<compile_context>
chip_gen: v7x
topology: tpu7x:2x2x1
jax: 0.10.0
libtpu: 0.0.40
codegen_flags: <defaults>
</compile_context>

<pallas_src>
import jax
import jax.numpy as jnp
from jax.experimental import pallas as pl
from jax.experimental.pallas import tpu as pltpu

Nc = 32
Nt = 32
BATCH = 16              # the PyTorch module hard-codes batch_size=16 in its reshape
ENCODED_DIM = 32
CIN = 2
COUT = 2
KH = KW = 3
BN_EPS = 1e-5
LRELU_SLOPE = 0.3

PW = Nt + 2             # 34: padded row stride on the lane axis
XOFF = 64               # lane offset of image row 0 inside the input buffer
ACCW = 1152             # 9*128: accumulator lane width (valid outputs live in lanes 0..1085)
XW = 1280               # 10*128: input buffer width = 64 zeros | 1088 image | 128 zeros


def encoder_kernel(wconv_ref, gamma_ref, beta_ref, x_ref, mask_ref, wfc_ref, bfc_ref, out_ref):
    """Fused Encoder forward.

    wconv_ref : (COUT*CIN*KH*KW,) f32 SMEM  flattened conv weight, OIHW order
    gamma_ref : (COUT,)           f32 SMEM  BN weight
    beta_ref  : (COUT,)           f32 SMEM  BN bias
    x_ref     : (CIN, B, XW)      f32 VMEM  lane-dense padded-flat input
    mask_ref  : (1, ACCW)         f32 VMEM  1.0 at valid output lanes (h*34 + w, h,w < 32)
    wfc_ref   : (COUT, ACCW, 32)  f32 VMEM  FC weight zero-expanded to the conv lane layout
    bfc_ref   : (1, 32)           f32 VMEM
    out_ref   : (B, 32)           f32 VMEM
    """
    inv_n = 1.0 / float(BATCH * Nc * Nt)
    mask = mask_ref[...]                                       # (1, ACCW)

    out_acc = None
    for co in range(COUT):
        # ---- 3x3 conv: 36 constant lane-shift taps (VPU mul/add, XLU lane shifts) ----
        acc = None
        for ci in range(CIN):
            xb = x_ref[ci]                                     # (B, XW), lane-dense
            for dy in range(KH):
                for dx in range(KW):
                    w = wconv_ref[((co * CIN + ci) * KH + dy) * KW + dx]
                    lo = XOFF + (dy - 1) * PW + (dx - 1)       # static lane shift
                    win = xb[:, lo:lo + ACCW]                  # (B, ACCW)
                    term = w * win
                    acc = term if acc is None else acc + term
        # NOTE: conv bias intentionally omitted: train-mode BN subtracts the per-channel
        # mean, so a constant per-channel offset cancels exactly (numerically identical).
        # TODO(synk): re-add the conv bias if an eval-mode (running-stats) BN path is added.

        # ---- BatchNorm2d (train-mode) stats over valid lanes only, one masked pass ----
        am = acc * mask                                        # junk lanes -> 0
        mean = jnp.sum(am) * inv_n
        var = jnp.sum(am * acc) * inv_n - mean * mean          # biased variance
        scale = gamma_ref[co] * jax.lax.rsqrt(var + BN_EPS)
        shift = beta_ref[co] - mean * scale

        # ---- normalize + LeakyReLU(0.3) on the whole channel at once ----
        y = acc * scale + shift
        y = jnp.where(y > 0, y, LRELU_SLOPE * y)

        # ---- FC contribution of this channel on the MXU (junk lanes hit zero weights) ----
        contrib = jnp.dot(y, wfc_ref[co], preferred_element_type=jnp.float32)   # (B, 32)
        out_acc = contrib if out_acc is None else out_acc + contrib

    out_ref[...] = out_acc + bfc_ref[...]


def _valid_mask():
    lane = jnp.arange(ACCW)
    m = ((lane // PW) < Nc) & ((lane % PW) < Nt)
    return m.astype(jnp.float32).reshape(1, ACCW)


def pack_params(params):
    """One-time re-layout of PyTorch-style parameters into the kernel layout."""
    w_conv, b_conv, gamma, beta, w_fc_t, b_fc = params
    del b_conv  # canceled exactly by train-mode BN inside the kernel
    # Zero-expand FC weight rows from dense flatten order (co*1024 + h*32 + w) to the
    # conv lane layout (lane = h*34 + w), per output channel.
    row_idx = (jnp.arange(Nc)[:, None] * PW + jnp.arange(Nt)[None, :]).reshape(-1)   # (1024,)
    w_fc_exp = jnp.zeros((COUT, ACCW, ENCODED_DIM), jnp.float32)
    w_fc_exp = w_fc_exp.at[:, row_idx, :].set(w_fc_t.reshape(COUT, Nc * Nt, ENCODED_DIM))
    return (w_conv.reshape(-1), gamma, beta, w_fc_exp, b_fc.reshape(1, -1), _valid_mask())


@jax.jit
def encoder_forward(x, kernel_params):
    w_conv_flat, gamma, beta, w_fc_exp, b_fc_2d, valid_mask = kernel_params
    # Lane-dense padded-flat input: (CIN, B, XW) with image rows at stride PW starting at
    # lane XOFF; all other lanes are zero (this supplies the 3x3 'SAME' zero padding).
    xp = jnp.pad(x, ((0, 0), (0, 0), (0, 0), (0, PW - Nt)))                 # (B,CIN,32,34)
    xp = jnp.transpose(xp, (1, 0, 2, 3)).reshape(CIN, BATCH, Nc * PW)       # (CIN,B,1088)
    xp = jnp.pad(xp, ((0, 0), (0, 0), (XOFF, XW - XOFF - Nc * PW)))         # (CIN,B,1280)
    return pl.pallas_call(
        encoder_kernel,
        out_shape=jax.ShapeDtypeStruct((BATCH, ENCODED_DIM), jnp.float32),
        in_specs=[
            pl.BlockSpec(memory_space=pltpu.MemorySpace.SMEM),   # conv weight (36,)
            pl.BlockSpec(memory_space=pltpu.MemorySpace.SMEM),   # BN gamma (2,)
            pl.BlockSpec(memory_space=pltpu.MemorySpace.SMEM),   # BN beta (2,)
            pl.BlockSpec(memory_space=pltpu.MemorySpace.VMEM),   # input (CIN, B, XW)
            pl.BlockSpec(memory_space=pltpu.MemorySpace.VMEM),   # valid mask (1, ACCW)
            pl.BlockSpec(memory_space=pltpu.MemorySpace.VMEM),   # FC weight (COUT, ACCW, 32)
            pl.BlockSpec(memory_space=pltpu.MemorySpace.VMEM),   # FC bias (1, 32)
        ],
        out_specs=pl.BlockSpec(memory_space=pltpu.MemorySpace.VMEM),
    )(w_conv_flat, gamma, beta, xp, valid_mask, w_fc_exp, b_fc_2d)


def encoder_reference(x, params):
    """Pure-JAX reference matching the PyTorch forward (train-mode BN, with conv bias)."""
    w_conv, b_conv, gamma, beta, w_fc_t, b_fc = params
    conv = jax.lax.conv_general_dilated(
        x, w_conv, window_strides=(1, 1), padding="SAME",
        dimension_numbers=("NCHW", "OIHW", "NCHW"),
    ) + b_conv.reshape(1, -1, 1, 1)
    mean = conv.mean(axis=(0, 2, 3), keepdims=True)
    var = conv.var(axis=(0, 2, 3), keepdims=True)       # biased, like BN train mode
    y = (conv - mean) / jnp.sqrt(var + BN_EPS) * gamma.reshape(1, -1, 1, 1) \
        + beta.reshape(1, -1, 1, 1)
    y = jnp.where(y > 0, y, LRELU_SLOPE * y)
    return y.reshape(BATCH, -1) @ w_fc_t + b_fc


def init_params(key):
    k1, k2, k3, k4, k5, k6 = jax.random.split(key, 6)
    fan_conv = CIN * KH * KW
    kc = 1.0 / jnp.sqrt(float(fan_conv))
    w_conv = jax.random.uniform(k1, (COUT, CIN, KH, KW), jnp.float32, -kc, kc)
    b_conv = jax.random.uniform(k2, (COUT,), jnp.float32, -kc, kc)
    gamma = 1.0 + 0.1 * jax.random.normal(k3, (COUT,), jnp.float32)
    beta = 0.1 * jax.random.normal(k4, (COUT,), jnp.float32)
    fan_fc = COUT * Nc * Nt
    kf = 1.0 / jnp.sqrt(float(fan_fc))
    # FC weight stored pre-transposed (in_features, out_features) = Linear.weight.T.
    w_fc_t = jax.random.uniform(k5, (fan_fc, ENCODED_DIM), jnp.float32, -kf, kf)
    b_fc = jax.random.uniform(k6, (ENCODED_DIM,), jnp.float32, -kf, kf)
    return (w_conv, b_conv, gamma, beta, w_fc_t, b_fc)


if __name__ == "__main__":
    key = jax.random.PRNGKey(0)
    pkey, xkey = jax.random.split(key)
    params = init_params(pkey)
    kparams = pack_params(params)
    x = jax.random.normal(xkey, (BATCH, CIN, Nc, Nt), jnp.float32)

    out = jax.block_until_ready(encoder_forward(x, kparams))
    ref = jax.block_until_ready(encoder_reference(x, params))

    assert out.shape == (BATCH, ENCODED_DIM), out.shape
    assert jnp.allclose(out, ref, atol=2e-2, rtol=2e-2), \
        f"max abs err {jnp.max(jnp.abs(out - ref))}"
    print("KERNEL_OK")
</pallas_src>

<mosaic_0001>
module attributes {stable_mosaic.version = 11 : i64} {
  func.func @encoder_kernel(%arg0: memref<36xf32, #tpu.memory_space<smem>>, %arg1: memref<2xf32, #tpu.memory_space<smem>>, %arg2: memref<2xf32, #tpu.memory_space<smem>>, %arg3: memref<2x16x1280xf32, #tpu.memory_space<vmem>>, %arg4: memref<1x1152xf32, #tpu.memory_space<vmem>>, %arg5: memref<2x1152x32xf32, #tpu.memory_space<vmem>>, %arg6: memref<1x32xf32, #tpu.memory_space<vmem>>, %arg7: memref<16x32xf32, #tpu.memory_space<vmem>>) attributes {dimension_semantics = [], scalar_prefetch = 0 : i64, scratch_operands = 0 : i64, tpu.core_type = #tpu.core_type<tc>} {
    %c0 = arith.constant 0 : index
    %c0_0 = arith.constant 0 : index
    %0 = vector.load %arg4[%c0, %c0_0] : memref<1x1152xf32, #tpu.memory_space<vmem>>, vector<1x1152xf32>
    %c0_1 = arith.constant 0 : index
    %c0_2 = arith.constant 0 : index
    %c0_3 = arith.constant 0 : index
    %1 = vector.load %arg3[%c0_1, %c0_2, %c0_3] : memref<2x16x1280xf32, #tpu.memory_space<vmem>>, vector<1x16x1280xf32>
    %2 = vector.shape_cast %1 : vector<1x16x1280xf32> to vector<16x1280xf32>
    %c0_4 = arith.constant 0 : index
    %3 = memref.load %arg0[%c0_4] : memref<36xf32, #tpu.memory_space<smem>>
    %4 = vector.extract_strided_slice %2 {offsets = [0, 29], sizes = [16, 1152], strides = [1, 1]} : vector<16x1280xf32> to vector<16x1152xf32>
    %5 = vector.broadcast %3 : f32 to vector<16x1152xf32>
    %6 = arith.mulf %5, %4 : vector<16x1152xf32>
    %c1 = arith.constant 1 : index
    %7 = memref.load %arg0[%c1] : memref<36xf32, #tpu.memory_space<smem>>
    %8 = vector.extract_strided_slice %2 {offsets = [0, 30], sizes = [16, 1152], strides = [1, 1]} : vector<16x1280xf32> to vector<16x1152xf32>
    %9 = vector.broadcast %7 : f32 to vector<16x1152xf32>
    %10 = arith.mulf %9, %8 : vector<16x1152xf32>
    %11 = arith.addf %6, %10 : vector<16x1152xf32>
    %c2 = arith.constant 2 : index
    %12 = memref.load %arg0[%c2] : memref<36xf32, #tpu.memory_space<smem>>
    %13 = vector.extract_strided_slice %2 {offsets = [0, 31], sizes = [16, 1152], strides = [1, 1]} : vector<16x1280xf32> to vector<16x1152xf32>
    %14 = vector.broadcast %12 : f32 to vector<16x1152xf32>
    %15 = arith.mulf %14, %13 : vector<16x1152xf32>
    %16 = arith.addf %11, %15 : vector<16x1152xf32>
    %c3 = arith.constant 3 : index
    %17 = memref.load %arg0[%c3] : memref<36xf32, #tpu.memory_space<smem>>
    %18 = vector.extract_strided_slice %2 {offsets = [0, 63], sizes = [16, 1152], strides = [1, 1]} : vector<16x1280xf32> to vector<16x1152xf32>
    %19 = vector.broadcast %17 : f32 to vector<16x1152xf32>
    %20 = arith.mulf %19, %18 : vector<16x1152xf32>
    %21 = arith.addf %16, %20 : vector<16x1152xf32>
    %c4 = arith.constant 4 : index
    %22 = memref.load %arg0[%c4] : memref<36xf32, #tpu.memory_space<smem>>
    %23 = vector.extract_strided_slice %2 {offsets = [0, 64], sizes = [16, 1152], strides = [1, 1]} : vector<16x1280xf32> to vector<16x1152xf32>
    %24 = vector.broadcast %22 : f32 to vector<16x1152xf32>
    %25 = arith.mulf %24, %23 : vector<16x1152xf32>
    %26 = arith.addf %21, %25 : vector<16x1152xf32>
    %c5 = arith.constant 5 : index
    %27 = memref.load %arg0[%c5] : memref<36xf32, #tpu.memory_space<smem>>
    %28 = vector.extract_strided_slice %2 {offsets = [0, 65], sizes = [16, 1152], strides = [1, 1]} : vector<16x1280xf32> to vector<16x1152xf32>
    %29 = vector.broadcast %27 : f32 to vector<16x1152xf32>
    %30 = arith.mulf %29, %28 : vector<16x1152xf32>
    %31 = arith.addf %26, %30 : vector<16x1152xf32>
    %c6 = arith.constant 6 : index
    %32 = memref.load %arg0[%c6] : memref<36xf32, #tpu.memory_space<smem>>
    %33 = vector.extract_strided_slice %2 {offsets = [0, 97], sizes = [16, 1152], strides = [1, 1]} : vector<16x1280xf32> to vector<16x1152xf32>
    %34 = vector.broadcast %32 : f32 to vector<16x1152xf32>
    %35 = arith.mulf %34, %33 : vector<16x1152xf32>
    %36 = arith.addf %31, %35 : vector<16x1152xf32>
    %c7 = arith.constant 7 : index
    %37 = memref.load %arg0[%c7] : memref<36xf32, #tpu.memory_space<smem>>
    %38 = vector.extract_strided_slice %2 {offsets = [0, 98], sizes = [16, 1152], strides = [1, 1]} : vector<16x1280xf32> to vector<16x1152xf32>
    %39 = vector.broadcast %37 : f32 to vector<16x1152xf32>
    %40 = arith.mulf %39, %38 : vector<16x1152xf32>
    %41 = arith.addf %36, %40 : vector<16x1152xf32>
    %c8 = arith.constant 8 : index
    %42 = memref.load %arg0[%c8] : memref<36xf32, #tpu.memory_space<smem>>
    %43 = vector.extract_strided_slice %2 {offsets = [0, 99], sizes = [16, 1152], strides = [1, 1]} : vector<16x1280xf32> to vector<16x1152xf32>
    %44 = vector.broadcast %42 : f32 to vector<16x1152xf32>
    %45 = arith.mulf %44, %43 : vector<16x1152xf32>
    %46 = arith.addf %41, %45 : vector<16x1152xf32>
    %c1_5 = arith.constant 1 : index
    %c0_6 = arith.constant 0 : index
    %c0_7 = arith.constant 0 : index
    %47 = vector.load %arg3[%c1_5, %c0_6, %c0_7] : memref<2x16x1280xf32, #tpu.memory_space<vmem>>, vector<1x16x1280xf32>
    %48 = vector.shape_cast %47 : vector<1x16x1280xf32> to vector<16x1280xf32>
    %c9 = arith.constant 9 : index
    %49 = memref.load %arg0[%c9] : memref<36xf32, #tpu.memory_space<smem>>
    %50 = vector.extract_strided_slice %48 {offsets = [0, 29], sizes = [16, 1152], strides = [1, 1]} : vector<16x1280xf32> to vector<16x1152xf32>
    %51 = vector.broadcast %49 : f32 to vector<16x1152xf32>
    %52 = arith.mulf %51, %50 : vector<16x1152xf32>
    %53 = arith.addf %46, %52 : vector<16x1152xf32>
    %c10 = arith.constant 10 : index
    %54 = memref.load %arg0[%c10] : memref<36xf32, #tpu.memory_space<smem>>
    %55 = vector.extract_strided_slice %48 {offsets = [0, 30], sizes = [16, 1152], strides = [1, 1]} : vector<16x1280xf32> to vector<16x1152xf32>
    %56 = vector.broadcast %54 : f32 to vector<16x1152xf32>
    %57 = arith.mulf %56, %55 : vector<16x1152xf32>
    %58 = arith.addf %53, %57 : vector<16x1152xf32>
    %c11 = arith.constant 11 : index
    %59 = memref.load %arg0[%c11] : memref<36xf32, #tpu.memory_space<smem>>
    %60 = vector.extract_strided_slice %48 {offsets = [0, 31], sizes = [16, 1152], strides = [1, 1]} : vector<16x1280xf32> to vector<16x1152xf32>
    %61 = vector.broadcast %59 : f32 to vector<16x1152xf32>
    %62 = arith.mulf %61, %60 : vector<16x1152xf32>
    %63 = arith.addf %58, %62 : vector<16x1152xf32>
    %c12 = arith.constant 12 : index
    %64 = memref.load %arg0[%c12] : memref<36xf32, #tpu.memory_space<smem>>
    %65 = vector.extract_strided_slice %48 {offsets = [0, 63], sizes = [16, 1152], strides = [1, 1]} : vector<16x1280xf32> to vector<16x1152xf32>
    %66 = vector.broadcast %64 : f32 to vector<16x1152xf32>
    %67 = arith.mulf %66, %65 : vector<16x1152xf32>
    %68 = arith.addf %63, %67 : vector<16x1152xf32>
    %c13 = arith.constant 13 : index
    %69 = memref.load %arg0[%c13] : memref<36xf32, #tpu.memory_space<smem>>
    %70 = vector.extract_strided_slice %48 {offsets = [0, 64], sizes = [16, 1152], strides = [1, 1]} : vector<16x1280xf32> to vector<16x1152xf32>
    %71 = vector.broadcast %69 : f32 to vector<16x1152xf32>
    %72 = arith.mulf %71, %70 : vector<16x1152xf32>
    %73 = arith.addf %68, %72 : vector<16x1152xf32>
    %c14 = arith.constant 14 : index
    %74 = memref.load %arg0[%c14] : memref<36xf32, #tpu.memory_space<smem>>
    %75 = vector.extract_strided_slice %48 {offsets = [0, 65], sizes = [16, 1152], strides = [1, 1]} : vector<16x1280xf32> to vector<16x1152xf32>
    %76 = vector.broadcast %74 : f32 to vector<16x1152xf32>
    %77 = arith.mulf %76, %75 : vector<16x1152xf32>
    %78 = arith.addf %73, %77 : vector<16x1152xf32>
    %c15 = arith.constant 15 : index
    %79 = memref.load %arg0[%c15] : memref<36xf32, #tpu.memory_space<smem>>
    %80 = vector.extract_strided_slice %48 {offsets = [0, 97], sizes = [16, 1152], strides = [1, 1]} : vector<16x1280xf32> to vector<16x1152xf32>
    %81 = vector.broadcast %79 : f32 to vector<16x1152xf32>
    %82 = arith.mulf %81, %80 : vector<16x1152xf32>
    %83 = arith.addf %78, %82 : vector<16x1152xf32>
    %c16 = arith.constant 16 : index
    %84 = memref.load %arg0[%c16] : memref<36xf32, #tpu.memory_space<smem>>
    %85 = vector.extract_strided_slice %48 {offsets = [0, 98], sizes = [16, 1152], strides = [1, 1]} : vector<16x1280xf32> to vector<16x1152xf32>
    %86 = vector.broadcast %84 : f32 to vector<16x1152xf32>
    %87 = arith.mulf %86, %85 : vector<16x1152xf32>
    %88 = arith.addf %83, %87 : vector<16x1152xf32>
    %c17 = arith.constant 17 : index
    %89 = memref.load %arg0[%c17] : memref<36xf32, #tpu.memory_space<smem>>
    %90 = vector.extract_strided_slice %48 {offsets = [0, 99], sizes = [16, 1152], strides = [1, 1]} : vector<16x1280xf32> to vector<16x1152xf32>
    %91 = vector.broadcast %89 : f32 to vector<16x1152xf32>
    %92 = arith.mulf %91, %90 : vector<16x1152xf32>
    %93 = arith.addf %88, %92 : vector<16x1152xf32>
    %94 = vector.broadcast %0 : vector<1x1152xf32> to vector<16x1152xf32>
    %95 = arith.mulf %93, %94 : vector<16x1152xf32>
    %96 = vector.shape_cast %95 : vector<16x1152xf32> to vector<1x16x1152xf32>
    %cst = arith.constant dense<0.000000e+00> : vector<1xf32>
    %97 = vector.multi_reduction <add>, %96, %cst [1, 2] : vector<1x16x1152xf32> to vector<1xf32>
    %98 = vector.shape_cast %97 : vector<1xf32> to vector<1x1x1xf32>
    %99 = vector.extract %98[0, 0, 0] : f32 from vector<1x1x1xf32>
    %cst_8 = arith.constant 6.10351563E-5 : f32
    %100 = arith.mulf %99, %cst_8 : f32
    %101 = arith.mulf %95, %93 : vector<16x1152xf32>
    %102 = vector.shape_cast %101 : vector<16x1152xf32> to vector<1x16x1152xf32>
    %cst_9 = arith.constant dense<0.000000e+00> : vector<1xf32>
    %103 = vector.multi_reduction <add>, %102, %cst_9 [1, 2] : vector<1x16x1152xf32> to vector<1xf32>
    %104 = vector.shape_cast %103 : vector<1xf32> to vector<1x1x1xf32>
    %105 = vector.extract %104[0, 0, 0] : f32 from vector<1x1x1xf32>
    %cst_10 = arith.constant 6.10351563E-5 : f32
    %106 = arith.mulf %105, %cst_10 : f32
    %107 = arith.mulf %100, %100 : f32
    %108 = arith.subf %106, %107 : f32
    %c0_11 = arith.constant 0 : index
    %109 = memref.load %arg1[%c0_11] : memref<2xf32, #tpu.memory_space<smem>>
    %cst_12 = arith.constant 9.99999974E-6 : f32
    %110 = arith.addf %108, %cst_12 : f32
    %111 = math.rsqrt %110 : f32
    %112 = arith.mulf %109, %111 : f32
    %c0_13 = arith.constant 0 : index
    %113 = memref.load %arg2[%c0_13] : memref<2xf32, #tpu.memory_space<smem>>
    %114 = arith.mulf %100, %112 : f32
    %115 = arith.subf %113, %114 : f32
    %116 = vector.broadcast %112 : f32 to vector<16x1152xf32>
    %117 = arith.mulf %93, %116 : vector<16x1152xf32>
    %118 = vector.broadcast %115 : f32 to vector<16x1152xf32>
    %119 = arith.addf %117, %118 : vector<16x1152xf32>
    %cst_14 = arith.constant 0.000000e+00 : f32
    %120 = vector.broadcast %cst_14 : f32 to vector<16x1152xf32>
    %121 = arith.cmpf ogt, %119, %120 : vector<16x1152xf32>
    %cst_15 = arith.constant 3.000000e-01 : f32
    %122 = vector.broadcast %cst_15 : f32 to vector<16x1152xf32>
    %123 = arith.mulf %122, %119 : vector<16x1152xf32>
    %124 = arith.select %121, %119, %123 : vector<16x1152xi1>, vector<16x1152xf32>
    %c0_16 = arith.constant 0 : index
    %c0_17 = arith.constant 0 : index
    %c0_18 = arith.constant 0 : index
    %125 = vector.load %arg5[%c0_16, %c0_17, %c0_18] : memref<2x1152x32xf32, #tpu.memory_space<vmem>>, vector<1x1152x32xf32>
    %126 = vector.shape_cast %125 : vector<1x1152x32xf32> to vector<1152x32xf32>
    %cst_19 = arith.constant dense<0.000000e+00> : vector<16x32xf32>
    %127 = tpu.matmul %124, %126, %cst_19 {dimension_numbers = #tpu.dot_dimension_numbers<[1], [0], [0], [1], [0, 0, 1, 1], [], []>} : vector<16x1152xf32>, vector<1152x32xf32>, vector<16x32xf32> -> vector<16x32xf32>
    %c0_20 = arith.constant 0 : index
    %c0_21 = arith.constant 0 : index
    %c0_22 = arith.constant 0 : index
    %128 = vector.load %arg3[%c0_20, %c0_21, %c0_22] : memref<2x16x1280xf32, #tpu.memory_space<vmem>>, vector<1x16x1280xf32>
    %129 = vector.shape_cast %128 : vector<1x16x1280xf32> to vector<16x1280xf32>
    %c18 = arith.constant 18 : index
    %130 = memref.load %arg0[%c18] : memref<36xf32, #tpu.memory_space<smem>>
    %131 = vector.extract_strided_slice %129 {offsets = [0, 29], sizes = [16, 1152], strides = [1, 1]} : vector<16x1280xf32> to vector<16x1152xf32>
    %132 = vector.broadcast %130 : f32 to vector<16x1152xf32>
    %133 = arith.mulf %132, %131 : vector<16x1152xf32>
    %c19 = arith.constant 19 : index
    %134 = memref.load %arg0[%c19] : memref<36xf32, #tpu.memory_space<smem>>
    %135 = vector.extract_strided_slice %129 {offsets = [0, 30], sizes = [16, 1152], strides = [1, 1]} : vector<16x1280xf32> to vector<16x1152xf32>
    %136 = vector.broadcast %134 : f32 to vector<16x1152xf32>
    %137 = arith.mulf %136, %135 : vector<16x1152xf32>
    %138 = arith.addf %133, %137 : vector<16x1152xf32>
    %c20 = arith.constant 20 : index
    %139 = memref.load %arg0[%c20] : memref<36xf32, #tpu.memory_space<smem>>
    %140 = vector.extract_strided_slice %129 {offsets = [0, 31], sizes = [16, 1152], strides = [1, 1]} : vector<16x1280xf32> to vector<16x1152xf32>
    %141 = vector.broadcast %139 : f32 to vector<16x1152xf32>
    %142 = arith.mulf %141, %140 : vector<16x1152xf32>
    %143 = arith.addf %138, %142 : vector<16x1152xf32>
    %c21 = arith.constant 21 : index
    %144 = memref.load %arg0[%c21] : memref<36xf32, #tpu.memory_space<smem>>
    %145 = vector.extract_strided_slice %129 {offsets = [0, 63], sizes = [16, 1152], strides = [1, 1]} : vector<16x1280xf32> to vector<16x1152xf32>
    %146 = vector.broadcast %144 : f32 to vector<16x1152xf32>
    %147 = arith.mulf %146, %145 : vector<16x1152xf32>
    %148 = arith.addf %143, %147 : vector<16x1152xf32>
    %c22 = arith.constant 22 : index
    %149 = memref.load %arg0[%c22] : memref<36xf32, #tpu.memory_space<smem>>
    %150 = vector.extract_strided_slice %129 {offsets = [0, 64], sizes = [16, 1152], strides = [1, 1]} : vector<16x1280xf32> to vector<16x1152xf32>
    %151 = vector.broadcast %149 : f32 to vector<16x1152xf32>
    %152 = arith.mulf %151, %150 : vector<16x1152xf32>
    %153 = arith.addf %148, %152 : vector<16x1152xf32>
    %c23 = arith.constant 23 : index
    %154 = memref.load %arg0[%c23] : memref<36xf32, #tpu.memory_space<smem>>
    %155 = vector.extract_strided_slice %129 {offsets = [0, 65], sizes = [16, 1152], strides = [1, 1]} : vector<16x1280xf32> to vector<16x1152xf32>
    %156 = vector.broadcast %154 : f32 to vector<16x1152xf32>
    %157 = arith.mulf %156, %155 : vector<16x1152xf32>
    %158 = arith.addf %153, %157 : vector<16x1152xf32>
    %c24 = arith.constant 24 : index
    %159 = memref.load %arg0[%c24] : memref<36xf32, #tpu.memory_space<smem>>
    %160 = vector.extract_strided_slice %129 {offsets = [0, 97], sizes = [16, 1152], strides = [1, 1]} : vector<16x1280xf32> to vector<16x1152xf32>
    %161 = vector.broadcast %159 : f32 to vector<16x1152xf32>
    %162 = arith.mulf %161, %160 : vector<16x1152xf32>
    %163 = arith.addf %158, %162 : vector<16x1152xf32>
    %c25 = arith.constant 25 : index
    %164 = memref.load %arg0[%c25] : memref<36xf32, #tpu.memory_space<smem>>
    %165 = vector.extract_strided_slice %129 {offsets = [0, 98], sizes = [16, 1152], strides = [1, 1]} : vector<16x1280xf32> to vector<16x1152xf32>
    %166 = vector.broadcast %164 : f32 to vector<16x1152xf32>
    %167 = arith.mulf %166, %165 : vector<16x1152xf32>
    %168 = arith.addf %163, %167 : vector<16x1152xf32>
    %c26 = arith.constant 26 : index
    %169 = memref.load %arg0[%c26] : memref<36xf32, #tpu.memory_space<smem>>
    %170 = vector.extract_strided_slice %129 {offsets = [0, 99], sizes = [16, 1152], strides = [1, 1]} : vector<16x1280xf32> to vector<16x1152xf32>
    %171 = vector.broadcast %169 : f32 to vector<16x1152xf32>
    %172 = arith.mulf %171, %170 : vector<16x1152xf32>
    %173 = arith.addf %168, %172 : vector<16x1152xf32>
    %c1_23 = arith.constant 1 : index
    %c0_24 = arith.constant 0 : index
    %c0_25 = arith.constant 0 : index
    %174 = vector.load %arg3[%c1_23, %c0_24, %c0_25] : memref<2x16x1280xf32, #tpu.memory_space<vmem>>, vector<1x16x1280xf32>
    %175 = vector.shape_cast %174 : vector<1x16x1280xf32> to vector<16x1280xf32>
    %c27 = arith.constant 27 : index
    %176 = memref.load %arg0[%c27] : memref<36xf32, #tpu.memory_space<smem>>
    %177 = vector.extract_strided_slice %175 {offsets = [0, 29], sizes = [16, 1152], strides = [1, 1]} : vector<16x1280xf32> to vector<16x1152xf32>
    %178 = vector.broadcast %176 : f32 to vector<16x1152xf32>
    %179 = arith.mulf %178, %177 : vector<16x1152xf32>
    %180 = arith.addf %173, %179 : vector<16x1152xf32>
    %c28 = arith.constant 28 : index
    %181 = memref.load %arg0[%c28] : memref<36xf32, #tpu.memory_space<smem>>
    %182 = vector.extract_strided_slice %175 {offsets = [0, 30], sizes = [16, 1152], strides = [1, 1]} : vector<16x1280xf32> to vector<16x1152xf32>
    %183 = vector.broadcast %181 : f32 to vector<16x1152xf32>
    %184 = arith.mulf %183, %182 : vector<16x1152xf32>
    %185 = arith.addf %180, %184 : vector<16x1152xf32>
    %c29 = arith.constant 29 : index
    %186 = memref.load %arg0[%c29] : memref<36xf32, #tpu.memory_space<smem>>
    %187 = vector.extract_strided_slice %175 {offsets = [0, 31], sizes = [16, 1152], strides = [1, 1]} : vector<16x1280xf32> to vector<16x1152xf32>
    %188 = vector.broadcast %186 : f32 to vector<16x1152xf32>
    %189 = arith.mulf %188, %187 : vector<16x1152xf32>
    %190 = arith.addf %185, %189 : vector<16x1152xf32>
    %c30 = arith.constant 30 : index
    %191 = memref.load %arg0[%c30] : memref<36xf32, #tpu.memory_space<smem>>
    %192 = vector.extract_strided_slice %175 {offsets = [0, 63], sizes = [16, 1152], strides = [1, 1]} : vector<16x1280xf32> to vector<16x1152xf32>
    %193 = vector.broadcast %191 : f32 to vector<16x1152xf32>
    %194 = arith.mulf %193, %192 : vector<16x1152xf32>
    %195 = arith.addf %190, %194 : vector<16x1152xf32>
    %c31 = arith.constant 31 : index
    %196 = memref.load %arg0[%c31] : memref<36xf32, #tpu.memory_space<smem>>
    %197 = vector.extract_strided_slice %175 {offsets = [0, 64], sizes = [16, 1152], strides = [1, 1]} : vector<16x1280xf32> to vector<16x1152xf32>
    %198 = vector.broadcast %196 : f32 to vector<16x1152xf32>
    %199 = arith.mulf %198, %197 : vector<16x1152xf32>
    %200 = arith.addf %195, %199 : vector<16x1152xf32>
    %c32 = arith.constant 32 : index
    %201 = memref.load %arg0[%c32] : memref<36xf32, #tpu.memory_space<smem>>
    %202 = vector.extract_strided_slice %175 {offsets = [0, 65], sizes = [16, 1152], strides = [1, 1]} : vector<16x1280xf32> to vector<16x1152xf32>
    %203 = vector.broadcast %201 : f32 to vector<16x1152xf32>
    %204 = arith.mulf %203, %202 : vector<16x1152xf32>
    %205 = arith.addf %200, %204 : vector<16x1152xf32>
    %c33 = arith.constant 33 : index
    %206 = memref.load %arg0[%c33] : memref<36xf32, #tpu.memory_space<smem>>
    %207 = vector.extract_strided_slice %175 {offsets = [0, 97], sizes = [16, 1152], strides = [1, 1]} : vector<16x1280xf32> to vector<16x1152xf32>
    %208 = vector.broadcast %206 : f32 to vector<16x1152xf32>
    %209 = arith.mulf %208, %207 : vector<16x1152xf32>
    %210 = arith.addf %205, %209 : vector<16x1152xf32>
    %c34 = arith.constant 34 : index
    %211 = memref.load %arg0[%c34] : memref<36xf32, #tpu.memory_space<smem>>
    %212 = vector.extract_strided_slice %175 {offsets = [0, 98], sizes = [16, 1152], strides = [1, 1]} : vector<16x1280xf32> to vector<16x1152xf32>
    %213 = vector.broadcast %211 : f32 to vector<16x1152xf32>
    %214 = arith.mulf %213, %212 : vector<16x1152xf32>
    %215 = arith.addf %210, %214 : vector<16x1152xf32>
    %c35 = arith.constant 35 : index
    %216 = memref.load %arg0[%c35] : memref<36xf32, #tpu.memory_space<smem>>
    %217 = vector.extract_strided_slice %175 {offsets = [0, 99], sizes = [16, 1152], strides = [1, 1]} : vector<16x1280xf32> to vector<16x1152xf32>
    %218 = vector.broadcast %216 : f32 to vector<16x1152xf32>
    %219 = arith.mulf %218, %217 : vector<16x1152xf32>
    %220 = arith.addf %215, %219 : vector<16x1152xf32>
    %221 = vector.broadcast %0 : vector<1x1152xf32> to vector<16x1152xf32>
    %222 = arith.mulf %220, %221 : vector<16x1152xf32>
    %223 = vector.shape_cast %222 : vector<16x1152xf32> to vector<1x16x1152xf32>
    %cst_26 = arith.constant dense<0.000000e+00> : vector<1xf32>
    %224 = vector.multi_reduction <add>, %223, %cst_26 [1, 2] : vector<1x16x1152xf32> to vector<1xf32>
    %225 = vector.shape_cast %224 : vector<1xf32> to vector<1x1x1xf32>
    %226 = vector.extract %225[0, 0, 0] : f32 from vector<1x1x1xf32>
    %cst_27 = arith.constant 6.10351563E-5 : f32
    %227 = arith.mulf %226, %cst_27 : f32
    %228 = arith.mulf %222, %220 : vector<16x1152xf32>
    %229 = vector.shape_cast %228 : vector<16x1152xf32> to vector<1x16x1152xf32>
    %cst_28 = arith.constant dense<0.000000e+00> : vector<1xf32>
    %230 = vector.multi_reduction <add>, %229, %cst_28 [1, 2] : vector<1x16x1152xf32> to vector<1xf32>
    %231 = vector.shape_cast %230 : vector<1xf32> to vector<1x1x1xf32>
    %232 = vector.extract %231[0, 0, 0] : f32 from vector<1x1x1xf32>
    %cst_29 = arith.constant 6.10351563E-5 : f32
    %233 = arith.mulf %232, %cst_29 : f32
    %234 = arith.mulf %227, %227 : f32
    %235 = arith.subf %233, %234 : f32
    %c1_30 = arith.constant 1 : index
    %236 = memref.load %arg1[%c1_30] : memref<2xf32, #tpu.memory_space<smem>>
    %cst_31 = arith.constant 9.99999974E-6 : f32
    %237 = arith.addf %235, %cst_31 : f32
    %238 = math.rsqrt %237 : f32
    %239 = arith.mulf %236, %238 : f32
    %c1_32 = arith.constant 1 : index
    %240 = memref.load %arg2[%c1_32] : memref<2xf32, #tpu.memory_space<smem>>
    %241 = arith.mulf %227, %239 : f32
    %242 = arith.subf %240, %241 : f32
    %243 = vector.broadcast %239 : f32 to vector<16x1152xf32>
    %244 = arith.mulf %220, %243 : vector<16x1152xf32>
    %245 = vector.broadcast %242 : f32 to vector<16x1152xf32>
    %246 = arith.addf %244, %245 : vector<16x1152xf32>
    %cst_33 = arith.constant 0.000000e+00 : f32
    %247 = vector.broadcast %cst_33 : f32 to vector<16x1152xf32>
    %248 = arith.cmpf ogt, %246, %247 : vector<16x1152xf32>
    %cst_34 = arith.constant 3.000000e-01 : f32
    %249 = vector.broadcast %cst_34 : f32 to vector<16x1152xf32>
    %250 = arith.mulf %249, %246 : vector<16x1152xf32>
    %251 = arith.select %248, %246, %250 : vector<16x1152xi1>, vector<16x1152xf32>
    %c1_35 = arith.constant 1 : index
    %c0_36 = arith.constant 0 : index
    %c0_37 = arith.constant 0 : index
    %252 = vector.load %arg5[%c1_35, %c0_36, %c0_37] : memref<2x1152x32xf32, #tpu.memory_space<vmem>>, vector<1x1152x32xf32>
    %253 = vector.shape_cast %252 : vector<1x1152x32xf32> to vector<1152x32xf32>
    %cst_38 = arith.constant dense<0.000000e+00> : vector<16x32xf32>
    %254 = tpu.matmul %251, %253, %cst_38 {dimension_numbers = #tpu.dot_dimension_numbers<[1], [0], [0], [1], [0, 0, 1, 1], [], []>} : vector<16x1152xf32>, vector<1152x32xf32>, vector<16x32xf32> -> vector<16x32xf32>
    %255 = arith.addf %127, %254 : vector<16x32xf32>
    %c0_39 = arith.constant 0 : index
    %c0_40 = arith.constant 0 : index
    %256 = vector.load %arg6[%c0_39, %c0_40] : memref<1x32xf32, #tpu.memory_space<vmem>>, vector<1x32xf32>
    %257 = vector.broadcast %256 : vector<1x32xf32> to vector<16x32xf32>
    %258 = arith.addf %255, %257 : vector<16x32xf32>
    %c0_41 = arith.constant 0 : index
    %c0_42 = arith.constant 0 : index
    %259 = vector.load %arg7[%c0_41, %c0_42] : memref<16x32xf32, #tpu.memory_space<vmem>>, vector<16x32xf32>
    tpu.vector_store %arg7[%c0_41, %c0_42], %258 {strides = array<i32>} : memref<16x32xf32, #tpu.memory_space<vmem>>, vector<16x32xf32>,
    return
  }
}

</mosaic_0001>

<bundles_post_ra>
// kernel: encoder_forward.1
= control target key start
LH: loop header
LB: loop body
LE: loop exit
PB: predicated region body
PF: predicated region fallthrough
CT: control target
= control target key end

     0   :  { %12 = vsyncpa [#allocation4], 0  ;;  %s15878_s0 = inlined_call_operand.vmem [shape: f32[36], index: 0, kind: input, shape index: {}]   ;;  %s15879_s1 = inlined_call_operand.vmem [shape: f32[2], index: 1, kind: input, shape index: {}]   ;;  %s15880_s2 = inlined_call_operand.vmem [shape: f32[2], index: 2, kind: input, shape index: {}]   ;;  %s15881_s3 = inlined_call_operand.vmem [shape: f32[2,16,1280], index: 3, kind: input, shape index: {}]   ;;  %s15882_s4 = inlined_call_operand.vmem [shape: f32[1,1152], index: 4, kind: input, shape index: {}]   ;;  %s15883_s5 = inlined_call_operand.vmem [shape: f32[2,1152,32], index: 5, kind: input, shape index: {}]   ;;  %s15884_s6 = inlined_call_operand.vmem [shape: f32[1,32], index: 6, kind: input, shape index: {}]   ;;  %s15885_s7 = inlined_call_operand.hbm [shape: f32[16,32], index: 7, kind: output, shape index: {}]  }
   0x1   :  { %13 = vsyncpa [#allocation6], 0  ;;  %s31_s26 = sshll.u32 %s15879_s1, 4  ;;  %s32_s26 = int_to_ptr.vmem [resolvable:$true] %s31_s26 }
   0x2   :  { %14 = vsyncpa [#allocation3], 0  ;;  %s21_s29 = sshll.u32 %s15878_s0, 4  ;;  %s8045_s30 = scalar_lea.vmem %s32_s26, 16  ;;  %s22_s29 = int_to_ptr.vmem [resolvable:$true] %s21_s29 }
   0x3   :  { %p8046_p0 = scmp.ne.s32.totalorder %s32_s26, %s8045_s30  ;;  %p8050_p1 = scmp.lt.s32.totalorder %s32_s26, %s32_s26 }
   0x4   :  { %p8051_p2 = scmp.lt.s32.totalorder %s8045_s30, %s8045_s30 }
   0x6   :  { %p8052_p3 = por %p8051_p2, %p8050_p1 }
   0x8   :  { %p8053_p4 = pnand %p8052_p3, %p8046_p0 }
   0xa   :  { %8056 = shalt.err (!%p8053_p4)
}
   0xb   :  { %s8109_s8 = smov [#allocation5]   ;;  %s8057_s9 = scalar_lea.vmem %s22_s29, 16 }
   0xc   :  { %34 = dma.vmem_to_smem %s32_s26, 16, %s8109_s8, [#allocation6]  }
   0xd   :  { %p8058_p5 = scmp.ne.s32.totalorder %s22_s29, %s8057_s9  ;;  %p8062_p6 = scmp.lt.s32.totalorder %s22_s29, %s22_s29 }
   0xe   :  { %p8063_p7 = scmp.lt.s32.totalorder %s8057_s9, %s8057_s9 }
  0x10   :  { %p8064_p8 = por %p8063_p7, %p8062_p6 }
  0x12   :  { %p8065_p9 = pnand %p8064_p8, %p8058_p5 }
  0x14   :  { %8068 = shalt.err (!%p8065_p9)
}
  0x15   :  { %s8110_s1 = smov [#allocation2]   ;;  %s41_s11 = sshll.u32 %s15880_s2, 4  ;;  %s42_s11 = int_to_ptr.vmem [resolvable:$true] %s41_s11 }
  0x16   :  { %24 = dma.vmem_to_smem %s22_s29, 16, %s8110_s1, [#allocation4]  }
  0x17   :  { %s8069_s12 = scalar_lea.vmem %s42_s11, 16  ;;  %p8074_p11 = scmp.lt.s32.totalorder %s42_s11, %s42_s11 }
  0x18   :  { %p8070_p10 = scmp.ne.s32.totalorder %s42_s11, %s8069_s12  ;;  %p8075_p12 = scmp.lt.s32.totalorder %s8069_s12, %s8069_s12 }
  0x1a   :  { %p8076_p13 = por %p8075_p12, %p8074_p11 }
  0x1c   :  { %p8077_p0 = pnand %p8076_p13, %p8070_p10 }
  0x1e   :  { %8080 = shalt.err (!%p8077_p0)
}
  0x1f   :  { %s8111_s13 = smov [#allocation7]  }
  0x20   :  { %44 = dma.vmem_to_smem %s42_s11, 16, %s8111_s13, [#allocation6]  }
  0x21   :  { %8103 = dma.done.wait [#allocation4], 16  }
  0x22   :  { %8104 = vsyncadd [#allocation4], 4294967280 }
  0x23   :  { %8105 = dma.done.wait [#allocation6], 32  }
  0x24   :  { %8106 = vsyncadd [#allocation6], 4294967264 }
  0x25   :  { %62 = sfence }
  0x26   :  { %s6857_s14 = sld [smem:[#allocation2 + $0x1]]  ;;  %v8177_v0 = vld [vmem:[%s15881_s3 + $0x10] sm:$0xff]  ;;  %v8182_v1 = vld [vmem:[%s15881_s3] sm:$0xff]  ;;  %v8187_v3 = vld [vmem:[%s15881_s3 + $0x18] sm:$0xff]  ;;  %s8112_s22 = smov 127   ;;  %vm189_vm0 = vcmask 1039360  }
  0x27   :  { %v8192_v4 = vld [vmem:[%s15881_s3 + $0x8] sm:$0xff]  ;;  %v8208_v10 = vld [vmem:[%s15881_s3 + $0x20] sm:$0xff]  ;;  %v8217_v13 = vld [vmem:[%s15881_s3 + $0x38] sm:$0xff]  ;;  %s6858_s26 = sld [smem:[#allocation2 + $0x2]]  ;;  %s8113_s8 = smov 126   ;;  %vm330_vm1 = vcmask 1031168  }
  0x28   :  { %v8203_v9 = vld [vmem:[%s15881_s3 + $0x28] sm:$0xff]  ;;  %v8222_v14 = vld [vmem:[%s15881_s3 + $0x30] sm:$0xff]  ;;  %v8236_v18 = vld [vmem:[%s15881_s3 + $0x40] sm:$0xff]  ;;  %s6859_s9 = sld [smem:[#allocation2 + $0x3]]  ;;  %s8114_s1 = smov 94   ;;  %vm471_vm2 = vcmask 769024  }
  0x29   :  { %v8231_v17 = vld [vmem:[%s15881_s3 + $0x48] sm:$0xff]  ;;  %v8245_v21 = vld [vmem:[%s15881_s3 + $0x58] sm:$0xff]  ;;  %v8250_v22 = vld [vmem:[%s15881_s3 + $0x50] sm:$0xff]  ;;  %s6860_s0 = sld [smem:[#allocation2 + $0x4]]  ;;  %s8115_s10 = smov 93   ;;  %vm612_vm3 = vcmask 760832  }
  0x2a   :  { %v8259_v25 = vld [vmem:[%s15881_s3 + $0x68] sm:$0xff]  ;;  %v8264_v26 = vld [vmem:[%s15881_s3 + $0x60] sm:$0xff]  ;;  %v8273_v29 = vld [vmem:[%s15881_s3 + $0x78] sm:$0xff]  ;;  %s6861_s11 = sld [smem:[#allocation2 + $0x5]]  ;;  %s8116_s12 = smov 92   ;;  %vm753_vm4 = vcmask 752640  }
  0x2b   :  { %v8278_v30 = vld [vmem:[%s15881_s3 + $0x70] sm:$0xff]  ;;  %v8287_v33 = vld [vmem:[%s15881_s3 + $0x88] sm:$0xff]  ;;  %v8292_v34 = vld [vmem:[%s15881_s3 + $0x80] sm:$0xff]  ;;  %s6862_s13 = sld [smem:[#allocation2 + $0x6]]  ;;  %s6863_s15 = sld [smem:[#allocation2 + $0x7]]  ;;  %vm894_vm5 = vcmask 490496  }
  0x2c   :  { %v108_v2 = vstv %s6857_s14  ;;  %v8301_v37 = vld [vmem:[%s15881_s3 + $0x98] sm:$0xff]  ;;  %v8306_v38 = vld [vmem:[%s15881_s3 + $0x90] sm:$0xff]  ;;  %s8117_s14 = smov 60   ;;  %s8118_s16 = smov 59   ;;  %vm1035_vm6 = vcmask 482304   ;;  %vm1176_vm7 = vcmask 474112  }
  0x2d   :  { %v111_v5 = vmul.f32 %v108_v2, %v8177_v0  ;;  %v109_v6 = vmul.f32 %v108_v2, %v8182_v1  ;;  %v112_v7 = vmul.f32 %v108_v2, %v8187_v3  ;;  %v110_v8 = vmul.f32 %v108_v2, %v8192_v4  ;;  %s6864_s2 = sld [smem:[#allocation2 + $0x8]]  ;;  %s8119_s17 = smov 58  }
  0x2e   :  { %v114_v11 = vmul.f32 %v108_v2, %v8203_v9  ;;  %v113_v12 = vmul.f32 %v108_v2, %v8208_v10  ;;  %v116_v15 = vmul.f32 %v108_v2, %v8217_v13  ;;  %v115_v16 = vmul.f32 %v108_v2, %v8222_v14  ;;  %s6886_s18 = sld [smem:[#allocation2 + $0xa]]  ;;  %s6887_s19 = sld [smem:[#allocation2 + $0xb]] }
  0x2f   :  { %153 = vrot.lane.b32.xlu1 %v111_v5, %s8112_s22  ;;  %149 = vrot.lane.b32.xlu0 %v109_v6, %s8112_s22  ;;  %v118_v19 = vmul.f32 %v108_v2, %v8231_v17  ;;  %v117_v20 = vmul.f32 %v108_v2, %v8236_v18  ;;  %v120_v23 = vmul.f32 %v108_v2, %v8245_v21  ;;  %v249_v41 = vstv %s6858_s26  ;;  %s6888_s25 = sld [smem:[#allocation2 + $0xc]]  ;;  %s6889_s26 = sld [smem:[#allocation2 + $0xd]] }
  0x30   :  { %v119_v24 = vmul.f32 %v108_v2, %v8250_v22  ;;  %v122_v27 = vmul.f32 %v108_v2, %v8259_v25  ;;  %v121_v28 = vmul.f32 %v108_v2, %v8264_v26  ;;  %v124_v31 = vmul.f32 %v108_v2, %v8273_v29  ;;  %s6890_s27 = sld [smem:[#allocation2 + $0xe]]  ;;  %s6891_s28 = sld [smem:[#allocation2 + $0xf]] }
  0x31   :  { %v123_v32 = vmul.f32 %v108_v2, %v8278_v30  ;;  %v126_v35 = vmul.f32 %v108_v2, %v8287_v33  ;;  %v125_v36 = vmul.f32 %v108_v2, %v8292_v34  ;;  %v128_v39 = vmul.f32 %v108_v2, %v8301_v37  ;;  %s6892_s29 = sld [smem:[#allocation2 + $0x10]]  ;;  %s6893_s30 = sld [smem:[#allocation2 + $0x11]] }
  0x32   :  { %v127_v40 = vmul.f32 %v108_v2, %v8306_v38  ;;  %v251_v42 = vmul.f32 %v249_v41, %v8192_v4  ;;  %v250_v43 = vmul.f32 %v249_v41, %v8182_v1  ;;  %v253_v44 = vmul.f32 %v249_v41, %v8187_v3  ;;  %s6899_s20 = sld [smem:[#allocation2 + $0x16]]  ;;  %s6900_s21 = sld [smem:[#allocation2 + $0x17]] }
  0x33   :  { %155 = vrot.lane.b32.xlu1 %v112_v7, %s8112_s22  ;;  %151 = vrot.lane.b32.xlu0 %v110_v8, %s8112_s22  ;;  %v252_v45 = vmul.f32 %v249_v41, %v8177_v0  ;;  %v255_v46 = vmul.f32 %v249_v41, %v8203_v9  ;;  %v254_v47 = vmul.f32 %v249_v41, %v8208_v10  ;;  %v390_v62 = vstv %s6859_s9  ;;  %s85_s9 = sld [smem:[#allocation2]]  ;;  %s6902_s24 = sld [smem:[#allocation2 + $0x19]] }
  0x34   :  { %v257_v48 = vmul.f32 %v249_v41, %v8217_v13  ;;  %v256_v49 = vmul.f32 %v249_v41, %v8222_v14  ;;  %v259_v50 = vmul.f32 %v249_v41, %v8231_v17  ;;  %v258_v51 = vmul.f32 %v249_v41, %v8236_v18  ;;  %s6901_s23 = sld [smem:[#allocation2 + $0x18]] }
  0x35   :  { %v261_v52 = vmul.f32 %v249_v41, %v8245_v21  ;;  %v260_v53 = vmul.f32 %v249_v41, %v8250_v22  ;;  %v263_v54 = vmul.f32 %v249_v41, %v8259_v25  ;;  %v262_v55 = vmul.f32 %v249_v41, %v8264_v26 }
  0x36   :  { %v265_v56 = vmul.f32 %v249_v41, %v8273_v29  ;;  %v264_v57 = vmul.f32 %v249_v41, %v8278_v30  ;;  %v267_v58 = vmul.f32 %v249_v41, %v8287_v33  ;;  %v266_v59 = vmul.f32 %v249_v41, %v8292_v34 }
  0x37   :  { %159 = vrot.lane.b32.xlu1 %v114_v11, %s8112_s22  ;;  %157 = vrot.lane.b32.xlu0 %v113_v12, %s8112_s22  ;;  %v269_v60 = vmul.f32 %v249_v41, %v8301_v37  ;;  %v268_v61 = vmul.f32 %v249_v41, %v8306_v38  ;;  %v392_v63 = vmul.f32 %v390_v62, %v8192_v4  ;;  %vm2474_vm8 = vcmask 236544  }
  0x38   :  { %v391_v2 = vmul.f32 %v390_v62, %v8182_v1  ;;  %v394_v5 = vmul.f32 %v390_v62, %v8187_v3  ;;  %v393_v6 = vmul.f32 %v390_v62, %v8177_v0  ;;  %v396_v7 = vmul.f32 %v390_v62, %v8203_v9 }
  0x39   :  { %v395_v8 = vmul.f32 %v390_v62, %v8208_v10  ;;  %v398_v11 = vmul.f32 %v390_v62, %v8217_v13  ;;  %v397_v12 = vmul.f32 %v390_v62, %v8222_v14  ;;  %vm2573_vm9 = vcmask 809984  }
  0x3b   :  { %163 = vrot.lane.b32.xlu1 %v116_v15, %s8112_s22  ;;  %161 = vrot.lane.b32.xlu0 %v115_v16, %s8112_s22  ;;  %v400_v15 = vmul.f32 %v390_v62, %v8231_v17  ;;  %v399_v16 = vmul.f32 %v390_v62, %v8236_v18 }
  0x3f   :  { %167 = vrot.lane.b32.xlu1 %v118_v19, %s8112_s22  ;;  %165 = vrot.lane.b32.xlu0 %v117_v20, %s8112_s22  ;;  %v402_v19 = vmul.f32 %v390_v62, %v8245_v21  ;;  %v401_v20 = vmul.f32 %v390_v62, %v8250_v22 }
  0x43   :  { %171 = vrot.lane.b32.xlu1 %v120_v23, %s8112_s22  ;;  %169 = vrot.lane.b32.xlu0 %v119_v24, %s8112_s22  ;;  %v404_v23 = vmul.f32 %v390_v62, %v8259_v25  ;;  %v403_v24 = vmul.f32 %v390_v62, %v8264_v26 }
  0x47   :  { %175 = vrot.lane.b32.xlu1 %v122_v27, %s8112_s22  ;;  %173 = vrot.lane.b32.xlu0 %v121_v28, %s8112_s22  ;;  %v406_v27 = vmul.f32 %v390_v62, %v8273_v29  ;;  %v405_v28 = vmul.f32 %v390_v62, %v8278_v30 }
  0x4b   :  { %179 = vrot.lane.b32.xlu1 %v124_v31, %s8112_s22  ;;  %177 = vrot.lane.b32.xlu0 %v123_v32, %s8112_s22  ;;  %v408_v31 = vmul.f32 %v390_v62, %v8287_v33  ;;  %v407_v32 = vmul.f32 %v390_v62, %v8292_v34 }
  0x4f   :  { %183 = vrot.lane.b32.xlu1 %v126_v35, %s8112_s22  ;;  %181 = vrot.lane.b32.xlu0 %v125_v36, %s8112_s22  ;;  %v410_v35 = vmul.f32 %v390_v62, %v8301_v37  ;;  %v409_v36 = vmul.f32 %v390_v62, %v8306_v38 }
  0x53   :  { %187 = vrot.lane.b32.xlu1 %v128_v39, %s8112_s22  ;;  %185 = vrot.lane.b32.xlu0 %v127_v40, %s8112_s22  ;;  %v531_v39 = vstv %s6860_s0  ;;  %s8120_s0 = smov 29  }
  0x54   :  { %v543_v62 = vmul.f32 %v531_v39, %v8245_v21 }
  0x57   :  { %292 = vrot.lane.b32.xlu1 %v251_v42, %s8113_s8  ;;  %290 = vrot.lane.b32.xlu0 %v250_v43, %s8113_s8  ;;  %v533_v42 = vmul.f32 %v531_v39, %v8192_v4  ;;  %v532_v43 = vmul.f32 %v531_v39, %v8182_v1 }
  0x5b   :  { %296 = vrot.lane.b32.xlu1 %v253_v44, %s8113_s8  ;;  %294 = vrot.lane.b32.xlu0 %v252_v45, %s8113_s8 }
  0x5f   :  { %300 = vrot.lane.b32.xlu1 %v255_v46, %s8113_s8  ;;  %298 = vrot.lane.b32.xlu0 %v254_v47, %s8113_s8  ;;  %v535_v46 = vmul.f32 %v531_v39, %v8187_v3  ;;  %v534_v47 = vmul.f32 %v531_v39, %v8177_v0 }
  0x63   :  { %304 = vrot.lane.b32.xlu1 %v257_v48, %s8113_s8  ;;  %302 = vrot.lane.b32.xlu0 %v256_v49, %s8113_s8 }
  0x67   :  { %308 = vrot.lane.b32.xlu1 %v259_v50, %s8113_s8  ;;  %306 = vrot.lane.b32.xlu0 %v258_v51, %s8113_s8  ;;  %v537_v50 = vmul.f32 %v531_v39, %v8203_v9  ;;  %v536_v51 = vmul.f32 %v531_v39, %v8208_v10 }
  0x6b   :  { %312 = vrot.lane.b32.xlu1 %v261_v52, %s8113_s8  ;;  %310 = vrot.lane.b32.xlu0 %v260_v53, %s8113_s8 }
  0x6f   :  { %316 = vrot.lane.b32.xlu1 %v263_v54, %s8113_s8  ;;  %314 = vrot.lane.b32.xlu0 %v262_v55, %s8113_s8  ;;  %v539_v54 = vmul.f32 %v531_v39, %v8217_v13  ;;  %v538_v55 = vmul.f32 %v531_v39, %v8222_v14 }
  0x73   :  { %320 = vrot.lane.b32.xlu1 %v265_v56, %s8113_s8  ;;  %318 = vrot.lane.b32.xlu0 %v264_v57, %s8113_s8 }
  0x77   :  { %324 = vrot.lane.b32.xlu1 %v267_v58, %s8113_s8  ;;  %322 = vrot.lane.b32.xlu0 %v266_v59, %s8113_s8  ;;  %v541_v58 = vmul.f32 %v531_v39, %v8231_v17  ;;  %v540_v59 = vmul.f32 %v531_v39, %v8236_v18 }
  0x7b   :  { %328 = vrot.lane.b32.xlu1 %v269_v60, %s8113_s8  ;;  %326 = vrot.lane.b32.xlu0 %v268_v61, %s8113_s8 }
  0x7f   :  { %433 = vrot.lane.b32.xlu1 %v392_v63, %s8114_s1  ;;  %431 = vrot.lane.b32.xlu0 %v391_v2, %s8114_s1  ;;  %v542_v63 = vmul.f32 %v531_v39, %v8250_v22 }
  0x83   :  { %437 = vrot.lane.b32.xlu1 %v394_v5, %s8114_s1  ;;  %435 = vrot.lane.b32.xlu0 %v393_v6, %s8114_s1  ;;  %v545_v6 = vmul.f32 %v531_v39, %v8259_v25 }
  0x87   :  { %441 = vrot.lane.b32.xlu1 %v396_v7, %s8114_s1  ;;  %439 = vrot.lane.b32.xlu0 %v395_v8, %s8114_s1  ;;  %v544_v7 = vmul.f32 %v531_v39, %v8264_v26 }
  0x8b   :  { %445 = vrot.lane.b32.xlu1 %v398_v11, %s8114_s1  ;;  %443 = vrot.lane.b32.xlu0 %v397_v12, %s8114_s1  ;;  %v547_v12 = vmul.f32 %v531_v39, %v8273_v29 }
  0x8f   :  { %449 = vrot.lane.b32.xlu1 %v400_v15, %s8114_s1  ;;  %447 = vrot.lane.b32.xlu0 %v399_v16, %s8114_s1  ;;  %v546_v15 = vmul.f32 %v531_v39, %v8278_v30 }
  0x93   :  { %453 = vrot.lane.b32.xlu1 %v402_v19, %s8114_s1  ;;  %451 = vrot.lane.b32.xlu0 %v401_v20, %s8114_s1  ;;  %v549_v20 = vmul.f32 %v531_v39, %v8287_v33 }
  0x97   :  { %457 = vrot.lane.b32.xlu1 %v404_v23, %s8114_s1  ;;  %455 = vrot.lane.b32.xlu0 %v403_v24, %s8114_s1  ;;  %v548_v23 = vmul.f32 %v531_v39, %v8292_v34 }
  0x9b   :  { %461 = vrot.lane.b32.xlu1 %v406_v27, %s8114_s1  ;;  %459 = vrot.lane.b32.xlu0 %v405_v28, %s8114_s1  ;;  %v551_v28 = vmul.f32 %v531_v39, %v8301_v37 }
  0x9f   :  { %465 = vrot.lane.b32.xlu1 %v408_v31, %s8114_s1  ;;  %463 = vrot.lane.b32.xlu0 %v407_v32, %s8114_s1  ;;  %v550_v31 = vmul.f32 %v531_v39, %v8306_v38  ;;  %v672_v32 = vstv %s6861_s11  ;;  %s9982_s11 = sld [smem:[#allocation2 + $0x9]] }
  0xa0   :  { %v676_v39 = vmul.f32 %v672_v32, %v8187_v3 }
  0xa1   :  { %v8392_v40 = vpop.permute.xlu1 %153  ;;  %v8394_v41 = vpop.permute.xlu0 %149 }
  0xa3   :  { %469 = vrot.lane.b32.xlu1 %v410_v35, %s8114_s1  ;;  %467 = vrot.lane.b32.xlu0 %v409_v36, %s8114_s1 }
  0xa5   :  { %v8400_v44 = vpop.permute.xlu1 %155  ;;  %v8402_v45 = vpop.permute.xlu0 %151 }
  0xa7   :  { %574 = vrot.lane.b32.xlu1 %v533_v42, %s8115_s10  ;;  %572 = vrot.lane.b32.xlu0 %v532_v43, %s8115_s10  ;;  %v674_v42 = vmul.f32 %v672_v32, %v8192_v4  ;;  %v673_v43 = vmul.f32 %v672_v32, %v8182_v1 }
  0xa9   :  { %v8408_v48 = vpop.permute.xlu1 %159  ;;  %v8410_v49 = vpop.permute.xlu0 %157 }
  0xab   :  { %578 = vrot.lane.b32.xlu1 %v535_v46, %s8115_s10  ;;  %576 = vrot.lane.b32.xlu0 %v534_v47, %s8115_s10 }
  0xad   :  { %v8416_v52 = vpop.permute.xlu1 %163  ;;  %v8418_v53 = vpop.permute.xlu0 %161 }
  0xaf   :  { %582 = vrot.lane.b32.xlu1 %v537_v50, %s8115_s10  ;;  %580 = vrot.lane.b32.xlu0 %v536_v51, %s8115_s10  ;;  %v675_v50 = vmul.f32 %v672_v32, %v8177_v0 }
  0xb1   :  { %v8424_v56 = vpop.permute.xlu1 %167  ;;  %v8426_v57 = vpop.permute.xlu0 %165 }
  0xb3   :  { %586 = vrot.lane.b32.xlu1 %v539_v54, %s8115_s10  ;;  %584 = vrot.lane.b32.xlu0 %v538_v55, %s8115_s10  ;;  %v678_v55 = vmul.f32 %v672_v32, %v8203_v9 }
  0xb5   :  { %v8432_v60 = vpop.permute.xlu1 %171  ;;  %v8434_v61 = vpop.permute.xlu0 %169 }
  0xb7   :  { %590 = vrot.lane.b32.xlu1 %v541_v58, %s8115_s10  ;;  %588 = vrot.lane.b32.xlu0 %v540_v59, %s8115_s10  ;;  %v677_v58 = vmul.f32 %v672_v32, %v8208_v10 }
  0xb9   :  { %v8440_v2 = vpop.permute.xlu1 %175  ;;  %v8442_v5 = vpop.permute.xlu0 %173 }
  0xbb   :  { %594 = vrot.lane.b32.xlu1 %v543_v62, %s8115_s10  ;;  %592 = vrot.lane.b32.xlu0 %v542_v63, %s8115_s10  ;;  %v680_v63 = vmul.f32 %v672_v32, %v8217_v13 }
  0xbd   :  { %v8448_v8 = vpop.permute.xlu1 %179  ;;  %v8450_v11 = vpop.permute.xlu0 %177 }
  0xbf   :  { %598 = vrot.lane.b32.xlu1 %v545_v6, %s8115_s10  ;;  %596 = vrot.lane.b32.xlu0 %v544_v7, %s8115_s10  ;;  %v679_v6 = vmul.f32 %v672_v32, %v8222_v14 }
  0xc1   :  { %v8456_v16 = vpop.permute.xlu1 %183  ;;  %v8458_v19 = vpop.permute.xlu0 %181 }
  0xc3   :  { %602 = vrot.lane.b32.xlu1 %v547_v12, %s8115_s10  ;;  %600 = vrot.lane.b32.xlu0 %v546_v15, %s8115_s10  ;;  %v682_v15 = vmul.f32 %v672_v32, %v8231_v17 }
  0xc5   :  { %v8464_v24 = vpop.permute.xlu1 %187  ;;  %v8466_v27 = vpop.permute.xlu0 %185 }
  0xc7   :  { %606 = vrot.lane.b32.xlu1 %v549_v20, %s8115_s10  ;;  %604 = vrot.lane.b32.xlu0 %v548_v23, %s8115_s10  ;;  %v681_v20 = vmul.f32 %v672_v32, %v8236_v18 }
  0xc9   :  { %v8472_v35 = vpop.permute.xlu1 %292  ;;  %v8474_v36 = vpop.permute.xlu0 %290 }
  0xcb   :  { %610 = vrot.lane.b32.xlu1 %v551_v28, %s8115_s10  ;;  %608 = vrot.lane.b32.xlu0 %v550_v31, %s8115_s10  ;;  %v684_v31 = vmul.f32 %v672_v32, %v8245_v21 }
  0xcd   :  { %v8480_v46 = vpop.permute.xlu1 %296  ;;  %v8482_v47 = vpop.permute.xlu0 %294 }
  0xcf   :  { %715 = vrot.lane.b32.xlu1 %v674_v42, %s8116_s12  ;;  %713 = vrot.lane.b32.xlu0 %v673_v43, %s8116_s12  ;;  %v683_v42 = vmul.f32 %v672_v32, %v8250_v22 }
  0xd1   :  { %v8488_v51 = vpop.permute.xlu1 %300  ;;  %v8490_v54 = vpop.permute.xlu0 %298 }
  0xd3   :  { %719 = vrot.lane.b32.xlu1 %v676_v39, %s8116_s12  ;;  %717 = vrot.lane.b32.xlu0 %v675_v50, %s8116_s12  ;;  %v686_v50 = vmul.f32 %v672_v32, %v8259_v25 }
  0xd5   :  { %v8496_v59 = vpop.permute.xlu1 %304  ;;  %v8498_v62 = vpop.permute.xlu0 %302 }
  0xd6   :  { %16428 = vst [vmem:[#allocation12_spill] sm:$0xff] %v8496_v59  ;;  %16429 = vst [vmem:[#allocation13_spill] sm:$0xff] %v8498_v62 }
  0xd7   :  { %723 = vrot.lane.b32.xlu1 %v678_v55, %s8116_s12  ;;  %721 = vrot.lane.b32.xlu0 %v677_v58, %s8116_s12  ;;  %v685_v55 = vmul.f32 %v672_v32, %v8264_v26 }
  0xd9   :  { %v8504_v7 = vpop.permute.xlu1 %308  ;;  %v8506_v12 = vpop.permute.xlu0 %306 }
  0xda   :  { %16430 = vst [vmem:[#allocation14_spill] sm:$0xff] %v8504_v7  ;;  %16431 = vst [vmem:[#allocation15_spill] sm:$0xff] %v8506_v12  ;;  %v196_v12 = vsel %vm189_vm0, %v8418_v53, %v8416_v52 }
  0xdb   :  { %727 = vrot.lane.b32.xlu1 %v680_v63, %s8116_s12  ;;  %725 = vrot.lane.b32.xlu0 %v679_v6, %s8116_s12  ;;  %v688_v6 = vmul.f32 %v672_v32, %v8273_v29 }
  0xdd   :  { %v8512_v23 = vpop.permute.xlu1 %312  ;;  %v8514_v28 = vpop.permute.xlu0 %310 }
  0xde   :  { %16432 = vst [vmem:[#allocation16_spill] sm:$0xff] %v8512_v23  ;;  %16433 = vst [vmem:[#allocation17_spill] sm:$0xff] %v8514_v28 }
  0xdf   :  { %731 = vrot.lane.b32.xlu1 %v682_v15, %s8116_s12  ;;  %729 = vrot.lane.b32.xlu0 %v681_v20, %s8116_s12  ;;  %v687_v15 = vmul.f32 %v672_v32, %v8278_v30 }
  0xe1   :  { %v8520_v43 = vpop.permute.xlu1 %316  ;;  %v8522_v39 = vpop.permute.xlu0 %314 }
  0xe2   :  { %16434 = vst [vmem:[#allocation18_spill] sm:$0xff] %v8520_v43  ;;  %16435 = vst [vmem:[#allocation19_spill] sm:$0xff] %v8522_v39 }
  0xe3   :  { %735 = vrot.lane.b32.xlu1 %v684_v31, %s8116_s12  ;;  %733 = vrot.lane.b32.xlu0 %v683_v42, %s8116_s12  ;;  %v690_v42 = vmul.f32 %v672_v32, %v8287_v33 }
  0xe5   :  { %v8528_v58 = vpop.permute.xlu1 %320  ;;  %v8530_v63 = vpop.permute.xlu0 %318 }
  0xe6   :  { %16436 = vst [vmem:[#allocation20_spill] sm:$0xff] %v8528_v58  ;;  %16437 = vst [vmem:[#allocation21_spill] sm:$0xff] %v8530_v63  ;;  %v689_v58 = vmul.f32 %v672_v32, %v8292_v34  ;;  %v813_v63 = vstv %s6862_s13  ;;  %s6897_s13 = sld [smem:[#allocation2 + $0x14]] }
  0xe7   :  { %739 = vrot.lane.b32.xlu1 %v686_v50, %s8116_s12  ;;  %737 = vrot.lane.b32.xlu0 %v685_v55, %s8116_s12 }
  0xe9   :  { %v8536_v20 = vpop.permute.xlu1 %324  ;;  %v8538_v31 = vpop.permute.xlu0 %322 }
  0xea   :  { %16438 = vst [vmem:[#allocation22_spill] sm:$0xff] %v8536_v20  ;;  %16439 = vst [vmem:[#allocation23_spill] sm:$0xff] %v8538_v31  ;;  %v692_v20 = vmul.f32 %v672_v32, %v8301_v37  ;;  %v691_v31 = vmul.f32 %v672_v32, %v8306_v38  ;;  %v817_v32 = vmul.f32 %v813_v63, %v8187_v3 }
  0xeb   :  { %743 = vrot.lane.b32.xlu1 %v688_v6, %s8116_s12  ;;  %741 = vrot.lane.b32.xlu0 %v687_v15, %s8116_s12 }
  0xed   :  { %v8544_v50 = vpop.permute.xlu1 %328  ;;  %v8546_v55 = vpop.permute.xlu0 %326 }
  0xee   :  { %16440 = vst [vmem:[#allocation24_spill] sm:$0xff] %v8544_v50  ;;  %16441 = vst [vmem:[#allocation25_spill] sm:$0xff] %v8546_v55  ;;  %v815_v50 = vmul.f32 %v813_v63, %v8192_v4  ;;  %v814_v55 = vmul.f32 %v813_v63, %v8182_v1 }
  0xef   :  { %747 = vrot.lane.b32.xlu1 %v690_v42, %s8116_s12  ;;  %745 = vrot.lane.b32.xlu0 %v689_v58, %s8116_s12 }
  0xf1   :  { %v8552_v6 = vpop.permute.xlu1 %433  ;;  %v8554_v15 = vpop.permute.xlu0 %431 }
  0xf2   :  { %16442 = vst [vmem:[#allocation26_spill] sm:$0xff] %v8552_v6  ;;  %16443 = vst [vmem:[#allocation27_spill] sm:$0xff] %v8554_v15  ;;  %v816_v15 = vmul.f32 %v813_v63, %v8177_v0 }
  0xf3   :  { %751 = vrot.lane.b32.xlu1 %v692_v20, %s8116_s12  ;;  %749 = vrot.lane.b32.xlu0 %v691_v31, %s8116_s12 }
  0xf5   :  { %v8560_v42 = vpop.permute.xlu1 %437  ;;  %v8562_v58 = vpop.permute.xlu0 %435 }
  0xf6   :  { %16444 = vst [vmem:[#allocation28_spill] sm:$0xff] %v8560_v42  ;;  %16445 = vst [vmem:[#allocation29_spill] sm:$0xff] %v8562_v58  ;;  %v819_v42 = vmul.f32 %v813_v63, %v8203_v9  ;;  %v818_v58 = vmul.f32 %v813_v63, %v8208_v10 }
  0xf7   :  { %856 = vrot.lane.b32.xlu1 %v815_v50, %s8117_s14  ;;  %854 = vrot.lane.b32.xlu0 %v814_v55, %s8117_s14  ;;  %v821_v55 = vmul.f32 %v813_v63, %v8217_v13 }
  0xf9   :  { %v8568_v20 = vpop.permute.xlu1 %441  ;;  %v8570_v31 = vpop.permute.xlu0 %439 }
  0xfa   :  { %16446 = vst [vmem:[#allocation30_spill] sm:$0xff] %v8568_v20  ;;  %16447 = vst [vmem:[#allocation31_spill] sm:$0xff] %v8570_v31  ;;  %v820_v20 = vmul.f32 %v813_v63, %v8222_v14 }
  0xfb   :  { %860 = vrot.lane.b32.xlu1 %v817_v32, %s8117_s14  ;;  %858 = vrot.lane.b32.xlu0 %v816_v15, %s8117_s14  ;;  %v823_v15 = vmul.f32 %v813_v63, %v8231_v17 }
  0xfd   :  { %v8576_v6 = vpop.permute.xlu1 %445  ;;  %v8578_v50 = vpop.permute.xlu0 %443 }
  0xfe   :  { %16448 = vst [vmem:[#allocation32_spill] sm:$0xff] %v8576_v6  ;;  %16449 = vst [vmem:[#allocation33_spill] sm:$0xff] %v8578_v50  ;;  %v822_v6 = vmul.f32 %v813_v63, %v8236_v18 }
  0xff   :  { %864 = vrot.lane.b32.xlu1 %v819_v42, %s8117_s14  ;;  %862 = vrot.lane.b32.xlu0 %v818_v58, %s8117_s14  ;;  %v825_v58 = vmul.f32 %v813_v63, %v8245_v21 }
 0x101   :  { %v8584_v31 = vpop.permute.xlu1 %449  ;;  %v8586_v32 = vpop.permute.xlu0 %447 }
 0x102   :  { %16450 = vst [vmem:[#allocation34_spill] sm:$0xff] %v8584_v31  ;;  %16451 = vst [vmem:[#allocation35_spill] sm:$0xff] %v8586_v32  ;;  %v824_v31 = vmul.f32 %v813_v63, %v8250_v22 }
 0x103   :  { %868 = vrot.lane.b32.xlu1 %v821_v55, %s8117_s14  ;;  %866 = vrot.lane.b32.xlu0 %v820_v20, %s8117_s14  ;;  %v827_v20 = vmul.f32 %v813_v63, %v8259_v25 }
 0x105   :  { %v8592_v50 = vpop.permute.xlu1 %453  ;;  %v8594_v42 = vpop.permute.xlu0 %451 }
 0x106   :  { %16452 = vst [vmem:[#allocation36_spill] sm:$0xff] %v8592_v50  ;;  %16453 = vst [vmem:[#allocation37_spill] sm:$0xff] %v8594_v42  ;;  %v826_v42 = vmul.f32 %v813_v63, %v8264_v26 }
 0x107   :  { %872 = vrot.lane.b32.xlu1 %v823_v15, %s8117_s14  ;;  %870 = vrot.lane.b32.xlu0 %v822_v6, %s8117_s14  ;;  %v829_v6 = vmul.f32 %v813_v63, %v8273_v29 }
 0x109   :  { %v8600_v32 = vpop.permute.xlu1 %457  ;;  %v8602_v55 = vpop.permute.xlu0 %455 }
 0x10a   :  { %16454 = vst [vmem:[#allocation38_spill] sm:$0xff] %v8600_v32  ;;  %16455 = vst [vmem:[#allocation39_spill] sm:$0xff] %v8602_v55  ;;  %v828_v32 = vmul.f32 %v813_v63, %v8278_v30  ;;  %v954_v55 = vstv %s6863_s15 }
 0x10b   :  { %876 = vrot.lane.b32.xlu1 %v825_v58, %s8117_s14  ;;  %874 = vrot.lane.b32.xlu0 %v824_v31, %s8117_s14 }
 0x10d   :  { %v8608_v50 = vpop.permute.xlu1 %461  ;;  %v8610_v15 = vpop.permute.xlu0 %459 }
 0x10e   :  { %16456 = vst [vmem:[#allocation40_spill] sm:$0xff] %v8608_v50  ;;  %16457 = vst [vmem:[#allocation41_spill] sm:$0xff] %v8610_v15  ;;  %v831_v50 = vmul.f32 %v813_v63, %v8287_v33  ;;  %v830_v15 = vmul.f32 %v813_v63, %v8292_v34 }
 0x10f   :  { %880 = vrot.lane.b32.xlu1 %v827_v20, %s8117_s14  ;;  %878 = vrot.lane.b32.xlu0 %v826_v42, %s8117_s14 }
 0x111   :  { %v8616_v58 = vpop.permute.xlu1 %465  ;;  %v8618_v31 = vpop.permute.xlu0 %463 }
 0x112   :  { %16458 = vst [vmem:[#allocation42_spill] sm:$0xff] %v8616_v58  ;;  %16459 = vst [vmem:[#allocation43_spill] sm:$0xff] %v8618_v31  ;;  %v833_v58 = vmul.f32 %v813_v63, %v8301_v37  ;;  %v832_v31 = vmul.f32 %v813_v63, %v8306_v38  ;;  %v958_v63 = vmul.f32 %v954_v55, %v8187_v3 }
 0x113   :  { %884 = vrot.lane.b32.xlu1 %v829_v6, %s8117_s14  ;;  %882 = vrot.lane.b32.xlu0 %v828_v32, %s8117_s14 }
 0x115   :  { %v8624_v20 = vpop.permute.xlu1 %469  ;;  %v8626_v42 = vpop.permute.xlu0 %467 }
 0x116   :  { %16460 = vst [vmem:[#allocation44_spill] sm:$0xff] %v8624_v20  ;;  %16461 = vst [vmem:[#allocation45_spill] sm:$0xff] %v8626_v42  ;;  %v956_v20 = vmul.f32 %v954_v55, %v8192_v4  ;;  %v955_v42 = vmul.f32 %v954_v55, %v8182_v1 }
 0x117   :  { %888 = vrot.lane.b32.xlu1 %v831_v50, %s8117_s14  ;;  %886 = vrot.lane.b32.xlu0 %v830_v15, %s8117_s14 }
 0x119   :  { %v8632_v6 = vpop.permute.xlu1 %574  ;;  %v8634_v32 = vpop.permute.xlu0 %572 }
 0x11a   :  { %16462 = vst [vmem:[#allocation46_spill] sm:$0xff] %v8632_v6  ;;  %16463 = vst [vmem:[#allocation47_spill] sm:$0xff] %v8634_v32  ;;  %v957_v32 = vmul.f32 %v954_v55, %v8177_v0 }
 0x11b   :  { %892 = vrot.lane.b32.xlu1 %v833_v58, %s8117_s14  ;;  %890 = vrot.lane.b32.xlu0 %v832_v31, %s8117_s14 }
 0x11d   :  { %v8640_v50 = vpop.permute.xlu1 %578  ;;  %v8642_v15 = vpop.permute.xlu0 %576 }
 0x11e   :  { %16464 = vst [vmem:[#allocation48_spill] sm:$0xff] %v8640_v50  ;;  %16465 = vst [vmem:[#allocation49_spill] sm:$0xff] %v8642_v15  ;;  %v960_v50 = vmul.f32 %v954_v55, %v8203_v9  ;;  %v959_v15 = vmul.f32 %v954_v55, %v8208_v10 }
 0x11f   :  { %997 = vrot.lane.b32.xlu1 %v956_v20, %s8118_s16  ;;  %995 = vrot.lane.b32.xlu0 %v955_v42, %s8118_s16  ;;  %v962_v42 = vmul.f32 %v954_v55, %v8217_v13 }
 0x121   :  { %v8648_v58 = vpop.permute.xlu1 %582  ;;  %v8650_v31 = vpop.permute.xlu0 %580 }
 0x122   :  { %16466 = vst [vmem:[#allocation50_spill] sm:$0xff] %v8648_v58  ;;  %16467 = vst [vmem:[#allocation51_spill] sm:$0xff] %v8650_v31  ;;  %v961_v58 = vmul.f32 %v954_v55, %v8222_v14 }
 0x123   :  { %1001 = vrot.lane.b32.xlu1 %v958_v63, %s8118_s16  ;;  %999 = vrot.lane.b32.xlu0 %v957_v32, %s8118_s16  ;;  %v964_v32 = vmul.f32 %v954_v55, %v8231_v17 }
 0x125   :  { %v8656_v6 = vpop.permute.xlu1 %586  ;;  %v8658_v20 = vpop.permute.xlu0 %584 }
 0x126   :  { %16468 = vst [vmem:[#allocation52_spill] sm:$0xff] %v8656_v6  ;;  %16469 = vst [vmem:[#allocation53_spill] sm:$0xff] %v8658_v20  ;;  %v963_v6 = vmul.f32 %v954_v55, %v8236_v18 }
 0x127   :  { %1005 = vrot.lane.b32.xlu1 %v960_v50, %s8118_s16  ;;  %1003 = vrot.lane.b32.xlu0 %v959_v15, %s8118_s16  ;;  %v966_v15 = vmul.f32 %v954_v55, %v8245_v21 }
 0x129   :  { %v8664_v31 = vpop.permute.xlu1 %590  ;;  %v8666_v63 = vpop.permute.xlu0 %588 }
 0x12a   :  { %16470 = vst [vmem:[#allocation54_spill] sm:$0xff] %v8664_v31  ;;  %16471 = vst [vmem:[#allocation55_spill] sm:$0xff] %v8666_v63  ;;  %v965_v31 = vmul.f32 %v954_v55, %v8250_v22 }
 0x12b   :  { %1009 = vrot.lane.b32.xlu1 %v962_v42, %s8118_s16  ;;  %1007 = vrot.lane.b32.xlu0 %v961_v58, %s8118_s16  ;;  %v968_v58 = vmul.f32 %v954_v55, %v8259_v25 }
 0x12d   :  { %v8672_v20 = vpop.permute.xlu1 %594  ;;  %v8674_v50 = vpop.permute.xlu0 %592 }
 0x12e   :  { %16472 = vst [vmem:[#allocation56_spill] sm:$0xff] %v8672_v20  ;;  %16473 = vst [vmem:[#allocation57_spill] sm:$0xff] %v8674_v50  ;;  %v967_v50 = vmul.f32 %v954_v55, %v8264_v26 }
 0x12f   :  { %1013 = vrot.lane.b32.xlu1 %v964_v32, %s8118_s16  ;;  %1011 = vrot.lane.b32.xlu0 %v963_v6, %s8118_s16  ;;  %v970_v6 = vmul.f32 %v954_v55, %v8273_v29 }
 0x131   :  { %v8680_v63 = vpop.permute.xlu1 %598  ;;  %v8682_v42 = vpop.permute.xlu0 %596 }
 0x132   :  { %16474 = vst [vmem:[#allocation58_spill] sm:$0xff] %v8680_v63  ;;  %16475 = vst [vmem:[#allocation59_spill] sm:$0xff] %v8682_v42  ;;  %v969_v63 = vmul.f32 %v954_v55, %v8278_v30  ;;  %v1095_v42 = vstv %s6864_s2 }
 0x133   :  { %1017 = vrot.lane.b32.xlu1 %v966_v15, %s8118_s16  ;;  %1015 = vrot.lane.b32.xlu0 %v965_v31, %s8118_s16 }
 0x135   :  { %v8688_v20 = vpop.permute.xlu1 %602  ;;  %v8690_v32 = vpop.permute.xlu0 %600 }
 0x136   :  { %16476 = vst [vmem:[#allocation60_spill] sm:$0xff] %v8688_v20  ;;  %16477 = vst [vmem:[#allocation61_spill] sm:$0xff] %v8690_v32  ;;  %v972_v20 = vmul.f32 %v954_v55, %v8287_v33  ;;  %v971_v32 = vmul.f32 %v954_v55, %v8292_v34 }
 0x137   :  { %1021 = vrot.lane.b32.xlu1 %v968_v58, %s8118_s16  ;;  %1019 = vrot.lane.b32.xlu0 %v967_v50, %s8118_s16 }
 0x139   :  { %v8696_v15 = vpop.permute.xlu1 %606  ;;  %v8698_v31 = vpop.permute.xlu0 %604 }
 0x13a   :  { %16478 = vst [vmem:[#allocation62_spill] sm:$0xff] %v8696_v15  ;;  %16479 = vst [vmem:[#allocation63_spill] sm:$0xff] %v8698_v31  ;;  %v974_v15 = vmul.f32 %v954_v55, %v8301_v37  ;;  %v973_v31 = vmul.f32 %v954_v55, %v8306_v38  ;;  %v1099_v55 = vmul.f32 %v1095_v42, %v8187_v3 }
 0x13b   :  { %1025 = vrot.lane.b32.xlu1 %v970_v6, %s8118_s16  ;;  %1023 = vrot.lane.b32.xlu0 %v969_v63, %s8118_s16  ;;  %v1102_v3 = vmul.f32 %v1095_v42, %v8222_v14  ;;  %v1106_v14 = vmul.f32 %v1095_v42, %v8250_v22  ;;  %v1110_v22 = vmul.f32 %v1095_v42, %v8278_v30 }
 0x13c   :  { %v1114_v30 = vmul.f32 %v1095_v42, %v8306_v38 }
 0x13d   :  { %v8704_v58 = vpop.permute.xlu1 %610  ;;  %v8706_v50 = vpop.permute.xlu0 %608 }
 0x13e   :  { %16480 = vst [vmem:[#allocation64_spill] sm:$0xff] %v8704_v58  ;;  %16481 = vst [vmem:[#allocation65_spill] sm:$0xff] %v8706_v50  ;;  %v1097_v58 = vmul.f32 %v1095_v42, %v8192_v4  ;;  %v1096_v50 = vmul.f32 %v1095_v42, %v8182_v1  ;;  %v1101_v1 = vmul.f32 %v1095_v42, %v8203_v9 }
 0x13f   :  { %1029 = vrot.lane.b32.xlu1 %v972_v20, %s8118_s16  ;;  %1027 = vrot.lane.b32.xlu0 %v971_v32, %s8118_s16  ;;  %v1100_v4 = vmul.f32 %v1095_v42, %v8208_v10  ;;  %v1105_v9 = vmul.f32 %v1095_v42, %v8231_v17  ;;  %v1104_v10 = vmul.f32 %v1095_v42, %v8236_v18 }
 0x140   :  { %v1109_v17 = vmul.f32 %v1095_v42, %v8259_v25  ;;  %v1108_v18 = vmul.f32 %v1095_v42, %v8264_v26  ;;  %v1113_v25 = vmul.f32 %v1095_v42, %v8287_v33  ;;  %v1112_v26 = vmul.f32 %v1095_v42, %v8292_v34  ;;  %v8802_v34 = vld [vmem:[%s15881_s3 + $0xa0] sm:$0xff] }
 0x141   :  { %v8712_v6 = vpop.permute.xlu1 %715  ;;  %v8714_v63 = vpop.permute.xlu0 %713  ;;  %v8797_v33 = vstv %s6886_s18  ;;  %s6910_s18 = sld [smem:[#allocation2 + $0x21]] }
 0x142   :  { %16482 = vst [vmem:[#allocation66_spill] sm:$0xff] %v8712_v6  ;;  %16483 = vst [vmem:[#allocation67_spill] sm:$0xff] %v8714_v63  ;;  %v1098_v63 = vmul.f32 %v1095_v42, %v8177_v0  ;;  %v1103_v0 = vmul.f32 %v1095_v42, %v8217_v13  ;;  %v1107_v13 = vmul.f32 %v1095_v42, %v8245_v21 }
 0x143   :  { %1033 = vrot.lane.b32.xlu1 %v974_v15, %s8118_s16  ;;  %1031 = vrot.lane.b32.xlu0 %v973_v31, %s8118_s16  ;;  %v1111_v21 = vmul.f32 %v1095_v42, %v8273_v29  ;;  %v1115_v29 = vmul.f32 %v1095_v42, %v8301_v37  ;;  %v1300_v38 = vmul.f32 %v8802_v34, %v8797_v33  ;;  %v8817_v42 = vld [vmem:[%s15881_s3 + $0xb8] sm:$0xff] }
 0x145   :  { %v8720_v20 = vpop.permute.xlu1 %719  ;;  %v8722_v32 = vpop.permute.xlu0 %717 }
 0x146   :  { %16484 = vst [vmem:[#allocation68_spill] sm:$0xff] %v8720_v20  ;;  %16485 = vst [vmem:[#allocation69_spill] sm:$0xff] %v8722_v32 }
 0x147   :  { %1138 = vrot.lane.b32.xlu1 %v1097_v58, %s8119_s17  ;;  %1136 = vrot.lane.b32.xlu0 %v1096_v50, %s8119_s17 }
 0x149   :  { %v8728_v15 = vpop.permute.xlu1 %723  ;;  %v8730_v31 = vpop.permute.xlu0 %721 }
 0x14a   :  { %16486 = vst [vmem:[#allocation70_spill] sm:$0xff] %v8728_v15  ;;  %16487 = vst [vmem:[#allocation71_spill] sm:$0xff] %v8730_v31  ;;  %v1439_v31 = vstv %s6887_s19  ;;  %s6898_s19 = sld [smem:[#allocation2 + $0x15]] }
 0x14b   :  { %1142 = vrot.lane.b32.xlu1 %v1099_v55, %s8119_s17  ;;  %1140 = vrot.lane.b32.xlu0 %v1098_v63, %s8119_s17 }
 0x14d   :  { %v8736_v20 = vpop.permute.xlu1 %727  ;;  %v8738_v58 = vpop.permute.xlu0 %725 }
 0x14e   :  { %16488 = vst [vmem:[#allocation72_spill] sm:$0xff] %v8736_v20  ;;  %16489 = vst [vmem:[#allocation73_spill] sm:$0xff] %v8738_v58  ;;  %v8977_v58 = vld [vmem:[%s15881_s3 + $0x138] sm:$0xff] }
 0x14f   :  { %1146 = vrot.lane.b32.xlu1 %v1101_v1, %s8119_s17  ;;  %1144 = vrot.lane.b32.xlu0 %v1100_v4, %s8119_s17 }
 0x151   :  { %v8744_v50 = vpop.permute.xlu1 %731  ;;  %v8746_v55 = vpop.permute.xlu0 %729 }
 0x152   :  { %16490 = vst [vmem:[#allocation74_spill] sm:$0xff] %v8744_v50  ;;  %16491 = vst [vmem:[#allocation75_spill] sm:$0xff] %v8746_v55  ;;  %v8957_v55 = vld [vmem:[%s15881_s3 + $0x128] sm:$0xff] }
 0x153   :  { %1150 = vrot.lane.b32.xlu1 %v1103_v0, %s8119_s17  ;;  %1148 = vrot.lane.b32.xlu0 %v1102_v3, %s8119_s17 }
 0x155   :  { %v8752_v63 = vpop.permute.xlu1 %735  ;;  %v8754_v1 = vpop.permute.xlu0 %733 }
 0x156   :  { %16492 = vst [vmem:[#allocation76_spill] sm:$0xff] %v8752_v63  ;;  %16493 = vst [vmem:[#allocation77_spill] sm:$0xff] %v8754_v1  ;;  %v8937_v63 = vld [vmem:[%s15881_s3 + $0x118] sm:$0xff] }
 0x157   :  { %1154 = vrot.lane.b32.xlu1 %v1105_v9, %s8119_s17  ;;  %1152 = vrot.lane.b32.xlu0 %v1104_v10, %s8119_s17 }
 0x159   :  { %v8760_v4 = vpop.permute.xlu1 %739  ;;  %v8762_v0 = vpop.permute.xlu0 %737 }
 0x15a   :  { %16494 = vst [vmem:[#allocation78_spill] sm:$0xff] %v8760_v4  ;;  %16495 = vst [vmem:[#allocation79_spill] sm:$0xff] %v8762_v0  ;;  %v8917_v0 = vld [vmem:[%s15881_s3 + $0x108] sm:$0xff] }
 0x15b   :  { %1158 = vrot.lane.b32.xlu1 %v1107_v13, %s8119_s17  ;;  %1156 = vrot.lane.b32.xlu0 %v1106_v14, %s8119_s17 }
 0x15d   :  { %v8768_v3 = vpop.permute.xlu1 %743  ;;  %v8770_v9 = vpop.permute.xlu0 %741 }
 0x15e   :  { %16496 = vst [vmem:[#allocation80_spill] sm:$0xff] %v8768_v3  ;;  %16497 = vst [vmem:[#allocation81_spill] sm:$0xff] %v8770_v9  ;;  %v8897_v9 = vld [vmem:[%s15881_s3 + $0xf8] sm:$0xff] }
 0x15f   :  { %1162 = vrot.lane.b32.xlu1 %v1109_v17, %s8119_s17  ;;  %1160 = vrot.lane.b32.xlu0 %v1108_v18, %s8119_s17  ;;  %v8795_v18 = vld [vmem:[%s15881_s3 + $0xa8] sm:$0xff] }
 0x160   :  { %v1301_v37 = vmul.f32 %v8795_v18, %v8797_v33 }
 0x161   :  { %v8776_v10 = vpop.permute.xlu1 %747  ;;  %v8778_v13 = vpop.permute.xlu0 %745 }
 0x162   :  { %16498 = vst [vmem:[#allocation82_spill] sm:$0xff] %v8776_v10  ;;  %16499 = vst [vmem:[#allocation83_spill] sm:$0xff] %v8778_v13  ;;  %v8877_v13 = vld [vmem:[%s15881_s3 + $0xe8] sm:$0xff] }
 0x163   :  { %1166 = vrot.lane.b32.xlu1 %v1111_v21, %s8119_s17  ;;  %1164 = vrot.lane.b32.xlu0 %v1110_v22, %s8119_s17 }
 0x165   :  { %v8784_v14 = vpop.permute.xlu1 %751  ;;  %v8786_v17 = vpop.permute.xlu0 %749 }
 0x166   :  { %16500 = vst [vmem:[#allocation84_spill] sm:$0xff] %v8784_v14  ;;  %16501 = vst [vmem:[#allocation85_spill] sm:$0xff] %v8786_v17  ;;  %v8857_v17 = vld [vmem:[%s15881_s3 + $0xd8] sm:$0xff] }
 0x167   :  { %1170 = vrot.lane.b32.xlu1 %v1113_v25, %s8119_s17  ;;  %1168 = vrot.lane.b32.xlu0 %v1112_v26, %s8119_s17  ;;  %v8822_v25 = vld [vmem:[%s15881_s3 + $0xb0] sm:$0xff] }
 0x169   :  { %v8804_v21 = vpop.permute.xlu1 %856  ;;  %v8806_v22 = vpop.permute.xlu0 %854 }
 0x16a   :  { %16502 = vst [vmem:[#allocation86_spill] sm:$0xff] %v8804_v21  ;;  %16503 = vst [vmem:[#allocation87_spill] sm:$0xff] %v8806_v22  ;;  %v1302_v22 = vmul.f32 %v8822_v25, %v8797_v33  ;;  %v8837_v21 = vld [vmem:[%s15881_s3 + $0xc8] sm:$0xff] }
 0x16b   :  { %1174 = vrot.lane.b32.xlu1 %v1115_v29, %s8119_s17  ;;  %1172 = vrot.lane.b32.xlu0 %v1114_v30, %s8119_s17  ;;  %v1303_v30 = vmul.f32 %v8817_v42, %v8797_v33 }
 0x16d   :  { %v8824_v26 = vpop.permute.xlu1 %860  ;;  %v8826_v29 = vpop.permute.xlu0 %858 }
 0x16e   :  { %16504 = vst [vmem:[#allocation88_spill] sm:$0xff] %v8824_v26  ;;  %16505 = vst [vmem:[#allocation89_spill] sm:$0xff] %v8826_v29  ;;  %v8842_v26 = vld [vmem:[%s15881_s3 + $0xc0] sm:$0xff] }
 0x16f   :  { %1342 = vrot.lane.b32.xlu1 %v1301_v37, %s8112_s22  ;;  %1340 = vrot.lane.b32.xlu0 %v1300_v38, %s8112_s22  ;;  %v1305_v38 = vmul.f32 %v8837_v21, %v8797_v33  ;;  %v1304_v14 = vmul.f32 %v8842_v26, %v8797_v33 }
 0x171   :  { %v8844_v29 = vpop.permute.xlu1 %864  ;;  %v8846_v37 = vpop.permute.xlu0 %862 }
 0x172   :  { %16506 = vst [vmem:[#allocation90_spill] sm:$0xff] %v8844_v29  ;;  %16507 = vst [vmem:[#allocation91_spill] sm:$0xff] %v8846_v37  ;;  %v8862_v29 = vld [vmem:[%s15881_s3 + $0xd0] sm:$0xff] }
 0x173   :  { %1346 = vrot.lane.b32.xlu1 %v1303_v30, %s8112_s22  ;;  %1344 = vrot.lane.b32.xlu0 %v1302_v22, %s8112_s22  ;;  %v1307_v22 = vmul.f32 %v8857_v17, %v8797_v33  ;;  %v1306_v10 = vmul.f32 %v8862_v29, %v8797_v33 }
 0x175   :  { %v8864_v37 = vpop.permute.xlu1 %868  ;;  %v8866_v30 = vpop.permute.xlu0 %866 }
 0x176   :  { %16508 = vst [vmem:[#allocation92_spill] sm:$0xff] %v8864_v37  ;;  %16509 = vst [vmem:[#allocation93_spill] sm:$0xff] %v8866_v30  ;;  %v8882_v37 = vld [vmem:[%s15881_s3 + $0xe0] sm:$0xff] }
 0x177   :  { %1350 = vrot.lane.b32.xlu1 %v1305_v38, %s8112_s22  ;;  %1348 = vrot.lane.b32.xlu0 %v1304_v14, %s8112_s22  ;;  %v1309_v14 = vmul.f32 %v8877_v13, %v8797_v33  ;;  %v1308_v3 = vmul.f32 %v8882_v37, %v8797_v33 }
 0x179   :  { %v8884_v30 = vpop.permute.xlu1 %872  ;;  %v8886_v38 = vpop.permute.xlu0 %870 }
 0x17a   :  { %16510 = vst [vmem:[#allocation94_spill] sm:$0xff] %v8884_v30  ;;  %16511 = vst [vmem:[#allocation95_spill] sm:$0xff] %v8886_v38  ;;  %v8902_v30 = vld [vmem:[%s15881_s3 + $0xf0] sm:$0xff] }
 0x17b   :  { %1354 = vrot.lane.b32.xlu1 %v1307_v22, %s8112_s22  ;;  %1352 = vrot.lane.b32.xlu0 %v1306_v10, %s8112_s22  ;;  %v1311_v10 = vmul.f32 %v8897_v9, %v8797_v33  ;;  %v1310_v4 = vmul.f32 %v8902_v30, %v8797_v33 }
 0x17d   :  { %v8904_v38 = vpop.permute.xlu1 %876  ;;  %v8906_v22 = vpop.permute.xlu0 %874 }
 0x17e   :  { %16512 = vst [vmem:[#allocation96_spill] sm:$0xff] %v8904_v38  ;;  %16513 = vst [vmem:[#allocation97_spill] sm:$0xff] %v8906_v22  ;;  %v8922_v38 = vld [vmem:[%s15881_s3 + $0x100] sm:$0xff] }
 0x17f   :  { %1358 = vrot.lane.b32.xlu1 %v1309_v14, %s8112_s22  ;;  %1356 = vrot.lane.b32.xlu0 %v1308_v3, %s8112_s22  ;;  %v1313_v3 = vmul.f32 %v8917_v0, %v8797_v33  ;;  %v1312_v1 = vmul.f32 %v8922_v38, %v8797_v33 }
 0x181   :  { %v8924_v22 = vpop.permute.xlu1 %880  ;;  %v8926_v14 = vpop.permute.xlu0 %878 }
 0x182   :  { %16514 = vst [vmem:[#allocation98_spill] sm:$0xff] %v8924_v22  ;;  %16515 = vst [vmem:[#allocation99_spill] sm:$0xff] %v8926_v14  ;;  %v8942_v22 = vld [vmem:[%s15881_s3 + $0x110] sm:$0xff] }
 0x183   :  { %1362 = vrot.lane.b32.xlu1 %v1311_v10, %s8112_s22  ;;  %1360 = vrot.lane.b32.xlu0 %v1310_v4, %s8112_s22  ;;  %v1315_v4 = vmul.f32 %v8937_v63, %v8797_v33  ;;  %v1314_v50 = vmul.f32 %v8942_v22, %v8797_v33 }
 0x185   :  { %v8944_v14 = vpop.permute.xlu1 %884  ;;  %v8946_v10 = vpop.permute.xlu0 %882 }
 0x186   :  { %16516 = vst [vmem:[#allocation100_spill] sm:$0xff] %v8944_v14  ;;  %16517 = vst [vmem:[#allocation101_spill] sm:$0xff] %v8946_v10  ;;  %v8962_v14 = vld [vmem:[%s15881_s3 + $0x120] sm:$0xff]  ;;  %v1317_v10 = vmul.f32 %v8957_v55, %v8797_v33 }
 0x187   :  { %1366 = vrot.lane.b32.xlu1 %v1313_v3, %s8112_s22  ;;  %1364 = vrot.lane.b32.xlu0 %v1312_v1, %s8112_s22  ;;  %v1316_v20 = vmul.f32 %v8962_v14, %v8797_v33 }
 0x189   :  { %v8964_v3 = vpop.permute.xlu1 %888  ;;  %v8966_v1 = vpop.permute.xlu0 %886 }
 0x18a   :  { %16518 = vst [vmem:[#allocation102_spill] sm:$0xff] %v8964_v3  ;;  %16519 = vst [vmem:[#allocation103_spill] sm:$0xff] %v8966_v1  ;;  %v8982_v3 = vld [vmem:[%s15881_s3 + $0x130] sm:$0xff] }
 0x18b   :  { %1370 = vrot.lane.b32.xlu1 %v1315_v4, %s8112_s22  ;;  %1368 = vrot.lane.b32.xlu0 %v1314_v50, %s8112_s22  ;;  %v1319_v50 = vmul.f32 %v8977_v58, %v8797_v33  ;;  %v1318_v15 = vmul.f32 %v8982_v3, %v8797_v33  ;;  %v1443_v33 = vmul.f32 %v8817_v42, %v1439_v31 }
 0x18d   :  { %v8984_v1 = vpop.permute.xlu1 %892  ;;  %v8986_v4 = vpop.permute.xlu0 %890 }
 0x18e   :  { %16520 = vst [vmem:[#allocation104_spill] sm:$0xff] %v8984_v1  ;;  %16521 = vst [vmem:[#allocation105_spill] sm:$0xff] %v8986_v4  ;;  %v1441_v1 = vmul.f32 %v8795_v18, %v1439_v31 }
 0x18f   :  { %1374 = vrot.lane.b32.xlu1 %v1317_v10, %s8112_s22  ;;  %1372 = vrot.lane.b32.xlu0 %v1316_v20, %s8112_s22  ;;  %v1440_v10 = vmul.f32 %v8802_v34, %v1439_v31 }
 0x191   :  { %v8994_v32 = vpop.permute.xlu1 %997  ;;  %v8996_v6 = vpop.permute.xlu0 %995 }
 0x192   :  { %16522 = vst [vmem:[#allocation106_spill] sm:$0xff] %v8994_v32  ;;  %16523 = vst [vmem:[#allocation107_spill] sm:$0xff] %v8996_v6  ;;  %v1442_v6 = vmul.f32 %v8822_v25, %v1439_v31 }
 0x193   :  { %1378 = vrot.lane.b32.xlu1 %v1319_v50, %s8112_s22  ;;  %1376 = vrot.lane.b32.xlu0 %v1318_v15, %s8112_s22  ;;  %v1445_v15 = vmul.f32 %v8837_v21, %v1439_v31 }
 0x195   :  { %v9002_v20 = vpop.permute.xlu1 %1001  ;;  %v9004_v4 = vpop.permute.xlu0 %999 }
 0x196   :  { %16524 = vst [vmem:[#allocation108_spill] sm:$0xff] %v9002_v20  ;;  %16525 = vst [vmem:[#allocation109_spill] sm:$0xff] %v9004_v4  ;;  %v1444_v20 = vmul.f32 %v8842_v26, %v1439_v31 }
 0x197   :  { %1482 = vrot.lane.b32.xlu1 %v1441_v1, %s8113_s8  ;;  %1480 = vrot.lane.b32.xlu0 %v1440_v10, %s8113_s8  ;;  %v1447_v10 = vmul.f32 %v8857_v17, %v1439_v31 }
 0x199   :  { %v9010_v32 = vpop.permute.xlu1 %1005  ;;  %v9012_v50 = vpop.permute.xlu0 %1003 }
 0x19a   :  { %16526 = vst [vmem:[#allocation110_spill] sm:$0xff] %v9010_v32  ;;  %16527 = vst [vmem:[#allocation111_spill] sm:$0xff] %v9012_v50  ;;  %v1446_v32 = vmul.f32 %v8862_v29, %v1439_v31 }
 0x19b   :  { %1486 = vrot.lane.b32.xlu1 %v1443_v33, %s8113_s8  ;;  %1484 = vrot.lane.b32.xlu0 %v1442_v6, %s8113_s8  ;;  %v1449_v6 = vmul.f32 %v8877_v13, %v1439_v31 }
 0x19d   :  { %v9018_v4 = vpop.permute.xlu1 %1009  ;;  %v9020_v1 = vpop.permute.xlu0 %1007 }
 0x19e   :  { %16528 = vst [vmem:[#allocation112_spill] sm:$0xff] %v9018_v4  ;;  %16529 = vst [vmem:[#allocation113_spill] sm:$0xff] %v9020_v1  ;;  %v1448_v4 = vmul.f32 %v8882_v37, %v1439_v31 }
 0x19f   :  { %1490 = vrot.lane.b32.xlu1 %v1445_v15, %s8113_s8  ;;  %1488 = vrot.lane.b32.xlu0 %v1444_v20, %s8113_s8  ;;  %v1451_v20 = vmul.f32 %v8897_v9, %v1439_v31 }
 0x1a1   :  { %v9026_v50 = vpop.permute.xlu1 %1013  ;;  %v9028_v33 = vpop.permute.xlu0 %1011 }
 0x1a2   :  { %16530 = vst [vmem:[#allocation114_spill] sm:$0xff] %v9026_v50  ;;  %16531 = vst [vmem:[#allocation115_spill] sm:$0xff] %v9028_v33  ;;  %v1450_v50 = vmul.f32 %v8902_v30, %v1439_v31 }
 0x1a3   :  { %1494 = vrot.lane.b32.xlu1 %v1447_v10, %s8113_s8  ;;  %1492 = vrot.lane.b32.xlu0 %v1446_v32, %s8113_s8  ;;  %v1453_v32 = vmul.f32 %v8917_v0, %v1439_v31 }
 0x1a5   :  { %v9034_v1 = vpop.permute.xlu1 %1017  ;;  %v9036_v15 = vpop.permute.xlu0 %1015 }
 0x1a6   :  { %16532 = vst [vmem:[#allocation116_spill] sm:$0xff] %v9034_v1  ;;  %16533 = vst [vmem:[#allocation117_spill] sm:$0xff] %v9036_v15  ;;  %v1452_v15 = vmul.f32 %v8922_v38, %v1439_v31 }
 0x1a7   :  { %1498 = vrot.lane.b32.xlu1 %v1449_v6, %s8113_s8  ;;  %1496 = vrot.lane.b32.xlu0 %v1448_v4, %s8113_s8  ;;  %v1455_v4 = vmul.f32 %v8937_v63, %v1439_v31 }
 0x1a9   :  { %v9042_v33 = vpop.permute.xlu1 %1021  ;;  %v9044_v10 = vpop.permute.xlu0 %1019 }
 0x1aa   :  { %16534 = vst [vmem:[#allocation118_spill] sm:$0xff] %v9042_v33  ;;  %16535 = vst [vmem:[#allocation119_spill] sm:$0xff] %v9044_v10  ;;  %v1454_v33 = vmul.f32 %v8942_v22, %v1439_v31  ;;  %v1579_v10 = vstv %s6888_s25  ;;  %s6903_s25 = sld [smem:[#allocation2 + $0x1a]] }
 0x1ab   :  { %1502 = vrot.lane.b32.xlu1 %v1451_v20, %s8113_s8  ;;  %1500 = vrot.lane.b32.xlu0 %v1450_v50, %s8113_s8 }
 0x1ad   :  { %v9050_v1 = vpop.permute.xlu1 %1025  ;;  %v9052_v6 = vpop.permute.xlu0 %1023 }
 0x1ae   :  { %16536 = vst [vmem:[#allocation120_spill] sm:$0xff] %v9050_v1  ;;  %16537 = vst [vmem:[#allocation121_spill] sm:$0xff] %v9052_v6  ;;  %v1457_v1 = vmul.f32 %v8957_v55, %v1439_v31  ;;  %v1456_v6 = vmul.f32 %v8962_v14, %v1439_v31 }
 0x1af   :  { %1506 = vrot.lane.b32.xlu1 %v1453_v32, %s8113_s8  ;;  %1504 = vrot.lane.b32.xlu0 %v1452_v15, %s8113_s8 }
 0x1b1   :  { %v9058_v20 = vpop.permute.xlu1 %1029  ;;  %v9060_v50 = vpop.permute.xlu0 %1027 }
 0x1b2   :  { %16538 = vst [vmem:[#allocation122_spill] sm:$0xff] %v9058_v20  ;;  %16539 = vst [vmem:[#allocation123_spill] sm:$0xff] %v9060_v50  ;;  %v1459_v20 = vmul.f32 %v8977_v58, %v1439_v31  ;;  %v1458_v50 = vmul.f32 %v8982_v3, %v1439_v31  ;;  %v1583_v31 = vmul.f32 %v8817_v42, %v1579_v10 }
 0x1b3   :  { %1510 = vrot.lane.b32.xlu1 %v1455_v4, %s8113_s8  ;;  %1508 = vrot.lane.b32.xlu0 %v1454_v33, %s8113_s8 }
 0x1b5   :  { %v9066_v32 = vpop.permute.xlu1 %1033  ;;  %v9068_v15 = vpop.permute.xlu0 %1031 }
 0x1b6   :  { %16540 = vst [vmem:[#allocation124_spill] sm:$0xff] %v9066_v32  ;;  %16541 = vst [vmem:[#allocation125_spill] sm:$0xff] %v9068_v15  ;;  %v1581_v32 = vmul.f32 %v8795_v18, %v1579_v10  ;;  %v1580_v15 = vmul.f32 %v8802_v34, %v1579_v10 }
 0x1b7   :  { %1514 = vrot.lane.b32.xlu1 %v1457_v1, %s8113_s8  ;;  %1512 = vrot.lane.b32.xlu0 %v1456_v6, %s8113_s8 }
 0x1b9   :  { %v9074_v4 = vpop.permute.xlu1 %1138  ;;  %v9076_v33 = vpop.permute.xlu0 %1136 }
 0x1ba   :  { %16542 = vst [vmem:[#allocation126_spill] sm:$0xff] %v9074_v4  ;;  %16543 = vst [vmem:[#allocation127_spill] sm:$0xff] %v9076_v33  ;;  %v1582_v33 = vmul.f32 %v8822_v25, %v1579_v10 }
 0x1bb   :  { %1518 = vrot.lane.b32.xlu1 %v1459_v20, %s8113_s8  ;;  %1516 = vrot.lane.b32.xlu0 %v1458_v50, %s8113_s8  ;;  %v1585_v50 = vmul.f32 %v8837_v21, %v1579_v10 }
 0x1bd   :  { %v9082_v1 = vpop.permute.xlu1 %1142  ;;  %v9084_v6 = vpop.permute.xlu0 %1140 }
 0x1be   :  { %16544 = vst [vmem:[#allocation128_spill] sm:$0xff] %v9082_v1  ;;  %16545 = vst [vmem:[#allocation129_spill] sm:$0xff] %v9084_v6  ;;  %v1584_v1 = vmul.f32 %v8842_v26, %v1579_v10 }
 0x1bf   :  { %1622 = vrot.lane.b32.xlu1 %v1581_v32, %s8114_s1  ;;  %1620 = vrot.lane.b32.xlu0 %v1580_v15, %s8114_s1  ;;  %v1587_v15 = vmul.f32 %v8857_v17, %v1579_v10 }
 0x1c1   :  { %v9090_v4 = vpop.permute.xlu1 %1146  ;;  %v9092_v20 = vpop.permute.xlu0 %1144 }
 0x1c2   :  { %16546 = vst [vmem:[#allocation130_spill] sm:$0xff] %v9090_v4  ;;  %16547 = vst [vmem:[#allocation131_spill] sm:$0xff] %v9092_v20  ;;  %v1586_v4 = vmul.f32 %v8862_v29, %v1579_v10 }
 0x1c3   :  { %1626 = vrot.lane.b32.xlu1 %v1583_v31, %s8114_s1  ;;  %1624 = vrot.lane.b32.xlu0 %v1582_v33, %s8114_s1  ;;  %v1589_v33 = vmul.f32 %v8877_v13, %v1579_v10 }
 0x1c5   :  { %v9098_v6 = vpop.permute.xlu1 %1150  ;;  %v9100_v32 = vpop.permute.xlu0 %1148 }
 0x1c6   :  { %16548 = vst [vmem:[#allocation132_spill] sm:$0xff] %v9098_v6  ;;  %16549 = vst [vmem:[#allocation133_spill] sm:$0xff] %v9100_v32  ;;  %v1588_v6 = vmul.f32 %v8882_v37, %v1579_v10 }
 0x1c7   :  { %1630 = vrot.lane.b32.xlu1 %v1585_v50, %s8114_s1  ;;  %1628 = vrot.lane.b32.xlu0 %v1584_v1, %s8114_s1  ;;  %v1591_v1 = vmul.f32 %v8897_v9, %v1579_v10 }
 0x1c9   :  { %v9106_v20 = vpop.permute.xlu1 %1154  ;;  %v9108_v31 = vpop.permute.xlu0 %1152 }
 0x1ca   :  { %16550 = vst [vmem:[#allocation134_spill] sm:$0xff] %v9106_v20  ;;  %16551 = vst [vmem:[#allocation135_spill] sm:$0xff] %v9108_v31  ;;  %v1590_v20 = vmul.f32 %v8902_v30, %v1579_v10 }
 0x1cb   :  { %1634 = vrot.lane.b32.xlu1 %v1587_v15, %s8114_s1  ;;  %1632 = vrot.lane.b32.xlu0 %v1586_v4, %s8114_s1  ;;  %v1593_v4 = vmul.f32 %v8917_v0, %v1579_v10 }
 0x1cd   :  { %v9114_v32 = vpop.permute.xlu1 %1158  ;;  %v9116_v50 = vpop.permute.xlu0 %1156 }
 0x1ce   :  { %16552 = vst [vmem:[#allocation136_spill] sm:$0xff] %v9114_v32  ;;  %16553 = vst [vmem:[#allocation137_spill] sm:$0xff] %v9116_v50  ;;  %v1592_v50 = vmul.f32 %v8922_v38, %v1579_v10 }
 0x1cf   :  { %1638 = vrot.lane.b32.xlu1 %v1589_v33, %s8114_s1  ;;  %1636 = vrot.lane.b32.xlu0 %v1588_v6, %s8114_s1  ;;  %v1595_v6 = vmul.f32 %v8937_v63, %v1579_v10 }
 0x1d1   :  { %v9122_v31 = vpop.permute.xlu1 %1162  ;;  %v9124_v15 = vpop.permute.xlu0 %1160 }
 0x1d2   :  { %16554 = vst [vmem:[#allocation138_spill] sm:$0xff] %v9122_v31  ;;  %16555 = vst [vmem:[#allocation139_spill] sm:$0xff] %v9124_v15  ;;  %v1594_v31 = vmul.f32 %v8942_v22, %v1579_v10  ;;  %v1719_v15 = vstv %s6889_s26  ;;  %s8121_s26 = smov 99  }
 0x1d3   :  { %1642 = vrot.lane.b32.xlu1 %v1591_v1, %s8114_s1  ;;  %1640 = vrot.lane.b32.xlu0 %v1590_v20, %s8114_s1 }
 0x1d5   :  { %v9130_v32 = vpop.permute.xlu1 %1166  ;;  %v9132_v33 = vpop.permute.xlu0 %1164 }
 0x1d6   :  { %16556 = vst [vmem:[#allocation140_spill] sm:$0xff] %v9130_v32  ;;  %16557 = vst [vmem:[#allocation141_spill] sm:$0xff] %v9132_v33  ;;  %v1597_v32 = vmul.f32 %v8957_v55, %v1579_v10  ;;  %v1596_v33 = vmul.f32 %v8962_v14, %v1579_v10 }
 0x1d7   :  { %1646 = vrot.lane.b32.xlu1 %v1593_v4, %s8114_s1  ;;  %1644 = vrot.lane.b32.xlu0 %v1592_v50, %s8114_s1 }
 0x1d9   :  { %v9138_v1 = vpop.permute.xlu1 %1170  ;;  %v9140_v20 = vpop.permute.xlu0 %1168 }
 0x1da   :  { %16558 = vst [vmem:[#allocation142_spill] sm:$0xff] %v9138_v1  ;;  %16559 = vst [vmem:[#allocation143_spill] sm:$0xff] %v9140_v20  ;;  %v1599_v1 = vmul.f32 %v8977_v58, %v1579_v10  ;;  %v1598_v20 = vmul.f32 %v8982_v3, %v1579_v10  ;;  %v1723_v10 = vmul.f32 %v8817_v42, %v1719_v15 }
 0x1db   :  { %1650 = vrot.lane.b32.xlu1 %v1595_v6, %s8114_s1  ;;  %1648 = vrot.lane.b32.xlu0 %v1594_v31, %s8114_s1 }
 0x1dd   :  { %v9146_v4 = vpop.permute.xlu1 %1174  ;;  %v9148_v50 = vpop.permute.xlu0 %1172 }
 0x1de   :  { %16560 = vst [vmem:[#allocation144_spill] sm:$0xff] %v9146_v4  ;;  %16561 = vst [vmem:[#allocation145_spill] sm:$0xff] %v9148_v50  ;;  %v1721_v4 = vmul.f32 %v8795_v18, %v1719_v15  ;;  %v1720_v50 = vmul.f32 %v8802_v34, %v1719_v15 }
 0x1df   :  { %1654 = vrot.lane.b32.xlu1 %v1597_v32, %s8114_s1  ;;  %1652 = vrot.lane.b32.xlu0 %v1596_v33, %s8114_s1 }
 0x1e1   :  { %v9154_v6 = vpop.permute.xlu1 %1342  ;;  %v9156_v31 = vpop.permute.xlu0 %1340 }
 0x1e2   :  { %16562 = vst [vmem:[#allocation146_spill] sm:$0xff] %v9154_v6  ;;  %16563 = vst [vmem:[#allocation147_spill] sm:$0xff] %v9156_v31  ;;  %v1722_v31 = vmul.f32 %v8822_v25, %v1719_v15 }
 0x1e3   :  { %1658 = vrot.lane.b32.xlu1 %v1599_v1, %s8114_s1  ;;  %1656 = vrot.lane.b32.xlu0 %v1598_v20, %s8114_s1  ;;  %v1725_v20 = vmul.f32 %v8837_v21, %v1719_v15 }
 0x1e5   :  { %v9162_v32 = vpop.permute.xlu1 %1346  ;;  %v9164_v33 = vpop.permute.xlu0 %1344 }
 0x1e6   :  { %16564 = vst [vmem:[#allocation148_spill] sm:$0xff] %v9162_v32  ;;  %16565 = vst [vmem:[#allocation149_spill] sm:$0xff] %v9164_v33  ;;  %v1724_v32 = vmul.f32 %v8842_v26, %v1719_v15 }
 0x1e7   :  { %1762 = vrot.lane.b32.xlu1 %v1721_v4, %s8115_s10  ;;  %1760 = vrot.lane.b32.xlu0 %v1720_v50, %s8115_s10  ;;  %v1727_v50 = vmul.f32 %v8857_v17, %v1719_v15 }
 0x1e9   :  { %v9170_v6 = vpop.permute.xlu1 %1350  ;;  %v9172_v1 = vpop.permute.xlu0 %1348 }
 0x1ea   :  { %16566 = vst [vmem:[#allocation150_spill] sm:$0xff] %v9170_v6  ;;  %16567 = vst [vmem:[#allocation151_spill] sm:$0xff] %v9172_v1  ;;  %v1726_v6 = vmul.f32 %v8862_v29, %v1719_v15 }
 0x1eb   :  { %1766 = vrot.lane.b32.xlu1 %v1723_v10, %s8115_s10  ;;  %1764 = vrot.lane.b32.xlu0 %v1722_v31, %s8115_s10  ;;  %v1729_v31 = vmul.f32 %v8877_v13, %v1719_v15 }
 0x1ed   :  { %v9178_v33 = vpop.permute.xlu1 %1354  ;;  %v9180_v4 = vpop.permute.xlu0 %1352 }
 0x1ee   :  { %16568 = vst [vmem:[#allocation152_spill] sm:$0xff] %v9178_v33  ;;  %16569 = vst [vmem:[#allocation153_spill] sm:$0xff] %v9180_v4  ;;  %v1728_v33 = vmul.f32 %v8882_v37, %v1719_v15 }
 0x1ef   :  { %1770 = vrot.lane.b32.xlu1 %v1725_v20, %s8115_s10  ;;  %1768 = vrot.lane.b32.xlu0 %v1724_v32, %s8115_s10  ;;  %v1731_v32 = vmul.f32 %v8897_v9, %v1719_v15 }
 0x1f1   :  { %v9186_v1 = vpop.permute.xlu1 %1358  ;;  %v9188_v10 = vpop.permute.xlu0 %1356 }
 0x1f2   :  { %16570 = vst [vmem:[#allocation154_spill] sm:$0xff] %v9186_v1  ;;  %16571 = vst [vmem:[#allocation155_spill] sm:$0xff] %v9188_v10  ;;  %v1730_v1 = vmul.f32 %v8902_v30, %v1719_v15 }
 0x1f3   :  { %1774 = vrot.lane.b32.xlu1 %v1727_v50, %s8115_s10  ;;  %1772 = vrot.lane.b32.xlu0 %v1726_v6, %s8115_s10  ;;  %v1733_v6 = vmul.f32 %v8917_v0, %v1719_v15 }
 0x1f5   :  { %v9194_v4 = vpop.permute.xlu1 %1362  ;;  %v9196_v20 = vpop.permute.xlu0 %1360 }
 0x1f6   :  { %16572 = vst [vmem:[#allocation156_spill] sm:$0xff] %v9194_v4  ;;  %16573 = vst [vmem:[#allocation157_spill] sm:$0xff] %v9196_v20  ;;  %v1732_v20 = vmul.f32 %v8922_v38, %v1719_v15 }
 0x1f7   :  { %1778 = vrot.lane.b32.xlu1 %v1729_v31, %s8115_s10  ;;  %1776 = vrot.lane.b32.xlu0 %v1728_v33, %s8115_s10  ;;  %v1735_v33 = vmul.f32 %v8937_v63, %v1719_v15 }
 0x1f9   :  { %v9202_v10 = vpop.permute.xlu1 %1366  ;;  %v9204_v50 = vpop.permute.xlu0 %1364 }
 0x1fa   :  { %16574 = vst [vmem:[#allocation158_spill] sm:$0xff] %v9202_v10  ;;  %16575 = vst [vmem:[#allocation159_spill] sm:$0xff] %v9204_v50  ;;  %v1734_v10 = vmul.f32 %v8942_v22, %v1719_v15  ;;  %v1859_v50 = vstv %s6890_s27  ;;  %s6896_s27 = sld [smem:[#allocation2 + $0x13]] }
 0x1fb   :  { %1782 = vrot.lane.b32.xlu1 %v1731_v32, %s8115_s10  ;;  %1780 = vrot.lane.b32.xlu0 %v1730_v1, %s8115_s10 }
 0x1fd   :  { %v9210_v4 = vpop.permute.xlu1 %1370  ;;  %v9212_v31 = vpop.permute.xlu0 %1368 }
 0x1fe   :  { %16576 = vst [vmem:[#allocation160_spill] sm:$0xff] %v9210_v4  ;;  %16577 = vst [vmem:[#allocation161_spill] sm:$0xff] %v9212_v31  ;;  %v1737_v4 = vmul.f32 %v8957_v55, %v1719_v15  ;;  %v1736_v31 = vmul.f32 %v8962_v14, %v1719_v15 }
 0x1ff   :  { %1786 = vrot.lane.b32.xlu1 %v1733_v6, %s8115_s10  ;;  %1784 = vrot.lane.b32.xlu0 %v1732_v20, %s8115_s10 }
 0x201   :  { %v9218_v32 = vpop.permute.xlu1 %1374  ;;  %v9220_v1 = vpop.permute.xlu0 %1372 }
 0x202   :  { %16578 = vst [vmem:[#allocation162_spill] sm:$0xff] %v9218_v32  ;;  %16579 = vst [vmem:[#allocation163_spill] sm:$0xff] %v9220_v1  ;;  %v1739_v32 = vmul.f32 %v8977_v58, %v1719_v15  ;;  %v1738_v1 = vmul.f32 %v8982_v3, %v1719_v15  ;;  %v1863_v15 = vmul.f32 %v8817_v42, %v1859_v50 }
 0x203   :  { %1790 = vrot.lane.b32.xlu1 %v1735_v33, %s8115_s10  ;;  %1788 = vrot.lane.b32.xlu0 %v1734_v10, %s8115_s10 }
 0x205   :  { %v9226_v6 = vpop.permute.xlu1 %1378  ;;  %v9228_v20 = vpop.permute.xlu0 %1376 }
 0x206   :  { %16580 = vst [vmem:[#allocation164_spill] sm:$0xff] %v9226_v6  ;;  %16581 = vst [vmem:[#allocation165_spill] sm:$0xff] %v9228_v20  ;;  %v1861_v6 = vmul.f32 %v8795_v18, %v1859_v50  ;;  %v1860_v20 = vmul.f32 %v8802_v34, %v1859_v50 }
 0x207   :  { %1794 = vrot.lane.b32.xlu1 %v1737_v4, %s8115_s10  ;;  %1792 = vrot.lane.b32.xlu0 %v1736_v31, %s8115_s10 }
 0x209   :  { %v9234_v33 = vpop.permute.xlu1 %1482  ;;  %v9236_v10 = vpop.permute.xlu0 %1480 }
 0x20a   :  { %16582 = vst [vmem:[#allocation166_spill] sm:$0xff] %v9234_v33  ;;  %16583 = vst [vmem:[#allocation167_spill] sm:$0xff] %v9236_v10  ;;  %v1862_v10 = vmul.f32 %v8822_v25, %v1859_v50 }
 0x20b   :  { %1798 = vrot.lane.b32.xlu1 %v1739_v32, %s8115_s10  ;;  %1796 = vrot.lane.b32.xlu0 %v1738_v1, %s8115_s10  ;;  %v1865_v1 = vmul.f32 %v8837_v21, %v1859_v50 }
 0x20d   :  { %v9242_v4 = vpop.permute.xlu1 %1486  ;;  %v9244_v31 = vpop.permute.xlu0 %1484 }
 0x20e   :  { %16584 = vst [vmem:[#allocation168_spill] sm:$0xff] %v9242_v4  ;;  %16585 = vst [vmem:[#allocation169_spill] sm:$0xff] %v9244_v31  ;;  %v1864_v4 = vmul.f32 %v8842_v26, %v1859_v50 }
 0x20f   :  { %1902 = vrot.lane.b32.xlu1 %v1861_v6, %s8116_s12  ;;  %1900 = vrot.lane.b32.xlu0 %v1860_v20, %s8116_s12  ;;  %v1867_v20 = vmul.f32 %v8857_v17, %v1859_v50 }
 0x211   :  { %v9250_v33 = vpop.permute.xlu1 %1490  ;;  %v9252_v32 = vpop.permute.xlu0 %1488 }
 0x212   :  { %16586 = vst [vmem:[#allocation170_spill] sm:$0xff] %v9250_v33  ;;  %16587 = vst [vmem:[#allocation171_spill] sm:$0xff] %v9252_v32  ;;  %v1866_v33 = vmul.f32 %v8862_v29, %v1859_v50 }
 0x213   :  { %1906 = vrot.lane.b32.xlu1 %v1863_v15, %s8116_s12  ;;  %1904 = vrot.lane.b32.xlu0 %v1862_v10, %s8116_s12  ;;  %v1869_v10 = vmul.f32 %v8877_v13, %v1859_v50 }
 0x215   :  { %v9258_v31 = vpop.permute.xlu1 %1494  ;;  %v9260_v6 = vpop.permute.xlu0 %1492 }
 0x216   :  { %16588 = vst [vmem:[#allocation172_spill] sm:$0xff] %v9258_v31  ;;  %16589 = vst [vmem:[#allocation173_spill] sm:$0xff] %v9260_v6  ;;  %v1868_v31 = vmul.f32 %v8882_v37, %v1859_v50 }
 0x217   :  { %1910 = vrot.lane.b32.xlu1 %v1865_v1, %s8116_s12  ;;  %1908 = vrot.lane.b32.xlu0 %v1864_v4, %s8116_s12  ;;  %v1871_v4 = vmul.f32 %v8897_v9, %v1859_v50 }
 0x219   :  { %v9266_v32 = vpop.permute.xlu1 %1498  ;;  %v9268_v15 = vpop.permute.xlu0 %1496 }
 0x21a   :  { %16590 = vst [vmem:[#allocation174_spill] sm:$0xff] %v9266_v32  ;;  %16591 = vst [vmem:[#allocation175_spill] sm:$0xff] %v9268_v15  ;;  %v1870_v32 = vmul.f32 %v8902_v30, %v1859_v50 }
 0x21b   :  { %1914 = vrot.lane.b32.xlu1 %v1867_v20, %s8116_s12  ;;  %1912 = vrot.lane.b32.xlu0 %v1866_v33, %s8116_s12  ;;  %v1873_v33 = vmul.f32 %v8917_v0, %v1859_v50 }
 0x21d   :  { %v9274_v6 = vpop.permute.xlu1 %1502  ;;  %v9276_v1 = vpop.permute.xlu0 %1500 }
 0x21e   :  { %16592 = vst [vmem:[#allocation176_spill] sm:$0xff] %v9274_v6  ;;  %16593 = vst [vmem:[#allocation177_spill] sm:$0xff] %v9276_v1  ;;  %v1872_v1 = vmul.f32 %v8922_v38, %v1859_v50 }
 0x21f   :  { %1918 = vrot.lane.b32.xlu1 %v1869_v10, %s8116_s12  ;;  %1916 = vrot.lane.b32.xlu0 %v1868_v31, %s8116_s12  ;;  %v1875_v31 = vmul.f32 %v8937_v63, %v1859_v50 }
 0x221   :  { %v9282_v15 = vpop.permute.xlu1 %1506  ;;  %v9284_v20 = vpop.permute.xlu0 %1504 }
 0x222   :  { %16594 = vst [vmem:[#allocation178_spill] sm:$0xff] %v9282_v15  ;;  %16595 = vst [vmem:[#allocation179_spill] sm:$0xff] %v9284_v20  ;;  %v1874_v15 = vmul.f32 %v8942_v22, %v1859_v50  ;;  %v1999_v20 = vstv %s6891_s28  ;;  %s6908_s28 = sld [smem:[#allocation2 + $0x1f]] }
 0x223   :  { %1922 = vrot.lane.b32.xlu1 %v1871_v4, %s8116_s12  ;;  %1920 = vrot.lane.b32.xlu0 %v1870_v32, %s8116_s12 }
 0x225   :  { %v9290_v6 = vpop.permute.xlu1 %1510  ;;  %v9292_v10 = vpop.permute.xlu0 %1508 }
 0x226   :  { %16596 = vst [vmem:[#allocation180_spill] sm:$0xff] %v9290_v6  ;;  %16597 = vst [vmem:[#allocation181_spill] sm:$0xff] %v9292_v10  ;;  %v1877_v6 = vmul.f32 %v8957_v55, %v1859_v50  ;;  %v1876_v10 = vmul.f32 %v8962_v14, %v1859_v50 }
 0x227   :  { %1926 = vrot.lane.b32.xlu1 %v1873_v33, %s8116_s12  ;;  %1924 = vrot.lane.b32.xlu0 %v1872_v1, %s8116_s12 }
 0x229   :  { %v9298_v4 = vpop.permute.xlu1 %1514  ;;  %v9300_v32 = vpop.permute.xlu0 %1512 }
 0x22a   :  { %16598 = vst [vmem:[#allocation182_spill] sm:$0xff] %v9298_v4  ;;  %16599 = vst [vmem:[#allocation183_spill] sm:$0xff] %v9300_v32  ;;  %v1879_v4 = vmul.f32 %v8977_v58, %v1859_v50  ;;  %v1878_v32 = vmul.f32 %v8982_v3, %v1859_v50  ;;  %v2003_v50 = vmul.f32 %v8817_v42, %v1999_v20 }
 0x22b   :  { %1930 = vrot.lane.b32.xlu1 %v1875_v31, %s8116_s12  ;;  %1928 = vrot.lane.b32.xlu0 %v1874_v15, %s8116_s12 }
 0x22d   :  { %v9306_v33 = vpop.permute.xlu1 %1518  ;;  %v9308_v1 = vpop.permute.xlu0 %1516 }
 0x22e   :  { %16600 = vst [vmem:[#allocation184_spill] sm:$0xff] %v9306_v33  ;;  %16601 = vst [vmem:[#allocation185_spill] sm:$0xff] %v9308_v1  ;;  %v2001_v33 = vmul.f32 %v8795_v18, %v1999_v20  ;;  %v2000_v1 = vmul.f32 %v8802_v34, %v1999_v20 }
 0x22f   :  { %1934 = vrot.lane.b32.xlu1 %v1877_v6, %s8116_s12  ;;  %1932 = vrot.lane.b32.xlu0 %v1876_v10, %s8116_s12 }
 0x231   :  { %v9314_v31 = vpop.permute.xlu1 %1622  ;;  %v9316_v15 = vpop.permute.xlu0 %1620 }
 0x232   :  { %16602 = vst [vmem:[#allocation186_spill] sm:$0xff] %v9314_v31  ;;  %16603 = vst [vmem:[#allocation187_spill] sm:$0xff] %v9316_v15  ;;  %v2002_v15 = vmul.f32 %v8822_v25, %v1999_v20 }
 0x233   :  { %1938 = vrot.lane.b32.xlu1 %v1879_v4, %s8116_s12  ;;  %1936 = vrot.lane.b32.xlu0 %v1878_v32, %s8116_s12  ;;  %v2005_v32 = vmul.f32 %v8837_v21, %v1999_v20 }
 0x235   :  { %v9322_v6 = vpop.permute.xlu1 %1626  ;;  %v9324_v10 = vpop.permute.xlu0 %1624 }
 0x236   :  { %16604 = vst [vmem:[#allocation188_spill] sm:$0xff] %v9322_v6  ;;  %16605 = vst [vmem:[#allocation189_spill] sm:$0xff] %v9324_v10  ;;  %v2004_v6 = vmul.f32 %v8842_v26, %v1999_v20 }
 0x237   :  { %2042 = vrot.lane.b32.xlu1 %v2001_v33, %s8117_s14  ;;  %2040 = vrot.lane.b32.xlu0 %v2000_v1, %s8117_s14  ;;  %v2007_v1 = vmul.f32 %v8857_v17, %v1999_v20 }
 0x239   :  { %v9330_v31 = vpop.permute.xlu1 %1630  ;;  %v9332_v4 = vpop.permute.xlu0 %1628 }
 0x23a   :  { %16606 = vst [vmem:[#allocation190_spill] sm:$0xff] %v9330_v31  ;;  %16607 = vst [vmem:[#allocation191_spill] sm:$0xff] %v9332_v4  ;;  %v2006_v31 = vmul.f32 %v8862_v29, %v1999_v20 }
 0x23b   :  { %2046 = vrot.lane.b32.xlu1 %v2003_v50, %s8117_s14  ;;  %2044 = vrot.lane.b32.xlu0 %v2002_v15, %s8117_s14  ;;  %v2009_v15 = vmul.f32 %v8877_v13, %v1999_v20 }
 0x23d   :  { %v9338_v10 = vpop.permute.xlu1 %1634  ;;  %v9340_v33 = vpop.permute.xlu0 %1632 }
 0x23e   :  { %16608 = vst [vmem:[#allocation192_spill] sm:$0xff] %v9338_v10  ;;  %16609 = vst [vmem:[#allocation193_spill] sm:$0xff] %v9340_v33  ;;  %v2008_v10 = vmul.f32 %v8882_v37, %v1999_v20 }
 0x23f   :  { %2050 = vrot.lane.b32.xlu1 %v2005_v32, %s8117_s14  ;;  %2048 = vrot.lane.b32.xlu0 %v2004_v6, %s8117_s14  ;;  %v2011_v6 = vmul.f32 %v8897_v9, %v1999_v20 }
 0x241   :  { %v9346_v4 = vpop.permute.xlu1 %1638  ;;  %v9348_v50 = vpop.permute.xlu0 %1636 }
 0x242   :  { %16610 = vst [vmem:[#allocation194_spill] sm:$0xff] %v9346_v4  ;;  %16611 = vst [vmem:[#allocation195_spill] sm:$0xff] %v9348_v50  ;;  %v2010_v4 = vmul.f32 %v8902_v30, %v1999_v20 }
 0x243   :  { %2054 = vrot.lane.b32.xlu1 %v2007_v1, %s8117_s14  ;;  %2052 = vrot.lane.b32.xlu0 %v2006_v31, %s8117_s14  ;;  %v2013_v31 = vmul.f32 %v8917_v0, %v1999_v20 }
 0x245   :  { %v9354_v33 = vpop.permute.xlu1 %1642  ;;  %v9356_v32 = vpop.permute.xlu0 %1640 }
 0x246   :  { %16612 = vst [vmem:[#allocation196_spill] sm:$0xff] %v9354_v33  ;;  %16613 = vst [vmem:[#allocation197_spill] sm:$0xff] %v9356_v32  ;;  %v2012_v32 = vmul.f32 %v8922_v38, %v1999_v20 }
 0x247   :  { %2058 = vrot.lane.b32.xlu1 %v2009_v15, %s8117_s14  ;;  %2056 = vrot.lane.b32.xlu0 %v2008_v10, %s8117_s14  ;;  %v2015_v10 = vmul.f32 %v8937_v63, %v1999_v20 }
 0x249   :  { %v9362_v50 = vpop.permute.xlu1 %1646  ;;  %v9364_v1 = vpop.permute.xlu0 %1644 }
 0x24a   :  { %16614 = vst [vmem:[#allocation198_spill] sm:$0xff] %v9362_v50  ;;  %16615 = vst [vmem:[#allocation199_spill] sm:$0xff] %v9364_v1  ;;  %v2014_v50 = vmul.f32 %v8942_v22, %v1999_v20  ;;  %v2139_v1 = vstv %s6892_s29  ;;  %s6905_s29 = sld [smem:[#allocation2 + $0x1c]] }
 0x24b   :  { %2062 = vrot.lane.b32.xlu1 %v2011_v6, %s8117_s14  ;;  %2060 = vrot.lane.b32.xlu0 %v2010_v4, %s8117_s14 }
 0x24d   :  { %v9370_v33 = vpop.permute.xlu1 %1650  ;;  %v9372_v15 = vpop.permute.xlu0 %1648 }
 0x24e   :  { %16616 = vst [vmem:[#allocation200_spill] sm:$0xff] %v9370_v33  ;;  %16617 = vst [vmem:[#allocation201_spill] sm:$0xff] %v9372_v15  ;;  %v2017_v33 = vmul.f32 %v8957_v55, %v1999_v20  ;;  %v2016_v15 = vmul.f32 %v8962_v14, %v1999_v20 }
 0x24f   :  { %2066 = vrot.lane.b32.xlu1 %v2013_v31, %s8117_s14  ;;  %2064 = vrot.lane.b32.xlu0 %v2012_v32, %s8117_s14 }
 0x251   :  { %v9378_v6 = vpop.permute.xlu1 %1654  ;;  %v9380_v4 = vpop.permute.xlu0 %1652 }
 0x252   :  { %16618 = vst [vmem:[#allocation202_spill] sm:$0xff] %v9378_v6  ;;  %16619 = vst [vmem:[#allocation203_spill] sm:$0xff] %v9380_v4  ;;  %v2019_v6 = vmul.f32 %v8977_v58, %v1999_v20  ;;  %v2018_v4 = vmul.f32 %v8982_v3, %v1999_v20  ;;  %v2143_v20 = vmul.f32 %v8817_v42, %v2139_v1 }
 0x253   :  { %2070 = vrot.lane.b32.xlu1 %v2015_v10, %s8117_s14  ;;  %2068 = vrot.lane.b32.xlu0 %v2014_v50, %s8117_s14 }
 0x255   :  { %v9386_v31 = vpop.permute.xlu1 %1658  ;;  %v9388_v32 = vpop.permute.xlu0 %1656 }
 0x256   :  { %16620 = vst [vmem:[#allocation204_spill] sm:$0xff] %v9386_v31  ;;  %16621 = vst [vmem:[#allocation205_spill] sm:$0xff] %v9388_v32  ;;  %v2141_v31 = vmul.f32 %v8795_v18, %v2139_v1  ;;  %v2140_v32 = vmul.f32 %v8802_v34, %v2139_v1 }
 0x257   :  { %2074 = vrot.lane.b32.xlu1 %v2017_v33, %s8117_s14  ;;  %2072 = vrot.lane.b32.xlu0 %v2016_v15, %s8117_s14 }
 0x259   :  { %v9394_v10 = vpop.permute.xlu1 %1762  ;;  %v9396_v50 = vpop.permute.xlu0 %1760 }
 0x25a   :  { %16622 = vst [vmem:[#allocation206_spill] sm:$0xff] %v9394_v10  ;;  %16623 = vst [vmem:[#allocation207_spill] sm:$0xff] %v9396_v50  ;;  %v2142_v50 = vmul.f32 %v8822_v25, %v2139_v1 }
 0x25b   :  { %2078 = vrot.lane.b32.xlu1 %v2019_v6, %s8117_s14  ;;  %2076 = vrot.lane.b32.xlu0 %v2018_v4, %s8117_s14  ;;  %v2145_v4 = vmul.f32 %v8837_v21, %v2139_v1 }
 0x25d   :  { %v9402_v33 = vpop.permute.xlu1 %1766  ;;  %v9404_v15 = vpop.permute.xlu0 %1764 }
 0x25e   :  { %16624 = vst [vmem:[#allocation208_spill] sm:$0xff] %v9402_v33  ;;  %16625 = vst [vmem:[#allocation209_spill] sm:$0xff] %v9404_v15  ;;  %v2144_v33 = vmul.f32 %v8842_v26, %v2139_v1 }
 0x25f   :  { %2182 = vrot.lane.b32.xlu1 %v2141_v31, %s8118_s16  ;;  %2180 = vrot.lane.b32.xlu0 %v2140_v32, %s8118_s16  ;;  %v2147_v32 = vmul.f32 %v8857_v17, %v2139_v1 }
 0x261   :  { %v9410_v10 = vpop.permute.xlu1 %1770  ;;  %v9412_v6 = vpop.permute.xlu0 %1768 }
 0x262   :  { %16626 = vst [vmem:[#allocation210_spill] sm:$0xff] %v9410_v10  ;;  %16627 = vst [vmem:[#allocation211_spill] sm:$0xff] %v9412_v6  ;;  %v2146_v10 = vmul.f32 %v8862_v29, %v2139_v1 }
 0x263   :  { %2186 = vrot.lane.b32.xlu1 %v2143_v20, %s8118_s16  ;;  %2184 = vrot.lane.b32.xlu0 %v2142_v50, %s8118_s16  ;;  %v2149_v50 = vmul.f32 %v8877_v13, %v2139_v1 }
 0x265   :  { %v9418_v15 = vpop.permute.xlu1 %1774  ;;  %v9420_v31 = vpop.permute.xlu0 %1772 }
 0x266   :  { %16628 = vst [vmem:[#allocation212_spill] sm:$0xff] %v9418_v15  ;;  %16629 = vst [vmem:[#allocation213_spill] sm:$0xff] %v9420_v31  ;;  %v2148_v15 = vmul.f32 %v8882_v37, %v2139_v1 }
 0x267   :  { %2190 = vrot.lane.b32.xlu1 %v2145_v4, %s8118_s16  ;;  %2188 = vrot.lane.b32.xlu0 %v2144_v33, %s8118_s16  ;;  %v2151_v33 = vmul.f32 %v8897_v9, %v2139_v1 }
 0x269   :  { %v9426_v6 = vpop.permute.xlu1 %1778  ;;  %v9428_v20 = vpop.permute.xlu0 %1776 }
 0x26a   :  { %16630 = vst [vmem:[#allocation214_spill] sm:$0xff] %v9426_v6  ;;  %16631 = vst [vmem:[#allocation215_spill] sm:$0xff] %v9428_v20  ;;  %v2150_v6 = vmul.f32 %v8902_v30, %v2139_v1 }
 0x26b   :  { %2194 = vrot.lane.b32.xlu1 %v2147_v32, %s8118_s16  ;;  %2192 = vrot.lane.b32.xlu0 %v2146_v10, %s8118_s16  ;;  %v2153_v10 = vmul.f32 %v8917_v0, %v2139_v1 }
 0x26d   :  { %v9434_v31 = vpop.permute.xlu1 %1782  ;;  %v9436_v4 = vpop.permute.xlu0 %1780 }
 0x26e   :  { %16632 = vst [vmem:[#allocation216_spill] sm:$0xff] %v9434_v31  ;;  %16633 = vst [vmem:[#allocation217_spill] sm:$0xff] %v9436_v4  ;;  %v2152_v4 = vmul.f32 %v8922_v38, %v2139_v1 }
 0x26f   :  { %2198 = vrot.lane.b32.xlu1 %v2149_v50, %s8118_s16  ;;  %2196 = vrot.lane.b32.xlu0 %v2148_v15, %s8118_s16  ;;  %v2155_v15 = vmul.f32 %v8937_v63, %v2139_v1  ;;  %v2159_v63 = vmul.f32 %v8977_v58, %v2139_v1 }
 0x271   :  { %v9442_v20 = vpop.permute.xlu1 %1786  ;;  %v9444_v32 = vpop.permute.xlu0 %1784 }
 0x272   :  { %16634 = vst [vmem:[#allocation218_spill] sm:$0xff] %v9442_v20  ;;  %16635 = vst [vmem:[#allocation219_spill] sm:$0xff] %v9444_v32  ;;  %v2154_v20 = vmul.f32 %v8942_v22, %v2139_v1  ;;  %v2158_v22 = vmul.f32 %v8982_v3, %v2139_v1  ;;  %v86_v3 = vstv %s85_s9 }
 0x273   :  { %2202 = vrot.lane.b32.xlu1 %v2151_v33, %s8118_s16  ;;  %2200 = vrot.lane.b32.xlu0 %v2150_v6, %s8118_s16 }
 0x275   :  { %v9450_v31 = vpop.permute.xlu1 %1790  ;;  %v9452_v50 = vpop.permute.xlu0 %1788 }
 0x276   :  { %16636 = vst [vmem:[#allocation220_spill] sm:$0xff] %v9450_v31  ;;  %16637 = vst [vmem:[#allocation221_spill] sm:$0xff] %v9452_v50  ;;  %v2157_v31 = vmul.f32 %v8957_v55, %v2139_v1  ;;  %v2156_v50 = vmul.f32 %v8962_v14, %v2139_v1 }
 0x277   :  { %2206 = vrot.lane.b32.xlu1 %v2153_v10, %s8118_s16  ;;  %2204 = vrot.lane.b32.xlu0 %v2152_v4, %s8118_s16 }
 0x279   :  { %v9458_v33 = vpop.permute.xlu1 %1794  ;;  %v9460_v6 = vpop.permute.xlu0 %1792 }
 0x27a   :  { %16638 = vst [vmem:[#allocation222_spill] sm:$0xff] %v9458_v33  ;;  %16639 = vst [vmem:[#allocation223_spill] sm:$0xff] %v9460_v6 }
 0x27b   :  { %2210 = vrot.lane.b32.xlu1 %v2155_v15, %s8118_s16  ;;  %2208 = vrot.lane.b32.xlu0 %v2154_v20, %s8118_s16  ;;  %v9474_v15 = vstv %s6893_s30  ;;  %s6912_s30 = sld [smem:[#allocation2 + $0x23]] }
 0x27c   :  { %v2281_v14 = vmul.f32 %v8795_v18, %v9474_v15  ;;  %v2283_v1 = vmul.f32 %v8817_v42, %v9474_v15  ;;  %v7914_v18 = vld [vmem:[%s15881_s3 + $0x10] sm:$0xff]  ;;  %v7916_v42 = vld [vmem:[%s15881_s3] sm:$0xff] }
 0x27d   :  { %v9466_v10 = vpop.permute.xlu1 %1798  ;;  %v9468_v4 = vpop.permute.xlu0 %1796 }
 0x27e   :  { %16640 = vst [vmem:[#allocation224_spill] sm:$0xff] %v9466_v10  ;;  %16641 = vst [vmem:[#allocation225_spill] sm:$0xff] %v9468_v4  ;;  %v7922_v4 = vld [vmem:[%s15881_s3 + $0x38] sm:$0xff] }
 0x27f   :  { %2214 = vrot.lane.b32.xlu1 %v2157_v31, %s8118_s16  ;;  %2212 = vrot.lane.b32.xlu0 %v2156_v50, %s8118_s16  ;;  %v2280_v31 = vmul.f32 %v8802_v34, %v9474_v15  ;;  %v89_v34 = vmul.f32 %v7914_v18, %v86_v3  ;;  %v7918_v18 = vld [vmem:[%s15881_s3 + $0x20] sm:$0xff] }
 0x281   :  { %v9476_v20 = vpop.permute.xlu1 %1902  ;;  %v9478_v55 = vpop.permute.xlu0 %1900 }
 0x282   :  { %16642 = vst [vmem:[#allocation226_spill] sm:$0xff] %v9476_v20  ;;  %16643 = vst [vmem:[#allocation227_spill] sm:$0xff] %v9478_v55  ;;  %v91_v20 = vmul.f32 %v7918_v18, %v86_v3  ;;  %v2284_v18 = vmul.f32 %v8842_v26, %v9474_v15 }
 0x283   :  { %2218 = vrot.lane.b32.xlu1 %v2159_v63, %s8118_s16  ;;  %2216 = vrot.lane.b32.xlu0 %v2158_v22, %s8118_s16  ;;  %v2282_v63 = vmul.f32 %v8822_v25, %v9474_v15  ;;  %v7915_v22 = vld [vmem:[%s15881_s3 + $0x8] sm:$0xff]  ;;  %v7917_v25 = vld [vmem:[%s15881_s3 + $0x18] sm:$0xff] }
 0x284   :  { %v90_v55 = vmul.f32 %v7917_v25, %v86_v3  ;;  %v2285_v25 = vmul.f32 %v8837_v21, %v9474_v15  ;;  %v7924_v21 = vld [vmem:[%s15881_s3 + $0x50] sm:$0xff] }
 0x285   :  { %v9486_v50 = vpop.permute.xlu1 %1906  ;;  %v9488_v58 = vpop.permute.xlu0 %1904  ;;  %v9539_v26 = vmul.f32 %v7924_v21, %v86_v3  ;;  %v7928_v21 = vld [vmem:[%s15881_s3 + $0x70] sm:$0xff] }
 0x286   :  { %16644 = vst [vmem:[#allocation228_spill] sm:$0xff] %v9486_v50  ;;  %16645 = vst [vmem:[#allocation229_spill] sm:$0xff] %v9488_v58  ;;  %v88_v50 = vmul.f32 %v7915_v22, %v86_v3  ;;  %v7919_v22 = vld [vmem:[%s15881_s3 + $0x28] sm:$0xff]  ;;  %v101_v43 = vmul.f32 %v7928_v21, %v86_v3  ;;  %v7929_v21 = vld [vmem:[%s15881_s3 + $0x78] sm:$0xff] }
 0x287   :  { %2322 = vrot.lane.b32.xlu1 %v2281_v14, %s8119_s17  ;;  %2320 = vrot.lane.b32.xlu0 %v2280_v31, %s8119_s17  ;;  %v87_v31 = vmul.f32 %v7916_v42, %v86_v3  ;;  %v7920_v42 = vld [vmem:[%s15881_s3 + $0x30] sm:$0xff]  ;;  %v102_v23 = vmul.f32 %v7929_v21, %v86_v3  ;;  %v7931_v21 = vld [vmem:[%s15881_s3 + $0x98] sm:$0xff] }
 0x289   :  { %v9502_v58 = vpop.permute.xlu1 %1910  ;;  %v9504_v14 = vpop.permute.xlu0 %1908 }
 0x28a   :  { %16646 = vst [vmem:[#allocation230_spill] sm:$0xff] %v9502_v58  ;;  %16647 = vst [vmem:[#allocation231_spill] sm:$0xff] %v9504_v14  ;;  %v92_v58 = vmul.f32 %v7919_v22, %v86_v3  ;;  %v93_v14 = vmul.f32 %v7920_v42, %v86_v3  ;;  %v7921_v22 = vld [vmem:[%s15881_s3 + $0x48] sm:$0xff]  ;;  %v94_v42 = vmul.f32 %v7922_v4, %v86_v3  ;;  %v7926_v4 = vld [vmem:[%s15881_s3 + $0x60] sm:$0xff] }
 0x28b   :  { %2326 = vrot.lane.b32.xlu1 %v2283_v1, %s8119_s17  ;;  %2324 = vrot.lane.b32.xlu0 %v2282_v63, %s8119_s17  ;;  %v96_v10 = vmul.f32 %v7921_v22, %v86_v3  ;;  %v7923_v1 = vld [vmem:[%s15881_s3 + $0x40] sm:$0xff]  ;;  %v7925_v22 = vld [vmem:[%s15881_s3 + $0x58] sm:$0xff]  ;;  %v99_v6 = vmul.f32 %v7926_v4, %v86_v3  ;;  %v190_v4 = vsel %vm189_vm0, %v8394_v41, %v8402_v45 }
 0x28c   :  { %v95_v63 = vmul.f32 %v7923_v1, %v86_v3  ;;  %v9544_v33 = vmul.f32 %v7925_v22, %v86_v3  ;;  %v7927_v1 = vld [vmem:[%s15881_s3 + $0x68] sm:$0xff]  ;;  %v192_v22 = vsel %vm189_vm0, %v8392_v40, %v8400_v44  ;;  %v2287_v41 = vmul.f32 %v8857_v17, %v9474_v15  ;;  %v7933_v17 = vld [vmem:[%s15881_s3 + $0x90] sm:$0xff] }
 0x28d   :  { %v100_v32 = vmul.f32 %v7927_v1, %v86_v3  ;;  %v9555_v39 = vpop.permute.xlu1 %1914  ;;  %v9557_v28 = vpop.permute.xlu0 %1912  ;;  %v191_v1 = vsel %vm189_vm0, %v8402_v45, %v8392_v40  ;;  %v7930_v40 = vld [vmem:[%s15881_s3 + $0x80] sm:$0xff]  ;;  %v9592_v7 = vadd.f32 %v192_v22, %v89_v34  ;;  %v228_v62 = vadd.f32 %v190_v4, %v87_v31 }
 0x28e   :  { %16648 = vst [vmem:[#allocation232_spill] sm:$0xff] %v9555_v39  ;;  %16649 = vst [vmem:[#allocation233_spill] sm:$0xff] %v9557_v28  ;;  %v193_v39 = vsel %vm189_vm0, %v8400_v44, %v8410_v49  ;;  %v2286_v28 = vmul.f32 %v8862_v29, %v9474_v15  ;;  %v103_v45 = vmul.f32 %v7930_v40, %v86_v3 }
 0x28f   :  { %2330 = vrot.lane.b32.xlu1 %v2285_v25, %s8119_s17  ;;  %2328 = vrot.lane.b32.xlu0 %v2284_v18, %s8119_s17  ;;  %v106_v44 = vmul.f32 %v7931_v21, %v86_v3  ;;  %v7932_v25 = vld [vmem:[%s15881_s3 + $0x88] sm:$0xff]  ;;  %v105_v29 = vmul.f32 %v7933_v17, %v86_v3  ;;  %v194_v40 = vsel %vm189_vm0, %v8410_v49, %v8408_v48 }
 0x290   :  { %v104_v18 = vmul.f32 %v7932_v25, %v86_v3  ;;  %v195_v21 = vsel %vm189_vm0, %v8408_v48, %v8418_v53  ;;  %v229_v3 = vadd.f32 %v191_v1, %v88_v50  ;;  %v231_v34 = vadd.f32 %v193_v39, %v90_v55  ;;  %v16660_v17 = vld [vmem:[#allocation15_spill] sm:$0xff] }
 0x291   :  { %v9603_v25 = vpop.permute.xlu1 %1918  ;;  %v9605_v59 = vpop.permute.xlu0 %1916  ;;  %v197_v22 = vsel %vm189_vm0, %v8416_v52, %v8426_v57  ;;  %v198_v49 = vsel %vm189_vm0, %v8426_v57, %v8424_v56  ;;  %v2289_v48 = vmul.f32 %v8877_v13, %v9474_v15  ;;  %v2288_v53 = vmul.f32 %v8882_v37, %v9474_v15 }
 0x292   :  { %16650 = vst [vmem:[#allocation234_spill] sm:$0xff] %v9603_v25  ;;  %16651 = vst [vmem:[#allocation235_spill] sm:$0xff] %v9605_v59  ;;  %v232_v39 = vadd.f32 %v194_v40, %v91_v20  ;;  %v233_v55 = vadd.f32 %v195_v21, %v92_v58  ;;  %v234_v50 = vadd.f32 %v196_v12, %v93_v14  ;;  %v16662_v40 = vld [vmem:[#allocation16_spill] sm:$0xff]  ;;  %v16663_v21 = vld [vmem:[#allocation17_spill] sm:$0xff] }
 0x293   :  { %2334 = vrot.lane.b32.xlu1 %v2287_v41, %s8119_s17  ;;  %2332 = vrot.lane.b32.xlu0 %v2286_v28, %s8119_s17  ;;  %v237_v52 = vadd.f32 %v8424_v56, %v96_v10  ;;  %v199_v57 = vsel %vm189_vm0, %v8434_v61, %v8432_v60  ;;  %v200_v31 = vsel %vm189_vm0, %v8432_v60, %v8442_v5  ;;  %v16656_v41 = vld [vmem:[#allocation13_spill] sm:$0xff] }
 0x294   :  { %v201_v28 = vsel %vm189_vm0, %v8442_v5, %v8440_v2  ;;  %v202_v13 = vsel %vm189_vm0, %v8440_v2, %v8450_v11  ;;  %v235_v56 = vadd.f32 %v197_v22, %v94_v42  ;;  %v236_v10 = vadd.f32 %v198_v49, %v95_v63  ;;  %v9741_v22 = vld [vmem:[%s15881_s3 + $0x110] sm:$0xff]  ;;  %v16780_v59 = vld [vmem:[#allocation105_spill] sm:$0xff] }
 0x295   :  { %v9632_v37 = vpop.permute.xlu1 %1922  ;;  %v9634_v12 = vpop.permute.xlu0 %1920  ;;  %v203_v61 = vsel %vm189_vm0, %v8450_v11, %v8448_v8  ;;  %v204_v60 = vsel %vm189_vm0, %v8448_v8, %v8458_v19  ;;  %v205_v5 = vsel %vm189_vm0, %v8458_v19, %v8456_v16  ;;  %v2291_v2 = vmul.f32 %v8897_v9, %v9474_v15 }
 0x296   :  { %16652 = vst [vmem:[#allocation236_spill] sm:$0xff] %v9632_v37  ;;  %16653 = vst [vmem:[#allocation237_spill] sm:$0xff] %v9634_v12  ;;  %v2290_v20 = vmul.f32 %v8902_v30, %v9474_v15  ;;  %v238_v11 = vadd.f32 %v199_v57, %v9539_v26  ;;  %v9653_v58 = vadd.f32 %v200_v31, %v9544_v33 }
 0x297   :  { %2338 = vrot.lane.b32.xlu1 %v2289_v48, %s8119_s17  ;;  %2336 = vrot.lane.b32.xlu0 %v2288_v53, %s8119_s17  ;;  %v9655_v8 = vadd.f32 %v201_v28, %v99_v6  ;;  %v9657_v14 = vadd.f32 %v202_v13, %v100_v32  ;;  %v9659_v19 = vadd.f32 %v203_v61, %v101_v43  ;;  %v2420_v48 = vlaneseq  ;;  %v16664_v13 = vld [vmem:[#allocation19_spill] sm:$0xff] }
 0x298   :  { %v206_v42 = vsel %vm189_vm0, %v8456_v16, %v8466_v27  ;;  %v207_v9 = vsel %vm189_vm0, %v8466_v27, %v8464_v24  ;;  %v331_v30 = vsel %vm330_vm1, %v8474_v36, %v8472_v35  ;;  %v9674_v32 = vadd.f32 %v204_v60, %v102_v23  ;;  %v16665_v60 = vld [vmem:[#allocation18_spill] sm:$0xff] }
 0x299   :  { %v9670_v33 = vpop.permute.xlu1 %1926  ;;  %v9672_v6 = vpop.permute.xlu0 %1924  ;;  %v9676_v43 = vadd.f32 %v205_v5, %v103_v45  ;;  %v332_v16 = vsel %vm330_vm1, %v8472_v35, %v8482_v47  ;;  %v333_v27 = vsel %vm330_vm1, %v8482_v47, %v8480_v46  ;;  %v334_v36 = vsel %vm330_vm1, %v8480_v46, %v8490_v54  ;;  %v16657_v45 = vld [vmem:[#allocation12_spill] sm:$0xff] }
 0x29a   :  { %16654 = vst [vmem:[#allocation238_spill] sm:$0xff] %v9670_v33  ;;  %16655 = vst [vmem:[#allocation239_spill] sm:$0xff] %v9672_v6  ;;  %v2293_v23 = vmul.f32 %v8917_v0, %v9474_v15  ;;  %v2292_v63 = vmul.f32 %v8922_v38, %v9474_v15  ;;  %v247_v35 = vadd.f32 %v8464_v24, %v106_v44 }
 0x29b   :  { %2342 = vrot.lane.b32.xlu1 %v2291_v2, %s8119_s17  ;;  %2340 = vrot.lane.b32.xlu0 %v2290_v20, %s8119_s17  ;;  %v9694_v26 = vadd.f32 %v206_v42, %v104_v18  ;;  %v9696_v47 = vadd.f32 %v207_v9, %v105_v29  ;;  %v9698_v4 = vadd.f32 %v331_v30, %v228_v62  ;;  %v16661_v29 = vld [vmem:[#allocation14_spill] sm:$0xff]  ;;  %v16666_v2 = vld [vmem:[#allocation21_spill] sm:$0xff]  ;;  %v16667_v20 = vld [vmem:[#allocation20_spill] sm:$0xff] }
 0x29c   :  { %v9700_v46 = vadd.f32 %v332_v16, %v229_v3  ;;  %v335_v1 = vsel %vm330_vm1, %v8490_v54, %v8488_v51  ;;  %v336_v0 = vsel %vm330_vm1, %v8488_v51, %v16656_v41  ;;  %v337_v24 = vsel %vm330_vm1, %v16656_v41, %v16657_v45  ;;  %v16670_v16 = vld [vmem:[#allocation23_spill] sm:$0xff] }
 0x29d   :  { %v9711_v38 = vpop.permute.xlu1 %1930  ;;  %v9713_v44 = vpop.permute.xlu0 %1928  ;;  %v9716_v62 = vadd.f32 %v333_v27, %v9592_v7  ;;  %v9718_v18 = vadd.f32 %v334_v36, %v231_v34  ;;  %v338_v54 = vsel %vm330_vm1, %v16657_v45, %v16660_v17  ;;  %v339_v51 = vsel %vm330_vm1, %v16660_v17, %v16661_v29  ;;  %v9734_v7 = vld [vmem:[%s15881_s3 + $0x118] sm:$0xff]  ;;  %v16671_v36 = vld [vmem:[#allocation22_spill] sm:$0xff] }
 0x29e   :  { %16658 = vst [vmem:[#allocation13_spill] sm:$0xff] %v9711_v38  ;;  %16659 = vst [vmem:[#allocation12_spill] sm:$0xff] %v9713_v44  ;;  %v340_v3 = vsel %vm330_vm1, %v16663_v21, %v16662_v40  ;;  %v2295_v34 = vmul.f32 %v9734_v7, %v9474_v15  ;;  %v2294_v49 = vmul.f32 %v9741_v22, %v9474_v15  ;;  %v16672_v17 = vld [vmem:[#allocation25_spill] sm:$0xff]  ;;  %v16760_v44 = vld [vmem:[#allocation91_spill] sm:$0xff] }
 0x29f   :  { %2346 = vrot.lane.b32.xlu1 %v2293_v23, %s8119_s17  ;;  %2344 = vrot.lane.b32.xlu0 %v2292_v63, %s8119_s17  ;;  %v9745_v53 = vadd.f32 %v335_v1, %v232_v39  ;;  %v9747_v57 = vadd.f32 %v336_v0, %v233_v55  ;;  %v9749_v31 = vadd.f32 %v337_v24, %v234_v50  ;;  %v9798_v1 = vshrl.u32 %v2420_v48, 7  ;;  %v16754_v38 = vld [vmem:[#allocation85_spill] sm:$0xff] }
 0x2a0   :  { %v9752_v28 = vadd.f32 %v16661_v29, %v237_v52  ;;  %v341_v61 = vsel %vm330_vm1, %v16662_v40, %v16664_v13  ;;  %v342_v5 = vsel %vm330_vm1, %v16664_v13, %v16665_v60  ;;  %v343_v39 = vsel %vm330_vm1, %v16665_v60, %v16666_v2  ;;  %v16673_v29 = vld [vmem:[#allocation24_spill] sm:$0xff]  ;;  %v16674_v40 = vld [vmem:[#allocation26_spill] sm:$0xff] }
 0x2a1   :  { %v344_v55 = vsel %vm330_vm1, %v16666_v2, %v16667_v20  ;;  %v9766_v50 = vpop.permute.xlu1 %1934  ;;  %v9768_v52 = vpop.permute.xlu0 %1932  ;;  %v9770_v42 = vadd.f32 %v338_v54, %v235_v56  ;;  %v9772_v9 = vadd.f32 %v339_v51, %v236_v10  ;;  %v9774_v30 = vadd.f32 %v340_v3, %v238_v11  ;;  %v9787_v56 = vld [vmem:[%s15881_s3 + $0x128] sm:$0xff]  ;;  %v9794_v11 = vld [vmem:[%s15881_s3 + $0x120] sm:$0xff]  ;;  %v16679_v13 = vld [vmem:[#allocation28_spill] sm:$0xff] }
 0x2a2   :  { %16668 = vst [vmem:[#allocation15_spill] sm:$0xff] %v9766_v50  ;;  %16669 = vst [vmem:[#allocation14_spill] sm:$0xff] %v9768_v52  ;;  %v345_v27 = vsel %vm330_vm1, %v16667_v20, %v16670_v16  ;;  %v346_v23 = vsel %vm330_vm1, %v16670_v16, %v16671_v36  ;;  %v2297_v10 = vmul.f32 %v9787_v56, %v9474_v15  ;;  %v2422_v2 = vsub.s32 0, %v9798_v1  ;;  %v16747_v52 = vld [vmem:[#allocation80_spill] sm:$0xff] }
 0x2a3   :  { %2350 = vrot.lane.b32.xlu1 %v2295_v34, %s8119_s17  ;;  %2348 = vrot.lane.b32.xlu0 %v2294_v49, %s8119_s17  ;;  %v2296_v63 = vmul.f32 %v9794_v11, %v9474_v15  ;;  %v9801_v41 = vadd.f32 %v341_v61, %v9653_v58  ;;  %v9804_v0 = vadd.f32 %v342_v5, %v9655_v8  ;;  %v16675_v58 = vld [vmem:[#allocation27_spill] sm:$0xff]  ;;  %v16676_v8 = vld [vmem:[#allocation29_spill] sm:$0xff]  ;;  %v2426_v5 = vsub.s32 1, %v9798_v1 }
 0x2a4   :  { %v9807_v45 = vadd.f32 %v343_v39, %v9657_v14  ;;  %v9810_v24 = vadd.f32 %v344_v55, %v9659_v19  ;;  %v347_v54 = vsel %vm330_vm1, %v16671_v36, %v16672_v17  ;;  %v348_v51 = vsel %vm330_vm1, %v16672_v17, %v16673_v29 }
 0x2a5   :  { %v472_v21 = vsel %vm471_vm2, %v16675_v58, %v16674_v40  ;;  %v473_v14 = vsel %vm471_vm2, %v16674_v40, %v16676_v8  ;;  %v9824_v3 = vpop.permute.xlu1 %1938  ;;  %v9826_v19 = vpop.permute.xlu0 %1936  ;;  %v9829_v34 = vadd.f32 %v345_v27, %v9674_v32  ;;  %v9832_v49 = vadd.f32 %v346_v23, %v9676_v43  ;;  %v9845_v32 = vld [vmem:[%s15881_s3 + $0x138] sm:$0xff]  ;;  %v16680_v27 = vld [vmem:[#allocation31_spill] sm:$0xff]  ;;  %v16687_v40 = vld [vmem:[#allocation34_spill] sm:$0xff] }
 0x2a6   :  { %16677 = vst [vmem:[#allocation16_spill] sm:$0xff] %v9824_v3  ;;  %16678 = vst [vmem:[#allocation17_spill] sm:$0xff] %v9826_v19  ;;  %v9835_v48 = vadd.f32 %v16673_v29, %v247_v35  ;;  %v474_v61 = vsel %vm471_vm2, %v16676_v8, %v16679_v13  ;;  %v2299_v43 = vmul.f32 %v9845_v32, %v9474_v15  ;;  %v9852_v35 = vld [vmem:[%s15881_s3 + $0x130] sm:$0xff]  ;;  %v16682_v23 = vld [vmem:[#allocation33_spill] sm:$0xff]  ;;  %v2446_v19 = vsub.s32 6, %v9798_v1 }
 0x2a7   :  { %2354 = vrot.lane.b32.xlu1 %v2297_v10, %s8119_s17  ;;  %2352 = vrot.lane.b32.xlu0 %v2296_v63, %s8119_s17  ;;  %v2298_v60 = vmul.f32 %v9852_v35, %v9474_v15  ;;  %v9859_v39 = vadd.f32 %v347_v54, %v9694_v26  ;;  %v9862_v20 = vadd.f32 %v348_v51, %v9696_v47  ;;  %v9873_v15 = vld [vmem:[%s15882_s4] sm:$0xff]  ;;  %v16683_v10 = vld [vmem:[#allocation32_spill] sm:$0xff]  ;;  %v16686_v29 = vld [vmem:[#allocation35_spill] sm:$0xff] }
 0x2a8   :  { %v9865_v55 = vadd.f32 %v472_v21, %v9698_v4  ;;  %v9868_v16 = vadd.f32 %v473_v14, %v9700_v46  ;;  %v475_v36 = vsel %vm471_vm2, %v16679_v13, %v16680_v27  ;;  %v16681_v26 = vld [vmem:[#allocation30_spill] sm:$0xff]  ;;  %v478_v46 = vsel %vm471_vm2, %v16682_v23, %v16683_v10  ;;  %v16688_v21 = vld [vmem:[#allocation36_spill] sm:$0xff]  ;;  %v16689_v8 = vld [vmem:[#allocation37_spill] sm:$0xff] }
 0x2a9   :  { %v476_v47 = vsel %vm471_vm2, %v16680_v27, %v16681_v26  ;;  %v477_v4 = vsel %vm471_vm2, %v16681_v26, %v16682_v23  ;;  %v9887_v63 = vpop.permute.xlu1 %2042  ;;  %v9889_v17 = vpop.permute.xlu0 %2040  ;;  %v9892_v54 = vadd.f32 %v474_v61, %v9716_v62  ;;  %v479_v51 = vsel %vm471_vm2, %v16683_v10, %v16686_v29 }
 0x2aa   :  { %16684 = vst [vmem:[#allocation19_spill] sm:$0xff] %v9887_v63  ;;  %16685 = vst [vmem:[#allocation18_spill] sm:$0xff] %v9889_v17  ;;  %v480_v58 = vsel %vm471_vm2, %v16686_v29, %v16687_v40  ;;  %v481_v14 = vsel %vm471_vm2, %v16689_v8, %v16688_v21  ;;  %v2427_v13 = vrot.slane %v9873_v15, %v2426_v5  ;;  %v2434_v61 = vsub.s32 3, %v9798_v1  ;;  %v16691_v5 = vld [vmem:[#allocation38_spill] sm:$0xff]  ;;  %v16692_v8 = vld [vmem:[#allocation41_spill] sm:$0xff] }
 0x2ab   :  { %2358 = vrot.lane.b32.xlu1 %v2299_v43, %s8119_s17  ;;  %2356 = vrot.lane.b32.xlu0 %v2298_v60, %s8119_s17  ;;  %v2423_v62 = vrot.slane %v9873_v15, %v2422_v2  ;;  %v2430_v27 = vsub.s32 2, %v9798_v1  ;;  %v513_v26 = vadd.f32 %v475_v36, %v9718_v18  ;;  %v514_v23 = vadd.f32 %v476_v47, %v9745_v53  ;;  %v16690_v43 = vld [vmem:[#allocation39_spill] sm:$0xff]  ;;  %v16693_v18 = vld [vmem:[#allocation40_spill] sm:$0xff] }
 0x2ac   :  { %v515_v10 = vadd.f32 %v477_v4, %v9747_v57  ;;  %v9913_v29 = vadd.f32 %v478_v46, %v9749_v31  ;;  %v482_v60 = vsel %vm471_vm2, %v16688_v21, %v16690_v43  ;;  %v483_v2 = vsel %vm471_vm2, %v16690_v43, %v16691_v5 }
 0x2ad   :  { %v484_v3 = vsel %vm471_vm2, %v16691_v5, %v16692_v8  ;;  %v485_v53 = vsel %vm471_vm2, %v16692_v8, %v16693_v18  ;;  %v9927_v57 = vpop.permute.xlu1 %2046  ;;  %v9929_v31 = vpop.permute.xlu0 %2044  ;;  %v519_v36 = vadd.f32 %v16687_v40, %v9752_v28  ;;  %v517_v47 = vadd.f32 %v479_v51, %v9770_v42  ;;  %v16696_v40 = vld [vmem:[#allocation43_spill] sm:$0xff] }
 0x2ae   :  { %16694 = vst [vmem:[#allocation21_spill] sm:$0xff] %v9927_v57  ;;  %16695 = vst [vmem:[#allocation20_spill] sm:$0xff] %v9929_v31  ;;  %v9935_v4 = vadd.f32 %v480_v58, %v9772_v9  ;;  %v9938_v46 = vadd.f32 %v481_v14, %v9774_v30  ;;  %v2435_v21 = vrot.slane %v9873_v15, %v2434_v61  ;;  %v2442_v5 = vsub.s32 5, %v9798_v1  ;;  %v16697_v14 = vld [vmem:[#allocation42_spill] sm:$0xff]  ;;  %v16699_v61 = vld [vmem:[#allocation44_spill] sm:$0xff] }
 0x2af   :  { %2458 = vrot.lane.b32.xlu1 %v2427_v13, %s8120_s0  ;;  %2456 = vrot.lane.b32.xlu0 %v2423_v62, %s8120_s0  ;;  %v2431_v43 = vrot.slane %v9873_v15, %v2430_v27  ;;  %v2438_v28 = vsub.s32 4, %v9798_v1  ;;  %v521_v42 = vadd.f32 %v482_v60, %v9801_v41  ;;  %v522_v9 = vadd.f32 %v483_v2, %v9804_v0  ;;  %v16698_v62 = vld [vmem:[#allocation45_spill] sm:$0xff]  ;;  %v16703_v27 = vld [vmem:[#allocation47_spill] sm:$0xff]  ;;  %v16755_v31 = vld [vmem:[#allocation84_spill] sm:$0xff] }
 0x2b0   :  { %v9949_v30 = vadd.f32 %v484_v3, %v9807_v45  ;;  %v9952_v51 = vadd.f32 %v485_v53, %v9810_v24  ;;  %v486_v58 = vsel %vm471_vm2, %v16693_v18, %v16696_v40  ;;  %v487_v13 = vsel %vm471_vm2, %v16696_v40, %v16697_v14  ;;  %v16702_v3 = vld [vmem:[#allocation46_spill] sm:$0xff]  ;;  %v16704_v2 = vld [vmem:[#allocation49_spill] sm:$0xff]  ;;  %v16705_v18 = vld [vmem:[#allocation48_spill] sm:$0xff] }
 0x2b1   :  { %v488_v41 = vsel %vm471_vm2, %v16697_v14, %v16698_v62  ;;  %v489_v0 = vsel %vm471_vm2, %v16698_v62, %v16699_v61  ;;  %v9966_v45 = vpop.permute.xlu1 %2050  ;;  %v9968_v24 = vpop.permute.xlu0 %2048  ;;  %v613_v60 = vsel %vm612_vm3, %v16703_v27, %v16702_v3  ;;  %v614_v8 = vsel %vm612_vm3, %v16702_v3, %v16704_v2  ;;  %v16706_v40 = vld [vmem:[#allocation51_spill] sm:$0xff] }
 0x2b2   :  { %16700 = vst [vmem:[#allocation23_spill] sm:$0xff] %v9966_v45  ;;  %16701 = vst [vmem:[#allocation22_spill] sm:$0xff] %v9968_v24  ;;  %v615_v53 = vsel %vm612_vm3, %v16704_v2, %v16705_v18  ;;  %v616_v14 = vsel %vm612_vm3, %v16705_v18, %v16706_v40  ;;  %v2443_v62 = vrot.slane %v9873_v15, %v2442_v5  ;;  %v2450_v3 = vsub.s32 7, %v9798_v1  ;;  %v16707_v5 = vld [vmem:[#allocation50_spill] sm:$0xff]  ;;  %v16708_v24 = vld [vmem:[#allocation53_spill] sm:$0xff] }
 0x2b3   :  { %2462 = vrot.lane.b32.xlu1 %v2435_v21, %s8120_s0  ;;  %2460 = vrot.lane.b32.xlu0 %v2431_v43, %s8120_s0  ;;  %v2439_v27 = vrot.slane %v9873_v15, %v2438_v28  ;;  %v525_v2 = vadd.f32 %v486_v58, %v9829_v34  ;;  %v526_v45 = vadd.f32 %v487_v13, %v9832_v49  ;;  %v16712_v13 = vld [vmem:[#allocation55_spill] sm:$0xff] }
 0x2b4   :  { %v529_v18 = vadd.f32 %v16699_v61, %v9835_v48  ;;  %v527_v50 = vadd.f32 %v488_v41, %v9859_v39  ;;  %v528_v21 = vadd.f32 %v489_v0, %v9862_v20  ;;  %v651_v43 = vadd.f32 %v613_v60, %v9865_v55  ;;  %v16711_v55 = vld [vmem:[#allocation52_spill] sm:$0xff]  ;;  %v16713_v0 = vld [vmem:[#allocation54_spill] sm:$0xff] }
 0x2b5   :  { %v617_v28 = vsel %vm612_vm3, %v16706_v40, %v16707_v5  ;;  %v618_v1 = vsel %vm612_vm3, %v16707_v5, %v16708_v24  ;;  %v10003_v34 = vpop.permute.xlu1 %2054  ;;  %v10005_v49 = vpop.permute.xlu0 %2052  ;;  %v652_v48 = vadd.f32 %v614_v8, %v9868_v16  ;;  %v10009_v39 = vadd.f32 %v615_v53, %v9892_v54  ;;  %v16714_v60 = vld [vmem:[#allocation56_spill] sm:$0xff]  ;;  %v16715_v8 = vld [vmem:[#allocation57_spill] sm:$0xff] }
 0x2b6   :  { %16709 = vst [vmem:[#allocation25_spill] sm:$0xff] %v10003_v34  ;;  %16710 = vst [vmem:[#allocation24_spill] sm:$0xff] %v10005_v49  ;;  %v10011_v20 = vadd.f32 %v616_v14, %v513_v26  ;;  %v619_v58 = vsel %vm612_vm3, %v16708_v24, %v16711_v55  ;;  %v620_v41 = vsel %vm612_vm3, %v16711_v55, %v16712_v13  ;;  %v16720_v5 = vld [vmem:[#allocation61_spill] sm:$0xff] }
 0x2b7   :  { %2466 = vrot.lane.b32.xlu1 %v2443_v62, %s8120_s0  ;;  %2464 = vrot.lane.b32.xlu0 %v2439_v27, %s8120_s0  ;;  %v2451_v16 = vrot.slane %v9873_v15, %v2450_v3  ;;  %v2447_v54 = vrot.slane %v9873_v15, %v2446_v19  ;;  %v10023_v61 = vadd.f32 %v617_v28, %v514_v23  ;;  %v16716_v19 = vld [vmem:[#allocation59_spill] sm:$0xff]  ;;  %v16717_v23 = vld [vmem:[#allocation58_spill] sm:$0xff] }
 0x2b8   :  { %v10025_v26 = vadd.f32 %v618_v1, %v515_v10  ;;  %v621_v24 = vsel %vm612_vm3, %v16712_v13, %v16713_v0  ;;  %v622_v53 = vsel %vm612_vm3, %v16715_v8, %v16714_v60  ;;  %v10034_v40 = vadd.f32 %v619_v58, %v9913_v29  ;;  %v16722_v1 = vld [vmem:[#allocation63_spill] sm:$0xff] }
 0x2b9   :  { %v10037_v14 = vadd.f32 %v16713_v0, %v519_v36  ;;  %v623_v15 = vsel %vm612_vm3, %v16714_v60, %v16716_v19  ;;  %v624_v10 = vsel %vm612_vm3, %v16716_v19, %v16717_v23  ;;  %v10045_v62 = vpop.permute.xlu1 %2058  ;;  %v10047_v27 = vpop.permute.xlu0 %2056  ;;  %v10049_v3 = vadd.f32 %v620_v41, %v517_v47  ;;  %v16721_v36 = vld [vmem:[#allocation60_spill] sm:$0xff]  ;;  %v16723_v47 = vld [vmem:[#allocation62_spill] sm:$0xff]  ;;  %v16724_v19 = vld [vmem:[#allocation65_spill] sm:$0xff] }
 0x2ba   :  { %16718 = vst [vmem:[#allocation26_spill] sm:$0xff] %v10045_v62  ;;  %16719 = vst [vmem:[#allocation27_spill] sm:$0xff] %v10047_v27  ;;  %v625_v29 = vsel %vm612_vm3, %v16717_v23, %v16720_v5  ;;  %v626_v28 = vsel %vm612_vm3, %v16720_v5, %v16721_v36  ;;  %v627_v55 = vsel %vm612_vm3, %v16721_v36, %v16722_v1  ;;  %v10070_v0 = vstv %s9982_s11  ;;  %s6909_s11 = sld [smem:[#allocation2 + $0x20]] }
 0x2bb   :  { %v10061_v58 = vadd.f32 %v621_v24, %v9935_v4  ;;  %v10064_v13 = vadd.f32 %v622_v53, %v9938_v46  ;;  %v628_v41 = vsel %vm612_vm3, %v16722_v1, %v16723_v47  ;;  %2470 = vrot.lane.b32.xlu1 %v2451_v16, %s8120_s0  ;;  %2468 = vrot.lane.b32.xlu0 %v2447_v54, %s8120_s0  ;;  %v16725_v46 = vld [vmem:[#allocation64_spill] sm:$0xff]  ;;  %v6894_v53 = vld [vmem:[%s15882_s4 + $0x8] ss:$0 sm:$0xff]  ;;  %v16726_v54 = vld [vmem:[#allocation66_spill] sm:$0xff] }
 0x2bc   :  { %v10074_v60 = vadd.f32 %v623_v15, %v521_v42  ;;  %v10076_v8 = vadd.f32 %v624_v10, %v522_v9  ;;  %v629_v4 = vsel %vm612_vm3, %v16723_v47, %v16724_v19  ;;  %v630_v24 = vsel %vm612_vm3, %v16724_v19, %v16725_v46  ;;  %v16727_v15 = vld [vmem:[#allocation67_spill] sm:$0xff] }
 0x2bd   :  { %v10088_v16 = vadd.f32 %v625_v29, %v9949_v30  ;;  %v10091_v42 = vadd.f32 %v626_v28, %v9952_v51  ;;  %v10093_v9 = vadd.f32 %v627_v55, %v525_v2  ;;  %v754_v23 = vsel %vm753_vm4, %v16727_v15, %v16726_v54  ;;  %v10098_v10 = vpop.permute.xlu1 %2062  ;;  %v10100_v5 = vpop.permute.xlu0 %2060  ;;  %v16730_v30 = vld [vmem:[#allocation69_spill] sm:$0xff]  ;;  %v7940_v2 = vld [vmem:[%s15881_s3 + $0xa0] sm:$0xff]  ;;  %v7941_v47 = vld [vmem:[%s15881_s3 + $0xa8] sm:$0xff] }
 0x2be   :  { %16728 = vst [vmem:[#allocation29_spill] sm:$0xff] %v10098_v10  ;;  %16729 = vst [vmem:[#allocation28_spill] sm:$0xff] %v10100_v5  ;;  %v10102_v36 = vadd.f32 %v628_v41, %v526_v45  ;;  %v10105_v1 = vadd.f32 %v16725_v46, %v529_v18  ;;  %v755_v51 = vsel %vm753_vm4, %v16726_v54, %v16730_v30  ;;  %v16731_v45 = vld [vmem:[#allocation68_spill] sm:$0xff]  ;;  %v16732_v46 = vld [vmem:[#allocation71_spill] sm:$0xff] }
 0x2bf   :  { %v10114_v29 = vmul.f32 %v7940_v2, %v10070_v0  ;;  %v10116_v28 = vadd.f32 %v629_v4, %v527_v50  ;;  %v10118_v55 = vadd.f32 %v630_v24, %v528_v21  ;;  %v756_v18 = vsel %vm753_vm4, %v16730_v30, %v16731_v45  ;;  %2472 = vrot.lane.b32.xlu0 %v6894_v53, %s8120_s0  ;;  %v7942_v21 = vld [vmem:[%s15881_s3 + $0xb0] sm:$0xff]  ;;  %v7943_v24 = vld [vmem:[%s15881_s3 + $0xb8] sm:$0xff]  ;;  %v16733_v54 = vld [vmem:[#allocation70_spill] sm:$0xff] }
 0x2c0   :  { %v10127_v41 = vmul.f32 %v7941_v47, %v10070_v0  ;;  %v10130_v19 = vadd.f32 %v754_v23, %v651_v43  ;;  %v757_v50 = vsel %vm753_vm4, %v16731_v45, %v16732_v46  ;;  %v10139_v4 = vmul.f32 %v7942_v21, %v10070_v0  ;;  %v16734_v23 = vld [vmem:[#allocation73_spill] sm:$0xff]  ;;  %v7944_v2 = vld [vmem:[%s15881_s3 + $0xc0] sm:$0xff] }
 0x2c1   :  { %v10145_v53 = vmul.f32 %v7943_v24, %v10070_v0  ;;  %v10147_v43 = vadd.f32 %v755_v51, %v652_v48  ;;  %v758_v15 = vsel %vm753_vm4, %v16732_v46, %v16733_v54  ;;  %v759_v30 = vsel %vm753_vm4, %v16733_v54, %v16734_v23  ;;  %v10161_v47 = vpop.permute.xlu1 %2066  ;;  %v10163_v21 = vpop.permute.xlu0 %2064  ;;  %v16737_v51 = vld [vmem:[#allocation72_spill] sm:$0xff]  ;;  %v7945_v24 = vld [vmem:[%s15881_s3 + $0xc8] sm:$0xff] }
 0x2c2   :  { %v10159_v45 = vmul.f32 %v7944_v2, %v10070_v0  ;;  %16735 = vst [vmem:[#allocation31_spill] sm:$0xff] %v10161_v47  ;;  %16736 = vst [vmem:[#allocation30_spill] sm:$0xff] %v10163_v21  ;;  %v10166_v48 = vadd.f32 %v756_v18, %v10009_v39  ;;  %v760_v46 = vsel %vm753_vm4, %v16734_v23, %v16737_v51  ;;  %v7946_v2 = vld [vmem:[%s15881_s3 + $0xd0] sm:$0xff]  ;;  %v16738_v18 = vld [vmem:[#allocation75_spill] sm:$0xff] }
 0x2c3   :  { %v10175_v54 = vmul.f32 %v7945_v24, %v10070_v0  ;;  %v10181_v47 = vmul.f32 %v7946_v2, %v10070_v0  ;;  %v10184_v39 = vadd.f32 %v757_v50, %v10011_v20  ;;  %v761_v23 = vsel %vm753_vm4, %v16737_v51, %v16738_v18  ;;  %v16739_v21 = vld [vmem:[#allocation74_spill] sm:$0xff]  ;;  %v7947_v24 = vld [vmem:[%s15881_s3 + $0xe8] sm:$0xff]  ;;  %v7948_v50 = vld [vmem:[%s15881_s3 + $0xd8] sm:$0xff] }
 0x2c4   :  { %v762_v5 = vsel %vm753_vm4, %v16738_v18, %v16739_v21  ;;  %v10196_v10 = vmul.f32 %v7947_v24, %v10070_v0  ;;  %v796_v2 = vadd.f32 %v758_v15, %v10023_v61  ;;  %v10200_v20 = vadd.f32 %v759_v30, %v10025_v26  ;;  %v7949_v18 = vld [vmem:[%s15881_s3 + $0xe0] sm:$0xff]  ;;  %v16740_v61 = vld [vmem:[#allocation76_spill] sm:$0xff]  ;;  %v16741_v26 = vld [vmem:[#allocation77_spill] sm:$0xff] }
 0x2c5   :  { %v10206_v51 = vmul.f32 %v7948_v50, %v10070_v0  ;;  %v10212_v62 = vmul.f32 %v7949_v18, %v10070_v0  ;;  %v10215_v24 = vadd.f32 %v760_v46, %v10034_v40  ;;  %v763_v15 = vsel %vm753_vm4, %v16741_v26, %v16740_v61  ;;  %v16742_v30 = vld [vmem:[#allocation79_spill] sm:$0xff]  ;;  %v7950_v50 = vld [vmem:[%s15881_s3 + $0xf0] sm:$0xff]  ;;  %v10229_v18 = vpop.permute.xlu1 %2070  ;;  %v10231_v49 = vpop.permute.xlu0 %2068  ;;  %v16745_v26 = vld [vmem:[#allocation78_spill] sm:$0xff] }
 0x2c6   :  { %v764_v27 = vsel %vm753_vm4, %v16740_v61, %v16742_v30  ;;  %v10227_v34 = vmul.f32 %v7950_v50, %v10070_v0  ;;  %16743 = vst [vmem:[#allocation33_spill] sm:$0xff] %v10229_v18  ;;  %16744 = vst [vmem:[#allocation32_spill] sm:$0xff] %v10231_v49  ;;  %v10235_v40 = vadd.f32 %v16739_v21, %v10037_v14  ;;  %v16746_v50 = vld [vmem:[#allocation81_spill] sm:$0xff] }
 0x2c7   :  { %v10238_v46 = vadd.f32 %v761_v23, %v10049_v3  ;;  %v10241_v61 = vadd.f32 %v762_v5, %v10061_v58  ;;  %v765_v57 = vsel %vm753_vm4, %v16742_v30, %v16745_v26  ;;  %v766_v18 = vsel %vm753_vm4, %v16745_v26, %v16746_v50  ;;  %v7951_v14 = vld [vmem:[%s15881_s3 + $0xf8] sm:$0xff]  ;;  %v7952_v58 = vld [vmem:[%s15881_s3 + $0x100] sm:$0xff]  ;;  %v7953_v30 = vld [vmem:[%s15881_s3 + $0x108] sm:$0xff] }
 0x2c8   :  { %v767_v49 = vsel %vm753_vm4, %v16746_v50, %v16747_v52  ;;  %v10256_v3 = vmul.f32 %v7951_v14, %v10070_v0  ;;  %v10262_v5 = vmul.f32 %v7952_v58, %v10070_v0  ;;  %v802_v21 = vadd.f32 %v763_v15, %v10064_v13 }
 0x2c9   :  { %v803_v23 = vadd.f32 %v764_v27, %v10074_v60  ;;  %v10270_v26 = vmul.f32 %v7953_v30, %v10070_v0  ;;  %v10274_v50 = vmul.f32 %v9741_v22, %v10070_v0  ;;  %v804_v14 = vadd.f32 %v765_v57, %v10076_v8  ;;  %v10289_v60 = vpop.permute.xlu1 %2074  ;;  %v10291_v15 = vpop.permute.xlu0 %2072  ;;  %v16752_v8 = vld [vmem:[#allocation83_spill] sm:$0xff]  ;;  %v16753_v30 = vld [vmem:[#allocation82_spill] sm:$0xff] }
 0x2ca   :  { %v10279_v58 = vmul.f32 %v9734_v7, %v10070_v0  ;;  %v10283_v27 = vmul.f32 %v9794_v11, %v10070_v0  ;;  %v10287_v13 = vmul.f32 %v9845_v32, %v10070_v0  ;;  %16750 = vst [vmem:[#allocation36_spill] sm:$0xff] %v10289_v60  ;;  %16751 = vst [vmem:[#allocation37_spill] sm:$0xff] %v10291_v15  ;;  %v16756_v15 = vld [vmem:[#allocation86_spill] sm:$0xff] }
 0x2cb   :  { %v805_v22 = vadd.f32 %v766_v18, %v10088_v16  ;;  %v806_v57 = vadd.f32 %v767_v49, %v10091_v42  ;;  %v768_v7 = vsel %vm753_vm4, %v16747_v52, %v16752_v8  ;;  %v769_v11 = vsel %vm753_vm4, %v16752_v8, %v16753_v30  ;;  %v16757_v16 = vld [vmem:[#allocation87_spill] sm:$0xff]  ;;  %v16758_v42 = vld [vmem:[#allocation89_spill] sm:$0xff]  ;;  %v16759_v18 = vld [vmem:[#allocation88_spill] sm:$0xff] }
 0x2cc   :  { %16748 = vst [vmem:[#allocation35_spill] sm:$0xff] %v10283_v27  ;;  %16749 = vst [vmem:[#allocation34_spill] sm:$0xff] %v10287_v13  ;;  %v770_v32 = vsel %vm753_vm4, %v16753_v30, %v16754_v38  ;;  %v771_v60 = vsel %vm753_vm4, %v16754_v38, %v16755_v31  ;;  %v895_v49 = vsel %vm894_vm5, %v16757_v16, %v16756_v15 }
 0x2cd   :  { %v896_v52 = vsel %vm894_vm5, %v16756_v15, %v16758_v42  ;;  %v897_v8 = vsel %vm894_vm5, %v16758_v42, %v16759_v18  ;;  %v898_v30 = vsel %vm894_vm5, %v16759_v18, %v16760_v44  ;;  %v10321_v38 = vmul.f32 %v9787_v56, %v10070_v0  ;;  %v16763_v42 = vld [vmem:[#allocation90_spill] sm:$0xff]  ;;  %v10334_v18 = vpop.permute.xlu1 %2078  ;;  %v10336_v6 = vpop.permute.xlu0 %2076 }
 0x2ce   :  { %v10325_v16 = vmul.f32 %v9852_v35, %v10070_v0  ;;  %v807_v17 = vadd.f32 %v768_v7, %v10093_v9  ;;  %v808_v15 = vadd.f32 %v769_v11, %v10102_v36  ;;  %v811_v63 = vadd.f32 %v16755_v31, %v10105_v1  ;;  %16764 = vst [vmem:[#allocation41_spill] sm:$0xff] %v10334_v18  ;;  %v16766_v1 = vld [vmem:[#allocation93_spill] sm:$0xff]  ;;  %v16767_v7 = vld [vmem:[#allocation92_spill] sm:$0xff] }
 0x2cf   :  { %16761 = vst [vmem:[#allocation39_spill] sm:$0xff] %v10321_v38  ;;  %v899_v33 = vsel %vm894_vm5, %v16760_v44, %v16763_v42  ;;  %16765 = vst [vmem:[#allocation40_spill] sm:$0xff] %v10336_v6  ;;  %v809_v56 = vadd.f32 %v770_v32, %v10116_v28  ;;  %v810_v35 = vadd.f32 %v771_v60, %v10118_v55  ;;  %v16768_v28 = vld [vmem:[#allocation95_spill] sm:$0xff]  ;;  %v16771_v60 = vld [vmem:[#allocation97_spill] sm:$0xff] }
 0x2d0   :  { %16762 = vst [vmem:[#allocation38_spill] sm:$0xff] %v10325_v16  ;;  %v933_v0 = vadd.f32 %v895_v49, %v10130_v19  ;;  %v934_v9 = vadd.f32 %v896_v52, %v10147_v43  ;;  %v935_v36 = vadd.f32 %v897_v8, %v10166_v48  ;;  %v936_v31 = vadd.f32 %v898_v30, %v10184_v39  ;;  %v16769_v19 = vld [vmem:[#allocation94_spill] sm:$0xff]  ;;  %v16770_v48 = vld [vmem:[#allocation96_spill] sm:$0xff]  ;;  %v16772_v32 = vld [vmem:[#allocation99_spill] sm:$0xff] }
 0x2d1   :  { %v900_v44 = vsel %vm894_vm5, %v16763_v42, %v16766_v1  ;;  %v901_v11 = vsel %vm894_vm5, %v16766_v1, %v16767_v7  ;;  %v937_v18 = vadd.f32 %v899_v33, %v796_v2  ;;  %v902_v55 = vsel %vm894_vm5, %v16767_v7, %v16768_v28  ;;  %v16773_v52 = vld [vmem:[#allocation98_spill] sm:$0xff]  ;;  %v16774_v2 = vld [vmem:[#allocation101_spill] sm:$0xff]  ;;  %v16775_v30 = vld [vmem:[#allocation100_spill] sm:$0xff]  ;;  %v10371_v1 = vpop.permute.xlu1 %2182  ;;  %v10373_v7 = vpop.permute.xlu0 %2180 }
 0x2d2   :  { %v903_v43 = vsel %vm894_vm5, %v16768_v28, %v16769_v19  ;;  %v904_v39 = vsel %vm894_vm5, %v16771_v60, %v16770_v48  ;;  %v905_v49 = vsel %vm894_vm5, %v16770_v48, %v16772_v32  ;;  %v906_v33 = vsel %vm894_vm5, %v16772_v32, %v16773_v52  ;;  %16776 = vst [vmem:[#allocation43_spill] sm:$0xff] %v10371_v1  ;;  %v16778_v60 = vld [vmem:[#allocation103_spill] sm:$0xff]  ;;  %v16779_v6 = vld [vmem:[#allocation102_spill] sm:$0xff]  ;;  %v16781_v16 = vld [vmem:[#allocation104_spill] sm:$0xff] }
 0x2d3   :  { %v907_v8 = vsel %vm894_vm5, %v16773_v52, %v16774_v2  ;;  %v908_v42 = vsel %vm894_vm5, %v16774_v2, %v16775_v30  ;;  %16777 = vst [vmem:[#allocation42_spill] sm:$0xff] %v10373_v7  ;;  %v938_v28 = vadd.f32 %v900_v44, %v10200_v20  ;;  %v939_v48 = vadd.f32 %v901_v11, %v10215_v24 }
 0x2d4   :  { %v909_v32 = vsel %vm894_vm5, %v16775_v30, %v16778_v60  ;;  %v910_v52 = vsel %vm894_vm5, %v16778_v60, %v16779_v6  ;;  %v942_v2 = vadd.f32 %v16769_v19, %v10235_v40  ;;  %v940_v12 = vadd.f32 %v902_v55, %v10238_v46  ;;  %v16789_v55 = vld [vmem:[#allocation110_spill] sm:$0xff] }
 0x2d5   :  { %v941_v1 = vadd.f32 %v903_v43, %v10241_v61  ;;  %v943_v7 = vadd.f32 %v904_v39, %v802_v21  ;;  %v944_v37 = vadd.f32 %v905_v49, %v803_v23  ;;  %v945_v20 = vadd.f32 %v906_v33, %v804_v14  ;;  %v10393_v40 = vpop.permute.xlu1 %2186  ;;  %v10395_v46 = vpop.permute.xlu0 %2184  ;;  %v16784_v21 = vld [vmem:[#allocation106_spill] sm:$0xff]  ;;  %v16785_v23 = vld [vmem:[#allocation107_spill] sm:$0xff]  ;;  %v16791_v43 = vld [vmem:[#allocation112_spill] sm:$0xff] }
 0x2d6   :  { %v946_v44 = vadd.f32 %v907_v8, %v805_v22  ;;  %v947_v24 = vadd.f32 %v908_v42, %v806_v57  ;;  %v948_v11 = vadd.f32 %v909_v32, %v807_v17  ;;  %v949_v25 = vadd.f32 %v910_v52, %v808_v15  ;;  %16782 = vst [vmem:[#allocation45_spill] sm:$0xff] %v10393_v40  ;;  %v16786_v17 = vld [vmem:[#allocation109_spill] sm:$0xff]  ;;  %v16787_v57 = vld [vmem:[#allocation108_spill] sm:$0xff]  ;;  %v16788_v15 = vld [vmem:[#allocation111_spill] sm:$0xff] }
 0x2d7   :  { %v911_v30 = vsel %vm894_vm5, %v16779_v6, %v16780_v59  ;;  %v912_v60 = vsel %vm894_vm5, %v16780_v59, %v16781_v16  ;;  %16783 = vst [vmem:[#allocation44_spill] sm:$0xff] %v10395_v46  ;;  %v952_v61 = vadd.f32 %v16781_v16, %v811_v63  ;;  %v1036_v14 = vsel %vm1035_vm6, %v16785_v23, %v16784_v21  ;;  %v16790_v16 = vld [vmem:[#allocation113_spill] sm:$0xff]  ;;  %v16792_v8 = vld [vmem:[#allocation115_spill] sm:$0xff]  ;;  %v16793_v32 = vld [vmem:[#allocation114_spill] sm:$0xff] }
 0x2d8   :  { %v1037_v22 = vsel %vm1035_vm6, %v16784_v21, %v16786_v17  ;;  %v1038_v6 = vsel %vm1035_vm6, %v16786_v17, %v16787_v57  ;;  %v1039_v59 = vsel %vm1035_vm6, %v16787_v57, %v16788_v15  ;;  %v1040_v63 = vsel %vm1035_vm6, %v16788_v15, %v16789_v55  ;;  %v16794_v57 = vld [vmem:[#allocation116_spill] sm:$0xff]  ;;  %v16795_v15 = vld [vmem:[#allocation117_spill] sm:$0xff] }
 0x2d9   :  { %v1041_v19 = vsel %vm1035_vm6, %v16789_v55, %v16790_v16  ;;  %v1042_v39 = vsel %vm1035_vm6, %v16790_v16, %v16791_v43  ;;  %v950_v49 = vadd.f32 %v911_v30, %v809_v56  ;;  %v951_v33 = vadd.f32 %v912_v60, %v810_v35  ;;  %v10428_v40 = vpop.permute.xlu1 %2190  ;;  %v10430_v16 = vpop.permute.xlu0 %2188 }
 0x2da   :  { %v1043_v42 = vsel %vm1035_vm6, %v16791_v43, %v16792_v8  ;;  %v1044_v52 = vsel %vm1035_vm6, %v16792_v8, %v16793_v32  ;;  %v1074_v21 = vadd.f32 %v1036_v14, %v933_v0  ;;  %v1075_v23 = vadd.f32 %v1037_v22, %v934_v9  ;;  %16796 = vst [vmem:[#allocation46_spill] sm:$0xff] %v10428_v40  ;;  %v16798_v8 = vld [vmem:[#allocation119_spill] sm:$0xff] }
 0x2db   :  { %v1076_v17 = vadd.f32 %v1038_v6, %v935_v36  ;;  %v1045_v55 = vsel %vm1035_vm6, %v16795_v15, %v16794_v57  ;;  %16797 = vst [vmem:[#allocation47_spill] sm:$0xff] %v10430_v16  ;;  %v1077_v56 = vadd.f32 %v1039_v59, %v936_v31  ;;  %v1078_v35 = vadd.f32 %v1040_v63, %v937_v18  ;;  %v16799_v36 = vld [vmem:[#allocation126_spill] sm:$0xff]  ;;  %v16800_v14 = vld [vmem:[#allocation127_spill] sm:$0xff]  ;;  %v16801_v6 = vld [vmem:[#allocation129_spill] sm:$0xff] }
 0x2dc   :  { %v1079_v30 = vadd.f32 %v1041_v19, %v938_v28  ;;  %v1080_v60 = vadd.f32 %v1042_v39, %v939_v48  ;;  %v1083_v43 = vadd.f32 %v16793_v32, %v942_v2  ;;  %v1081_v46 = vadd.f32 %v1043_v42, %v940_v12  ;;  %v16802_v18 = vld [vmem:[#allocation128_spill] sm:$0xff]  ;;  %v16803_v48 = vld [vmem:[#allocation118_spill] sm:$0xff]  ;;  %v16806_v63 = vld [vmem:[#allocation131_spill] sm:$0xff] }
 0x2dd   :  { %v1082_v38 = vadd.f32 %v1044_v52, %v941_v1  ;;  %v1046_v0 = vsel %vm1035_vm6, %v16794_v57, %v16798_v8  ;;  %v1084_v9 = vadd.f32 %v1045_v55, %v943_v7  ;;  %v1177_v22 = vsel %vm1176_vm7, %v16800_v14, %v16799_v36  ;;  %v16804_v1 = vld [vmem:[#allocation121_spill] sm:$0xff]  ;;  %v16805_v2 = vld [vmem:[#allocation120_spill] sm:$0xff]  ;;  %v10457_v39 = vpop.permute.xlu1 %2194  ;;  %v10459_v42 = vpop.permute.xlu0 %2192  ;;  %v16809_v52 = vld [vmem:[#allocation123_spill] sm:$0xff] }
 0x2de   :  { %v1178_v31 = vsel %vm1176_vm7, %v16799_v36, %v16801_v6  ;;  %v1179_v28 = vsel %vm1176_vm7, %v16801_v6, %v16802_v18  ;;  %v1047_v12 = vsel %vm1035_vm6, %v16798_v8, %v16803_v48  ;;  %v1048_v7 = vsel %vm1035_vm6, %v16803_v48, %v16804_v1  ;;  %16807 = vst [vmem:[#allocation49_spill] sm:$0xff] %v10457_v39  ;;  %v16810_v15 = vld [vmem:[#allocation122_spill] sm:$0xff]  ;;  %v16811_v8 = vld [vmem:[#allocation125_spill] sm:$0xff]  ;;  %v16812_v14 = vld [vmem:[#allocation124_spill] sm:$0xff] }
 0x2df   :  { %v1049_v59 = vsel %vm1035_vm6, %v16804_v1, %v16805_v2  ;;  %v1180_v19 = vsel %vm1176_vm7, %v16802_v18, %v16806_v63  ;;  %16808 = vst [vmem:[#allocation48_spill] sm:$0xff] %v10459_v42  ;;  %v1085_v32 = vadd.f32 %v1046_v0, %v944_v37  ;;  %v1050_v57 = vsel %vm1035_vm6, %v16805_v2, %v16809_v52 }
 0x2e0   :  { %v1051_v55 = vsel %vm1035_vm6, %v16809_v52, %v16810_v15  ;;  %v1052_v36 = vsel %vm1035_vm6, %v16810_v15, %v16811_v8  ;;  %v1053_v6 = vsel %vm1035_vm6, %v16811_v8, %v16812_v14  ;;  %v1215_v18 = vadd.f32 %v1177_v22, %v1074_v21  ;;  %v16813_v52 = vld [vmem:[#allocation130_spill] sm:$0xff] }
 0x2e1   :  { %v1216_v48 = vadd.f32 %v1178_v31, %v1075_v23  ;;  %v1217_v1 = vadd.f32 %v1179_v28, %v1076_v17  ;;  %v1086_v37 = vadd.f32 %v1047_v12, %v945_v20  ;;  %v1087_v0 = vadd.f32 %v1048_v7, %v946_v44  ;;  %v10477_v15 = vpop.permute.xlu1 %2198  ;;  %v10479_v27 = vpop.permute.xlu0 %2196  ;;  %v16814_v23 = vld [vmem:[#allocation133_spill] sm:$0xff]  ;;  %v16815_v44 = vld [vmem:[#allocation132_spill] sm:$0xff] }
 0x2e2   :  { %v1088_v39 = vadd.f32 %v1049_v59, %v947_v24  ;;  %v1218_v42 = vadd.f32 %v1180_v19, %v1077_v56  ;;  %v1089_v2 = vadd.f32 %v1050_v57, %v948_v11  ;;  %v1090_v40 = vadd.f32 %v1051_v55, %v949_v25  ;;  %v16816_v24 = vld [vmem:[#allocation135_spill] sm:$0xff]  ;;  %v16818_v31 = vld [vmem:[#allocation136_spill] sm:$0xff]  ;;  %v16819_v28 = vld [vmem:[#allocation137_spill] sm:$0xff] }
 0x2e3   :  { %v1093_v16 = vadd.f32 %v16812_v14, %v952_v61  ;;  %v1181_v13 = vsel %vm1176_vm7, %v16806_v63, %v16813_v52  ;;  %v1091_v8 = vadd.f32 %v1052_v36, %v950_v49  ;;  %v1092_v21 = vadd.f32 %v1053_v6, %v951_v33  ;;  %v16817_v33 = vld [vmem:[#allocation134_spill] sm:$0xff]  ;;  %v16820_v19 = vld [vmem:[#allocation139_spill] sm:$0xff]  ;;  %v16822_v36 = vld [vmem:[#allocation141_spill] sm:$0xff] }
 0x2e4   :  { %v1182_v20 = vsel %vm1176_vm7, %v16813_v52, %v16814_v23  ;;  %v1183_v25 = vsel %vm1176_vm7, %v16814_v23, %v16815_v44  ;;  %v1184_v11 = vsel %vm1176_vm7, %v16815_v44, %v16816_v24  ;;  %v1278_v61 = vadd.f32 %v10114_v29, %v1215_v18  ;;  %v16824_v6 = vld [vmem:[#allocation143_spill] sm:$0xff]  ;;  %v16826_v52 = vld [vmem:[#allocation145_spill] sm:$0xff] }
 0x2e5   :  { %v1279_v17 = vadd.f32 %v10127_v41, %v1216_v48  ;;  %v1280_v56 = vadd.f32 %v10139_v4, %v1217_v1  ;;  %v1219_v49 = vadd.f32 %v1181_v13, %v1078_v35  ;;  %v1185_v22 = vsel %vm1176_vm7, %v16816_v24, %v16817_v33  ;;  %v16821_v41 = vld [vmem:[#allocation138_spill] sm:$0xff]  ;;  %v10506_v13 = vpop.permute.xlu1 %2202  ;;  %v10508_v35 = vpop.permute.xlu0 %2200 }
 0x2e6   :  { %v1186_v12 = vsel %vm1176_vm7, %v16819_v28, %v16818_v31  ;;  %v1281_v7 = vadd.f32 %v10145_v53, %v1218_v42  ;;  %v1220_v59 = vadd.f32 %v1182_v20, %v1079_v30  ;;  %v1221_v63 = vadd.f32 %v1183_v25, %v1080_v60  ;;  %v16823_v30 = vld [vmem:[#allocation140_spill] sm:$0xff]  ;;  %v16825_v48 = vld [vmem:[#allocation142_spill] sm:$0xff] }
 0x2e7   :  { %v1187_v29 = vsel %vm1176_vm7, %v16818_v31, %v16820_v19  ;;  %v1188_v4 = vsel %vm1176_vm7, %v16820_v19, %v16821_v41  ;;  %v1224_v57 = vadd.f32 %v16817_v33, %v1083_v43  ;;  %v1222_v55 = vadd.f32 %v1184_v11, %v1081_v46  ;;  %v16827_v20 = vld [vmem:[#allocation144_spill] sm:$0xff] }
 0x2e8   :  { %v1189_v53 = vsel %vm1176_vm7, %v16821_v41, %v16822_v36  ;;  %v1190_v60 = vsel %vm1176_vm7, %v16822_v36, %v16823_v30  ;;  %v1223_v42 = vadd.f32 %v1185_v22, %v1082_v38  ;;  %v1225_v14 = vadd.f32 %v1186_v12, %v1084_v9 }
 0x2e9   :  { %v1191_v18 = vsel %vm1176_vm7, %v16823_v30, %v16824_v6  ;;  %v1192_v1 = vsel %vm1176_vm7, %v16824_v6, %v16825_v48  ;;  %v1226_v43 = vadd.f32 %v1187_v29, %v1085_v32  ;;  %v1227_v46 = vadd.f32 %v1188_v4, %v1086_v37  ;;  %v10531_v11 = vpop.permute.xlu1 %2206  ;;  %v10533_v33 = vpop.permute.xlu0 %2204  ;;  %v16833_v29 = vld [vmem:[#allocation35_spill] sm:$0xff]  ;;  %v16834_v4 = vld [vmem:[#allocation150_spill] sm:$0xff] }
 0x2ea   :  { %v1193_v23 = vsel %vm1176_vm7, %v16825_v48, %v16826_v52  ;;  %v1194_v44 = vsel %vm1176_vm7, %v16826_v52, %v16827_v20  ;;  %v1228_v38 = vadd.f32 %v1189_v53, %v1087_v0  ;;  %v1229_v9 = vadd.f32 %v1190_v60, %v1088_v39  ;;  %v16837_v53 = vld [vmem:[#allocation38_spill] sm:$0xff] }
 0x2eb   :  { %v1282_v25 = vadd.f32 %v10159_v45, %v1219_v49  ;;  %v1283_v24 = vadd.f32 %v10175_v54, %v1220_v59  ;;  %v1230_v32 = vadd.f32 %v1191_v18, %v1089_v2  ;;  %v1231_v37 = vadd.f32 %v1192_v1, %v1090_v40  ;;  %v16828_v2 = vld [vmem:[#allocation146_spill] sm:$0xff]  ;;  %v16829_v40 = vld [vmem:[#allocation147_spill] sm:$0xff]  ;;  %v16830_v59 = vld [vmem:[#allocation149_spill] sm:$0xff] }
 0x2ec   :  { %v1284_v22 = vadd.f32 %v10181_v47, %v1221_v63  ;;  %v1287_v31 = vadd.f32 %v10196_v10, %v1224_v57  ;;  %v1234_v28 = vadd.f32 %v16827_v20, %v1093_v16  ;;  %v1232_v12 = vadd.f32 %v1193_v23, %v1091_v8  ;;  %v16839_v18 = vld [vmem:[#allocation152_spill] sm:$0xff]  ;;  %v16841_v52 = vld [vmem:[#allocation154_spill] sm:$0xff] }
 0x2ed   :  { %v1233_v19 = vadd.f32 %v1194_v44, %v1092_v21  ;;  %v1285_v39 = vadd.f32 %v10206_v51, %v1222_v55  ;;  %v1286_v45 = vadd.f32 %v10212_v62, %v1223_v42  ;;  %v1288_v54 = vadd.f32 %v10227_v34, %v1225_v14  ;;  %v10551_v8 = vpop.permute.xlu1 %2210  ;;  %v10553_v62 = vpop.permute.xlu0 %2208  ;;  %v16831_v34 = vld [vmem:[#allocation148_spill] sm:$0xff]  ;;  %v16836_v55 = vld [vmem:[#allocation39_spill] sm:$0xff]  ;;  %v16838_v14 = vld [vmem:[#allocation153_spill] sm:$0xff] }
 0x2ee   :  { %v1289_v0 = vadd.f32 %v10256_v3, %v1226_v43  ;;  %v1290_v49 = vadd.f32 %v10262_v5, %v1227_v46  ;;  %v1380_v47 = vsel %vm189_vm0, %v16829_v40, %v16828_v2  ;;  %v1381_v10 = vsel %vm189_vm0, %v16828_v2, %v16830_v59  ;;  %v16832_v5 = vld [vmem:[#allocation151_spill] sm:$0xff]  ;;  %v16843_v44 = vld [vmem:[#allocation156_spill] sm:$0xff] }
 0x2ef   :  { %v1291_v16 = vadd.f32 %v10270_v26, %v1228_v38  ;;  %v1292_v51 = vadd.f32 %v10274_v50, %v1229_v9  ;;  %v1382_v3 = vsel %vm189_vm0, %v16830_v59, %v16831_v34  ;;  %v1383_v21 = vsel %vm189_vm0, %v16831_v34, %v16832_v5  ;;  %v16835_v50 = vld [vmem:[#allocation34_spill] sm:$0xff]  ;;  %v16840_v43 = vld [vmem:[#allocation155_spill] sm:$0xff]  ;;  %v16844_v38 = vld [vmem:[#allocation157_spill] sm:$0xff] }
 0x2f0   :  { %v1293_v63 = vadd.f32 %v10279_v58, %v1230_v32  ;;  %v1294_v41 = vadd.f32 %v16833_v29, %v1231_v37  ;;  %v1384_v26 = vsel %vm189_vm0, %v16832_v5, %v16834_v4  ;;  %v1297_v57 = vadd.f32 %v16835_v50, %v1234_v28  ;;  %v16845_v32 = vld [vmem:[#allocation159_spill] sm:$0xff]  ;;  %v16848_v40 = vld [vmem:[#allocation160_spill] sm:$0xff] }
 0x2f1   :  { %v1295_v36 = vadd.f32 %v16836_v55, %v1232_v12  ;;  %v1296_v30 = vadd.f32 %v16837_v53, %v1233_v19  ;;  %v1418_v60 = vadd.f32 %v1380_v47, %v1278_v61  ;;  %v1419_v42 = vadd.f32 %v1381_v10, %v1279_v17  ;;  %v10581_v61 = vpop.permute.xlu1 %2214  ;;  %v10583_v17 = vpop.permute.xlu0 %2212  ;;  %v16847_v19 = vld [vmem:[#allocation161_spill] sm:$0xff]  ;;  %v16849_v34 = vld [vmem:[#allocation163_spill] sm:$0xff] }
 0x2f2   :  { %v1385_v6 = vsel %vm189_vm0, %v16834_v4, %v16838_v14  ;;  %v1386_v58 = vsel %vm189_vm0, %v16838_v14, %v16839_v18  ;;  %v1420_v48 = vadd.f32 %v1382_v3, %v1280_v56  ;;  %v1421_v1 = vadd.f32 %v1383_v21, %v1281_v7  ;;  %16842 = vst [vmem:[#allocation51_spill] sm:$0xff] %v10581_v61  ;;  %v16846_v7 = vld [vmem:[#allocation158_spill] sm:$0xff]  ;;  %v16856_v53 = vld [vmem:[#allocation167_spill] sm:$0xff] }
 0x2f3   :  { %v1387_v46 = vsel %vm189_vm0, %v16839_v18, %v16840_v43  ;;  %v1388_v23 = vsel %vm189_vm0, %v16840_v43, %v16841_v52  ;;  %v1422_v20 = vadd.f32 %v1384_v26, %v1282_v25  ;;  %v1389_v9 = vsel %vm189_vm0, %v16844_v38, %v16843_v44  ;;  %v16926_v61 = vld [vmem:[#allocation234_spill] sm:$0xff] }
 0x2f4   :  { %v1390_v56 = vsel %vm189_vm0, %v16843_v44, %v16845_v32  ;;  %v1391_v37 = vsel %vm189_vm0, %v16845_v32, %v16846_v7  ;;  %v1423_v28 = vadd.f32 %v1385_v6, %v1283_v24  ;;  %v1424_v12 = vadd.f32 %v1386_v58, %v1284_v22  ;;  %v16850_v22 = vld [vmem:[#allocation162_spill] sm:$0xff]  ;;  %v16857_v6 = vld [vmem:[#allocation169_spill] sm:$0xff]  ;;  %v16858_v58 = vld [vmem:[#allocation168_spill] sm:$0xff] }
 0x2f5   :  { %v1392_v2 = vsel %vm189_vm0, %v16846_v7, %v16847_v19  ;;  %v1393_v25 = vsel %vm189_vm0, %v16847_v19, %v16848_v40  ;;  %v1427_v47 = vadd.f32 %v16841_v52, %v1287_v31  ;;  %v1425_v59 = vadd.f32 %v1387_v46, %v1285_v39  ;;  %v10607_v4 = vpop.permute.xlu1 %2218  ;;  %v10609_v26 = vpop.permute.xlu0 %2216  ;;  %v16853_v31 = vld [vmem:[#allocation165_spill] sm:$0xff]  ;;  %v16859_v46 = vld [vmem:[#allocation171_spill] sm:$0xff] }
 0x2f6   :  { %v1426_v10 = vadd.f32 %v1388_v23, %v1286_v45  ;;  %v1394_v3 = vsel %vm189_vm0, %v16848_v40, %v16849_v34  ;;  %v1428_v5 = vadd.f32 %v1389_v9, %v1288_v54  ;;  %v1429_v21 = vadd.f32 %v1390_v56, %v1289_v0  ;;  %16851 = vst [vmem:[#allocation50_spill] sm:$0xff] %v10607_v4  ;;  %v16854_v45 = vld [vmem:[#allocation164_spill] sm:$0xff]  ;;  %v16861_v9 = vld [vmem:[#allocation173_spill] sm:$0xff]  ;;  %v16863_v40 = vld [vmem:[#allocation175_spill] sm:$0xff] }
 0x2f7   :  { %v1430_v24 = vadd.f32 %v1391_v37, %v1290_v49  ;;  %v1395_v29 = vsel %vm189_vm0, %v16849_v34, %v16850_v22  ;;  %16852 = vst [vmem:[#allocation53_spill] sm:$0xff] %v10609_v26  ;;  %v1431_v50 = vadd.f32 %v1392_v2, %v1291_v16  ;;  %v1432_v55 = vadd.f32 %v1393_v25, %v1292_v51  ;;  %v16855_v49 = vld [vmem:[#allocation166_spill] sm:$0xff]  ;;  %v16862_v56 = vld [vmem:[#allocation172_spill] sm:$0xff] }
 0x2f8   :  { %v1396_v39 = vsel %vm189_vm0, %v16850_v22, %v16853_v31  ;;  %v1397_v54 = vsel %vm189_vm0, %v16853_v31, %v16854_v45  ;;  %v1433_v0 = vadd.f32 %v1394_v3, %v1293_v63  ;;  %v1520_v14 = vsel %vm330_vm1, %v16856_v53, %v16855_v49  ;;  %v16860_v63 = vld [vmem:[#allocation170_spill] sm:$0xff]  ;;  %v16865_v22 = vld [vmem:[#allocation176_spill] sm:$0xff] }
 0x2f9   :  { %v1521_v18 = vsel %vm330_vm1, %v16855_v49, %v16857_v6  ;;  %v1522_v16 = vsel %vm330_vm1, %v16857_v6, %v16858_v58  ;;  %v1434_v51 = vadd.f32 %v1395_v29, %v1294_v41  ;;  %v1437_v43 = vadd.f32 %v16854_v45, %v1297_v57  ;;  %v10639_v7 = vpop.permute.xlu1 %2322  ;;  %v10641_v57 = vpop.permute.xlu0 %2320  ;;  %v16864_v34 = vld [vmem:[#allocation174_spill] sm:$0xff]  ;;  %v16866_v29 = vld [vmem:[#allocation177_spill] sm:$0xff] }
 0x2fa   :  { %v1523_v52 = vsel %vm330_vm1, %v16858_v58, %v16859_v46  ;;  %v1524_v23 = vsel %vm330_vm1, %v16859_v46, %v16860_v63  ;;  %v1435_v44 = vadd.f32 %v1396_v39, %v1295_v36  ;;  %v1436_v38 = vadd.f32 %v1397_v54, %v1296_v30  ;;  %v16867_v54 = vld [vmem:[#allocation179_spill] sm:$0xff]  ;;  %v16869_v49 = vld [vmem:[#allocation181_spill] sm:$0xff]  ;;  %v16912_v4 = vld [vmem:[#allocation222_spill] sm:$0xff] }
 0x2fb   :  { %v1525_v32 = vsel %vm330_vm1, %v16860_v63, %v16861_v9  ;;  %v1526_v41 = vsel %vm330_vm1, %v16861_v9, %v16862_v56  ;;  %v1558_v37 = vadd.f32 %v1520_v14, %v1418_v60  ;;  %v1559_v19 = vadd.f32 %v1521_v18, %v1419_v42  ;;  %v16868_v42 = vld [vmem:[#allocation178_spill] sm:$0xff]  ;;  %v16870_v14 = vld [vmem:[#allocation180_spill] sm:$0xff] }
 0x2fc   :  { %v1560_v2 = vadd.f32 %v1522_v16, %v1420_v48  ;;  %v1527_v36 = vsel %vm330_vm1, %v16862_v56, %v16863_v40  ;;  %v1561_v30 = vadd.f32 %v1523_v52, %v1421_v1  ;;  %v1562_v25 = vadd.f32 %v1524_v23, %v1422_v20  ;;  %v16871_v16 = vld [vmem:[#allocation183_spill] sm:$0xff]  ;;  %v16873_v23 = vld [vmem:[#allocation185_spill] sm:$0xff] }
 0x2fd   :  { %v1528_v3 = vsel %vm330_vm1, %v16863_v40, %v16864_v34  ;;  %v1529_v31 = vsel %vm330_vm1, %v16866_v29, %v16865_v22  ;;  %v1563_v39 = vadd.f32 %v1525_v32, %v1423_v28  ;;  %v1564_v45 = vadd.f32 %v1526_v41, %v1424_v12  ;;  %v10665_v12 = vpop.permute.xlu1 %2326  ;;  %v10667_v6 = vpop.permute.xlu0 %2324  ;;  %v16874_v32 = vld [vmem:[#allocation184_spill] sm:$0xff]  ;;  %v16875_v41 = vld [vmem:[#allocation186_spill] sm:$0xff]  ;;  %v16876_v40 = vld [vmem:[#allocation187_spill] sm:$0xff] }
 0x2fe   :  { %v1530_v60 = vsel %vm330_vm1, %v16865_v22, %v16867_v54  ;;  %v1531_v48 = vsel %vm330_vm1, %v16867_v54, %v16868_v42  ;;  %v1567_v1 = vadd.f32 %v16864_v34, %v1427_v47  ;;  %v1565_v20 = vadd.f32 %v1527_v36, %v1425_v59  ;;  %v16872_v47 = vld [vmem:[#allocation182_spill] sm:$0xff]  ;;  %v16877_v34 = vld [vmem:[#allocation189_spill] sm:$0xff]  ;;  %v16878_v22 = vld [vmem:[#allocation188_spill] sm:$0xff] }
 0x2ff   :  { %v1532_v53 = vsel %vm330_vm1, %v16868_v42, %v16869_v49  ;;  %v1533_v28 = vsel %vm330_vm1, %v16869_v49, %v16870_v14  ;;  %v1566_v18 = vadd.f32 %v1528_v3, %v1426_v10  ;;  %v1568_v58 = vadd.f32 %v1529_v31, %v1428_v5  ;;  %v16879_v31 = vld [vmem:[#allocation191_spill] sm:$0xff]  ;;  %v16880_v49 = vld [vmem:[#allocation190_spill] sm:$0xff] }
 0x300   :  { %v1534_v46 = vsel %vm330_vm1, %v16870_v14, %v16871_v16  ;;  %v1535_v59 = vsel %vm330_vm1, %v16871_v16, %v16872_v47  ;;  %v1569_v52 = vadd.f32 %v1530_v60, %v1429_v21  ;;  %v1570_v63 = vadd.f32 %v1531_v48, %v1430_v24  ;;  %v16881_v14 = vld [vmem:[#allocation193_spill] sm:$0xff]  ;;  %v16882_v16 = vld [vmem:[#allocation192_spill] sm:$0xff] }
 0x301   :  { %v1536_v9 = vsel %vm330_vm1, %v16872_v47, %v16873_v23  ;;  %v1537_v56 = vsel %vm330_vm1, %v16873_v23, %v16874_v32  ;;  %v1571_v10 = vadd.f32 %v1532_v53, %v1431_v50  ;;  %v1572_v5 = vadd.f32 %v1533_v28, %v1432_v55  ;;  %v10693_v50 = vpop.permute.xlu1 %2330  ;;  %v10695_v55 = vpop.permute.xlu0 %2328  ;;  %v16883_v23 = vld [vmem:[#allocation195_spill] sm:$0xff] }
 0x302   :  { %v1660_v36 = vsel %vm471_vm2, %v16876_v40, %v16875_v41  ;;  %v1661_v3 = vsel %vm471_vm2, %v16875_v41, %v16877_v34  ;;  %v1573_v21 = vadd.f32 %v1534_v46, %v1433_v0  ;;  %v1574_v24 = vadd.f32 %v1535_v59, %v1434_v51  ;;  %v16888_v40 = vld [vmem:[#allocation198_spill] sm:$0xff] }
 0x303   :  { %v1662_v29 = vsel %vm471_vm2, %v16877_v34, %v16878_v22  ;;  %v1663_v54 = vsel %vm471_vm2, %v16878_v22, %v16879_v31  ;;  %v1577_v60 = vadd.f32 %v16874_v32, %v1437_v43  ;;  %v1575_v42 = vadd.f32 %v1536_v9, %v1435_v44  ;;  %v16884_v44 = vld [vmem:[#allocation194_spill] sm:$0xff]  ;;  %v16886_v9 = vld [vmem:[#allocation197_spill] sm:$0xff] }
 0x304   :  { %v1576_v48 = vadd.f32 %v1537_v56, %v1436_v38  ;;  %v1664_v0 = vsel %vm471_vm2, %v16879_v31, %v16880_v49  ;;  %v1698_v51 = vadd.f32 %v1660_v36, %v1558_v37  ;;  %v1699_v53 = vadd.f32 %v1661_v3, %v1559_v19  ;;  %v16885_v19 = vld [vmem:[#allocation196_spill] sm:$0xff]  ;;  %v16887_v56 = vld [vmem:[#allocation199_spill] sm:$0xff]  ;;  %v16889_v22 = vld [vmem:[#allocation201_spill] sm:$0xff] }
 0x305   :  { %v1665_v28 = vsel %vm471_vm2, %v16880_v49, %v16881_v14  ;;  %v1666_v46 = vsel %vm471_vm2, %v16881_v14, %v16882_v16  ;;  %v1700_v47 = vadd.f32 %v1662_v29, %v1560_v2  ;;  %v1701_v59 = vadd.f32 %v1663_v54, %v1561_v30  ;;  %v10722_v30 = vpop.permute.xlu1 %2334  ;;  %v10724_v36 = vpop.permute.xlu0 %2332  ;;  %v16890_v49 = vld [vmem:[#allocation200_spill] sm:$0xff]  ;;  %v16891_v14 = vld [vmem:[#allocation203_spill] sm:$0xff] }
 0x306   :  { %v1667_v43 = vsel %vm471_vm2, %v16882_v16, %v16883_v23  ;;  %v1668_v38 = vsel %vm471_vm2, %v16883_v23, %v16884_v44  ;;  %v1702_v37 = vadd.f32 %v1664_v0, %v1562_v25  ;;  %v1669_v32 = vsel %vm471_vm2, %v16886_v9, %v16885_v19 }
 0x307   :  { %v1670_v41 = vsel %vm471_vm2, %v16885_v19, %v16887_v56  ;;  %v1671_v2 = vsel %vm471_vm2, %v16887_v56, %v16888_v40  ;;  %v1703_v34 = vadd.f32 %v1665_v28, %v1563_v39  ;;  %v1704_v3 = vadd.f32 %v1666_v46, %v1564_v45  ;;  %v16892_v45 = vld [vmem:[#allocation202_spill] sm:$0xff]  ;;  %v16893_v46 = vld [vmem:[#allocation205_spill] sm:$0xff] }
 0x308   :  { %v1707_v25 = vadd.f32 %v16884_v44, %v1567_v1  ;;  %v1672_v29 = vsel %vm471_vm2, %v16888_v40, %v16889_v22  ;;  %v1705_v31 = vadd.f32 %v1667_v43, %v1565_v20  ;;  %v1706_v54 = vadd.f32 %v1668_v38, %v1566_v18  ;;  %v16894_v18 = vld [vmem:[#allocation204_spill] sm:$0xff]  ;;  %v16895_v44 = vld [vmem:[#allocation206_spill] sm:$0xff]  ;;  %v16896_v38 = vld [vmem:[#allocation207_spill] sm:$0xff] }
 0x309   :  { %v1673_v0 = vsel %vm471_vm2, %v16889_v22, %v16890_v49  ;;  %v1674_v16 = vsel %vm471_vm2, %v16890_v49, %v16891_v14  ;;  %v1708_v23 = vadd.f32 %v1669_v32, %v1568_v58  ;;  %v1709_v19 = vadd.f32 %v1670_v41, %v1569_v52  ;;  %v10748_v58 = vpop.permute.xlu1 %2338  ;;  %v10750_v52 = vpop.permute.xlu0 %2336  ;;  %v16897_v56 = vld [vmem:[#allocation209_spill] sm:$0xff]  ;;  %v16898_v41 = vld [vmem:[#allocation208_spill] sm:$0xff] }
 0x30a   :  { %v1710_v39 = vadd.f32 %v1671_v2, %v1570_v63  ;;  %v1675_v1 = vsel %vm471_vm2, %v16891_v14, %v16892_v45  ;;  %v1711_v28 = vadd.f32 %v1672_v29, %v1571_v10  ;;  %v1676_v20 = vsel %vm471_vm2, %v16892_v45, %v16893_v46  ;;  %v16899_v29 = vld [vmem:[#allocation211_spill] sm:$0xff]  ;;  %v16900_v14 = vld [vmem:[#allocation210_spill] sm:$0xff]  ;;  %v16901_v45 = vld [vmem:[#allocation213_spill] sm:$0xff] }
 0x30b   :  { %v1677_v43 = vsel %vm471_vm2, %v16893_v46, %v16894_v18  ;;  %v1800_v9 = vsel %vm612_vm3, %v16896_v38, %v16895_v44  ;;  %v1712_v63 = vadd.f32 %v1673_v0, %v1572_v5  ;;  %v1713_v32 = vadd.f32 %v1674_v16, %v1573_v21 }
 0x30c   :  { %v1801_v10 = vsel %vm612_vm3, %v16895_v44, %v16897_v56  ;;  %v1802_v40 = vsel %vm612_vm3, %v16897_v56, %v16898_v41  ;;  %v1714_v2 = vadd.f32 %v1675_v1, %v1574_v24  ;;  %v1717_v22 = vadd.f32 %v16894_v18, %v1577_v60  ;;  %v16902_v24 = vld [vmem:[#allocation212_spill] sm:$0xff]  ;;  %v16903_v1 = vld [vmem:[#allocation215_spill] sm:$0xff] }
 0x30d   :  { %v1803_v49 = vsel %vm612_vm3, %v16898_v41, %v16899_v29  ;;  %v1804_v5 = vsel %vm612_vm3, %v16899_v29, %v16900_v14  ;;  %v1715_v21 = vadd.f32 %v1676_v20, %v1575_v42  ;;  %v1716_v0 = vadd.f32 %v1677_v43, %v1576_v48  ;;  %v10774_v56 = vpop.permute.xlu1 %2342  ;;  %v10776_v41 = vpop.permute.xlu0 %2340  ;;  %v16908_v29 = vld [vmem:[#allocation218_spill] sm:$0xff] }
 0x30e   :  { %v1838_v16 = vadd.f32 %v1800_v9, %v1698_v51  ;;  %v1805_v46 = vsel %vm612_vm3, %v16900_v14, %v16901_v45  ;;  %v1839_v44 = vadd.f32 %v1801_v10, %v1699_v53  ;;  %v1840_v38 = vadd.f32 %v1802_v40, %v1700_v47  ;;  %v16904_v51 = vld [vmem:[#allocation214_spill] sm:$0xff]  ;;  %v16905_v53 = vld [vmem:[#allocation216_spill] sm:$0xff]  ;;  %v16906_v47 = vld [vmem:[#allocation217_spill] sm:$0xff] }
 0x30f   :  { %v1806_v60 = vsel %vm612_vm3, %v16901_v45, %v16902_v24  ;;  %v1807_v18 = vsel %vm612_vm3, %v16902_v24, %v16903_v1  ;;  %v1841_v42 = vadd.f32 %v1803_v49, %v1701_v59  ;;  %v1842_v48 = vadd.f32 %v1804_v5, %v1702_v37  ;;  %v16907_v10 = vld [vmem:[#allocation219_spill] sm:$0xff]  ;;  %v16909_v45 = vld [vmem:[#allocation221_spill] sm:$0xff]  ;;  %v16910_v24 = vld [vmem:[#allocation220_spill] sm:$0xff] }
 0x310   :  { %v1808_v20 = vsel %vm612_vm3, %v16903_v1, %v16904_v51  ;;  %v1809_v43 = vsel %vm612_vm3, %v16906_v47, %v16905_v53  ;;  %v1843_v9 = vadd.f32 %v1805_v46, %v1703_v34  ;;  %v1810_v40 = vsel %vm612_vm3, %v16905_v53, %v16907_v10  ;;  %v16911_v47 = vld [vmem:[#allocation223_spill] sm:$0xff] }
 0x311   :  { %v1811_v14 = vsel %vm612_vm3, %v16907_v10, %v16908_v29  ;;  %v1812_v59 = vsel %vm612_vm3, %v16908_v29, %v16909_v45  ;;  %v1844_v37 = vadd.f32 %v1806_v60, %v1704_v3  ;;  %v1847_v49 = vadd.f32 %v16904_v51, %v1707_v25  ;;  %v10803_v26 = vpop.permute.xlu1 %2346  ;;  %v10805_v3 = vpop.permute.xlu0 %2344  ;;  %v16914_v51 = vld [vmem:[#allocation224_spill] sm:$0xff]  ;;  %v16916_v29 = vld [vmem:[#allocation227_spill] sm:$0xff] }
 0x312   :  { %v1845_v5 = vadd.f32 %v1807_v18, %v1705_v31  ;;  %v1813_v34 = vsel %vm612_vm3, %v16909_v45, %v16910_v24  ;;  %v1846_v46 = vadd.f32 %v1808_v20, %v1706_v54  ;;  %v1848_v1 = vadd.f32 %v1809_v43, %v1708_v23  ;;  %v16913_v18 = vld [vmem:[#allocation225_spill] sm:$0xff]  ;;  %v16915_v43 = vld [vmem:[#allocation226_spill] sm:$0xff] }
 0x313   :  { %v1814_v53 = vsel %vm612_vm3, %v16910_v24, %v16911_v47  ;;  %v1815_v10 = vsel %vm612_vm3, %v16911_v47, %v16912_v4  ;;  %v1849_v25 = vadd.f32 %v1810_v40, %v1709_v19  ;;  %v1850_v31 = vadd.f32 %v1811_v14, %v1710_v39  ;;  %v16917_v24 = vld [vmem:[#allocation229_spill] sm:$0xff] }
 0x314   :  { %v1851_v60 = vadd.f32 %v1812_v59, %v1711_v28  ;;  %v1816_v54 = vsel %vm612_vm3, %v16912_v4, %v16913_v18  ;;  %v1852_v23 = vadd.f32 %v1813_v34, %v1712_v63  ;;  %v1817_v20 = vsel %vm612_vm3, %v16913_v18, %v16914_v51  ;;  %v16918_v28 = vld [vmem:[#allocation228_spill] sm:$0xff]  ;;  %v16919_v63 = vld [vmem:[#allocation231_spill] sm:$0xff]  ;;  %v16921_v34 = vld [vmem:[#allocation230_spill] sm:$0xff] }
 0x315   :  { %v1940_v45 = vsel %vm753_vm4, %v16916_v29, %v16915_v43  ;;  %v1941_v47 = vsel %vm753_vm4, %v16915_v43, %v16917_v24  ;;  %v1853_v19 = vadd.f32 %v1814_v53, %v1713_v32  ;;  %v10819_v39 = vadd.f32 %v1815_v10, %v1714_v2  ;;  %v16922_v32 = vld [vmem:[#allocation233_spill] sm:$0xff]  ;;  %v10838_v53 = vpop.permute.xlu1 %2350  ;;  %v10840_v10 = vpop.permute.xlu0 %2348 }
 0x316   :  { %v1942_v4 = vsel %vm753_vm4, %v16917_v24, %v16918_v28  ;;  %v1943_v40 = vsel %vm753_vm4, %v16918_v28, %v16919_v63  ;;  %v10828_v14 = vadd.f32 %v16914_v51, %v1717_v22  ;;  %v10830_v59 = vadd.f32 %v1816_v54, %v1715_v21  ;;  %16923 = vst [vmem:[#allocation55_spill] sm:$0xff] %v10838_v53  ;;  %v16924_v22 = vld [vmem:[#allocation232_spill] sm:$0xff]  ;;  %v16925_v28 = vld [vmem:[#allocation235_spill] sm:$0xff] }
 0x317   :  { %v1944_v18 = vsel %vm753_vm4, %v16919_v63, %v16921_v34  ;;  %v1945_v2 = vsel %vm753_vm4, %v16921_v34, %v16922_v32  ;;  %v10842_v43 = vadd.f32 %v1817_v20, %v1716_v0  ;;  %v1978_v29 = vadd.f32 %v1940_v45, %v1838_v16  ;;  %v16927_v0 = vld [vmem:[#allocation236_spill] sm:$0xff]  ;;  %v16928_v20 = vld [vmem:[#allocation237_spill] sm:$0xff] }
 0x318   :  { %16920 = vst [vmem:[#allocation52_spill] sm:$0xff] %v10828_v14  ;;  %v1979_v24 = vadd.f32 %v1941_v47, %v1839_v44  ;;  %v1946_v21 = vsel %vm753_vm4, %v16922_v32, %v16924_v22  ;;  %v1980_v54 = vadd.f32 %v1942_v4, %v1840_v38  ;;  %v1981_v51 = vadd.f32 %v1943_v40, %v1841_v42  ;;  %v16929_v44 = vld [vmem:[#allocation239_spill] sm:$0xff]  ;;  %v16930_v47 = vld [vmem:[#allocation238_spill] sm:$0xff] }
 0x319   :  { %v1947_v63 = vsel %vm753_vm4, %v16924_v22, %v16925_v28  ;;  %v1948_v34 = vsel %vm753_vm4, %v16925_v28, %v16926_v61  ;;  %v1982_v14 = vadd.f32 %v1944_v18, %v1842_v48  ;;  %v1983_v53 = vadd.f32 %v1945_v2, %v1843_v9  ;;  %v16931_v40 = vld [vmem:[#allocation19_spill] sm:$0xff]  ;;  %v16932_v48 = vld [vmem:[#allocation18_spill] sm:$0xff]  ;;  %v10870_v18 = vpop.permute.xlu1 %2354  ;;  %v10872_v32 = vpop.permute.xlu0 %2352 }
 0x31a   :  { %v1949_v16 = vsel %vm753_vm4, %v16928_v20, %v16927_v0  ;;  %v1950_v45 = vsel %vm753_vm4, %v16927_v0, %v16929_v44  ;;  %v10859_v38 = vadd.f32 %v1946_v21, %v1844_v37  ;;  %v10862_v42 = vadd.f32 %v16926_v61, %v1847_v49  ;;  %16933 = vst [vmem:[#allocation54_spill] sm:$0xff] %v10870_v18  ;;  %v16934_v37 = vld [vmem:[#allocation12_spill] sm:$0xff]  ;;  %v16936_v20 = vld [vmem:[#allocation13_spill] sm:$0xff] }
 0x31b   :  { %v1951_v4 = vsel %vm753_vm4, %v16929_v44, %v16930_v47  ;;  %v2080_v9 = vsel %vm894_vm5, %v16932_v48, %v16931_v40  ;;  %v10874_v2 = vadd.f32 %v1947_v63, %v1845_v5  ;;  %v10876_v22 = vadd.f32 %v1948_v34, %v1846_v46  ;;  %v16935_v49 = vld [vmem:[#allocation20_spill] sm:$0xff]  ;;  %v16937_v5 = vld [vmem:[#allocation43_spill] sm:$0xff]  ;;  %v16938_v63 = vld [vmem:[#allocation42_spill] sm:$0xff] }
 0x31c   :  { %v1952_v61 = vsel %vm753_vm4, %v16930_v47, %v16934_v37  ;;  %v2081_v21 = vsel %vm894_vm5, %v16931_v40, %v16935_v49  ;;  %v10884_v28 = vadd.f32 %v1949_v16, %v1848_v1  ;;  %v10886_v0 = vadd.f32 %v1950_v45, %v1849_v25  ;;  %v16939_v48 = vld [vmem:[#allocation14_spill] sm:$0xff]  ;;  %v16940_v40 = vld [vmem:[#allocation44_spill] sm:$0xff]  ;;  %v16941_v16 = vld [vmem:[#allocation21_spill] sm:$0xff] }
 0x31d   :  { %v1953_v44 = vsel %vm753_vm4, %v16934_v37, %v16936_v20  ;;  %v2220_v46 = vsel %vm1035_vm6, %v16938_v63, %v16937_v5  ;;  %v10894_v34 = vadd.f32 %v1951_v4, %v1850_v31  ;;  %v1954_v47 = vsel %vm753_vm4, %v16936_v20, %v16939_v48  ;;  %v10910_v4 = vpop.permute.xlu1 %2358  ;;  %v10912_v63 = vpop.permute.xlu0 %2356 }
 0x31e   :  { %v2118_v18 = vadd.f32 %v2080_v9, %v1978_v29  ;;  %v2221_v1 = vsel %vm1035_vm6, %v16937_v5, %v16940_v40  ;;  %v10902_v25 = vadd.f32 %v1952_v61, %v1851_v60  ;;  %v2082_v45 = vsel %vm894_vm5, %v16935_v49, %v16941_v16  ;;  %16942 = vst [vmem:[#allocation56_spill] sm:$0xff] %v10910_v4  ;;  %v16943_v9 = vld [vmem:[#allocation22_spill] sm:$0xff]  ;;  %v16946_v4 = vld [vmem:[#allocation47_spill] sm:$0xff] }
 0x31f   :  { %v2119_v37 = vadd.f32 %v2081_v21, %v1979_v24  ;;  %v2360_v31 = vsel %vm1176_vm7, %v10641_v57, %v10639_v7  ;;  %v10914_v29 = vadd.f32 %v1953_v44, %v1852_v23  ;;  %v2083_v60 = vsel %vm894_vm5, %v16941_v16, %v16943_v9  ;;  %v16944_v24 = vld [vmem:[#allocation15_spill] sm:$0xff]  ;;  %v16945_v23 = vld [vmem:[#allocation45_spill] sm:$0xff] }
 0x320   :  { %v2258_v61 = vadd.f32 %v2220_v46, %v2118_v18  ;;  %v2361_v49 = vsel %vm1176_vm7, %v10639_v7, %v10667_v6  ;;  %v1955_v21 = vsel %vm753_vm4, %v16939_v48, %v16944_v24  ;;  %v10925_v57 = vadd.f32 %v1954_v47, %v1853_v19  ;;  %v16948_v7 = vld [vmem:[#allocation23_spill] sm:$0xff]  ;;  %v16949_v19 = vld [vmem:[#allocation24_spill] sm:$0xff] }
 0x321   :  { %v2259_v20 = vadd.f32 %v2221_v1, %v2119_v37  ;;  %v2120_v5 = vadd.f32 %v2082_v45, %v1980_v54  ;;  %v2222_v44 = vsel %vm1035_vm6, %v16940_v40, %v16945_v23  ;;  %v2223_v18 = vsel %vm1035_vm6, %v16945_v23, %v16946_v4  ;;  %v2459_v1 = vpop.permute.xlu1 %2458  ;;  %v10943_v45 = vpop.permute.xlu0 %2456  ;;  %v16954_v23 = vld [vmem:[#allocation46_spill] sm:$0xff] }
 0x322   :  { %v10933_v46 = vadd.f32 %v2360_v31, %v2258_v61  ;;  %v2084_v16 = vsel %vm894_vm5, %v16943_v9, %v16948_v7  ;;  %v2121_v48 = vadd.f32 %v2083_v60, %v1981_v51  ;;  %v2085_v47 = vsel %vm894_vm5, %v16948_v7, %v16949_v19  ;;  %16951 = vst [vmem:[#allocation58_spill] sm:$0xff] %v10943_v45 }
 0x323   :  { %v10941_v54 = vadd.f32 %v2361_v49, %v2259_v20  ;;  %v2362_v40 = vsel %vm1176_vm7, %v10667_v6, %v10665_v12  ;;  %v2363_v37 = vsel %vm1176_vm7, %v10665_v12, %v10695_v55  ;;  %v10957_v31 = vsel %vm2474_vm8, %v10943_v45, %v2459_v1  ;;  %v16953_v20 = vld [vmem:[#allocation25_spill] sm:$0xff] }
 0x324   :  { %16947 = vst [vmem:[#allocation57_spill] sm:$0xff] %v10933_v46  ;;  %v10953_v51 = vmul.f32 %v10943_v45, %v10933_v46  ;;  %16952 = vst [vmem:[#allocation61_spill] sm:$0xff] %v10957_v31  ;;  %v10960_v9 = vadd.f32 %v1955_v21, %v10819_v39  ;;  %v2260_v60 = vadd.f32 %v2222_v44, %v2120_v5  ;;  %v16955_v46 = vld [vmem:[#allocation48_spill] sm:$0xff]  ;;  %v16956_v5 = vld [vmem:[#allocation27_spill] sm:$0xff] }
 0x325   :  { %16950 = vst [vmem:[#allocation59_spill] sm:$0xff] %v10941_v54  ;;  %v2261_v61 = vadd.f32 %v2223_v18, %v2121_v48  ;;  %v10964_v6 = vmul.f32 %v10957_v31, %v10941_v54  ;;  %v2122_v49 = vadd.f32 %v2084_v16, %v1982_v14  ;;  %v2086_v12 = vsel %vm894_vm5, %v16949_v19, %v16953_v20  ;;  %v2463_v16 = vpop.permute.xlu1 %2462 }
 0x326   :  { %v2224_v7 = vsel %vm1035_vm6, %v16946_v4, %v16954_v23  ;;  %v2225_v39 = vsel %vm1035_vm6, %v16954_v23, %v16955_v46  ;;  %2533 = vrot.lane.b32.xlu1 %v10953_v51, %s8121_s26  ;;  %v2123_v21 = vadd.f32 %v2085_v47, %v1983_v53  ;;  %v2087_v14 = vsel %vm894_vm5, %v16953_v20, %v16956_v5  ;;  %v2461_v4 = vpop.permute.xlu0 %2460  ;;  %v16961_v20 = vld [vmem:[#allocation26_spill] sm:$0xff] }
 0x327   :  { %v10980_v44 = vadd.f32 %v2362_v40, %v2260_v60  ;;  %v10982_v18 = vadd.f32 %v2363_v37, %v2261_v61  ;;  %2535 = vrot.lane.b32.xlu0 %v10964_v6, %s8121_s26  ;;  %v2364_v48 = vsel %vm1176_vm7, %v10695_v55, %v10693_v50  ;;  %v2365_v53 = vsel %vm1176_vm7, %v10693_v50, %v10724_v36 }
 0x328   :  { %v10993_v19 = vsel %vm2474_vm8, %v2459_v1, %v2461_v4  ;;  %v10996_v47 = vsel %vm2474_vm8, %v2461_v4, %v2463_v16  ;;  %v2262_v40 = vadd.f32 %v2224_v7, %v2122_v49  ;;  %v2263_v37 = vadd.f32 %v2225_v39, %v2123_v21  ;;  %v16962_v1 = vld [vmem:[#allocation49_spill] sm:$0xff] }
 0x329   :  { %16957 = vst [vmem:[#allocation60_spill] sm:$0xff] %v10980_v44  ;;  %16958 = vst [vmem:[#allocation63_spill] sm:$0xff] %v10982_v18  ;;  %v11000_v60 = vmul.f32 %v10996_v47, %v10982_v18  ;;  %v11004_v61 = vmul.f32 %v10993_v19, %v10980_v44  ;;  %v2124_v55 = vadd.f32 %v2086_v12, %v10859_v38  ;;  %v2467_v4 = vpop.permute.xlu1 %2466 }
 0x32a   :  { %16959 = vst [vmem:[#allocation62_spill] sm:$0xff] %v10993_v19  ;;  %16960 = vst [vmem:[#allocation65_spill] sm:$0xff] %v10996_v47  ;;  %v2088_v50 = vsel %vm894_vm5, %v16956_v5, %v16961_v20  ;;  %v2226_v23 = vsel %vm1035_vm6, %v16955_v46, %v16962_v1  ;;  %v2227_v49 = vsel %vm1035_vm6, %v16962_v1, %v10479_v27  ;;  %v2465_v38 = vpop.permute.xlu0 %2464 }
 0x32b   :  { %v2125_v7 = vadd.f32 %v2087_v14, %v10874_v2  ;;  %v11017_v39 = vadd.f32 %v2364_v48, %v2262_v40  ;;  %v11019_v21 = vadd.f32 %v2365_v53, %v2263_v37  ;;  %2539 = vrot.lane.b32.xlu0 %v11000_v60, %s8121_s26  ;;  %2537 = vrot.lane.b32.xlu1 %v11004_v61, %s8121_s26  ;;  %v16968_v37 = vld [vmem:[#allocation28_spill] sm:$0xff] }
 0x32c   :  { %v2366_v46 = vsel %vm1176_vm7, %v10724_v36, %v10722_v30  ;;  %v2367_v2 = vsel %vm1176_vm7, %v10722_v30, %v10750_v52  ;;  %v11032_v12 = vsel %vm2474_vm8, %v2463_v16, %v2465_v38  ;;  %v11035_v5 = vsel %vm2474_vm8, %v2465_v38, %v2467_v4  ;;  %v16967_v16 = vld [vmem:[#allocation29_spill] sm:$0xff] }
 0x32d   :  { %16963 = vst [vmem:[#allocation64_spill] sm:$0xff] %v11017_v39  ;;  %16964 = vst [vmem:[#allocation66_spill] sm:$0xff] %v11019_v21  ;;  %v2264_v14 = vadd.f32 %v2226_v23, %v2124_v55  ;;  %v2265_v48 = vadd.f32 %v2227_v49, %v2125_v7  ;;  %v11039_v53 = vmul.f32 %v11035_v5, %v11019_v21  ;;  %v16969_v23 = vld [vmem:[#allocation30_spill] sm:$0xff]  ;;  %v2471_v21 = vpop.permute.xlu1 %2470 }
 0x32e   :  { %16965 = vst [vmem:[#allocation67_spill] sm:$0xff] %v11032_v12  ;;  %16966 = vst [vmem:[#allocation69_spill] sm:$0xff] %v11035_v5  ;;  %v11043_v40 = vmul.f32 %v11032_v12, %v11017_v39  ;;  %v2127_v36 = vadd.f32 %v16961_v20, %v10862_v42  ;;  %v2126_v30 = vadd.f32 %v2088_v50, %v10876_v22  ;;  %v2469_v42 = vpop.permute.xlu0 %2468 }
 0x32f   :  { %v2089_v1 = vsel %vm894_vm5, %v16968_v37, %v16967_v16  ;;  %v2228_v55 = vsel %vm1035_vm6, %v10479_v27, %v10477_v15  ;;  %v2090_v49 = vsel %vm894_vm5, %v16967_v16, %v16969_v23  ;;  %v11057_v7 = vadd.f32 %v2366_v46, %v2264_v14  ;;  %2543 = vrot.lane.b32.xlu0 %v11039_v53, %s8121_s26  ;;  %v16976_v16 = vld [vmem:[#allocation32_spill] sm:$0xff] }
 0x330   :  { %v11059_v38 = vadd.f32 %v2367_v2, %v2265_v48  ;;  %2541 = vrot.lane.b32.xlu1 %v11043_v40, %s8121_s26  ;;  %v2267_v22 = vadd.f32 %v10477_v15, %v2127_v36  ;;  %v2368_v27 = vsel %vm1176_vm7, %v10750_v52, %v10748_v58  ;;  %v11070_v20 = vsel %vm2474_vm8, %v2467_v4, %v2469_v42  ;;  %v16974_v48 = vld [vmem:[#allocation31_spill] sm:$0xff] }
 0x331   :  { %16970 = vst [vmem:[#allocation68_spill] sm:$0xff] %v11057_v7  ;;  %16972 = vst [vmem:[#allocation70_spill] sm:$0xff] %v11070_v20  ;;  %v11073_v50 = vsel %vm2474_vm8, %v2469_v42, %v2471_v21  ;;  %v2128_v46 = vadd.f32 %v2089_v1, %v10884_v28  ;;  %v2266_v2 = vadd.f32 %v2228_v55, %v2126_v30 }
 0x332   :  { %16971 = vst [vmem:[#allocation71_spill] sm:$0xff] %v11059_v38  ;;  %16973 = vst [vmem:[#allocation73_spill] sm:$0xff] %v11073_v50  ;;  %v11078_v14 = vmul.f32 %v11073_v50, %v11059_v38  ;;  %v11082_v15 = vmul.f32 %v11070_v20, %v11057_v7  ;;  %v2091_v52 = vsel %vm894_vm5, %v16969_v23, %v16974_v48  ;;  %v16980_v23 = vld [vmem:[#allocation17_spill] sm:$0xff] }
 0x333   :  { %v2229_v4 = vsel %vm1035_vm6, %v10508_v35, %v10506_v13  ;;  %v2230_v28 = vsel %vm1035_vm6, %v10506_v13, %v10533_v33  ;;  %v11094_v36 = vadd.f32 %v10748_v58, %v2267_v22  ;;  %v2129_v30 = vadd.f32 %v2090_v49, %v10886_v0  ;;  %v11106_v35 = vpop.permute.xlu0 %2472 }
 0x334   :  { %v2092_v37 = vsel %vm894_vm5, %v16974_v48, %v16976_v16  ;;  %v11100_v1 = vadd.f32 %v2368_v27, %v2266_v2  ;;  %2547 = vrot.lane.b32.xlu0 %v11078_v14, %s8121_s26  ;;  %2545 = vrot.lane.b32.xlu1 %v11082_v15, %s8121_s26  ;;  %16978 = vst [vmem:[#allocation74_spill] sm:$0xff] %v11106_v35  ;;  %v16981_v27 = vld [vmem:[#allocation33_spill] sm:$0xff] }
 0x335   :  { %16975 = vst [vmem:[#allocation72_spill] sm:$0xff] %v11094_v36  ;;  %v2369_v13 = vsel %vm1176_vm7, %v10776_v41, %v10774_v56  ;;  %v2370_v58 = vsel %vm1176_vm7, %v10774_v56, %v10805_v3  ;;  %v11116_v0 = vmul.f32 %v11106_v35, %v11094_v36  ;;  %v11120_v55 = vsel %vm2474_vm8, %v2471_v21, %v11106_v35 }
 0x336   :  { %16977 = vst [vmem:[#allocation75_spill] sm:$0xff] %v11100_v1  ;;  %16979 = vst [vmem:[#allocation76_spill] sm:$0xff] %v11120_v55  ;;  %v1956_v49 = vsel %vm753_vm4, %v16944_v24, %v16980_v23  ;;  %v2268_v42 = vadd.f32 %v2229_v4, %v2128_v46  ;;  %v2269_v22 = vadd.f32 %v2230_v28, %v2129_v30 }
 0x337   :  { %v11127_v41 = vmul.f32 %v11120_v55, %v11100_v1  ;;  %v2130_v56 = vadd.f32 %v2091_v52, %v10894_v34  ;;  %v2093_v2 = vsel %vm894_vm5, %v16976_v16, %v16981_v27  ;;  %v2231_v21 = vsel %vm1035_vm6, %v10533_v33, %v10531_v11  ;;  %v16984_v34 = vld [vmem:[#allocation16_spill] sm:$0xff]  ;;  %v16985_v52 = vld [vmem:[#allocation37_spill] sm:$0xff] }
 0x338   :  { %v2232_v24 = vsel %vm1035_vm6, %v10531_v11, %v10553_v62  ;;  %v2131_v46 = vadd.f32 %v2092_v37, %v10902_v25  ;;  %v11140_v48 = vadd.f32 %v2369_v13, %v2268_v42  ;;  %v11142_v4 = vadd.f32 %v2370_v58, %v2269_v22  ;;  %2551 = vrot.lane.b32.xlu0 %v11116_v0, %s8121_s26 }
 0x339   :  { %2549 = vrot.lane.b32.xlu1 %v11127_v41, %s8121_s26  ;;  %v1957_v33 = vsel %vm753_vm4, %v16980_v23, %v16984_v34  ;;  %v2094_v11 = vsel %vm894_vm5, %v16981_v27, %v16985_v52  ;;  %v2371_v25 = vsel %vm1176_vm7, %v10805_v3, %v10803_v26  ;;  %v2372_v28 = vsel %vm1176_vm7, %v10803_v26, %v10840_v10  ;;  %v16986_v23 = vld [vmem:[#allocation36_spill] sm:$0xff] }
 0x33a   :  { %16982 = vst [vmem:[#allocation77_spill] sm:$0xff] %v11140_v48  ;;  %16983 = vst [vmem:[#allocation79_spill] sm:$0xff] %v11142_v4  ;;  %v2270_v30 = vadd.f32 %v2231_v21, %v2130_v56  ;;  %v2271_v16 = vadd.f32 %v2232_v24, %v2131_v46  ;;  %v11162_v37 = vmul.f32 %v10957_v31, %v11142_v4  ;;  %v16990_v21 = vld [vmem:[#allocation55_spill] sm:$0xff] }
 0x33b   :  { %v11166_v13 = vmul.f32 %v10943_v45, %v11140_v48  ;;  %v2132_v58 = vadd.f32 %v2093_v2, %v10914_v29  ;;  %v2095_v3 = vsel %vm894_vm5, %v16985_v52, %v16986_v23  ;;  %v2233_v26 = vsel %vm1035_vm6, %v10553_v62, %v10551_v8  ;;  %v16989_v2 = vld [vmem:[#allocation40_spill] sm:$0xff]  ;;  %v11666_v45 = vld [vmem:[%s15881_s3 + $0xb8] sm:$0xff] }
 0x33c   :  { %v2234_v42 = vsel %vm1035_vm6, %v10551_v8, %v10583_v17  ;;  %v2133_v22 = vadd.f32 %v2094_v11, %v10925_v57  ;;  %v11179_v56 = vadd.f32 %v2371_v25, %v2270_v30  ;;  %v11181_v27 = vadd.f32 %v2372_v28, %v2271_v16  ;;  %2555 = vrot.lane.b32.xlu0 %v11162_v37, %s8121_s26  ;;  %v16992_v28 = vld [vmem:[#allocation51_spill] sm:$0xff]  ;;  %v16993_v30 = vld [vmem:[#allocation53_spill] sm:$0xff] }
 0x33d   :  { %2553 = vrot.lane.b32.xlu1 %v11166_v13, %s8121_s26  ;;  %v1995_v29 = vadd.f32 %v1956_v49, %v10830_v59  ;;  %v2096_v62 = vsel %vm894_vm5, %v16986_v23, %v16989_v2  ;;  %v2373_v8 = vsel %vm1176_vm7, %v10840_v10, %v16990_v21  ;;  %v2374_v57 = vsel %vm1176_vm7, %v16990_v21, %v10872_v32  ;;  %v16991_v49 = vld [vmem:[#allocation52_spill] sm:$0xff] }
 0x33e   :  { %16987 = vst [vmem:[#allocation78_spill] sm:$0xff] %v11179_v56  ;;  %16988 = vst [vmem:[#allocation81_spill] sm:$0xff] %v11181_v27  ;;  %v2272_v24 = vadd.f32 %v2233_v26, %v2132_v58  ;;  %v2273_v46 = vadd.f32 %v2234_v42, %v2133_v22  ;;  %v11199_v52 = vmul.f32 %v10996_v47, %v11181_v27  ;;  %v11865_v47 = vstv %s6908_s28  ;;  %s6904_s28 = sld [smem:[#allocation2 + $0x1b]] }
 0x33f   :  { %v2505_v59 = vmul.f32 %v10993_v19, %v11179_v56  ;;  %v1997_v11 = vadd.f32 %v16984_v34, %v16991_v49  ;;  %v2134_v25 = vadd.f32 %v2095_v3, %v10960_v9  ;;  %v2235_v10 = vsel %vm1035_vm6, %v10583_v17, %v16992_v28  ;;  %v16996_v34 = vld [vmem:[#allocation41_spill] sm:$0xff]  ;;  %v16997_v3 = vld [vmem:[#allocation54_spill] sm:$0xff] }
 0x340   :  { %v2236_v16 = vsel %vm1035_vm6, %v16992_v28, %v16993_v30  ;;  %v2135_v58 = vadd.f32 %v2096_v62, %v1995_v29  ;;  %v11212_v23 = vadd.f32 %v2373_v8, %v2272_v24  ;;  %v11214_v26 = vadd.f32 %v2374_v57, %v2273_v46  ;;  %2559 = vrot.lane.b32.xlu0 %v11199_v52, %s8121_s26  ;;  %v17001_v46 = vld [vmem:[#allocation56_spill] sm:$0xff] }
 0x341   :  { %2557 = vrot.lane.b32.xlu1 %v2505_v59, %s8121_s26  ;;  %v1996_v9 = vadd.f32 %v1957_v33, %v10842_v43  ;;  %v2097_v17 = vsel %vm894_vm5, %v16989_v2, %v16996_v34  ;;  %v2375_v42 = vsel %vm1176_vm7, %v10872_v32, %v16997_v3  ;;  %v2376_v22 = vsel %vm1176_vm7, %v16997_v3, %v10912_v63  ;;  %v16998_v2 = vld [vmem:[#allocation50_spill] sm:$0xff] }
 0x342   :  { %16994 = vst [vmem:[#allocation80_spill] sm:$0xff] %v11212_v23  ;;  %16995 = vst [vmem:[#allocation83_spill] sm:$0xff] %v11214_v26  ;;  %v2274_v29 = vadd.f32 %v2235_v10, %v2134_v25  ;;  %v2275_v62 = vadd.f32 %v2236_v16, %v2135_v58  ;;  %v2508_v21 = vmul.f32 %v11035_v5, %v11214_v26 }
 0x343   :  { %v11233_v43 = vmul.f32 %v11032_v12, %v11212_v23  ;;  %v2137_v33 = vadd.f32 %v16996_v34, %v1997_v11  ;;  %v2237_v8 = vsel %vm1035_vm6, %v16993_v30, %v16998_v2  ;;  %v2136_v32 = vadd.f32 %v2097_v17, %v1996_v9  ;;  %v17004_v9 = vld [vmem:[#allocation57_spill] sm:$0xff] }
 0x344   :  { %v11239_v57 = vadd.f32 %v2375_v42, %v2274_v29  ;;  %v11241_v24 = vadd.f32 %v2376_v22, %v2275_v62  ;;  %2563 = vrot.lane.b32.xlu0 %v2508_v21, %s8121_s26  ;;  %v2377_v49 = vsel %vm1176_vm7, %v10912_v63, %v17001_v46  ;;  %v2637_v34 = vmul.f32 %v10953_v51, %v17004_v9  ;;  %v17005_v22 = vld [vmem:[#allocation66_spill] sm:$0xff] }
 0x345   :  { %2561 = vrot.lane.b32.xlu1 %v11233_v43, %s8121_s26  ;;  %v2277_v11 = vadd.f32 %v16998_v2, %v2137_v33  ;;  %v2276_v25 = vadd.f32 %v2237_v8, %v2136_v32  ;;  %v2638_v17 = vmul.f32 %v10964_v6, %v10941_v54  ;;  %v2639_v3 = vmul.f32 %v11004_v61, %v10980_v44  ;;  %v11338_v2 = vld [vmem:[%s15881_s3 + $0x10] sm:$0xff]  ;;  %v11346_v32 = vld [vmem:[%s15881_s3 + $0x18] sm:$0xff] }
 0x346   :  { %16999 = vst [vmem:[#allocation82_spill] sm:$0xff] %v11239_v57  ;;  %17000 = vst [vmem:[#allocation85_spill] sm:$0xff] %v11241_v24  ;;  %v2510_v28 = vmul.f32 %v11073_v50, %v11241_v24  ;;  %v11254_v10 = vmul.f32 %v11070_v20, %v11239_v57  ;;  %v2640_v42 = vmul.f32 %v11000_v60, %v10982_v18 }
 0x347   :  { %v11257_v30 = vadd.f32 %v17001_v46, %v2277_v11  ;;  %v11259_v16 = vadd.f32 %v2377_v49, %v2276_v25  ;;  %v2641_v51 = vmul.f32 %v11043_v40, %v11017_v39  ;;  %v2642_v6 = vmul.f32 %v11039_v53, %v17005_v22  ;;  %v11354_v25 = vld [vmem:[%s15881_s3 + $0x20] sm:$0xff] }
 0x348   :  { %2567 = vrot.lane.b32.xlu0 %v2510_v28, %s8121_s26  ;;  %v2643_v61 = vmul.f32 %v11082_v15, %v11057_v7  ;;  %v2644_v60 = vmul.f32 %v11078_v14, %v11059_v38  ;;  %v2645_v40 = vmul.f32 %v11127_v41, %v11100_v1  ;;  %v2647_v53 = vmul.f32 %v11166_v13, %v11140_v48 }
 0x349   :  { %17002 = vst [vmem:[#allocation84_spill] sm:$0xff] %v11257_v30  ;;  %17003 = vst [vmem:[#allocation86_spill] sm:$0xff] %v11259_v16  ;;  %2565 = vrot.lane.b32.xlu1 %v11254_v10, %s8121_s26  ;;  %v2512_v63 = vmul.f32 %v11106_v35, %v11257_v30  ;;  %v11268_v58 = vmul.f32 %v11120_v55, %v11259_v16  ;;  %v2648_v15 = vmul.f32 %v11162_v37, %v11142_v4 }
 0x34a   :  { %v2649_v29 = vmul.f32 %v2505_v59, %v11179_v56  ;;  %v2650_v14 = vmul.f32 %v11199_v52, %v11181_v27  ;;  %v2652_v41 = vmul.f32 %v2508_v21, %v11214_v26  ;;  %v2654_v13 = vmul.f32 %v2510_v28, %v11241_v24  ;;  %v11322_v52 = vld [vmem:[%s15881_s3] sm:$0xff]  ;;  %v11330_v21 = vld [vmem:[%s15881_s3 + $0x8] sm:$0xff] }
 0x34b   :  { %v11315_v37 = vstv %s6896_s27  ;;  %v2656_v59 = vmul.f32 %v2512_v63, %v11257_v30  ;;  %v11560_v4 = vstv %s6902_s24  ;;  %v11587_v27 = vstv %s6903_s25  ;;  %s6911_s27 = sld [smem:[#allocation2 + $0x22]] }
 0x34c   :  { %2571 = vrot.lane.b32.xlu0 %v2512_v63, %s8121_s26  ;;  %v3061_v62 = vmul.f32 %v11322_v52, %v11315_v37  ;;  %v3062_v33 = vmul.f32 %v11330_v21, %v11315_v37  ;;  %v3063_v8 = vmul.f32 %v11338_v2, %v11315_v37  ;;  %v3064_v46 = vmul.f32 %v11346_v32, %v11315_v37  ;;  %s6895_s24 = sld [smem:[#allocation2 + $0x12]] }
 0x34d   :  { %2569 = vrot.lane.b32.xlu1 %v11268_v58, %s8121_s26  ;;  %v3065_v28 = vmul.f32 %v11354_v25, %v11315_v37  ;;  %v3902_v48 = vmul.f32 %v11330_v21, %v11560_v4  ;;  %v3904_v1 = vmul.f32 %v11346_v32, %v11560_v4  ;;  %v4042_v54 = vmul.f32 %v11330_v21, %v11587_v27 }
 0x34e   :  { %v4044_v9 = vmul.f32 %v11346_v32, %v11587_v27 }
 0x350   :  { %2677 = vrot.lane.b32.xlu0 %v2637_v34, %s8121_s26 }
 0x354   :  { %2679 = vrot.lane.b32.xlu0 %v2638_v17, %s8121_s26 }
 0x358   :  { %2681 = vrot.lane.b32.xlu0 %v2639_v3, %s8121_s26 }
 0x35c   :  { %2683 = vrot.lane.b32.xlu0 %v2640_v42, %s8121_s26 }
 0x360   :  { %2685 = vrot.lane.b32.xlu0 %v2641_v51, %s8121_s26  ;;  %v11364_v51 = vld [vmem:[%s15881_s3 + $0x28] sm:$0xff] }
 0x364   :  { %2687 = vrot.lane.b32.xlu0 %v2642_v6, %s8121_s26  ;;  %v3066_v6 = vmul.f32 %v11364_v51, %v11315_v37 }
 0x368   :  { %2689 = vrot.lane.b32.xlu0 %v2643_v61, %s8121_s26 }
 0x36c   :  { %2691 = vrot.lane.b32.xlu0 %v2644_v60, %s8121_s26 }
 0x370   :  { %2693 = vrot.lane.b32.xlu0 %v2645_v40, %s8121_s26 }
 0x374   :  { %2697 = vrot.lane.b32.xlu0 %v2647_v53, %s8121_s26 }
 0x378   :  { %2699 = vrot.lane.b32.xlu0 %v2648_v15, %s8121_s26 }
 0x37c   :  { %2701 = vrot.lane.b32.xlu0 %v2649_v29, %s8121_s26 }
 0x380   :  { %2703 = vrot.lane.b32.xlu0 %v2650_v14, %s8121_s26  ;;  %v11374_v14 = vld [vmem:[%s15881_s3 + $0x30] sm:$0xff] }
 0x384   :  { %2707 = vrot.lane.b32.xlu0 %v2652_v41, %s8121_s26  ;;  %v3067_v41 = vmul.f32 %v11374_v14, %v11315_v37 }
 0x388   :  { %2711 = vrot.lane.b32.xlu0 %v2654_v13, %s8121_s26 }
 0x38c   :  { %2715 = vrot.lane.b32.xlu0 %v2656_v59, %s8121_s26 }
 0x390   :  { %3101 = vrot.lane.b32.xlu0 %v3061_v62, %s8112_s22 }
 0x394   :  { %3103 = vrot.lane.b32.xlu0 %v3062_v33, %s8112_s22 }
 0x398   :  { %3105 = vrot.lane.b32.xlu0 %v3063_v8, %s8112_s22  ;;  %v2534_v49 = vpop.permute.xlu1 %2533 }
 0x399   :  { %v2536_v11 = vpop.permute.xlu0 %2535 }
 0x39a   :  { %v2574_v17 = vsel %vm2573_vm9, %v2534_v49, %v2536_v11  ;;  %v11384_v49 = vld [vmem:[%s15881_s3 + $0x38] sm:$0xff] }
 0x39c   :  { %3107 = vrot.lane.b32.xlu0 %v3064_v46, %s8112_s22 }
 0x39d   :  { %v2538_v63 = vpop.permute.xlu1 %2537  ;;  %v2540_v34 = vpop.permute.xlu0 %2539 }
 0x39e   :  { %v2575_v3 = vsel %vm2573_vm9, %v2536_v11, %v2538_v63  ;;  %v2576_v61 = vsel %vm2573_vm9, %v2538_v63, %v2540_v34  ;;  %v3068_v11 = vmul.f32 %v11384_v49, %v11315_v37 }
 0x39f   :  { %v2610_v42 = vadd.f32 %v2575_v3, %v2574_v17 }
 0x3a0   :  { %3109 = vrot.lane.b32.xlu0 %v3065_v28, %s8112_s22 }
 0x3a1   :  { %v2611_v60 = vadd.f32 %v2610_v42, %v2576_v61  ;;  %v2544_v53 = vpop.permute.xlu0 %2543 }
 0x3a2   :  { %v2542_v40 = vpop.permute.xlu1 %2541 }
 0x3a3   :  { %v2577_v15 = vsel %vm2573_vm9, %v2540_v34, %v2542_v40  ;;  %v2578_v13 = vsel %vm2573_vm9, %v2542_v40, %v2544_v53 }
 0x3a4   :  { %v2612_v29 = vadd.f32 %v2611_v60, %v2577_v15  ;;  %3111 = vrot.lane.b32.xlu0 %v3066_v6, %s8112_s22  ;;  %v11394_v6 = vld [vmem:[%s15881_s3 + $0x40] sm:$0xff] }
 0x3a5   :  { %v3069_v61 = vmul.f32 %v11394_v6, %v11315_v37 }
 0x3a6   :  { %v2613_v59 = vadd.f32 %v2612_v29, %v2578_v13  ;;  %v2546_v62 = vpop.permute.xlu1 %2545  ;;  %v2548_v33 = vpop.permute.xlu0 %2547 }
 0x3a7   :  { %v2579_v8 = vsel %vm2573_vm9, %v2544_v53, %v2546_v62  ;;  %v2580_v28 = vsel %vm2573_vm9, %v2546_v62, %v2548_v33 }
 0x3a8   :  { %v2614_v46 = vadd.f32 %v2613_v59, %v2579_v8  ;;  %3113 = vrot.lane.b32.xlu0 %v3067_v41, %s8112_s22  ;;  %v11404_v41 = vld [vmem:[%s15881_s3 + $0x50] sm:$0xff] }
 0x3a9   :  { %v3071_v13 = vmul.f32 %v11404_v41, %v11315_v37 }
 0x3aa   :  { %v2615_v63 = vadd.f32 %v2614_v46, %v2580_v28  ;;  %v2552_v17 = vpop.permute.xlu0 %2551 }
 0x3ab   :  { %v2550_v34 = vpop.permute.xlu1 %2549 }
 0x3ac   :  { %v2581_v3 = vsel %vm2573_vm9, %v2548_v33, %v2550_v34  ;;  %3115 = vrot.lane.b32.xlu0 %v3068_v11, %s8112_s22  ;;  %v2582_v60 = vsel %vm2573_vm9, %v2550_v34, %v2552_v17  ;;  %v11413_v11 = vld [vmem:[%s15881_s3 + $0x58] sm:$0xff] }
 0x3ad   :  { %v2616_v42 = vadd.f32 %v2615_v63, %v2581_v3  ;;  %v3072_v28 = vmul.f32 %v11413_v11, %v11315_v37 }
 0x3ae   :  { %v2556_v15 = vpop.permute.xlu0 %2555 }
 0x3af   :  { %v2617_v40 = vadd.f32 %v2616_v42, %v2582_v60  ;;  %v2554_v53 = vpop.permute.xlu1 %2553  ;;  %v11423_v60 = vld [vmem:[%s15881_s3 + $0x60] sm:$0xff] }
 0x3b0   :  { %v2583_v29 = vsel %vm2573_vm9, %v2554_v53, %v2556_v15  ;;  %3117 = vrot.lane.b32.xlu0 %v3069_v61, %s8112_s22 }
 0x3b1   :  { %v2618_v59 = vadd.f32 %v2617_v40, %v2583_v29  ;;  %v3073_v40 = vmul.f32 %v11423_v60, %v11315_v37 }
 0x3b2   :  { %v2560_v33 = vpop.permute.xlu0 %2559 }
 0x3b3   :  { %v2558_v62 = vpop.permute.xlu1 %2557 }
 0x3b4   :  { %v2584_v8 = vsel %vm2573_vm9, %v2556_v15, %v2558_v62  ;;  %3121 = vrot.lane.b32.xlu0 %v3071_v13, %s8112_s22  ;;  %v2585_v63 = vsel %vm2573_vm9, %v2558_v62, %v2560_v33 }
 0x3b5   :  { %v2619_v46 = vadd.f32 %v2618_v59, %v2584_v8 }
 0x3b6   :  { %v2564_v3 = vpop.permute.xlu0 %2563 }
 0x3b7   :  { %v2620_v34 = vadd.f32 %v2619_v46, %v2585_v63  ;;  %v2562_v17 = vpop.permute.xlu1 %2561 }
 0x3b8   :  { %v2586_v42 = vsel %vm2573_vm9, %v2560_v33, %v2562_v17  ;;  %3123 = vrot.lane.b32.xlu0 %v3072_v28, %s8112_s22  ;;  %v2587_v53 = vsel %vm2573_vm9, %v2562_v17, %v2564_v3  ;;  %v11433_v33 = vld [vmem:[%s15881_s3 + $0x68] sm:$0xff] }
 0x3b9   :  { %v2621_v61 = vadd.f32 %v2620_v34, %v2586_v42  ;;  %v3074_v8 = vmul.f32 %v11433_v33, %v11315_v37 }
 0x3ba   :  { %v2568_v13 = vpop.permute.xlu0 %2567 }
 0x3bb   :  { %v2622_v15 = vadd.f32 %v2621_v61, %v2587_v53  ;;  %v2566_v29 = vpop.permute.xlu1 %2565  ;;  %v11448_v53 = vstv %s6897_s13  ;;  %s6906_s13 = sld [smem:[#allocation2 + $0x1d]] }
 0x3bc   :  { %v2588_v59 = vsel %vm2573_vm9, %v2564_v3, %v2566_v29  ;;  %3125 = vrot.lane.b32.xlu0 %v3073_v40, %s8112_s22  ;;  %v2589_v46 = vsel %vm2573_vm9, %v2566_v29, %v2568_v13  ;;  %v11443_v3 = vld [vmem:[%s15881_s3 + $0x78] sm:$0xff]  ;;  %v3209_v26 = vmul.f32 %v11394_v6, %v11448_v53 }
 0x3bd   :  { %v2623_v62 = vadd.f32 %v2622_v15, %v2588_v59  ;;  %v3076_v61 = vmul.f32 %v11443_v3, %v11315_v37 }
 0x3be   :  { %v2572_v34 = vpop.permute.xlu0 %2571 }
 0x3bf   :  { %v2624_v28 = vadd.f32 %v2623_v62, %v2589_v46  ;;  %v2570_v63 = vpop.permute.xlu1 %2569  ;;  %v3203_v62 = vmul.f32 %v11338_v2, %v11448_v53  ;;  %v3205_v46 = vmul.f32 %v11354_v25, %v11448_v53 }
 0x3c0   :  { %v2590_v17 = vsel %vm2573_vm9, %v2568_v13, %v2570_v63  ;;  %3127 = vrot.lane.b32.xlu0 %v3074_v8, %s8112_s22  ;;  %v2591_v40 = vsel %vm2573_vm9, %v2570_v63, %v2572_v34  ;;  %v3201_v13 = vmul.f32 %v11322_v52, %v11448_v53 }
 0x3c1   :  { %v2625_v42 = vadd.f32 %v2624_v28, %v2590_v17  ;;  %v11465_v28 = vstv %s6898_s19 }
 0x3c2   :  { %v11450_v29 = vpop.permute.xlu0 %2677  ;;  %v3342_v34 = vmul.f32 %v11330_v21, %v11465_v28  ;;  %v3349_v38 = vmul.f32 %v11394_v6, %v11465_v28 }
 0x3c3   :  { %v2626_v15 = vadd.f32 %v2625_v42, %v2591_v40  ;;  %v2646_v42 = vmul.f32 %v11116_v0, %v11094_v36  ;;  %v11488_v0 = vstv %s6899_s20  ;;  %v11533_v36 = vstv %s6901_s23  ;;  %s2788_s20 = sld [smem:[#allocation7]] }
 0x3c4   :  { %3131 = vrot.lane.b32.xlu0 %v3076_v61, %s8112_s22  ;;  %v3344_v61 = vmul.f32 %v11346_v32, %v11465_v28  ;;  %v3761_v24 = vmul.f32 %v11322_v52, %v11533_v36  ;;  %v3489_v44 = vmul.f32 %v11394_v6, %v11488_v0 }
 0x3c5   :  { %2627 = vadd.xlane.f32.xlu1 %v2626_v15  ;;  %v2651_v15 = vmul.f32 %v11233_v43, %v11212_v23 }
 0x3c6   :  { %v11455_v59 = vpop.permute.xlu0 %2679 }
 0x3c7   :  { %v2717_v19 = vsel %vm2573_vm9, %v11450_v29, %v11455_v59 }
 0x3c8   :  { %3241 = vrot.lane.b32.xlu0 %v3201_v13, %s8113_s8  ;;  %v3345_v13 = vmul.f32 %v11354_v25, %v11465_v28 }
 0x3ca   :  { %v11460_v8 = vpop.permute.xlu0 %2681 }
 0x3cc   :  { %3245 = vrot.lane.b32.xlu0 %v3203_v62, %s8113_s8 }
 0x3ce   :  { %v11467_v63 = vpop.permute.xlu0 %2683 }
 0x3d0   :  { %3249 = vrot.lane.b32.xlu0 %v3205_v46, %s8113_s8  ;;  %v2653_v46 = vmul.f32 %v11254_v10, %v11239_v57  ;;  %v3763_v57 = vmul.f32 %v11338_v2, %v11533_v36 }
 0x3d2   :  { %v11472_v17 = vpop.permute.xlu0 %2685 }
 0x3d4   :  { %3383 = vrot.lane.b32.xlu0 %v3342_v34, %s8114_s1  ;;  %v3482_v34 = vmul.f32 %v11330_v21, %v11488_v0 }
 0x3d6   :  { %2695 = vrot.lane.b32.xlu1 %v2646_v42, %s8121_s26  ;;  %v11480_v40 = vpop.permute.xlu0 %2687  ;;  %v2655_v42 = vmul.f32 %v11268_v58, %v11259_v16  ;;  %v3208_v16 = vmul.f32 %v11384_v49, %v11448_v53 }
 0x3d8   :  { %3387 = vrot.lane.b32.xlu0 %v3344_v61, %s8114_s1  ;;  %v3484_v61 = vmul.f32 %v11346_v32, %v11488_v0 }
 0x3da   :  { %2705 = vrot.lane.b32.xlu1 %v2651_v15, %s8121_s26  ;;  %v11490_v62 = vpop.permute.xlu0 %2689  ;;  %v3346_v15 = vmul.f32 %v11364_v51, %v11465_v28 }
 0x3dc   :  { %3389 = vrot.lane.b32.xlu0 %v3345_v13, %s8114_s1  ;;  %v11511_v13 = vstv %s6900_s21  ;;  %s6907_s21 = sld [smem:[#allocation2 + $0x1e]] }
 0x3dd   :  { %v3621_v58 = vmul.f32 %v11322_v52, %v11511_v13 }
 0x3de   :  { %2709 = vrot.lane.b32.xlu1 %v2653_v46, %s8121_s26  ;;  %v11498_v43 = vpop.permute.xlu0 %2691 }
 0x3e0   :  { %3523 = vrot.lane.b32.xlu0 %v3482_v34, %s8115_s10 }
 0x3e2   :  { %2713 = vrot.lane.b32.xlu1 %v2655_v42, %s8121_s26  ;;  %v11506_v10 = vpop.permute.xlu0 %2693  ;;  %v3623_v42 = vmul.f32 %v11338_v2, %v11511_v13 }
 0x3e4   :  { %3527 = vrot.lane.b32.xlu0 %v3484_v61, %s8115_s10 }
 0x3e6   :  { %v11513_v46 = vpop.permute.xlu0 %2697 }
 0x3e8   :  { %3391 = vrot.lane.b32.xlu0 %v3346_v15, %s8114_s1  ;;  %v3486_v15 = vmul.f32 %v11364_v51, %v11488_v0 }
 0x3ea   :  { %v11518_v34 = vpop.permute.xlu0 %2699 }
 0x3ec   :  { %3661 = vrot.lane.b32.xlu0 %v3621_v58, %s8116_s12 }
 0x3ee   :  { %v11523_v61 = vpop.permute.xlu0 %2701 }
 0x3f0   :  { %3665 = vrot.lane.b32.xlu0 %v3623_v42, %s8116_s12 }
 0x3f2   :  { %v11528_v30 = vpop.permute.xlu0 %2703 }
 0x3f4   :  { %3255 = vrot.lane.b32.xlu0 %v3208_v16, %s8113_s8 }
 0x3f6   :  { %v11535_v58 = vpop.permute.xlu0 %2707 }
 0x3f8   :  { %3531 = vrot.lane.b32.xlu0 %v3486_v15, %s8115_s10  ;;  %v3487_v15 = vmul.f32 %v11374_v14, %v11488_v0 }
 0x3fa   :  { %v11540_v42 = vpop.permute.xlu0 %2711 }
 0x3fc   :  { %3801 = vrot.lane.b32.xlu0 %v3761_v24, %s8117_s14  ;;  %v3765_v24 = vmul.f32 %v11354_v25, %v11533_v36 }
 0x3fe   :  { %v11545_v16 = vpop.permute.xlu0 %2715 }
 0x400   :  { %3805 = vrot.lane.b32.xlu0 %v3763_v57, %s8117_s14 }
 0x402   :  { %v11550_v22 = vpop.permute.xlu0 %3101 }
 0x403   :  { %17006 = vst [vmem:[#allocation87_spill] sm:$0xff] %v11550_v22 }
 0x404   :  { %3257 = vrot.lane.b32.xlu0 %v3209_v26, %s8113_s8 }
 0x406   :  { %v11555_v7 = vpop.permute.xlu0 %3103 }
 0x408   :  { %3533 = vrot.lane.b32.xlu0 %v3487_v15, %s8115_s10 }
 0x40a   :  { %v11562_v57 = vpop.permute.xlu0 %3105 }
 0x40b   :  { %17007 = vst [vmem:[#allocation89_spill] sm:$0xff] %v11562_v57 }
 0x40c   :  { %3809 = vrot.lane.b32.xlu0 %v3765_v24, %s8117_s14  ;;  %v3627_v24 = vmul.f32 %v11374_v14, %v11511_v13 }
 0x40e   :  { %v11567_v26 = vpop.permute.xlu0 %3107 }
 0x40f   :  { %17008 = vst [vmem:[#allocation88_spill] sm:$0xff] %v11567_v26 }
 0x410   :  { %3943 = vrot.lane.b32.xlu0 %v3902_v48, %s8118_s16  ;;  %v3905_v48 = vmul.f32 %v11354_v25, %v11560_v4 }
 0x412   :  { %v11572_v15 = vpop.permute.xlu0 %3109 }
 0x413   :  { %17009 = vst [vmem:[#allocation91_spill] sm:$0xff] %v11572_v15 }
 0x414   :  { %3947 = vrot.lane.b32.xlu0 %v3904_v1, %s8118_s16 }
 0x416   :  { %v11577_v23 = vpop.permute.xlu0 %3111 }
 0x417   :  { %17010 = vst [vmem:[#allocation90_spill] sm:$0xff] %v11577_v23 }
 0x418   :  { %3397 = vrot.lane.b32.xlu0 %v3349_v38, %s8114_s1 }
 0x41a   :  { %v11582_v56 = vpop.permute.xlu0 %3113 }
 0x41b   :  { %17011 = vst [vmem:[#allocation93_spill] sm:$0xff] %v11582_v56 }
 0x41c   :  { %3673 = vrot.lane.b32.xlu0 %v3627_v24, %s8116_s12 }
 0x41e   :  { %v11589_v1 = vpop.permute.xlu0 %3115 }
 0x41f   :  { %17012 = vst [vmem:[#allocation92_spill] sm:$0xff] %v11589_v1 }
 0x420   :  { %3949 = vrot.lane.b32.xlu0 %v3905_v48, %s8118_s16  ;;  %v3767_v48 = vmul.f32 %v11374_v14, %v11533_v36 }
 0x422   :  { %v11594_v38 = vpop.permute.xlu0 %3117 }
 0x423   :  { %17013 = vst [vmem:[#allocation95_spill] sm:$0xff] %v11594_v38 }
 0x424   :  { %4083 = vrot.lane.b32.xlu0 %v4042_v54, %s8119_s17  ;;  %v4045_v54 = vmul.f32 %v11354_v25, %v11587_v27 }
 0x426   :  { %v11599_v24 = vpop.permute.xlu0 %3121 }
 0x427   :  { %17014 = vst [vmem:[#allocation94_spill] sm:$0xff] %v11599_v24 }
 0x428   :  { %4087 = vrot.lane.b32.xlu0 %v4044_v9, %s8119_s17  ;;  %v3212_v9 = vmul.f32 %v11413_v11, %v11448_v53 }
 0x42a   :  { %v11604_v39 = vpop.permute.xlu0 %3123 }
 0x42b   :  { %17015 = vst [vmem:[#allocation96_spill] sm:$0xff] %v11604_v39 }
 0x42c   :  { %3537 = vrot.lane.b32.xlu0 %v3489_v44, %s8115_s10  ;;  %v11625_v44 = vld [vmem:[%s15881_s3 + $0x48] sm:$0xff] }
 0x42e   :  { %v11609_v18 = vpop.permute.xlu0 %3125 }
 0x42f   :  { %17016 = vst [vmem:[#allocation97_spill] sm:$0xff] %v11609_v18 }
 0x430   :  { %3813 = vrot.lane.b32.xlu0 %v3767_v48, %s8117_s14  ;;  %v3490_v48 = vmul.f32 %v11625_v44, %v11488_v0 }
 0x432   :  { %v11614_v35 = vpop.permute.xlu0 %3127 }
 0x433   :  { %17017 = vst [vmem:[#allocation99_spill] sm:$0xff] %v11614_v35 }
 0x434   :  { %4089 = vrot.lane.b32.xlu0 %v4045_v54, %s8119_s17  ;;  %v3768_v54 = vmul.f32 %v11384_v49, %v11533_v36 }
 0x436   :  { %v11619_v55 = vpop.permute.xlu0 %3131 }
 0x437   :  { %17018 = vst [vmem:[#allocation98_spill] sm:$0xff] %v11619_v55  ;;  %v11639_v55 = vstv %s6905_s29 }
 0x438   :  { %3263 = vrot.lane.b32.xlu0 %v3212_v9, %s8113_s8  ;;  %v4046_v9 = vmul.f32 %v11364_v51, %v11587_v27  ;;  %v4226_v20 = vmul.f32 %v11666_v45, %v11639_v55 }
 0x43a   :  { %v11629_v18 = vpop.permute.xlu0 %3241 }
 0x43b   :  { %17019 = vst [vmem:[#allocation101_spill] sm:$0xff] %v11629_v18  ;;  %v2720_v18 = vsel %vm2573_vm9, %v11467_v63, %v11472_v17 }
 0x43c   :  { %3539 = vrot.lane.b32.xlu0 %v3490_v48, %s8115_s10  ;;  %v11647_v48 = vld [vmem:[%s15881_s3 + $0xa8] sm:$0xff] }
 0x43d   :  { %v4224_v39 = vmul.f32 %v11647_v48, %v11639_v55 }
 0x43e   :  { %v11634_v35 = vpop.permute.xlu0 %3245 }
 0x43f   :  { %17020 = vst [vmem:[#allocation100_spill] sm:$0xff] %v11634_v35 }
 0x440   :  { %3815 = vrot.lane.b32.xlu0 %v3768_v54, %s8117_s14  ;;  %v2718_v54 = vsel %vm2573_vm9, %v11455_v59, %v11460_v8 }
 0x441   :  { %v2753_v38 = vadd.f32 %v2718_v54, %v2717_v19  ;;  %v2722_v19 = vsel %vm2573_vm9, %v11480_v40, %v11490_v62 }
 0x442   :  { %v11641_v24 = vpop.permute.xlu0 %3249 }
 0x443   :  { %17021 = vst [vmem:[#allocation103_spill] sm:$0xff] %v11641_v24 }
 0x444   :  { %4091 = vrot.lane.b32.xlu0 %v4046_v9, %s8119_s17  ;;  %v2719_v9 = vsel %vm2573_vm9, %v11460_v8, %v11467_v63  ;;  %v3351_v8 = vmul.f32 %v11404_v41, %v11465_v28 }
 0x445   :  { %v2754_v59 = vadd.f32 %v2753_v38, %v2719_v9  ;;  %v2723_v38 = vsel %vm2573_vm9, %v11490_v62, %v11498_v43  ;;  %v3769_v62 = vmul.f32 %v11394_v6, %v11533_v36 }
 0x446   :  { %v11654_v50 = vpop.permute.xlu0 %3383 }
 0x447   :  { %v2755_v22 = vadd.f32 %v2754_v59, %v2720_v18  ;;  %v2724_v18 = vsel %vm2573_vm9, %v11498_v43, %v11506_v10  ;;  %v2726_v43 = vsel %vm2573_vm9, %v11513_v46, %v11518_v34  ;;  %v2728_v46 = vsel %vm2573_vm9, %v11523_v61, %v11528_v30 }
 0x448   :  { %4265 = vrot.lane.b32.xlu0 %v4224_v39, %s8112_s22  ;;  %v2721_v39 = vsel %vm2573_vm9, %v11472_v17, %v11480_v40 }
 0x449   :  { %v2756_v63 = vadd.f32 %v2755_v22, %v2721_v39 }
 0x44a   :  { %v11673_v29 = vpop.permute.xlu0 %3387 }
 0x44b   :  { %17022 = vst [vmem:[#allocation102_spill] sm:$0xff] %v11673_v29  ;;  %v2757_v17 = vadd.f32 %v2756_v63, %v2722_v19 }
 0x44c   :  { %4269 = vrot.lane.b32.xlu0 %v4226_v20, %s8112_s22  ;;  %v3353_v20 = vmul.f32 %v11423_v60, %v11465_v28 }
 0x44d   :  { %v2758_v22 = vadd.f32 %v2757_v17, %v2723_v38  ;;  %v4047_v38 = vmul.f32 %v11374_v14, %v11587_v27 }
 0x44e   :  { %v11684_v54 = vpop.permute.xlu0 %3389 }
 0x44f   :  { %17023 = vst [vmem:[#allocation105_spill] sm:$0xff] %v11684_v54 }
 0x450   :  { %3401 = vrot.lane.b32.xlu0 %v3351_v8, %s8114_s1  ;;  %v2759_v8 = vadd.f32 %v2758_v22, %v2724_v18  ;;  %v11710_v18 = vstv %s6906_s13 }
 0x452   :  { %v2628_v9 = vpop.xlane.xlu1 %2627  ;;  %v11695_v59 = vpop.permute.xlu0 %3523 }
 0x453   :  { %v2629_v40 = vrot.slane %v2628_v9, 4  ;;  %17024 = vst [vmem:[#allocation104_spill] sm:$0xff] %v11695_v59 }
 0x454   :  { %3405 = vrot.lane.b32.xlu0 %v3353_v20, %s8114_s1 }
 0x455   :  { %v2630_v39 = vadd.f32 %v2629_v40, %v2628_v9 }
 0x456   :  { %v2696_v5 = vpop.permute.xlu1 %2695  ;;  %v11702_v63 = vpop.permute.xlu0 %3527 }
 0x457   :  { %v2725_v19 = vsel %vm2573_vm9, %v11506_v10, %v2696_v5  ;;  %17025 = vst [vmem:[#allocation106_spill] sm:$0xff] %v11702_v63  ;;  %v2631_v12 = vrot.slane %v2630_v39, 2  ;;  %v2727_v5 = vsel %vm2573_vm9, %v11518_v34, %v11523_v61 }
 0x458   :  { %v2760_v1 = vadd.f32 %v2759_v8, %v2725_v19  ;;  %3817 = vrot.lane.b32.xlu0 %v3769_v62, %s8117_s14 }
 0x459   :  { %v2632_v20 = vadd.f32 %v2631_v12, %v2630_v39  ;;  %v11724_v12 = vld [vmem:[%s15881_s3 + $0xa0] sm:$0xff] }
 0x45a   :  { %v2761_v17 = vadd.f32 %v2760_v1, %v2726_v43  ;;  %v2706_v9 = vpop.permute.xlu1 %2705  ;;  %v11715_v10 = vpop.permute.xlu0 %3391  ;;  %v4363_v1 = vmul.f32 %v11724_v12, %v11710_v18 }
 0x45b   :  { %17026 = vst [vmem:[#allocation107_spill] sm:$0xff] %v11715_v10  ;;  %v2633_v40 = vrot.slane %v2632_v20, 1  ;;  %v2729_v8 = vsel %vm2573_vm9, %v11528_v30, %v2706_v9  ;;  %v2730_v43 = vsel %vm2573_vm9, %v2706_v9, %v11535_v58 }
 0x45c   :  { %v2762_v22 = vadd.f32 %v2761_v17, %v2727_v5  ;;  %4093 = vrot.lane.b32.xlu0 %v4047_v38, %s8119_s17  ;;  %v11738_v38 = vld [vmem:[%s15881_s3 + $0xb0] sm:$0xff] }
 0x45d   :  { %v2634_v62 = vadd.f32 %v2633_v40, %v2632_v20  ;;  %v4365_v20 = vmul.f32 %v11738_v38, %v11710_v18 }
 0x45e   :  { %v2763_v34 = vadd.f32 %v2762_v22, %v2728_v46  ;;  %v2710_v39 = vpop.permute.xlu1 %2709  ;;  %v11730_v19 = vpop.permute.xlu0 %3661  ;;  %v11752_v46 = vld [vmem:[%s15881_s3 + $0x70] sm:$0xff] }
 0x45f   :  { %7802 = vpush %v2634_v62  ;;  %17027 = vst [vmem:[#allocation109_spill] sm:$0xff] %v11730_v19  ;;  %v2731_v30 = vsel %vm2573_vm9, %v11535_v58, %v2710_v39  ;;  %v2732_v9 = vsel %vm2573_vm9, %v2710_v39, %v11540_v42  ;;  %v3215_v62 = vmul.f32 %v11752_v46, %v11448_v53 }
 0x460   :  { %v2764_v61 = vadd.f32 %v2763_v34, %v2729_v8  ;;  %4403 = vrot.lane.b32.xlu0 %v4363_v1, %s8113_s8 }
 0x462   :  { %v2765_v17 = vadd.f32 %v2764_v61, %v2730_v43  ;;  %v11744_v5 = vpop.permute.xlu0 %3665  ;;  %v2714_v22 = vpop.permute.xlu1 %2713  ;;  %v3491_v61 = vmul.f32 %v11404_v41, %v11488_v0 }
 0x463   :  { %17028 = vst [vmem:[#allocation108_spill] sm:$0xff] %v11744_v5  ;;  %v2733_v58 = vsel %vm2573_vm9, %v11540_v42, %v2714_v22  ;;  %v2734_v39 = vsel %vm2573_vm9, %v2714_v22, %v11545_v16  ;;  %v3493_v42 = vmul.f32 %v11423_v60, %v11488_v0  ;;  %v3909_v16 = vmul.f32 %v11394_v6, %v11560_v4 }
 0x464   :  { %v2766_v40 = vadd.f32 %v2765_v17, %v2731_v30  ;;  %4407 = vrot.lane.b32.xlu0 %v4365_v20, %s8113_s8 }
 0x466   :  { %v2767_v1 = vadd.f32 %v2766_v40, %v2732_v9  ;;  %v11758_v34 = vpop.permute.xlu0 %3255  ;;  %v11781_v40 = vld [vmem:[%s15881_s3 + $0xc8] sm:$0xff]  ;;  %v11785_v9 = vstv %s6907_s21 }
 0x467   :  { %17029 = vst [vmem:[#allocation111_spill] sm:$0xff] %v11758_v34  ;;  %v4228_v22 = vmul.f32 %v11781_v40, %v11639_v55 }
 0x468   :  { %v2768_v8 = vadd.f32 %v2767_v1, %v2733_v58  ;;  %3269 = vrot.lane.b32.xlu0 %v3215_v62, %s8113_s8  ;;  %v3070_v1 = vmul.f32 %v11625_v44, %v11315_v37  ;;  %v4503_v58 = vmul.f32 %v11724_v12, %v11785_v9 }
 0x46a   :  { %v2769_v43 = vadd.f32 %v2768_v8, %v2734_v39  ;;  %v11765_v20 = vpop.permute.xlu0 %3531  ;;  %v3075_v39 = vmul.f32 %v11752_v46, %v11315_v37 }
 0x46b   :  { %17030 = vst [vmem:[#allocation110_spill] sm:$0xff] %v11765_v20 }
 0x46c   :  { %2770 = vadd.xlane.f32.xlu1 %v2769_v43  ;;  %3541 = vrot.lane.b32.xlu0 %v3491_v61, %s8115_s10  ;;  %v4505_v61 = vmul.f32 %v11738_v38, %v11785_v9 }
 0x46e   :  { %v11770_v17 = vpop.permute.xlu0 %3801 }
 0x46f   :  { %17031 = vst [vmem:[#allocation113_spill] sm:$0xff] %v11770_v17 }
 0x470   :  { %3545 = vrot.lane.b32.xlu0 %v3493_v42, %s8115_s10  ;;  %v11809_v42 = vld [vmem:[%s15881_s3 + $0x80] sm:$0xff] }
 0x472   :  { %v11775_v30 = vpop.permute.xlu0 %3805 }
 0x473   :  { %17032 = vst [vmem:[#allocation112_spill] sm:$0xff] %v11775_v30 }
 0x474   :  { %3957 = vrot.lane.b32.xlu0 %v3909_v16, %s8118_s16  ;;  %v3077_v16 = vmul.f32 %v11809_v42, %v11315_v37 }
 0x476   :  { %v11787_v62 = vpop.permute.xlu0 %3257 }
 0x477   :  { %17033 = vst [vmem:[#allocation115_spill] sm:$0xff] %v11787_v62  ;;  %v3204_v62 = vmul.f32 %v11346_v32, %v11448_v53 }
 0x478   :  { %4273 = vrot.lane.b32.xlu0 %v4228_v22, %s8112_s22  ;;  %v3216_v22 = vmul.f32 %v11443_v3, %v11448_v53 }
 0x47a   :  { %v11794_v8 = vpop.permute.xlu0 %3533 }
 0x47b   :  { %17034 = vst [vmem:[#allocation114_spill] sm:$0xff] %v11794_v8  ;;  %v3483_v8 = vmul.f32 %v11338_v2, %v11488_v0 }
 0x47c   :  { %4543 = vrot.lane.b32.xlu0 %v4503_v58, %s8114_s1  ;;  %v3202_v58 = vmul.f32 %v11330_v21, %v11448_v53 }
 0x47d   :  { %3119 = vrot.lane.b32.xlu1 %v3070_v1, %s8112_s22 }
 0x47e   :  { %v11802_v43 = vpop.permute.xlu0 %3809 }
 0x47f   :  { %17035 = vst [vmem:[#allocation116_spill] sm:$0xff] %v11802_v43 }
 0x480   :  { %4547 = vrot.lane.b32.xlu0 %v4505_v61, %s8114_s1 }
 0x481   :  { %3129 = vrot.lane.b32.xlu1 %v3075_v39, %s8112_s22  ;;  %v3494_v39 = vmul.f32 %v11433_v33, %v11488_v0 }
 0x482   :  { %v11815_v1 = vpop.permute.xlu0 %3943 }
 0x483   :  { %17036 = vst [vmem:[#allocation117_spill] sm:$0xff] %v11815_v1 }
 0x484   :  { %3271 = vrot.lane.b32.xlu0 %v3216_v22, %s8113_s8  ;;  %v3341_v22 = vmul.f32 %v11322_v52, %v11465_v28 }
 0x485   :  { %3133 = vrot.lane.b32.xlu1 %v3077_v16, %s8112_s22  ;;  %v3632_v16 = vmul.f32 %v11413_v11, %v11511_v13 }
 0x486   :  { %v11823_v61 = vpop.permute.xlu0 %3947 }
 0x487   :  { %17037 = vst [vmem:[#allocation119_spill] sm:$0xff] %v11823_v61 }
 0x488   :  { %3547 = vrot.lane.b32.xlu0 %v3494_v39, %s8115_s10 }
 0x489   :  { %3243 = vrot.lane.b32.xlu1 %v3202_v58, %s8113_s8  ;;  %v3910_v58 = vmul.f32 %v11625_v44, %v11560_v4 }
 0x48a   :  { %v11831_v17 = vpop.permute.xlu0 %3397 }
 0x48b   :  { %17038 = vst [vmem:[#allocation126_spill] sm:$0xff] %v11831_v17  ;;  %v3343_v17 = vmul.f32 %v11338_v2, %v11465_v28 }
 0x48c   :  { %3683 = vrot.lane.b32.xlu0 %v3632_v16, %s8116_s12 }
 0x48d   :  { %3247 = vrot.lane.b32.xlu1 %v3204_v62, %s8113_s8  ;;  %v11848_v62 = vld [vmem:[%s15881_s3 + $0xd0] sm:$0xff] }
 0x48e   :  { %v11839_v39 = vpop.permute.xlu0 %3673  ;;  %v4229_v16 = vmul.f32 %v11848_v62, %v11639_v55  ;;  %v4369_v26 = vmul.f32 %v11848_v62, %v11710_v18 }
 0x48f   :  { %17039 = vst [vmem:[#allocation127_spill] sm:$0xff] %v11839_v39 }
 0x490   :  { %3959 = vrot.lane.b32.xlu0 %v3910_v58, %s8118_s16  ;;  %v11861_v58 = vld [vmem:[%s15881_s3 + $0xc0] sm:$0xff]  ;;  %s7803_s9 = spop %7802 }
 0x491   :  { %3381 = vrot.lane.b32.xlu1 %v3341_v22, %s8114_s1  ;;  %v3206_v22 = vmul.f32 %v11364_v51, %v11448_v53  ;;  %v4507_v34 = vmul.f32 %v11861_v58, %v11785_v9  ;;  %s12247_s13 = smul.f32 6.1035156e-05, %s7803_s9 }
 0x492   :  { %v11852_v19 = vpop.permute.xlu0 %3949 }
 0x493   :  { %17040 = vst [vmem:[#allocation129_spill] sm:$0xff] %v11852_v19  ;;  %s2780_s15 = smul.f32 %s12247_s13, %s12247_s13 }
 0x494   :  { %4275 = vrot.lane.b32.xlu0 %v4229_v16, %s8112_s22  ;;  %v4644_v16 = vmul.f32 %v11647_v48, %v11865_v47 }
 0x495   :  { %3385 = vrot.lane.b32.xlu1 %v3343_v17, %s8114_s1  ;;  %v3481_v17 = vmul.f32 %v11322_v52, %v11488_v0 }
 0x496   :  { %v11867_v39 = vpop.permute.xlu0 %4083 }
 0x497   :  { %17041 = vst [vmem:[#allocation128_spill] sm:$0xff] %v11867_v39 }
 0x498   :  { %4551 = vrot.lane.b32.xlu0 %v4507_v34, %s8114_s1  ;;  %v3207_v34 = vmul.f32 %v11374_v14, %v11448_v53 }
 0x499   :  { %3251 = vrot.lane.b32.xlu1 %v3206_v22, %s8113_s8  ;;  %v4646_v22 = vmul.f32 %v11666_v45, %v11865_v47 }
 0x49a   :  { %v11875_v20 = vpop.permute.xlu0 %4087 }
 0x49b   :  { %17042 = vst [vmem:[#allocation118_spill] sm:$0xff] %v11875_v20 }
 0x49c   :  { %4685 = vrot.lane.b32.xlu0 %v4644_v16, %s8115_s10  ;;  %v3485_v16 = vmul.f32 %v11354_v25, %v11488_v0 }
 0x49d   :  { %3521 = vrot.lane.b32.xlu1 %v3481_v17, %s8115_s10  ;;  %v3217_v17 = vmul.f32 %v11809_v42, %v11448_v53 }
 0x49e   :  { %v11883_v10 = vpop.permute.xlu0 %3537 }
 0x49f   :  { %17043 = vst [vmem:[#allocation121_spill] sm:$0xff] %v11883_v10 }
 0x4a0   :  { %4689 = vrot.lane.b32.xlu0 %v4646_v22, %s8115_s10  ;;  %v3622_v22 = vmul.f32 %v11330_v21, %v11511_v13 }
 0x4a1   :  { %3525 = vrot.lane.b32.xlu1 %v3483_v8, %s8115_s10  ;;  %v3495_v8 = vmul.f32 %v11752_v46, %v11488_v0 }
 0x4a2   :  { %v11891_v56 = vpop.permute.xlu0 %3813 }
 0x4a3   :  { %17044 = vst [vmem:[#allocation120_spill] sm:$0xff] %v11891_v56 }
 0x4a4   :  { %3273 = vrot.lane.b32.xlu0 %v3217_v17, %s8113_s8  ;;  %v3624_v17 = vmul.f32 %v11346_v32, %v11511_v13 }
 0x4a5   :  { %3253 = vrot.lane.b32.xlu1 %v3207_v34, %s8113_s8  ;;  %v3771_v34 = vmul.f32 %v11404_v41, %v11533_v36 }
 0x4a6   :  { %v11899_v10 = vpop.permute.xlu0 %4089 }
 0x4a7   :  { %17045 = vst [vmem:[#allocation131_spill] sm:$0xff] %v11899_v10  ;;  %v3762_v10 = vmul.f32 %v11330_v21, %v11533_v36  ;;  %v3348_v21 = vmul.f32 %v11384_v49, %v11465_v28 }
 0x4a8   :  { %3549 = vrot.lane.b32.xlu0 %v3495_v8, %s8115_s10  ;;  %v3347_v8 = vmul.f32 %v11374_v14, %v11465_v28 }
 0x4a9   :  { %3529 = vrot.lane.b32.xlu1 %v3485_v16, %s8115_s10  ;;  %v3773_v16 = vmul.f32 %v11423_v60, %v11533_v36 }
 0x4aa   :  { %v11907_v56 = vpop.permute.xlu0 %3263 }
 0x4ab   :  { %17046 = vst [vmem:[#allocation123_spill] sm:$0xff] %v11907_v56 }
 0x4ac   :  { %3821 = vrot.lane.b32.xlu0 %v3771_v34, %s8117_s14 }
 0x4ad   :  { %3663 = vrot.lane.b32.xlu1 %v3622_v22, %s8116_s12  ;;  %v11924_v22 = vld [vmem:[%s15881_s3 + $0xd8] sm:$0xff] }
 0x4ae   :  { %v11915_v23 = vpop.permute.xlu0 %3539  ;;  %v4230_v34 = vmul.f32 %v11924_v22, %v11639_v55 }
 0x4af   :  { %17047 = vst [vmem:[#allocation122_spill] sm:$0xff] %v11915_v23  ;;  %v11936_v23 = vstv %s6909_s11 }
 0x4b0   :  { %3825 = vrot.lane.b32.xlu0 %v3773_v16, %s8117_s14  ;;  %v4508_v16 = vmul.f32 %v11781_v40, %v11785_v9 }
 0x4b1   :  { %3667 = vrot.lane.b32.xlu1 %v3624_v17, %s8116_s12  ;;  %v3625_v17 = vmul.f32 %v11354_v25, %v11511_v13 }
 0x4b2   :  { %v11928_v56 = vpop.permute.xlu0 %3815 }
 0x4b3   :  { %17048 = vst [vmem:[#allocation125_spill] sm:$0xff] %v11928_v56 }
 0x4b4   :  { %4277 = vrot.lane.b32.xlu0 %v4230_v34, %s8112_s22  ;;  %v3764_v34 = vmul.f32 %v11346_v32, %v11533_v36 }
 0x4b5   :  { %3393 = vrot.lane.b32.xlu1 %v3347_v8, %s8114_s1  ;;  %v4783_v8 = vmul.f32 %v11724_v12, %v11936_v23 }
 0x4b6   :  { %v11938_v20 = vpop.permute.xlu0 %4091 }
 0x4b7   :  { %17049 = vst [vmem:[#allocation124_spill] sm:$0xff] %v11938_v20  ;;  %v3901_v20 = vmul.f32 %v11322_v52, %v11560_v4 }
 0x4b8   :  { %4553 = vrot.lane.b32.xlu0 %v4508_v16, %s8114_s1 }
 0x4b9   :  { %3669 = vrot.lane.b32.xlu1 %v3625_v17, %s8116_s12  ;;  %v4785_v17 = vmul.f32 %v11738_v38, %v11936_v23 }
 0x4ba   :  { %v11946_v25 = vpop.permute.xlu0 %4265 }
 0x4bb   :  { %17050 = vst [vmem:[#allocation130_spill] sm:$0xff] %v11946_v25 }
 0x4bc   :  { %4823 = vrot.lane.b32.xlu0 %v4783_v8, %s8116_s12  ;;  %v3626_v8 = vmul.f32 %v11364_v51, %v11511_v13 }
 0x4bd   :  { %3803 = vrot.lane.b32.xlu1 %v3762_v10, %s8117_s14  ;;  %v11963_v10 = vld [vmem:[%s15881_s3 + $0x90] sm:$0xff] }
 0x4be   :  { %v11954_v56 = vpop.permute.xlu0 %4269  ;;  %v3079_v32 = vmul.f32 %v11963_v10, %v11315_v37 }
 0x4bf   :  { %17051 = vst [vmem:[#allocation133_spill] sm:$0xff] %v11954_v56 }
 0x4c0   :  { %4827 = vrot.lane.b32.xlu0 %v4785_v17, %s8116_s12 }
 0x4c1   :  { %3807 = vrot.lane.b32.xlu1 %v3764_v34, %s8117_s14  ;;  %v3357_v34 = vmul.f32 %v11809_v42, %v11465_v28 }
 0x4c2   :  { %v11967_v16 = vpop.permute.xlu0 %3401 }
 0x4c3   :  { %17052 = vst [vmem:[#allocation132_spill] sm:$0xff] %v11967_v16 }
 0x4c4   :  { %3137 = vrot.lane.b32.xlu0 %v3079_v32, %s8112_s22  ;;  %v3903_v32 = vmul.f32 %v11338_v2, %v11560_v4 }
 0x4c5   :  { %3395 = vrot.lane.b32.xlu1 %v3348_v21, %s8114_s1  ;;  %v3635_v21 = vmul.f32 %v11752_v46, %v11511_v13 }
 0x4c6   :  { %v11975_v17 = vpop.permute.xlu0 %3405 }
 0x4c7   :  { %17053 = vst [vmem:[#allocation135_spill] sm:$0xff] %v11975_v17 }
 0x4c8   :  { %3413 = vrot.lane.b32.xlu0 %v3357_v34, %s8114_s1  ;;  %v3210_v34 = vmul.f32 %v11625_v44, %v11448_v53 }
 0x4c9   :  { %3671 = vrot.lane.b32.xlu1 %v3626_v8, %s8116_s12  ;;  %v3911_v8 = vmul.f32 %v11404_v41, %v11560_v4 }
 0x4ca   :  { %v11983_v16 = vpop.permute.xlu0 %3817 }
 0x4cb   :  { %17054 = vst [vmem:[#allocation134_spill] sm:$0xff] %v11983_v16 }
 0x4cc   :  { %3689 = vrot.lane.b32.xlu0 %v3635_v21, %s8116_s12  ;;  %v3488_v21 = vmul.f32 %v11384_v49, %v11488_v0 }
 0x4cd   :  { %3941 = vrot.lane.b32.xlu1 %v3901_v20, %s8118_s16  ;;  %v3913_v20 = vmul.f32 %v11423_v60, %v11560_v4 }
 0x4ce   :  { %v11991_v17 = vpop.permute.xlu0 %4093 }
 0x4cf   :  { %17055 = vst [vmem:[#allocation136_spill] sm:$0xff] %v11991_v17 }
 0x4d0   :  { %3961 = vrot.lane.b32.xlu0 %v3911_v8, %s8118_s16  ;;  %v3766_v8 = vmul.f32 %v11364_v51, %v11533_v36 }
 0x4d1   :  { %3945 = vrot.lane.b32.xlu1 %v3903_v32, %s8118_s16  ;;  %v4370_v32 = vmul.f32 %v11924_v22, %v11710_v18 }
 0x4d2   :  { %v11999_v16 = vpop.permute.xlu0 %4403 }
 0x4d3   :  { %17056 = vst [vmem:[#allocation137_spill] sm:$0xff] %v11999_v16  ;;  %v12015_v16 = vstv %s6910_s18 }
 0x4d4   :  { %3965 = vrot.lane.b32.xlu0 %v3913_v20, %s8118_s16  ;;  %v4041_v20 = vmul.f32 %v11322_v52, %v11587_v27  ;;  %v3350_v52 = vmul.f32 %v11625_v44, %v11465_v28 }
 0x4d5   :  { %3259 = vrot.lane.b32.xlu1 %v3210_v34, %s8113_s8  ;;  %v4648_v34 = vmul.f32 %v11781_v40, %v11865_v47 }
 0x4d6   :  { %v12007_v17 = vpop.permute.xlu0 %4407 }
 0x4d7   :  { %17057 = vst [vmem:[#allocation139_spill] sm:$0xff] %v12007_v17 }
 0x4d8   :  { %4417 = vrot.lane.b32.xlu0 %v4370_v32, %s8113_s8  ;;  %v4043_v32 = vmul.f32 %v11338_v2, %v11587_v27 }
 0x4d9   :  { %3535 = vrot.lane.b32.xlu1 %v3488_v21, %s8115_s10  ;;  %v4923_v21 = vmul.f32 %v11724_v12, %v12015_v16 }
 0x4da   :  { %v12017_v56 = vpop.permute.xlu0 %3269 }
 0x4db   :  { %17058 = vst [vmem:[#allocation138_spill] sm:$0xff] %v12017_v56 }
 0x4dc   :  { %4693 = vrot.lane.b32.xlu0 %v4648_v34, %s8115_s10  ;;  %v12042_v34 = vld [vmem:[%s15881_s3 + $0x98] sm:$0xff] }
 0x4dd   :  { %3811 = vrot.lane.b32.xlu1 %v3766_v8, %s8117_s14  ;;  %v4925_v8 = vmul.f32 %v11738_v38, %v12015_v16  ;;  %v3080_v2 = vmul.f32 %v12042_v34, %v11315_v37 }
 0x4de   :  { %v12025_v61 = vpop.permute.xlu0 %3541 }
 0x4df   :  { %17059 = vst [vmem:[#allocation141_spill] sm:$0xff] %v12025_v61 }
 0x4e0   :  { %4963 = vrot.lane.b32.xlu0 %v4923_v21, %s8117_s14  ;;  %v3628_v21 = vmul.f32 %v11384_v49, %v11511_v13 }
 0x4e1   :  { %4081 = vrot.lane.b32.xlu1 %v4041_v20, %s8119_s17 }
 0x4e2   :  { %v12033_v56 = vpop.permute.xlu0 %3545 }
 0x4e3   :  { %17060 = vst [vmem:[#allocation140_spill] sm:$0xff] %v12033_v56 }
 0x4e4   :  { %4967 = vrot.lane.b32.xlu0 %v4925_v8, %s8117_s14 }
 0x4e5   :  { %4085 = vrot.lane.b32.xlu1 %v4043_v32, %s8119_s17  ;;  %v12055_v32 = vld [vmem:[%s15881_s3 + $0x88] sm:$0xff] }
 0x4e6   :  { %v12046_v20 = vpop.permute.xlu0 %3957  ;;  %v3358_v8 = vmul.f32 %v12055_v32, %v11465_v28 }
 0x4e7   :  { %17061 = vst [vmem:[#allocation143_spill] sm:$0xff] %v12046_v20  ;;  %v3211_v20 = vmul.f32 %v11404_v41, %v11448_v53 }
 0x4e8   :  { %3139 = vrot.lane.b32.xlu0 %v3080_v2, %s8112_s22  ;;  %v3636_v2 = vmul.f32 %v11443_v3, %v11511_v13 }
 0x4e9   :  { %3399 = vrot.lane.b32.xlu1 %v3350_v52, %s8114_s1  ;;  %v3906_v52 = vmul.f32 %v11364_v51, %v11560_v4  ;;  %v3213_v51 = vmul.f32 %v11423_v60, %v11448_v53 }
 0x4ea   :  { %v12059_v61 = vpop.permute.xlu0 %4273 }
 0x4eb   :  { %17062 = vst [vmem:[#allocation142_spill] sm:$0xff] %v12059_v61 }
 0x4ec   :  { %3415 = vrot.lane.b32.xlu0 %v3358_v8, %s8114_s1  ;;  %v4052_v8 = vmul.f32 %v11413_v11, %v11587_v27 }
 0x4ed   :  { %3675 = vrot.lane.b32.xlu1 %v3628_v21, %s8116_s12  ;;  %v3914_v21 = vmul.f32 %v11433_v33, %v11560_v4 }
 0x4ee   :  { %v12067_v56 = vpop.permute.xlu0 %4543 }
 0x4ef   :  { %17063 = vst [vmem:[#allocation145_spill] sm:$0xff] %v12067_v56 }
 0x4f0   :  { %3691 = vrot.lane.b32.xlu0 %v3636_v2, %s8116_s12  ;;  %v3629_v2 = vmul.f32 %v11394_v6, %v11511_v13  ;;  %v3907_v6 = vmul.f32 %v11374_v14, %v11560_v4  ;;  %v4788_v14 = vmul.f32 %v11781_v40, %v11936_v23 }
 0x4f1   :  { %3951 = vrot.lane.b32.xlu1 %v3906_v52, %s8118_s16 }
 0x4f2   :  { %v12075_v61 = vpop.permute.xlu0 %4547 }
 0x4f3   :  { %17064 = vst [vmem:[#allocation144_spill] sm:$0xff] %v12075_v61 }
 0x4f4   :  { %3967 = vrot.lane.b32.xlu0 %v3914_v21, %s8118_s16 }
 0x4f5   :  { %3261 = vrot.lane.b32.xlu1 %v3211_v20, %s8113_s8  ;;  %v12092_v20 = vld [vmem:[%s15881_s3 + $0xe8] sm:$0xff] }
 0x4f6   :  { %v12083_v52 = vpop.permute.xlu0 %3271  ;;  %v4232_v60 = vmul.f32 %v12092_v20, %v11639_v55 }
 0x4f7   :  { %17065 = vst [vmem:[#allocation146_spill] sm:$0xff] %v12083_v52 }
 0x4f8   :  { %4103 = vrot.lane.b32.xlu0 %v4052_v8, %s8119_s17  ;;  %v4510_v8 = vmul.f32 %v11924_v22, %v11785_v9 }
 0x4f9   :  { %3265 = vrot.lane.b32.xlu1 %v3213_v51, %s8113_s8  ;;  %v2771_v41 = vpop.xlane.xlu1 %2770 }
 0x4fa   :  { %v2772_v21 = vrot.slane %v2771_v41, 4  ;;  %v12096_v56 = vpop.permute.xlu0 %3547 }
 0x4fb   :  { %17066 = vst [vmem:[#allocation147_spill] sm:$0xff] %v12096_v56 }
 0x4fc   :  { %v2773_v52 = vadd.f32 %v2772_v21, %v2771_v41  ;;  %4281 = vrot.lane.b32.xlu0 %v4232_v60, %s8112_s22  ;;  %v4223_v41 = vmul.f32 %v11724_v12, %v11639_v55  ;;  %v12116_v60 = vstv %s6911_s27 }
 0x4fd   :  { %3677 = vrot.lane.b32.xlu1 %v3629_v2, %s8116_s12  ;;  %v12099_v51 = vpop.permute.xlu1 %3119 }
 0x4fe   :  { %17067 = vst [vmem:[#allocation149_spill] sm:$0xff] %v12099_v51  ;;  %v2774_v19 = vrot.slane %v2773_v52, 2  ;;  %v12106_v31 = vpop.permute.xlu0 %3683 }
 0x4ff   :  { %17068 = vst [vmem:[#allocation148_spill] sm:$0xff] %v12106_v31 }
 0x500   :  { %v2775_v43 = vadd.f32 %v2774_v19, %v2773_v52  ;;  %4557 = vrot.lane.b32.xlu0 %v4510_v8, %s8114_s1  ;;  %v4225_v52 = vmul.f32 %v11738_v38, %v11639_v55 }
 0x501   :  { %3953 = vrot.lane.b32.xlu1 %v3907_v6, %s8118_s16  ;;  %v12109_v56 = vpop.permute.xlu1 %3129  ;;  %v5063_v6 = vmul.f32 %v11724_v12, %v12116_v60 }
 0x502   :  { %17069 = vst [vmem:[#allocation151_spill] sm:$0xff] %v12109_v56  ;;  %v2776_v2 = vrot.slane %v2775_v43, 1  ;;  %v12118_v21 = vpop.permute.xlu0 %3959  ;;  %v3630_v56 = vmul.f32 %v11625_v44, %v11511_v13 }
 0x503   :  { %17070 = vst [vmem:[#allocation35_spill] sm:$0xff] %v12118_v21 }
 0x504   :  { %v2777_v51 = vadd.f32 %v2776_v2, %v2775_v43  ;;  %4833 = vrot.lane.b32.xlu0 %v4788_v14, %s8116_s12  ;;  %v3214_v43 = vmul.f32 %v11433_v33, %v11448_v53 }
 0x505   :  { %4263 = vrot.lane.b32.xlu1 %v4223_v41, %s8112_s22  ;;  %v12121_v19 = vpop.permute.xlu1 %3133  ;;  %v5065_v41 = vmul.f32 %v11738_v38, %v12116_v60 }
 0x506   :  { %17071 = vst [vmem:[#allocation150_spill] sm:$0xff] %v12121_v19  ;;  %7804 = vpush %v2777_v51  ;;  %v12128_v8 = vpop.permute.xlu0 %4275  ;;  %v3352_v51 = vmul.f32 %v11413_v11, %v11465_v28 }
 0x507   :  { %17072 = vst [vmem:[#allocation34_spill] sm:$0xff] %v12128_v8  ;;  %v3908_v8 = vmul.f32 %v11384_v49, %v11560_v4 }
 0x508   :  { %5103 = vrot.lane.b32.xlu0 %v5063_v6, %s8118_s16 }
 0x509   :  { %4267 = vrot.lane.b32.xlu1 %v4225_v52, %s8112_s22  ;;  %v12131_v31 = vpop.permute.xlu1 %3243  ;;  %v3220_v52 = vmul.f32 %v12042_v34, %v11448_v53 }
 0x50a   :  { %v12138_v2 = vpop.permute.xlu0 %4551 }
 0x50b   :  { %17073 = vst [vmem:[#allocation39_spill] sm:$0xff] %v12138_v2 }
 0x50c   :  { %5107 = vrot.lane.b32.xlu0 %v5065_v41, %s8118_s16 }
 0x50d   :  { %3267 = vrot.lane.b32.xlu1 %v3214_v43, %s8113_s8  ;;  %v12141_v14 = vpop.permute.xlu1 %3247  ;;  %v3498_v43 = vmul.f32 %v12055_v32, %v11488_v0 }
 0x50e   :  { %17074 = vst [vmem:[#allocation38_spill] sm:$0xff] %v12141_v14  ;;  %v12148_v19 = vpop.permute.xlu0 %4685 }
 0x50f   :  { %17075 = vst [vmem:[#allocation153_spill] sm:$0xff] %v12148_v19 }
 0x510   :  { %3279 = vrot.lane.b32.xlu0 %v3220_v52, %s8113_s8 }
 0x511   :  { %3403 = vrot.lane.b32.xlu1 %v3352_v51, %s8114_s1  ;;  %v12151_v6 = vpop.permute.xlu1 %3381  ;;  %v3776_v51 = vmul.f32 %v11443_v3, %v11533_v36  ;;  %v4364_v3 = vmul.f32 %v11647_v48, %v11710_v18 }
 0x512   :  { %17076 = vst [vmem:[#allocation152_spill] sm:$0xff] %v12151_v6  ;;  %v12158_v21 = vpop.permute.xlu0 %4689 }
 0x513   :  { %17077 = vst [vmem:[#allocation155_spill] sm:$0xff] %v12158_v21  ;;  %v4227_v21 = vmul.f32 %v11861_v58, %v11639_v55 }
 0x514   :  { %3555 = vrot.lane.b32.xlu0 %v3498_v43, %s8115_s10 }
 0x515   :  { %3679 = vrot.lane.b32.xlu1 %v3630_v56, %s8116_s12  ;;  %v12161_v41 = vpop.permute.xlu1 %3385  ;;  %v4054_v56 = vmul.f32 %v11433_v33, %v11587_v27 }
 0x516   :  { %17078 = vst [vmem:[#allocation154_spill] sm:$0xff] %v12161_v41  ;;  %v12168_v6 = vpop.permute.xlu0 %3273 }
 0x517   :  { %17079 = vst [vmem:[#allocation156_spill] sm:$0xff] %v12168_v6 }
 0x518   :  { %3831 = vrot.lane.b32.xlu0 %v3776_v51, %s8117_s14 }
 0x519   :  { %3955 = vrot.lane.b32.xlu1 %v3908_v8, %s8118_s16  ;;  %v12171_v52 = vpop.permute.xlu1 %3251  ;;  %v12189_v8 = vld [vmem:[%s15881_s3 + $0xe0] sm:$0xff] }
 0x51a   :  { %17080 = vst [vmem:[#allocation157_spill] sm:$0xff] %v12171_v52  ;;  %v12178_v49 = vpop.permute.xlu0 %3549  ;;  %v4511_v51 = vmul.f32 %v12189_v8, %v11785_v9  ;;  %v12213_v52 = vstv %s6912_s30 }
 0x51b   :  { %17081 = vst [vmem:[#allocation159_spill] sm:$0xff] %v12178_v49  ;;  %v4366_v49 = vmul.f32 %v11666_v45, %v11710_v18 }
 0x51c   :  { %4107 = vrot.lane.b32.xlu0 %v4054_v56, %s8119_s17  ;;  %v4789_v56 = vmul.f32 %v11848_v62, %v11936_v23 }
 0x51d   :  { %4271 = vrot.lane.b32.xlu1 %v4227_v21, %s8112_s22  ;;  %v12181_v43 = vpop.permute.xlu1 %3521 }
 0x51e   :  { %17082 = vst [vmem:[#allocation158_spill] sm:$0xff] %v12181_v43  ;;  %v12193_v6 = vpop.permute.xlu0 %3821 }
 0x51f   :  { %17083 = vst [vmem:[#allocation161_spill] sm:$0xff] %v12193_v6  ;;  %v3354_v6 = vmul.f32 %v11433_v33, %v11465_v28  ;;  %v5204_v33 = vmul.f32 %v11647_v48, %v12213_v52 }
 0x520   :  { %4559 = vrot.lane.b32.xlu0 %v4511_v51, %s8114_s1 }
 0x521   :  { %4405 = vrot.lane.b32.xlu1 %v4364_v3, %s8113_s8  ;;  %v12196_v21 = vpop.permute.xlu1 %3525  ;;  %v5067_v3 = vmul.f32 %v11861_v58, %v12116_v60 }
 0x522   :  { %17084 = vst [vmem:[#allocation160_spill] sm:$0xff] %v12196_v21  ;;  %v12203_v43 = vpop.permute.xlu0 %3825 }
 0x523   :  { %17085 = vst [vmem:[#allocation163_spill] sm:$0xff] %v12203_v43 }
 0x524   :  { %4835 = vrot.lane.b32.xlu0 %v4789_v56, %s8116_s12 }
 0x525   :  { %4409 = vrot.lane.b32.xlu1 %v4366_v49, %s8113_s8  ;;  %v12206_v2 = vpop.permute.xlu1 %3253  ;;  %v3492_v49 = vmul.f32 %v11413_v11, %v11488_v0 }
 0x526   :  { %17086 = vst [vmem:[#allocation162_spill] sm:$0xff] %v12206_v2  ;;  %v12215_v51 = vpop.permute.xlu0 %4277 }
 0x527   :  { %17087 = vst [vmem:[#allocation165_spill] sm:$0xff] %v12215_v51  ;;  %v3770_v51 = vmul.f32 %v11625_v44, %v11533_v36 }
 0x528   :  { %5111 = vrot.lane.b32.xlu0 %v5067_v3, %s8118_s16 }
 0x529   :  { %3407 = vrot.lane.b32.xlu1 %v3354_v6, %s8114_s1  ;;  %v12218_v63 = vpop.permute.xlu1 %3529  ;;  %v5206_v6 = vmul.f32 %v11666_v45, %v12213_v52 }
 0x52a   :  { %17088 = vst [vmem:[#allocation164_spill] sm:$0xff] %v12218_v63  ;;  %v12225_v56 = vpop.permute.xlu0 %4553 }
 0x52b   :  { %17089 = vst [vmem:[#allocation166_spill] sm:$0xff] %v12225_v56 }
 0x52c   :  { %5245 = vrot.lane.b32.xlu0 %v5204_v33, %s8119_s17  ;;  %v3499_v33 = vmul.f32 %v11963_v10, %v11488_v0 }
 0x52d   :  { %3543 = vrot.lane.b32.xlu1 %v3492_v49, %s8115_s10  ;;  %v12228_v43 = vpop.permute.xlu1 %3663  ;;  %v7984_v49 = vld [vmem:[%s15881_s3 + $0x38] sm:$0xff] }
 0x52e   :  { %17090 = vst [vmem:[#allocation167_spill] sm:$0xff] %v12228_v43  ;;  %v12235_v11 = vpop.permute.xlu0 %4823  ;;  %v4048_v56 = vmul.f32 %v7984_v49, %v11587_v27 }
 0x52f   :  { %17091 = vst [vmem:[#allocation169_spill] sm:$0xff] %v12235_v11 }
 0x530   :  { %5249 = vrot.lane.b32.xlu0 %v5206_v6, %s8119_s17  ;;  %v3777_v6 = vmul.f32 %v11809_v42, %v11533_v36 }
 0x531   :  { %3819 = vrot.lane.b32.xlu1 %v3770_v51, %s8117_s14  ;;  %v12238_v3 = vpop.permute.xlu1 %3667  ;;  %v4367_v51 = vmul.f32 %v11861_v58, %v11710_v18 }
 0x532   :  { %17092 = vst [vmem:[#allocation168_spill] sm:$0xff] %v12238_v3  ;;  %v12254_v2 = vpop.permute.xlu0 %4827 }
 0x533   :  { %17094 = vst [vmem:[#allocation170_spill] sm:$0xff] %v12254_v2 }
 0x534   :  { %3557 = vrot.lane.b32.xlu0 %v3499_v33, %s8115_s10 }
 0x535   :  { %4095 = vrot.lane.b32.xlu1 %v4048_v56, %s8119_s17  ;;  %v12250_v11 = vpop.permute.xlu1 %3393  ;;  %v4504_v56 = vmul.f32 %v11647_v48, %v11785_v9 }
 0x536   :  { %17093 = vst [vmem:[#allocation171_spill] sm:$0xff] %v12250_v11  ;;  %v4055_v11 = vmul.f32 %v11752_v46, %v11587_v27  ;;  %v12269_v33 = vpop.permute.xlu0 %3137 }
 0x537   :  { %s7805_s4 = spop %7804  ;;  %17096 = vst [vmem:[#allocation172_spill] sm:$0xff] %v12269_v33  ;;  %v3355_v33 = vmul.f32 %v11752_v46, %v11465_v28 }
 0x538   :  { %s2779_s2 = smul.f32 6.1035156e-05, %s7805_s4  ;;  %3833 = vrot.lane.b32.xlu0 %v3777_v6, %s8117_s14  ;;  %v12280_v6 = vld [vmem:[%s15881_s3 + $0xf8] sm:$0xff] }
 0x539   :  { %4411 = vrot.lane.b32.xlu1 %v4367_v51, %s8113_s8  ;;  %v12262_v49 = vpop.permute.xlu1 %3669  ;;  %v4506_v51 = vmul.f32 %v11666_v45, %v11785_v9 }
 0x53a   :  { %17095 = vst [vmem:[#allocation173_spill] sm:$0xff] %v12262_v49  ;;  %s2781_s18 = ssub.f32 %s2779_s2, %s2780_s15  ;;  %v4234_v49 = vmul.f32 %v12280_v6, %v11639_v55  ;;  %v12289_v29 = vpop.permute.xlu0 %3413 }
 0x53b   :  { %17099 = vst [vmem:[#allocation176_spill] sm:$0xff] %v12289_v29 }
 0x53c   :  { %s2783_s19 = sadd.f32 1e-05, %s2781_s18  ;;  %4109 = vrot.lane.b32.xlu0 %v4055_v11, %s8119_s17  ;;  %v4512_v11 = vmul.f32 %v12092_v20, %v11785_v9 }
 0x53d   :  { %4545 = vrot.lane.b32.xlu1 %v4504_v56, %s8114_s1  ;;  %v12272_v3 = vpop.permute.xlu1 %3803 }
 0x53e   :  { %17097 = vst [vmem:[#allocation175_spill] sm:$0xff] %v12272_v3  ;;  %v2784_v63 = vstv %s2783_s19  ;;  %v12307_v29 = vpop.permute.xlu0 %3689  ;;  %s2782_s19 = sld [smem:[#allocation5]] }
 0x53f   :  { %7910 = vrsqrt.f32 %v2784_v63  ;;  %v12300_v63 = vld [vmem:[%s15881_s3 + $0x50] sm:$0xff]  ;;  %17101 = vst [vmem:[#allocation179_spill] sm:$0xff] %v12307_v29 }
 0x540   :  { %4285 = vrot.lane.b32.xlu0 %v4234_v49, %s8112_s22  ;;  %v4790_v49 = vmul.f32 %v11924_v22, %v11936_v23 }
 0x541   :  { %4549 = vrot.lane.b32.xlu1 %v4506_v51, %s8114_s1  ;;  %v12285_v56 = vpop.permute.xlu1 %3807  ;;  %v3631_v51 = vmul.f32 %v12300_v63, %v11511_v13 }
 0x542   :  { %17098 = vst [vmem:[#allocation174_spill] sm:$0xff] %v12285_v56  ;;  %v12329_v14 = vpop.permute.xlu0 %3961 }
 0x543   :  { %17104 = vst [vmem:[#allocation180_spill] sm:$0xff] %v12329_v14  ;;  %v4643_v14 = vmul.f32 %v11724_v12, %v11865_v47 }
 0x544   :  { %4561 = vrot.lane.b32.xlu0 %v4512_v11, %s8114_s1  ;;  %v5068_v11 = vmul.f32 %v11781_v40, %v12116_v60 }
 0x545   :  { %3409 = vrot.lane.b32.xlu1 %v3355_v33, %s8114_s1  ;;  %v12295_v54 = vpop.permute.xlu1 %3395 }
 0x546   :  { %17100 = vst [vmem:[#allocation177_spill] sm:$0xff] %v12295_v54  ;;  %v12315_v54 = vld [vmem:[%s15881_s3 + $0x60] sm:$0xff] }
 0x547   :  { %v3633_v2 = vmul.f32 %v12315_v54, %v11511_v13 }
 0x548   :  { %4837 = vrot.lane.b32.xlu0 %v4790_v49, %s8116_s12  ;;  %v3500_v49 = vmul.f32 %v12042_v34, %v11488_v0 }
 0x549   :  { %v7911_v56 = vpop.eup %7910  ;;  %3681 = vrot.lane.b32.xlu1 %v3631_v51, %s8116_s12  ;;  %v12310_v33 = vpop.permute.xlu1 %3671  ;;  %v7988_v51 = vld [vmem:[%s15881_s3 + $0x40] sm:$0xff] }
 0x54a   :  { %17102 = vst [vmem:[#allocation178_spill] sm:$0xff] %v12310_v33  ;;  %7806 = vpush %v7911_v56  ;;  %v4049_v33 = vmul.f32 %v7988_v51, %v11587_v27  ;;  %v12342_v51 = vpop.permute.xlu0 %3965 }
 0x54b   :  { %17106 = vst [vmem:[#allocation182_spill] sm:$0xff] %v12342_v51 }
 0x54c   :  { %5113 = vrot.lane.b32.xlu0 %v5068_v11, %s8118_s16 }
 0x54d   :  { %3685 = vrot.lane.b32.xlu1 %v3633_v2, %s8116_s12  ;;  %v12323_v29 = vpop.permute.xlu1 %3941  ;;  %v4368_v2 = vmul.f32 %v11781_v40, %v11710_v18  ;;  %v12353_v40 = vld [vmem:[%s15881_s3 + $0x78] sm:$0xff] }
 0x54e   :  { %17103 = vst [vmem:[#allocation181_spill] sm:$0xff] %v12323_v29  ;;  %v3778_v29 = vmul.f32 %v12055_v32, %v11533_v36  ;;  %v12362_v51 = vpop.permute.xlu0 %4417 }
 0x54f   :  { %17109 = vst [vmem:[#allocation186_spill] sm:$0xff] %v12362_v51 }
 0x550   :  { %3559 = vrot.lane.b32.xlu0 %v3500_v49, %s8115_s10 }
 0x551   :  { %4097 = vrot.lane.b32.xlu1 %v4049_v33, %s8119_s17  ;;  %v12335_v56 = vpop.permute.xlu1 %3945  ;;  %v4056_v33 = vmul.f32 %v12353_v40, %v11587_v27 }
 0x552   :  { %17105 = vst [vmem:[#allocation183_spill] sm:$0xff] %v12335_v56  ;;  %v12385_v51 = vpop.permute.xlu0 %4693 }
 0x553   :  { %17111 = vst [vmem:[#allocation189_spill] sm:$0xff] %v12385_v51  ;;  %v7992_v51 = vld [vmem:[%s15881_s3 + $0x68] sm:$0xff] }
 0x554   :  { %3835 = vrot.lane.b32.xlu0 %v3778_v29, %s8117_s14  ;;  %v12368_v29 = vld [vmem:[%s15881_s3 + $0xf0] sm:$0xff] }
 0x555   :  { %4413 = vrot.lane.b32.xlu1 %v4368_v2, %s8113_s8  ;;  %v12345_v11 = vpop.permute.xlu1 %3259  ;;  %v4645_v2 = vmul.f32 %v11738_v38, %v11865_v47  ;;  %v4373_v12 = vmul.f32 %v12368_v29, %v11710_v18  ;;  %v12381_v38 = vld [vmem:[%s15881_s3 + $0x100] sm:$0xff] }
 0x556   :  { %17107 = vst [vmem:[#allocation185_spill] sm:$0xff] %v12345_v11  ;;  %v3078_v11 = vmul.f32 %v12055_v32, %v11315_v37  ;;  %v4791_v37 = vmul.f32 %v12189_v8, %v11936_v23 }
 0x558   :  { %4111 = vrot.lane.b32.xlu0 %v4056_v33, %s8119_s17  ;;  %v4375_v33 = vmul.f32 %v12381_v38, %v11710_v18 }
 0x559   :  { %4683 = vrot.lane.b32.xlu1 %v4643_v14, %s8115_s10  ;;  %v12358_v49 = vpop.permute.xlu1 %3535 }
 0x55a   :  { %17108 = vst [vmem:[#allocation184_spill] sm:$0xff] %v12358_v49  ;;  %v3356_v49 = vmul.f32 %v12353_v40, %v11465_v28 }
 0x55c   :  { %4423 = vrot.lane.b32.xlu0 %v4373_v12, %s8113_s8 }
 0x55d   :  { %4687 = vrot.lane.b32.xlu1 %v4645_v2, %s8115_s10  ;;  %v12373_v14 = vpop.permute.xlu1 %3811 }
 0x55e   :  { %17110 = vst [vmem:[#allocation187_spill] sm:$0xff] %v12373_v14  ;;  %v12402_v14 = vpop.permute.xlu0 %4963 }
 0x55f   :  { %17114 = vst [vmem:[#allocation190_spill] sm:$0xff] %v12402_v14  ;;  %v3640_v14 = vmul.f32 %v12042_v34, %v11511_v13 }
 0x560   :  { %4427 = vrot.lane.b32.xlu0 %v4375_v33, %s8113_s8  ;;  %v5069_v33 = vmul.f32 %v11848_v62, %v12116_v60 }
 0x561   :  { %3135 = vrot.lane.b32.xlu1 %v3078_v11, %s8112_s22  ;;  %v12388_v2 = vpop.permute.xlu1 %4081  ;;  %v3634_v11 = vmul.f32 %v7992_v51, %v11511_v13 }
 0x562   :  { %17112 = vst [vmem:[#allocation188_spill] sm:$0xff] %v12388_v2  ;;  %v12417_v19 = vpop.permute.xlu0 %4967 }
 0x563   :  { %17116 = vst [vmem:[#allocation192_spill] sm:$0xff] %v12417_v19 }
 0x564   :  { %4839 = vrot.lane.b32.xlu0 %v4791_v37, %s8116_s12 }
 0x565   :  { %3411 = vrot.lane.b32.xlu1 %v3356_v49, %s8114_s1  ;;  %v12396_v12 = vpop.permute.xlu1 %4085  ;;  %v7993_v49 = vld [vmem:[%s15881_s3 + $0x58] sm:$0xff] }
 0x566   :  { %17113 = vst [vmem:[#allocation191_spill] sm:$0xff] %v12396_v12  ;;  %v3772_v24 = vmul.f32 %v7993_v49, %v11533_v36  ;;  %v12432_v19 = vpop.permute.xlu0 %3139 }
 0x567   :  { %17119 = vst [vmem:[#allocation196_spill] sm:$0xff] %v12432_v19 }
 0x568   :  { %5115 = vrot.lane.b32.xlu0 %v5069_v33, %s8118_s16 }
 0x569   :  { %3687 = vrot.lane.b32.xlu1 %v3634_v11, %s8116_s12  ;;  %v12408_v2 = vpop.permute.xlu1 %3399  ;;  %v4050_v11 = vmul.f32 %v11625_v44, %v11587_v27 }
 0x56a   :  { %17115 = vst [vmem:[#allocation193_spill] sm:$0xff] %v12408_v2  ;;  %v3918_v2 = vmul.f32 %v12055_v32, %v11560_v4  ;;  %v12450_v19 = vpop.permute.xlu0 %3415 }
 0x56b   :  { %17121 = vst [vmem:[#allocation199_spill] sm:$0xff] %v12450_v19 }
 0x56c   :  { %3699 = vrot.lane.b32.xlu0 %v3640_v14, %s8116_s12 }
 0x56d   :  { %3823 = vrot.lane.b32.xlu1 %v3772_v24, %s8117_s14  ;;  %v12420_v37 = vpop.permute.xlu1 %3675  ;;  %v12438_v24 = vld [vmem:[%s15881_s3 + $0x110] sm:$0xff] }
 0x56e   :  { %17117 = vst [vmem:[#allocation195_spill] sm:$0xff] %v12420_v37  ;;  %v4237_v44 = vmul.f32 %v12438_v24, %v11639_v55  ;;  %v12465_v19 = vpop.permute.xlu0 %3691 }
 0x56f   :  { %17124 = vst [vmem:[#allocation200_spill] sm:$0xff] %v12465_v19  ;;  %v3496_v19 = vmul.f32 %v12353_v40, %v11488_v0 }
 0x570   :  { %3975 = vrot.lane.b32.xlu0 %v3918_v2, %s8118_s16  ;;  %v4513_v2 = vmul.f32 %v12368_v29, %v11785_v9 }
 0x571   :  { %4099 = vrot.lane.b32.xlu1 %v4050_v11, %s8119_s17  ;;  %v12428_v33 = vpop.permute.xlu1 %3951  ;;  %v4647_v11 = vmul.f32 %v11861_v58, %v11865_v47 }
 0x572   :  { %17118 = vst [vmem:[#allocation194_spill] sm:$0xff] %v12428_v33  ;;  %v4784_v33 = vmul.f32 %v11647_v48, %v11936_v23 }
 0x574   :  { %4291 = vrot.lane.b32.xlu0 %v4237_v44, %s8112_s22 }
 0x575   :  { %4415 = vrot.lane.b32.xlu1 %v4369_v26, %s8113_s8  ;;  %v12443_v14 = vpop.permute.xlu1 %3261  ;;  %v4515_v26 = vmul.f32 %v12381_v38, %v11785_v9 }
 0x576   :  { %17120 = vst [vmem:[#allocation197_spill] sm:$0xff] %v12443_v14  ;;  %v4786_v14 = vmul.f32 %v11666_v45, %v11936_v23  ;;  %v12478_v45 = vpop.permute.xlu0 %3967 }
 0x577   :  { %17126 = vst [vmem:[#allocation202_spill] sm:$0xff] %v12478_v45 }
 0x578   :  { %4563 = vrot.lane.b32.xlu0 %v4513_v2, %s8114_s1  ;;  %v3218_v2 = vmul.f32 %v12055_v32, %v11448_v53 }
 0x579   :  { %4691 = vrot.lane.b32.xlu1 %v4647_v11, %s8115_s10  ;;  %v12453_v37 = vpop.permute.xlu1 %3265  ;;  %v4931_v11 = vmul.f32 %v12189_v8, %v12015_v16 }
 0x57a   :  { %17122 = vst [vmem:[#allocation198_spill] sm:$0xff] %v12453_v37  ;;  %v3774_v37 = vmul.f32 %v7992_v51, %v11533_v36  ;;  %v12510_v51 = vld [vmem:[%s15881_s3 + $0x108] sm:$0xff] }
 0x57b   :  { %v4656_v15 = vmul.f32 %v12510_v51, %v11865_v47 }
 0x57c   :  { %4567 = vrot.lane.b32.xlu0 %v4515_v26, %s8114_s1 }
 0x57d   :  { %4825 = vrot.lane.b32.xlu1 %v4784_v33, %s8116_s12  ;;  %v12461_v44 = vpop.permute.xlu1 %3677  ;;  %v5209_v33 = vmul.f32 %v11848_v62, %v12213_v52 }
 0x57e   :  { %17123 = vst [vmem:[#allocation201_spill] sm:$0xff] %v12461_v44  ;;  %v12492_v44 = vpop.permute.xlu0 %4103 }
 0x57f   :  { %17129 = vst [vmem:[#allocation206_spill] sm:$0xff] %v12492_v44 }
 0x580   :  { %4979 = vrot.lane.b32.xlu0 %v4931_v11, %s8117_s14 }
 0x581   :  { %4829 = vrot.lane.b32.xlu1 %v4786_v14, %s8116_s12  ;;  %v12471_v48 = vpop.permute.xlu1 %3953  ;;  %v3919_v14 = vmul.f32 %v11963_v10, %v11560_v4 }
 0x582   :  { %17125 = vst [vmem:[#allocation203_spill] sm:$0xff] %v12471_v48  ;;  %v12514_v44 = vpop.permute.xlu0 %4281 }
 0x583   :  { %17131 = vst [vmem:[#allocation209_spill] sm:$0xff] %v12514_v44 }
 0x584   :  { %5255 = vrot.lane.b32.xlu0 %v5209_v33, %s8119_s17 }
 0x585   :  { %3275 = vrot.lane.b32.xlu1 %v3218_v2, %s8113_s8  ;;  %v12481_v26 = vpop.permute.xlu1 %4263  ;;  %v12498_v2 = vld [vmem:[%s15881_s3 + $0x118] sm:$0xff] }
 0x586   :  { %17127 = vst [vmem:[#allocation205_spill] sm:$0xff] %v12481_v26  ;;  %v4238_v33 = vmul.f32 %v12498_v2, %v11639_v55  ;;  %v12529_v44 = vpop.permute.xlu0 %4557 }
 0x587   :  { %17134 = vst [vmem:[#allocation210_spill] sm:$0xff] %v12529_v44 }
 0x588   :  { %3977 = vrot.lane.b32.xlu0 %v3919_v14, %s8118_s16  ;;  %v4516_v14 = vmul.f32 %v12510_v51, %v11785_v9 }
 0x589   :  { %3551 = vrot.lane.b32.xlu1 %v3496_v19, %s8115_s10  ;;  %v12489_v11 = vpop.permute.xlu1 %4267  ;;  %v3912_v19 = vmul.f32 %v7993_v49, %v11560_v4  ;;  %v4654_v49 = vmul.f32 %v12280_v6, %v11865_v47 }
 0x58a   :  { %17128 = vst [vmem:[#allocation204_spill] sm:$0xff] %v12489_v11 }
 0x58c   :  { %4293 = vrot.lane.b32.xlu0 %v4238_v33, %s8112_s22 }
 0x58d   :  { %3827 = vrot.lane.b32.xlu1 %v3774_v37, %s8117_s14  ;;  %v12503_v45 = vpop.permute.xlu1 %3267  ;;  %v4231_v37 = vmul.f32 %v12189_v8, %v11639_v55 }
 0x58e   :  { %17130 = vst [vmem:[#allocation207_spill] sm:$0xff] %v12503_v45  ;;  %v4509_v45 = vmul.f32 %v11848_v62, %v11785_v9 }
 0x590   :  { %4569 = vrot.lane.b32.xlu0 %v4516_v14, %s8114_s1 }
 0x591   :  { %3963 = vrot.lane.b32.xlu1 %v3912_v19, %s8118_s16  ;;  %v12517_v26 = vpop.permute.xlu1 %3403  ;;  %v4932_v19 = vmul.f32 %v12092_v20, %v12015_v16 }
 0x592   :  { %17132 = vst [vmem:[#allocation208_spill] sm:$0xff] %v12517_v26  ;;  %v4787_v26 = vmul.f32 %v11861_v58, %v11936_v23 }
 0x594   :  { %4705 = vrot.lane.b32.xlu0 %v4654_v49, %s8115_s10 }
 0x595   :  { %4279 = vrot.lane.b32.xlu1 %v4231_v37, %s8112_s22  ;;  %v12525_v33 = vpop.permute.xlu1 %3679  ;;  %v5210_v37 = vmul.f32 %v11924_v22, %v12213_v52 }
 0x596   :  { %17133 = vst [vmem:[#allocation211_spill] sm:$0xff] %v12525_v33  ;;  %v12542_v33 = vpop.permute.xlu0 %4833 }
 0x597   :  { %17136 = vst [vmem:[#allocation212_spill] sm:$0xff] %v12542_v33 }
 0x598   :  { %4981 = vrot.lane.b32.xlu0 %v4932_v19, %s8117_s14  ;;  %v4059_v19 = vmul.f32 %v11963_v10, %v11587_v27 }
 0x599   :  { %4555 = vrot.lane.b32.xlu1 %v4509_v45, %s8114_s1  ;;  %v12535_v14 = vpop.permute.xlu1 %3955  ;;  %v12550_v45 = vld [vmem:[%s15881_s3 + $0xa8] sm:$0xff] }
 0x59a   :  { %17135 = vst [vmem:[#allocation213_spill] sm:$0xff] %v12535_v14  ;;  %v4924_v44 = vmul.f32 %v12550_v45, %v12015_v16  ;;  %v12567_v48 = vpop.permute.xlu0 %5103 }
 0x59b   :  { %17139 = vst [vmem:[#allocation216_spill] sm:$0xff] %v12567_v48  ;;  %v3497_v48 = vmul.f32 %v11809_v42, %v11488_v0 }
 0x59c   :  { %5257 = vrot.lane.b32.xlu0 %v5210_v37, %s8119_s17  ;;  %v4378_v37 = vmul.f32 %v12498_v2, %v11710_v18 }
 0x59d   :  { %4831 = vrot.lane.b32.xlu1 %v4787_v26, %s8116_s12  ;;  %v12545_v49 = vpop.permute.xlu1 %4271  ;;  %v12563_v26 = vld [vmem:[%s15881_s3 + $0xb8] sm:$0xff] }
 0x59e   :  { %17137 = vst [vmem:[#allocation215_spill] sm:$0xff] %v12545_v49  ;;  %v4926_v33 = vmul.f32 %v12563_v26, %v12015_v16  ;;  %v3219_v49 = vmul.f32 %v11963_v10, %v11448_v53  ;;  %v12580_v61 = vpop.permute.xlu0 %5107 }
 0x59f   :  { %17141 = vst [vmem:[#allocation219_spill] sm:$0xff] %v12580_v61 }
 0x5a0   :  { %4117 = vrot.lane.b32.xlu0 %v4059_v19, %s8119_s17 }
 0x5a1   :  { %4965 = vrot.lane.b32.xlu1 %v4924_v44, %s8117_s14  ;;  %v12558_v14 = vpop.permute.xlu1 %4405 }
 0x5a2   :  { %17138 = vst [vmem:[#allocation214_spill] sm:$0xff] %v12558_v14 }
 0x5a4   :  { %4433 = vrot.lane.b32.xlu0 %v4378_v37, %s8113_s8  ;;  %v3775_v37 = vmul.f32 %v11752_v46, %v11533_v36 }
 0x5a5   :  { %4969 = vrot.lane.b32.xlu1 %v4926_v33, %s8117_s14  ;;  %v12573_v44 = vpop.permute.xlu1 %4409  ;;  %v4794_v33 = vmul.f32 %v12280_v6, %v11936_v23 }
 0x5a6   :  { %17140 = vst [vmem:[#allocation217_spill] sm:$0xff] %v12573_v44  ;;  %v12595_v44 = vpop.permute.xlu0 %3279 }
 0x5a7   :  { %17144 = vst [vmem:[#allocation220_spill] sm:$0xff] %v12595_v44  ;;  %v4053_v44 = vmul.f32 %v12315_v54, %v11587_v27  ;;  %v4657_v54 = vmul.f32 %v12438_v24, %v11865_v47 }
 0x5a8   :  { %4709 = vrot.lane.b32.xlu0 %v4656_v15, %s8115_s10  ;;  %v4051_v15 = vmul.f32 %v12300_v63, %v11587_v27  ;;  %v12619_v63 = vld [vmem:[%s15881_s3 + $0x120] sm:$0xff] }
 0x5a9   :  { %3277 = vrot.lane.b32.xlu1 %v3219_v49, %s8113_s8  ;;  %v12583_v19 = vpop.permute.xlu1 %3407  ;;  %v5072_v49 = vmul.f32 %v12092_v20, %v12116_v60 }
 0x5aa   :  { %17142 = vst [vmem:[#allocation218_spill] sm:$0xff] %v12583_v19  ;;  %v12608_v46 = vpop.permute.xlu0 %3555  ;;  %v4649_v19 = vmul.f32 %v11848_v62, %v11865_v47 }
 0x5ab   :  { %17146 = vst [vmem:[#allocation222_spill] sm:$0xff] %v12608_v46 }
 0x5ac   :  { %4845 = vrot.lane.b32.xlu0 %v4794_v33, %s8116_s12 }
 0x5ad   :  { %3553 = vrot.lane.b32.xlu1 %v3497_v48, %s8115_s10  ;;  %v12591_v53 = vpop.permute.xlu1 %3543  ;;  %v4060_v48 = vmul.f32 %v12042_v34, %v11587_v27 }
 0x5ae   :  { %17143 = vst [vmem:[#allocation221_spill] sm:$0xff] %v12591_v53  ;;  %v12628_v46 = vpop.permute.xlu0 %3831 }
 0x5af   :  { %17148 = vst [vmem:[#allocation224_spill] sm:$0xff] %v12628_v46  ;;  %v4927_v46 = vmul.f32 %v11861_v58, %v12015_v16  ;;  %v12662_v58 = vld [vmem:[%s15881_s3 + $0x130] sm:$0xff] }
 0x5b0   :  { %5121 = vrot.lane.b32.xlu0 %v5072_v49, %s8118_s16  ;;  %17154 = vst [vmem:[#allocation230_spill] sm:$0xff] %v12662_v58 }
 0x5b1   :  { %3829 = vrot.lane.b32.xlu1 %v3775_v37, %s8117_s14  ;;  %v12601_v0 = vpop.permute.xlu1 %3819  ;;  %v4379_v37 = vmul.f32 %v12619_v63, %v11710_v18 }
 0x5b2   :  { %17145 = vst [vmem:[#allocation223_spill] sm:$0xff] %v12601_v0  ;;  %v12641_v53 = vpop.permute.xlu0 %4107 }
 0x5b3   :  { %17150 = vst [vmem:[#allocation227_spill] sm:$0xff] %v12641_v53 }
 0x5b4   :  { %4119 = vrot.lane.b32.xlu0 %v4060_v48, %s8119_s17 }
 0x5b5   :  { %4101 = vrot.lane.b32.xlu1 %v4051_v15, %s8119_s17  ;;  %v12611_v33 = vpop.permute.xlu1 %4095  ;;  %v4371_v15 = vmul.f32 %v12189_v8, %v11710_v18 }
 0x5b6   :  { %17147 = vst [vmem:[#allocation225_spill] sm:$0xff] %v12611_v33  ;;  %v12656_v53 = vpop.permute.xlu0 %4559 }
 0x5b7   :  { %17153 = vst [vmem:[#allocation231_spill] sm:$0xff] %v12656_v53  ;;  %v3359_v53 = vmul.f32 %v11963_v10, %v11465_v28 }
 0x5b8   :  { %4435 = vrot.lane.b32.xlu0 %v4379_v37, %s8113_s8 }
 0x5b9   :  { %4105 = vrot.lane.b32.xlu1 %v4053_v44, %s8119_s17  ;;  %v12624_v49 = vpop.permute.xlu1 %4411  ;;  %v4933_v44 = vmul.f32 %v12368_v29, %v12015_v16 }
 0x5bc   :  { %4711 = vrot.lane.b32.xlu0 %v4657_v54, %s8115_s10  ;;  %v5064_v54 = vmul.f32 %v12550_v45, %v12116_v60 }
 0x5bd   :  { %4419 = vrot.lane.b32.xlu1 %v4371_v15, %s8113_s8  ;;  %v12634_v48 = vpop.permute.xlu1 %4545  ;;  %v4935_v15 = vmul.f32 %v12381_v38, %v12015_v16 }
 0x5be   :  { %17149 = vst [vmem:[#allocation226_spill] sm:$0xff] %v12634_v48 }
 0x5c0   :  { %4983 = vrot.lane.b32.xlu0 %v4933_v44, %s8117_s14  ;;  %v5066_v44 = vmul.f32 %v12563_v26, %v12116_v60 }
 0x5c1   :  { %4695 = vrot.lane.b32.xlu1 %v4649_v19, %s8115_s10  ;;  %v12644_v37 = vpop.permute.xlu1 %4549  ;;  %v4241_v19 = vmul.f32 %v12662_v58, %v11639_v55 }
 0x5c2   :  { %17151 = vst [vmem:[#allocation229_spill] sm:$0xff] %v12644_v37 }
 0x5c4   :  { %4987 = vrot.lane.b32.xlu0 %v4935_v15, %s8117_s14  ;;  %v4519_v15 = vmul.f32 %v12619_v63, %v11785_v9 }
 0x5c5   :  { %4971 = vrot.lane.b32.xlu1 %v4927_v46, %s8117_s14  ;;  %v12652_v62 = vpop.permute.xlu1 %3409 }
 0x5c6   :  { %17152 = vst [vmem:[#allocation228_spill] sm:$0xff] %v12652_v62  ;;  %v12674_v62 = vpop.permute.xlu0 %4835 }
 0x5c7   :  { %17156 = vst [vmem:[#allocation232_spill] sm:$0xff] %v12674_v62  ;;  %v4381_v62 = vmul.f32 %v12662_v58, %v11710_v18 }
 0x5c8   :  { %4299 = vrot.lane.b32.xlu0 %v4241_v19, %s8112_s22 }
 0x5c9   :  { %5105 = vrot.lane.b32.xlu1 %v5064_v54, %s8118_s16  ;;  %v12667_v46 = vpop.permute.xlu1 %3681  ;;  %v4797_v54 = vmul.f32 %v12438_v24, %v11936_v23 }
 0x5ca   :  { %17155 = vst [vmem:[#allocation233_spill] sm:$0xff] %v12667_v46  ;;  %v3637_v46 = vmul.f32 %v11809_v42, %v11511_v13  ;;  %v12689_v33 = vpop.permute.xlu0 %5111  ;;  %v5075_v42 = vmul.f32 %v12381_v38, %v12116_v60 }
 0x5cb   :  { %17159 = vst [vmem:[#allocation236_spill] sm:$0xff] %v12689_v33 }
 0x5cc   :  { %4575 = vrot.lane.b32.xlu0 %v4519_v15, %s8114_s1 }
 0x5cd   :  { %5109 = vrot.lane.b32.xlu1 %v5066_v44, %s8118_s16  ;;  %v12677_v0 = vpop.permute.xlu1 %3685  ;;  %v5073_v44 = vmul.f32 %v12368_v29, %v12116_v60 }
 0x5ce   :  { %17157 = vst [vmem:[#allocation235_spill] sm:$0xff] %v12677_v0 }
 0x5d0   :  { %4851 = vrot.lane.b32.xlu0 %v4797_v54, %s8116_s12 }
 0x5d1   :  { %3417 = vrot.lane.b32.xlu1 %v3359_v53, %s8114_s1  ;;  %v12685_v19 = vpop.permute.xlu1 %4097  ;;  %v8001_v53 = vld [vmem:[%s15881_s3 + $0x70] sm:$0xff] }
 0x5d2   :  { %17158 = vst [vmem:[#allocation234_spill] sm:$0xff] %v12685_v19  ;;  %v3915_v0 = vmul.f32 %v8001_v53, %v11560_v4  ;;  %v12704_v19 = vpop.permute.xlu0 %5245  ;;  %v4650_v53 = vmul.f32 %v11924_v22, %v11865_v47  ;;  %v4937_v22 = vmul.f32 %v12438_v24, %v12015_v16 }
 0x5d3   :  { %17161 = vst [vmem:[#allocation239_spill] sm:$0xff] %v12704_v19 }
 0x5d4   :  { %5123 = vrot.lane.b32.xlu0 %v5073_v44, %s8118_s16 }
 0x5d5   :  { %3693 = vrot.lane.b32.xlu1 %v3637_v46, %s8116_s12  ;;  %v12695_v15 = vpop.permute.xlu1 %4413  ;;  %v4372_v46 = vmul.f32 %v12092_v20, %v11710_v18 }
 0x5d6   :  { %17160 = vst [vmem:[#allocation237_spill] sm:$0xff] %v12695_v15  ;;  %v12719_v15 = vpop.permute.xlu0 %5249 }
 0x5d7   :  { %17164 = vst [vmem:[#allocation18_spill] sm:$0xff] %v12719_v15 }
 0x5d8   :  { %5127 = vrot.lane.b32.xlu0 %v5075_v42, %s8118_s16 }
 0x5d9   :  { %3969 = vrot.lane.b32.xlu1 %v3915_v0, %s8118_s16  ;;  %v12707_v54 = vpop.permute.xlu1 %4683  ;;  %v4659_v0 = vmul.f32 %v12619_v63, %v11865_v47 }
 0x5da   :  { %17162 = vst [vmem:[#allocation238_spill] sm:$0xff] %v12707_v54 }
 0x5dc   :  { %4439 = vrot.lane.b32.xlu0 %v4381_v62, %s8113_s8  ;;  %v12737_v62 = vpop.permute.xlu0 %3557 }
 0x5dd   :  { %4421 = vrot.lane.b32.xlu1 %v4372_v46, %s8113_s8  ;;  %v12715_v44 = vpop.permute.xlu1 %4687  ;;  %v12730_v46 = vld [vmem:[%s15881_s3 + $0xc8] sm:$0xff]  ;;  %17167 = vst [vmem:[#allocation13_spill] sm:$0xff] %v12737_v62 }
 0x5de   :  { %17163 = vst [vmem:[#allocation19_spill] sm:$0xff] %v12715_v44  ;;  %17166 = vst [vmem:[#allocation20_spill] sm:$0xff] %v12730_v46  ;;  %v4928_v54 = vmul.f32 %v12730_v46, %v12015_v16 }
 0x5e0   :  { %4715 = vrot.lane.b32.xlu0 %v4659_v0, %s8115_s10  ;;  %v5213_v0 = vmul.f32 %v12368_v29, %v12213_v52  ;;  %v12762_v33 = vpop.permute.xlu0 %3833 }
 0x5e1   :  { %4697 = vrot.lane.b32.xlu1 %v4650_v53, %s8115_s10  ;;  %v12725_v42 = vpop.permute.xlu1 %3135  ;;  %17172 = vst [vmem:[#allocation21_spill] sm:$0xff] %v12762_v33  ;;  %v3638_v33 = vmul.f32 %v12055_v32, %v11511_v13 }
 0x5e2   :  { %17165 = vst [vmem:[#allocation12_spill] sm:$0xff] %v12725_v42  ;;  %v12745_v42 = vld [vmem:[%s15881_s3 + $0xa0] sm:$0xff] }
 0x5e3   :  { %17169 = vst [vmem:[#allocation42_spill] sm:$0xff] %v12745_v42  ;;  %v5203_v15 = vmul.f32 %v12745_v42, %v12213_v52  ;;  %v4521_v42 = vmul.f32 %v12662_v58, %v11785_v9 }
 0x5e4   :  { %4991 = vrot.lane.b32.xlu0 %v4937_v22, %s8117_s14  ;;  %v5215_v22 = vmul.f32 %v12381_v38, %v12213_v52 }
 0x5e5   :  { %4973 = vrot.lane.b32.xlu1 %v4928_v54, %s8117_s14  ;;  %v12740_v53 = vpop.permute.xlu1 %3411  ;;  %v12758_v54 = vld [vmem:[%s15881_s3 + $0xb0] sm:$0xff] }
 0x5e6   :  { %17168 = vst [vmem:[#allocation43_spill] sm:$0xff] %v12740_v53  ;;  %17171 = vst [vmem:[#allocation44_spill] sm:$0xff] %v12758_v54  ;;  %v5205_v53 = vmul.f32 %v12758_v54, %v12213_v52  ;;  %v12775_v54 = vpop.permute.xlu0 %4109 }
 0x5e7   :  { %17174 = vst [vmem:[#allocation15_spill] sm:$0xff] %v12775_v54 }
 0x5e8   :  { %5263 = vrot.lane.b32.xlu0 %v5213_v0, %s8119_s17 }
 0x5e9   :  { %5243 = vrot.lane.b32.xlu1 %v5203_v15, %s8119_s17  ;;  %v12753_v62 = vpop.permute.xlu1 %3687 }
 0x5ea   :  { %17170 = vst [vmem:[#allocation14_spill] sm:$0xff] %v12753_v62  ;;  %v3360_v62 = vmul.f32 %v12042_v34, %v11465_v28  ;;  %v12790_v54 = vpop.permute.xlu0 %4285 }
 0x5eb   :  { %17177 = vst [vmem:[#allocation23_spill] sm:$0xff] %v12790_v54  ;;  %v4235_v54 = vmul.f32 %v12381_v38, %v11639_v55 }
 0x5ec   :  { %5267 = vrot.lane.b32.xlu0 %v5215_v22, %s8119_s17  ;;  %v3916_v22 = vmul.f32 %v12353_v40, %v11560_v4  ;;  %v12804_v40 = vld [vmem:[%s15881_s3 + $0x138] sm:$0xff] }
 0x5ed   :  { %5247 = vrot.lane.b32.xlu1 %v5205_v53, %s8119_s17  ;;  %v12768_v15 = vpop.permute.xlu1 %3823  ;;  %v4799_v53 = vmul.f32 %v12619_v63, %v11936_v23  ;;  %17179 = vst [vmem:[#allocation25_spill] sm:$0xff] %v12804_v40 }
 0x5ee   :  { %17173 = vst [vmem:[#allocation22_spill] sm:$0xff] %v12768_v15  ;;  %v4233_v15 = vmul.f32 %v12368_v29, %v11639_v55 }
 0x5f0   :  { %4579 = vrot.lane.b32.xlu0 %v4521_v42, %s8114_s1 }
 0x5f1   :  { %3419 = vrot.lane.b32.xlu1 %v3360_v62, %s8114_s1  ;;  %v12778_v0 = vpop.permute.xlu1 %4099  ;;  %v5077_v62 = vmul.f32 %v12438_v24, %v12116_v60 }
 0x5f2   :  { %17175 = vst [vmem:[#allocation45_spill] sm:$0xff] %v12778_v0 }
 0x5f4   :  { %4855 = vrot.lane.b32.xlu0 %v4799_v53, %s8116_s12  ;;  %v12808_v53 = vpop.permute.xlu0 %4561 }
 0x5f5   :  { %3695 = vrot.lane.b32.xlu1 %v3638_v33, %s8116_s12  ;;  %v12786_v28 = vpop.permute.xlu1 %4415  ;;  %v4522_v33 = vmul.f32 %v12804_v40, %v11785_v9  ;;  %17180 = vst [vmem:[#allocation46_spill] sm:$0xff] %v12808_v53 }
 0x5f6   :  { %17176 = vst [vmem:[#allocation47_spill] sm:$0xff] %v12786_v28 }
 0x5f8   :  { %5131 = vrot.lane.b32.xlu0 %v5077_v62, %s8118_s16  ;;  %v12819_v62 = vld [vmem:[%s15881_s3 + $0x128] sm:$0xff]  ;;  %v12828_v28 = vpop.permute.xlu0 %4837 }
 0x5f9   :  { %3971 = vrot.lane.b32.xlu1 %v3916_v22, %s8118_s16  ;;  %v12796_v42 = vpop.permute.xlu1 %4691  ;;  %v4800_v0 = vmul.f32 %v12819_v62, %v11936_v23  ;;  %17183 = vst [vmem:[#allocation26_spill] sm:$0xff] %v12828_v28 }
 0x5fa   :  { %17178 = vst [vmem:[#allocation24_spill] sm:$0xff] %v12796_v42 }
 0x5fc   :  { %4581 = vrot.lane.b32.xlu0 %v4522_v33, %s8114_s1  ;;  %v5078_v33 = vmul.f32 %v12498_v2, %v12116_v60  ;;  %v12846_v28 = vpop.permute.xlu0 %5113 }
 0x5fd   :  { %4283 = vrot.lane.b32.xlu1 %v4233_v15, %s8112_s22  ;;  %v12811_v22 = vpop.permute.xlu1 %4825  ;;  %v4651_v15 = vmul.f32 %v12189_v8, %v11865_v47  ;;  %17186 = vst [vmem:[#allocation28_spill] sm:$0xff] %v12846_v28  ;;  %v5218_v28 = vmul.f32 %v12498_v2, %v12213_v52 }
 0x5fe   :  { %17181 = vst [vmem:[#allocation48_spill] sm:$0xff] %v12811_v22 }
 0x600   :  { %4857 = vrot.lane.b32.xlu0 %v4800_v0, %s8116_s12  ;;  %v4662_v0 = vmul.f32 %v12804_v40, %v11865_v47 }
 0x601   :  { %4287 = vrot.lane.b32.xlu1 %v4235_v54, %s8112_s22  ;;  %v12824_v53 = vpop.permute.xlu1 %4829  ;;  %v12839_v54 = vld [vmem:[%s15881_s3 + $0xd0] sm:$0xff] }
 0x602   :  { %17182 = vst [vmem:[#allocation27_spill] sm:$0xff] %v12824_v53  ;;  %17185 = vst [vmem:[#allocation29_spill] sm:$0xff] %v12839_v54  ;;  %v4929_v53 = vmul.f32 %v12839_v54, %v12015_v16 }
 0x604   :  { %5133 = vrot.lane.b32.xlu0 %v5078_v33, %s8118_s16  ;;  %v4940_v33 = vmul.f32 %v12819_v62, %v12015_v16 }
 0x605   :  { %4699 = vrot.lane.b32.xlu1 %v4651_v15, %s8115_s10  ;;  %v12834_v42 = vpop.permute.xlu1 %3275 }
 0x606   :  { %17184 = vst [vmem:[#allocation49_spill] sm:$0xff] %v12834_v42  ;;  %v12854_v42 = vld [vmem:[%s15881_s3 + $0xc0] sm:$0xff] }
 0x607   :  { %17188 = vst [vmem:[#allocation31_spill] sm:$0xff] %v12854_v42  ;;  %v5207_v37 = vmul.f32 %v12854_v42, %v12213_v52 }
 0x608   :  { %4721 = vrot.lane.b32.xlu0 %v4662_v0, %s8115_s10 }
 0x609   :  { %4975 = vrot.lane.b32.xlu1 %v4929_v53, %s8117_s14  ;;  %v12849_v15 = vpop.permute.xlu1 %3551  ;;  %v12864_v53 = vpop.permute.xlu0 %3559 }
 0x60a   :  { %17187 = vst [vmem:[#allocation30_spill] sm:$0xff] %v12849_v15  ;;  %17190 = vst [vmem:[#allocation17_spill] sm:$0xff] %v12864_v53  ;;  %v3639_v15 = vmul.f32 %v11963_v10, %v11511_v13  ;;  %v4941_v13 = vmul.f32 %v12662_v58, %v12015_v16  ;;  %v5219_v53 = vmul.f32 %v12619_v63, %v12213_v52 }
 0x60c   :  { %4997 = vrot.lane.b32.xlu0 %v4940_v33, %s8117_s14 }
 0x60d   :  { %5251 = vrot.lane.b32.xlu1 %v5207_v37, %s8119_s17  ;;  %v12862_v54 = vpop.permute.xlu1 %3827  ;;  %v8009_v37 = vld [vmem:[%s15881_s3 + $0x80] sm:$0xff]  ;;  %v12881_v10 = vpop.permute.xlu0 %3835 }
 0x60e   :  { %17189 = vst [vmem:[#allocation32_spill] sm:$0xff] %v12862_v54  ;;  %v3917_v54 = vmul.f32 %v8009_v37, %v11560_v4  ;;  %17192 = vst [vmem:[#allocation16_spill] sm:$0xff] %v12881_v10  ;;  %v4374_v10 = vmul.f32 %v12280_v6, %v11710_v18 }
 0x610   :  { %5273 = vrot.lane.b32.xlu0 %v5218_v28, %s8119_s17 }
 0x611   :  { %3697 = vrot.lane.b32.xlu1 %v3639_v15, %s8116_s12  ;;  %v12872_v0 = vpop.permute.xlu1 %3963  ;;  %v4236_v15 = vmul.f32 %v12510_v51, %v11639_v55 }
 0x612   :  { %17191 = vst [vmem:[#allocation33_spill] sm:$0xff] %v12872_v0  ;;  %v12891_v0 = vpop.permute.xlu0 %4111 }
 0x613   :  { %17194 = vst [vmem:[#allocation36_spill] sm:$0xff] %v12891_v0 }
 0x614   :  { %4999 = vrot.lane.b32.xlu0 %v4941_v13, %s8117_s14 }
 0x615   :  { %3973 = vrot.lane.b32.xlu1 %v3917_v54, %s8118_s16  ;;  %v12884_v33 = vpop.permute.xlu1 %4279  ;;  %v5081_v54 = vmul.f32 %v12662_v58, %v12116_v60 }
 0x616   :  { %17193 = vst [vmem:[#allocation37_spill] sm:$0xff] %v12884_v33  ;;  %v4652_v33 = vmul.f32 %v12092_v20, %v11865_v47  ;;  %v12909_v0 = vpop.permute.xlu0 %4423 }
 0x617   :  { %17196 = vst [vmem:[#allocation55_spill] sm:$0xff] %v12909_v0  ;;  %v5208_v0 = vmul.f32 %v12730_v46, %v12213_v52 }
 0x618   :  { %5275 = vrot.lane.b32.xlu0 %v5219_v53, %s8119_s17 }
 0x619   :  { %4289 = vrot.lane.b32.xlu1 %v4236_v15, %s8112_s22  ;;  %v12894_v28 = vpop.permute.xlu1 %4555  ;;  %v5082_v15 = vmul.f32 %v12804_v40, %v12116_v60 }
 0x61a   :  { %17195 = vst [vmem:[#allocation40_spill] sm:$0xff] %v12894_v28  ;;  %v12924_v28 = vpop.permute.xlu0 %4427 }
 0x61b   :  { %17199 = vst [vmem:[#allocation53_spill] sm:$0xff] %v12924_v28  ;;  %v4057_v28 = vmul.f32 %v8009_v37, %v11587_v27  ;;  %v4792_v37 = vmul.f32 %v12092_v20, %v11936_v23 }
 0x61c   :  { %5139 = vrot.lane.b32.xlu0 %v5081_v54, %s8118_s16  ;;  %v5222_v54 = vmul.f32 %v12804_v40, %v12213_v52 }
 0x61d   :  { %4425 = vrot.lane.b32.xlu1 %v4374_v10, %s8113_s8  ;;  %v12902_v13 = vpop.permute.xlu1 %4831  ;;  %v12917_v10 = vld [vmem:[%s15881_s3 + $0xd8] sm:$0xff] }
 0x61e   :  { %17198 = vst [vmem:[#allocation51_spill] sm:$0xff] %v12917_v10  ;;  %v4930_v58 = vmul.f32 %v12917_v10, %v12015_v16 }
 0x620   :  { %5141 = vrot.lane.b32.xlu0 %v5082_v15, %s8118_s16  ;;  %v8011_v15 = vld [vmem:[%s15881_s3 + $0x90] sm:$0xff] }
 0x621   :  { %4701 = vrot.lane.b32.xlu1 %v4652_v33, %s8115_s10  ;;  %v12912_v53 = vpop.permute.xlu1 %4965  ;;  %v3779_v40 = vmul.f32 %v8011_v15, %v11533_v36  ;;  %v4514_v15 = vmul.f32 %v12280_v6, %v11785_v9 }
 0x622   :  { %17197 = vst [vmem:[#allocation52_spill] sm:$0xff] %v12912_v53 }
 0x624   :  { %5281 = vrot.lane.b32.xlu0 %v5222_v54, %s8119_s17 }
 0x625   :  { %4977 = vrot.lane.b32.xlu1 %v4930_v58, %s8117_s14  ;;  %v12927_v33 = vpop.permute.xlu1 %4969 }
 0x626   :  { %17200 = vst [vmem:[#allocation41_spill] sm:$0xff] %v12927_v33 }
 0x629   :  { %5253 = vrot.lane.b32.xlu1 %v5208_v0, %s8119_s17  ;;  %v12933_v42 = vpop.permute.xlu1 %3277  ;;  %v4376_v0 = vmul.f32 %v12510_v51, %v11710_v18 }
 0x62a   :  { %17201 = vst [vmem:[#allocation54_spill] sm:$0xff] %v12933_v42  ;;  %v5070_v42 = vmul.f32 %v12917_v10, %v12116_v60 }
 0x62d   :  { %3837 = vrot.lane.b32.xlu1 %v3779_v40, %s8117_s14  ;;  %v12940_v58 = vpop.permute.xlu1 %3553 }
 0x62e   :  { %17202 = vst [vmem:[#allocation50_spill] sm:$0xff] %v12940_v58 }
 0x631   :  { %4113 = vrot.lane.b32.xlu1 %v4057_v28, %s8119_s17  ;;  %v12944_v46 = vpop.permute.xlu1 %3829 }
 0x632   :  { %17203 = vst [vmem:[#allocation56_spill] sm:$0xff] %v12944_v46 }
 0x635   :  { %4429 = vrot.lane.b32.xlu1 %v4376_v0, %s8113_s8  ;;  %v12949_v54 = vpop.permute.xlu1 %4101  ;;  %v12963_v0 = vpop.permute.xlu0 %4839 }
 0x636   :  { %17204 = vst [vmem:[#allocation240_spill] sm:$0xff] %v12949_v54  ;;  %17207 = vst [vmem:[#allocation243_spill] sm:$0xff] %v12963_v0 }
 0x639   :  { %4565 = vrot.lane.b32.xlu1 %v4514_v15, %s8114_s1  ;;  %v12954_v40 = vpop.permute.xlu1 %4105  ;;  %v3780_v15 = vmul.f32 %v12042_v34, %v11533_v36  ;;  %v12970_v46 = vpop.permute.xlu0 %5115  ;;  %v4377_v34 = vmul.f32 %v12438_v24, %v11710_v18 }
 0x63a   :  { %17205 = vst [vmem:[#allocation241_spill] sm:$0xff] %v12954_v40  ;;  %v12977_v40 = vstv %s6895_s24  ;;  %s6913_s24 = sld [smem:[#allocation5 + $0x1]] }
 0x63d   :  { %4841 = vrot.lane.b32.xlu1 %v4792_v37, %s8116_s12  ;;  %v12959_v28 = vpop.permute.xlu1 %4419  ;;  %v4058_v37 = vmul.f32 %v12055_v32, %v11587_v27  ;;  %v12991_v27 = vpop.permute.xlu0 %3699  ;;  %v3282_v32 = vsel %vm330_vm1, %v12131_v31, %v11634_v35 }
 0x63e   :  { %17206 = vst [vmem:[#allocation242_spill] sm:$0xff] %v12959_v28  ;;  %17209 = vst [vmem:[#allocation245_spill] sm:$0xff] %v12991_v27  ;;  %v3422_v28 = vsel %vm471_vm2, %v11654_v50, %v12161_v41  ;;  %v3562_v27 = vsel %vm612_vm3, %v11695_v59, %v12196_v21 }
 0x641   :  { %5117 = vrot.lane.b32.xlu1 %v5070_v42, %s8118_s16  ;;  %v12966_v58 = vpop.permute.xlu1 %4695  ;;  %v8012_v42 = vld [vmem:[%s15881_s3 + $0x8] sm:$0xff] }
 0x642   :  { %v3040_v54 = vmul.f32 %v8012_v42, %v12977_v40 }
 0x645   :  { %3839 = vrot.lane.b32.xlu1 %v3780_v15, %s8117_s14  ;;  %v12973_v20 = vpop.permute.xlu1 %4971  ;;  %v3142_v15 = vsel %vm189_vm0, %v11555_v7, %v11562_v57  ;;  %v13007_v57 = vpop.permute.xlu0 %3975 }
 0x646   :  { %v3180_v0 = vadd.f32 %v3142_v15, %v3040_v54  ;;  %17210 = vst [vmem:[#allocation246_spill] sm:$0xff] %v13007_v57  ;;  %v3702_v15 = vsel %vm753_vm4, %v12228_v43, %v11744_v5  ;;  %v17255_v5 = vld [vmem:[#allocation217_spill] sm:$0xff] }
 0x648   :  { %v3320_v10 = vadd.f32 %v3282_v32, %v3180_v0  ;;  %v3842_v32 = vsel %vm894_vm5, %v12272_v3, %v11775_v30  ;;  %v17229_v30 = vld [vmem:[#allocation102_spill] sm:$0xff] }
 0x649   :  { %4115 = vrot.lane.b32.xlu1 %v4058_v37, %s8119_s17  ;;  %v12984_v36 = vpop.permute.xlu1 %5105  ;;  %v4653_v37 = vmul.f32 %v12368_v29, %v11865_v47 }
 0x64a   :  { %17208 = vst [vmem:[#allocation244_spill] sm:$0xff] %v12984_v36  ;;  %v3460_v35 = vadd.f32 %v3422_v28, %v3320_v10  ;;  %v5071_v28 = vmul.f32 %v12189_v8, %v12116_v60 }
 0x64c   :  { %v3600_v0 = vadd.f32 %v3562_v27, %v3460_v35  ;;  %v4122_v35 = vsel %vm1176_vm7, %v11867_v39, %v12396_v12  ;;  %v17225_v12 = vld [vmem:[#allocation192_spill] sm:$0xff]  ;;  %v17228_v39 = vld [vmem:[#allocation105_spill] sm:$0xff] }
 0x64d   :  { %4431 = vrot.lane.b32.xlu1 %v4377_v34, %s8113_s8  ;;  %v12997_v42 = vpop.permute.xlu1 %5109  ;;  %v4655_v34 = vmul.f32 %v12381_v38, %v11865_v47 }
 0x64e   :  { %v3740_v21 = vadd.f32 %v3702_v15, %v3600_v0  ;;  %v8013_v15 = vld [vmem:[%s15881_s3 + $0x98] sm:$0xff] }
 0x64f   :  { %v3920_v0 = vmul.f32 %v8013_v15, %v11560_v4  ;;  %v4517_v15 = vmul.f32 %v12438_v24, %v11785_v9 }
 0x650   :  { %v3880_v57 = vadd.f32 %v3842_v32, %v3740_v21 }
 0x651   :  { %4703 = vrot.lane.b32.xlu1 %v4653_v37, %s8115_s10  ;;  %v13010_v54 = vpop.permute.xlu1 %3417  ;;  %v3982_v37 = vsel %vm1035_vm6, %v11815_v1, %v12335_v56  ;;  %v17253_v1 = vld [vmem:[#allocation157_spill] sm:$0xff] }
 0x652   :  { %17211 = vst [vmem:[#allocation247_spill] sm:$0xff] %v13010_v54  ;;  %v13028_v54 = vpop.permute.xlu0 %4291  ;;  %v4020_v27 = vadd.f32 %v3982_v37, %v3880_v57  ;;  %v4304_v37 = vsel %vm189_vm0, %v11946_v25, %v12489_v11  ;;  %v17223_v11 = vld [vmem:[#allocation38_spill] sm:$0xff] }
 0x653   :  { %17213 = vst [vmem:[#allocation249_spill] sm:$0xff] %v13028_v54 }
 0x654   :  { %v4160_v56 = vadd.f32 %v4122_v35, %v4020_v27  ;;  %v4444_v35 = vsel %vm330_vm1, %v12558_v14, %v12007_v17 }
 0x655   :  { %4707 = vrot.lane.b32.xlu1 %v4655_v34, %s8115_s10  ;;  %v13021_v10 = vpop.permute.xlu1 %3693 }
 0x656   :  { %17212 = vst [vmem:[#allocation248_spill] sm:$0xff] %v13021_v10  ;;  %v13040_v10 = vstv %s6904_s28  ;;  %v13044_v32 = vpop.permute.xlu0 %4563 }
 0x657   :  { %v4182_v21 = vmul.f32 %v12550_v45, %v13040_v10  ;;  %17215 = vst [vmem:[#allocation251_spill] sm:$0xff] %v13044_v32 }
 0x659   :  { %5119 = vrot.lane.b32.xlu1 %v5071_v28, %s8118_s16  ;;  %v13034_v34 = vpop.permute.xlu1 %3969  ;;  %v4239_v28 = vmul.f32 %v12619_v63, %v11639_v55  ;;  %v4202_v4 = vadd.f32 %v4182_v21, %v4160_v56  ;;  %v8014_v56 = vld [vmem:[%s15881_s3 + $0x18] sm:$0xff] }
 0x65a   :  { %17214 = vst [vmem:[#allocation250_spill] sm:$0xff] %v13034_v34  ;;  %v13065_v34 = vpop.permute.xlu0 %4567  ;;  %v3042_v21 = vmul.f32 %v8014_v56, %v12977_v40 }
 0x65b   :  { %v4342_v27 = vadd.f32 %v4304_v37, %v4202_v4  ;;  %17218 = vst [vmem:[#allocation253_spill] sm:$0xff] %v13065_v34  ;;  %v17219_v4 = vld [vmem:[#allocation91_spill] sm:$0xff]  ;;  %v4793_v34 = vmul.f32 %v12368_v29, %v11936_v23 }
 0x65d   :  { %3979 = vrot.lane.b32.xlu1 %v3920_v0, %s8118_s16  ;;  %v13047_v57 = vpop.permute.xlu1 %4421  ;;  %v17217_v0 = vld [vmem:[#allocation144_spill] sm:$0xff]  ;;  %v4482_v37 = vadd.f32 %v4444_v35, %v4342_v27  ;;  %v17224_v27 = vld [vmem:[#allocation170_spill] sm:$0xff] }
 0x65e   :  { %17216 = vst [vmem:[#allocation252_spill] sm:$0xff] %v13047_v57  ;;  %v4584_v54 = vsel %vm471_vm2, %v12634_v48, %v17217_v0  ;;  %v17221_v57 = vld [vmem:[#allocation153_spill] sm:$0xff]  ;;  %v17222_v48 = vld [vmem:[#allocation103_spill] sm:$0xff]  ;;  %v4864_v56 = vsel %vm753_vm4, %v12811_v22, %v17224_v27 }
 0x65f   :  { %v4724_v24 = vsel %vm612_vm3, %v17221_v57, %v12715_v44  ;;  %v4622_v17 = vadd.f32 %v4584_v54, %v4482_v37  ;;  %v3284_v35 = vsel %vm330_vm1, %v17223_v11, %v17222_v48  ;;  %v5004_v54 = vsel %vm894_vm5, %v12912_v53, %v17225_v12 }
 0x660   :  { %v4795_v57 = vmul.f32 %v12381_v38, %v11936_v23  ;;  %v5211_v38 = vmul.f32 %v12189_v8, %v12213_v52  ;;  %v4240_v53 = vmul.f32 %v12819_v62, %v11639_v55 }
 0x661   :  { %4295 = vrot.lane.b32.xlu1 %v4239_v28, %s8112_s22  ;;  %v13058_v45 = vpop.permute.xlu1 %4697  ;;  %v17220_v28 = vld [vmem:[#allocation88_spill] sm:$0xff]  ;;  %v4762_v25 = vadd.f32 %v4724_v24, %v4622_v17  ;;  %v5144_v17 = vsel %vm1035_vm6, %v12984_v36, %v12580_v61  ;;  %v17239_v61 = vld [vmem:[#allocation61_spill] sm:$0xff] }
 0x662   :  { %v3144_v32 = vsel %vm189_vm0, %v17220_v28, %v17219_v4  ;;  %v17230_v24 = vld [vmem:[#allocation164_spill] sm:$0xff] }
 0x663   :  { %v3182_v14 = vadd.f32 %v3144_v32, %v3042_v21  ;;  %v4902_v44 = vadd.f32 %v4864_v56, %v4762_v25  ;;  %v3424_v32 = vsel %vm471_vm2, %v17229_v30, %v17228_v39  ;;  %v17233_v56 = vld [vmem:[#allocation173_spill] sm:$0xff] }
 0x665   :  { %4571 = vrot.lane.b32.xlu1 %v4517_v15, %s8114_s1  ;;  %v13078_v0 = vpop.permute.xlu1 %4973  ;;  %v13091_v15 = vpop.permute.xlu0 %4979  ;;  %v3322_v37 = vadd.f32 %v3284_v35, %v3182_v14  ;;  %v5042_v21 = vadd.f32 %v5004_v54, %v4902_v44 }
 0x666   :  { %17226 = vst [vmem:[#allocation91_spill] sm:$0xff] %v13091_v15  ;;  %v17231_v15 = vld [vmem:[#allocation106_spill] sm:$0xff] }
 0x667   :  { %v3564_v25 = vsel %vm612_vm3, %v17231_v15, %v17230_v24  ;;  %v3462_v14 = vadd.f32 %v3424_v32, %v3322_v37  ;;  %v17236_v32 = vld [vmem:[#allocation116_spill] sm:$0xff] }
 0x669   :  { %4843 = vrot.lane.b32.xlu1 %v4793_v34, %s8116_s12  ;;  %v13094_v29 = vpop.permute.xlu1 %5243  ;;  %v5182_v34 = vadd.f32 %v5144_v17, %v5042_v21  ;;  %v13115_v27 = vpop.permute.xlu0 %5255  ;;  %v3602_v54 = vadd.f32 %v3564_v25, %v3462_v14  ;;  %v17240_v25 = vld [vmem:[#allocation129_spill] sm:$0xff]  ;;  %v17241_v14 = vld [vmem:[#allocation119_spill] sm:$0xff] }
 0x66a   :  { %17227 = vst [vmem:[#allocation88_spill] sm:$0xff] %v13094_v29  ;;  %v17234_v29 = vld [vmem:[#allocation168_spill] sm:$0xff] }
 0x66b   :  { %v3704_v12 = vsel %vm753_vm4, %v17234_v29, %v17233_v56 }
 0x66c   :  { %v3742_v21 = vadd.f32 %v3704_v12, %v3602_v54 }
 0x66d   :  { %4847 = vrot.lane.b32.xlu1 %v4795_v57, %s8116_s12  ;;  %v13108_v35 = vpop.permute.xlu1 %5247  ;;  %v17237_v57 = vld [vmem:[#allocation174_spill] sm:$0xff]  ;;  %v13139_v12 = vpop.permute.xlu0 %3977 }
 0x66e   :  { %17232 = vst [vmem:[#allocation103_spill] sm:$0xff] %v13108_v35  ;;  %v5284_v44 = vsel %vm1176_vm7, %v12704_v19, %v13108_v35  ;;  %v3844_v17 = vsel %vm894_vm5, %v17237_v57, %v17236_v32  ;;  %17242 = vst [vmem:[#allocation173_spill] sm:$0xff] %v13139_v12  ;;  %v4796_v19 = vmul.f32 %v12510_v51, %v11936_v23 }
 0x66f   :  { %v13120_v37 = vadd.f32 %v5284_v44, %v5182_v34  ;;  %v3882_v35 = vadd.f32 %v3844_v17, %v3742_v21  ;;  %v3984_v34 = vsel %vm1035_vm6, %v17241_v14, %v17240_v25  ;;  %v4518_v44 = vmul.f32 %v12498_v2, %v11785_v9  ;;  %v17252_v14 = vld [vmem:[#allocation133_spill] sm:$0xff] }
 0x671   :  { %17235 = vst [vmem:[#allocation105_spill] sm:$0xff] %v13120_v37  ;;  %5259 = vrot.lane.b32.xlu1 %v5211_v38, %s8119_s17  ;;  %v13126_v8 = vpop.permute.xlu1 %3419  ;;  %v13130_v36 = vmul.f32 %v13120_v37, %v17239_v61  ;;  %v4022_v54 = vadd.f32 %v3984_v34, %v3882_v35  ;;  %v17245_v61 = vld [vmem:[#allocation118_spill] sm:$0xff]  ;;  %v13154_v12 = vpop.permute.xlu0 %4293 }
 0x672   :  { %17238 = vst [vmem:[#allocation164_spill] sm:$0xff] %v13126_v8  ;;  %v17244_v8 = vld [vmem:[#allocation131_spill] sm:$0xff]  ;;  %v8015_v35 = vld [vmem:[%s15881_s3 + $0x20] sm:$0xff] }
 0x673   :  { %5383 = vrot.lane.b32.xlu0 %v13130_v36, %s8121_s26  ;;  %v4124_v17 = vsel %vm1176_vm7, %v17245_v61, %v17244_v8  ;;  %17247 = vst [vmem:[#allocation131_spill] sm:$0xff] %v13154_v12  ;;  %v3043_v34 = vmul.f32 %v8015_v35, %v12977_v40  ;;  %v17250_v12 = vld [vmem:[#allocation93_spill] sm:$0xff]  ;;  %v17251_v61 = vld [vmem:[#allocation215_spill] sm:$0xff] }
 0x674   :  { %v4306_v57 = vsel %vm189_vm0, %v17252_v14, %v17251_v61  ;;  %v17260_v14 = vld [vmem:[#allocation107_spill] sm:$0xff] }
 0x675   :  { %4297 = vrot.lane.b32.xlu1 %v4240_v53, %s8112_s22  ;;  %v13142_v38 = vpop.permute.xlu1 %3695  ;;  %v4184_v53 = vmul.f32 %v12563_v26, %v13040_v10  ;;  %v4934_v26 = vmul.f32 %v12280_v6, %v12015_v16  ;;  %v13189_v29 = vpop.permute.xlu0 %4569 }
 0x676   :  { %17243 = vst [vmem:[#allocation116_spill] sm:$0xff] %v13142_v38  ;;  %v4162_v38 = vadd.f32 %v4124_v17, %v4022_v54  ;;  %v17249_v54 = vld [vmem:[#allocation90_spill] sm:$0xff] }
 0x677   :  { %v3145_v17 = vsel %vm189_vm0, %v17219_v4, %v17249_v54  ;;  %v3146_v35 = vsel %vm189_vm0, %v17249_v54, %v17250_v12  ;;  %v4446_v4 = vsel %vm330_vm1, %v17255_v5, %v12624_v49  ;;  %17256 = vst [vmem:[#allocation90_spill] sm:$0xff] %v13189_v29  ;;  %v17261_v29 = vld [vmem:[#allocation39_spill] sm:$0xff] }
 0x678   :  { %v3183_v54 = vadd.f32 %v3145_v17, %v3043_v34  ;;  %v17262_v34 = vld [vmem:[#allocation229_spill] sm:$0xff] }
 0x679   :  { %4573 = vrot.lane.b32.xlu1 %v4518_v44, %s8114_s1  ;;  %v13150_v21 = vpop.permute.xlu1 %3971  ;;  %v8016_v44 = vld [vmem:[%s15881_s3 + $0x28] sm:$0xff] }
 0x67a   :  { %17246 = vst [vmem:[#allocation129_spill] sm:$0xff] %v13150_v21  ;;  %v3044_v21 = vmul.f32 %v8016_v44, %v12977_v40  ;;  %v4204_v44 = vadd.f32 %v4184_v53, %v4162_v38  ;;  %v17259_v53 = vld [vmem:[#allocation171_spill] sm:$0xff] }
 0x67b   :  { %v3426_v5 = vsel %vm471_vm2, %v17260_v14, %v17259_v53 }
 0x67c   :  { %v3184_v3 = vadd.f32 %v3146_v35, %v3044_v21  ;;  %v4344_v15 = vadd.f32 %v4306_v57, %v4204_v44  ;;  %v4586_v57 = vsel %vm471_vm2, %v17262_v34, %v17261_v29  ;;  %v3425_v35 = vsel %vm471_vm2, %v17228_v39, %v17260_v14  ;;  %v17263_v44 = vld [vmem:[#allocation24_spill] sm:$0xff]  ;;  %v17268_v14 = vld [vmem:[#allocation27_spill] sm:$0xff] }
 0x67d   :  { %4849 = vrot.lane.b32.xlu1 %v4796_v19, %s8116_s12  ;;  %v13167_v22 = vpop.permute.xlu1 %4283  ;;  %v3285_v19 = vsel %vm330_vm1, %v17222_v48, %v17253_v1  ;;  %v13197_v48 = vld [vmem:[%s15881_s3 + $0xe8] sm:$0xff]  ;;  %v4380_v34 = vmul.f32 %v12819_v62, %v11710_v18 }
 0x67e   :  { %17248 = vst [vmem:[#allocation254_spill] sm:$0xff] %v13167_v22  ;;  %v17254_v22 = vld [vmem:[#allocation162_spill] sm:$0xff]  ;;  %17258 = vst [vmem:[#allocation215_spill] sm:$0xff] %v13197_v48  ;;  %v3323_v21 = vadd.f32 %v3285_v19, %v3183_v54  ;;  %v4484_v17 = vadd.f32 %v4446_v4, %v4344_v15 }
 0x67f   :  { %v3286_v6 = vsel %vm330_vm1, %v17253_v1, %v17254_v22  ;;  %v5212_v1 = vmul.f32 %v13197_v48, %v12213_v52  ;;  %v17266_v19 = vld [vmem:[#allocation114_spill] sm:$0xff] }
 0x680   :  { %v4624_v41 = vadd.f32 %v4586_v57, %v4484_v17  ;;  %v3463_v4 = vadd.f32 %v3425_v35, %v3323_v21  ;;  %v17273_v21 = vld [vmem:[#allocation120_spill] sm:$0xff] }
 0x681   :  { %4985 = vrot.lane.b32.xlu1 %v4934_v26, %s8117_s14  ;;  %v13192_v38 = vpop.permute.xlu1 %4287  ;;  %v3324_v26 = vadd.f32 %v3286_v6, %v3184_v3  ;;  %v17267_v3 = vld [vmem:[#allocation110_spill] sm:$0xff]  ;;  %v13227_v6 = vpop.permute.xlu0 %4705 }
 0x682   :  { %17257 = vst [vmem:[#allocation93_spill] sm:$0xff] %v13192_v38  ;;  %v17264_v38 = vld [vmem:[#allocation155_spill] sm:$0xff]  ;;  %v3566_v15 = vsel %vm612_vm3, %v17267_v3, %v17266_v19  ;;  %v3565_v39 = vsel %vm612_vm3, %v17230_v24, %v17267_v3  ;;  %17269 = vst [vmem:[#allocation162_spill] sm:$0xff] %v13227_v6  ;;  %v5006_v24 = vsel %vm894_vm5, %v12927_v33, %v12973_v20 }
 0x683   :  { %v4726_v43 = vsel %vm612_vm3, %v17264_v38, %v17263_v44  ;;  %v3464_v48 = vadd.f32 %v3426_v5, %v3324_v26  ;;  %v4866_v5 = vsel %vm753_vm4, %v17268_v14, %v12902_v13  ;;  %v17271_v26 = vld [vmem:[#allocation127_spill] sm:$0xff]  ;;  %v3603_v3 = vadd.f32 %v3565_v39, %v3463_v4 }
 0x684   :  { %v4764_v54 = vadd.f32 %v4726_v43, %v4624_v41  ;;  %v4658_v41 = vmul.f32 %v12498_v2, %v11865_v47  ;;  %v17272_v43 = vld [vmem:[#allocation187_spill] sm:$0xff] }
 0x685   :  { %5261 = vrot.lane.b32.xlu1 %v5212_v1, %s8119_s17  ;;  %v13214_v30 = vpop.permute.xlu1 %4699  ;;  %v17270_v1 = vld [vmem:[#allocation178_spill] sm:$0xff]  ;;  %v3846_v35 = vsel %vm894_vm5, %v17272_v43, %v17273_v21 }
 0x686   :  { %17265 = vst [vmem:[#allocation157_spill] sm:$0xff] %v13214_v30  ;;  %v3705_v57 = vsel %vm753_vm4, %v17233_v56, %v17270_v1  ;;  %v3706_v17 = vsel %vm753_vm4, %v17270_v1, %v17271_v26  ;;  %v3604_v30 = vadd.f32 %v3566_v15, %v3464_v48  ;;  %v4904_v38 = vadd.f32 %v4866_v5, %v4764_v54  ;;  %v17274_v1 = vld [vmem:[#allocation236_spill] sm:$0xff]  ;;  %v17275_v5 = vld [vmem:[#allocation194_spill] sm:$0xff]  ;;  %v17276_v54 = vld [vmem:[#allocation203_spill] sm:$0xff] }
 0x687   :  { %v3845_v56 = vsel %vm894_vm5, %v17236_v32, %v17272_v43  ;;  %v5146_v48 = vsel %vm1035_vm6, %v12997_v42, %v17274_v1  ;;  %v3743_v15 = vadd.f32 %v3705_v57, %v3603_v3  ;;  %v3985_v4 = vsel %vm1035_vm6, %v17240_v25, %v17275_v5  ;;  %v13258_v32 = vpop.permute.xlu0 %4981  ;;  %v17280_v3 = vld [vmem:[#allocation124_spill] sm:$0xff] }
 0x688   :  { %v3744_v39 = vadd.f32 %v3706_v17, %v3604_v30  ;;  %v3986_v33 = vsel %vm1035_vm6, %v17275_v5, %v17276_v54  ;;  %17277 = vst [vmem:[#allocation171_spill] sm:$0xff] %v13258_v32  ;;  %v4936_v30 = vmul.f32 %v12510_v51, %v12015_v16  ;;  %v17285_v5 = vld [vmem:[#allocation31_spill] sm:$0xff] }
 0x689   :  { %4437 = vrot.lane.b32.xlu1 %v4380_v34, %s8113_s8  ;;  %v13239_v6 = vpop.permute.xlu1 %4975  ;;  %v5044_v34 = vadd.f32 %v5006_v24, %v4904_v38  ;;  %v3883_v14 = vadd.f32 %v3845_v56, %v3743_v15  ;;  %v17278_v38 = vld [vmem:[#allocation18_spill] sm:$0xff]  ;;  %v4125_v56 = vsel %vm1176_vm7, %v17244_v8, %v17280_v3  ;;  %v17283_v15 = vld [vmem:[#allocation65_spill] sm:$0xff]  ;;  %v17296_v32 = vld [vmem:[#allocation111_spill] sm:$0xff] }
 0x68a   :  { %v3884_v59 = vadd.f32 %v3846_v35, %v3744_v39  ;;  %v17281_v35 = vld [vmem:[#allocation136_spill] sm:$0xff] }
 0x68b   :  { %v5184_v43 = vadd.f32 %v5146_v48, %v5044_v34  ;;  %v4023_v57 = vadd.f32 %v3985_v4, %v3883_v14  ;;  %v13290_v8 = vpop.permute.xlu0 %5257  ;;  %v4185_v4 = vmul.f32 %v17285_v5, %v13040_v10 }
 0x68c   :  { %v4024_v17 = vadd.f32 %v3986_v33, %v3884_v59  ;;  %v13286_v59 = vld [vmem:[%s15881_s3 + $0xf8] sm:$0xff] }
 0x68d   :  { %4713 = vrot.lane.b32.xlu1 %v4658_v41, %s8115_s10  ;;  %v13261_v11 = vpop.permute.xlu1 %5251  ;;  %v4126_v41 = vsel %vm1176_vm7, %v17280_v3, %v17281_v35  ;;  %v5074_v33 = vmul.f32 %v13286_v59, %v12116_v60  ;;  %v4163_v14 = vadd.f32 %v4125_v56, %v4023_v57  ;;  %v5485_v3 = vmul.f32 %v13130_v36, %v13120_v37 }
 0x68e   :  { %v5286_v25 = vsel %vm1176_vm7, %v17278_v38, %v13261_v11  ;;  %v4164_v34 = vadd.f32 %v4126_v41, %v4024_v17  ;;  %v17289_v17 = vld [vmem:[#allocation142_spill] sm:$0xff] }
 0x68f   :  { %v13268_v24 = vadd.f32 %v5286_v25, %v5184_v43  ;;  %v17286_v43 = vld [vmem:[#allocation20_spill] sm:$0xff]  ;;  %v4307_v56 = vsel %vm189_vm0, %v17251_v61, %v17289_v17  ;;  %v4205_v41 = vadd.f32 %v4185_v4, %v4163_v14  ;;  %v13315_v36 = vpop.permute.xlu0 %4117  ;;  %v4520_v4 = vmul.f32 %v12819_v62, %v11785_v9 }
 0x690   :  { %17292 = vst [vmem:[#allocation110_spill] sm:$0xff] %v13315_v36 }
 0x691   :  { %17279 = vst [vmem:[#allocation107_spill] sm:$0xff] %v13268_v24  ;;  %4989 = vrot.lane.b32.xlu1 %v4936_v30, %s8117_s14  ;;  %v13277_v48 = vpop.permute.xlu1 %3697  ;;  %v13281_v39 = vmul.f32 %v13268_v24, %v17283_v15  ;;  %v4186_v30 = vmul.f32 %v17286_v43, %v13040_v10  ;;  %v17288_v15 = vld [vmem:[#allocation25_spill] sm:$0xff]  ;;  %v17290_v43 = vld [vmem:[#allocation34_spill] sm:$0xff]  ;;  %v4345_v14 = vadd.f32 %v4307_v56, %v4205_v41 }
 0x692   :  { %17282 = vst [vmem:[#allocation39_spill] sm:$0xff] %v13277_v48  ;;  %v4242_v57 = vmul.f32 %v17288_v15, %v11639_v55  ;;  %v17291_v48 = vld [vmem:[#allocation237_spill] sm:$0xff]  ;;  %v8019_v55 = vld [vmem:[%s15881_s3 + $0x30] sm:$0xff]  ;;  %v3287_v56 = vsel %vm330_vm1, %v17254_v22, %v17296_v32 }
 0x693   :  { %17284 = vst [vmem:[#allocation24_spill] sm:$0xff] %v13281_v39  ;;  %5387 = vrot.lane.b32.xlu0 %v13281_v39, %s8121_s26  ;;  %v4206_v5 = vadd.f32 %v4186_v30, %v4164_v34  ;;  %v3045_v61 = vmul.f32 %v8019_v55, %v12977_v40  ;;  %v17294_v30 = vld [vmem:[#allocation92_spill] sm:$0xff] }
 0x694   :  { %v17298_v55 = vld [vmem:[#allocation40_spill] sm:$0xff] }
 0x695   :  { %5125 = vrot.lane.b32.xlu1 %v5074_v33, %s8118_s16  ;;  %v13299_v25 = vpop.permute.xlu1 %3973  ;;  %v4308_v33 = vsel %vm189_vm0, %v17289_v17, %v17290_v43 }
 0x696   :  { %17287 = vst [vmem:[#allocation114_spill] sm:$0xff] %v13299_v25  ;;  %v4447_v25 = vsel %vm330_vm1, %v12624_v49, %v17291_v48  ;;  %v3147_v49 = vsel %vm189_vm0, %v17250_v12, %v17294_v30  ;;  %v4346_v36 = vadd.f32 %v4308_v33, %v4206_v5  ;;  %v17301_v5 = vld [vmem:[#allocation189_spill] sm:$0xff] }
 0x697   :  { %5526 = vrot.lane.b32.xlu0 %v5485_v3, %s8121_s26  ;;  %v17295_v3 = vld [vmem:[#allocation47_spill] sm:$0xff]  ;;  %v4485_v37 = vadd.f32 %v4447_v25, %v4345_v14  ;;  %v17300_v25 = vld [vmem:[#allocation177_spill] sm:$0xff]  ;;  %v4728_v33 = vsel %vm612_vm3, %v17301_v5, %v12966_v58 }
 0x698   :  { %v4448_v17 = vsel %vm330_vm1, %v17291_v48, %v17295_v3  ;;  %v4798_v48 = vmul.f32 %v12498_v2, %v11936_v23  ;;  %v3427_v22 = vsel %vm471_vm2, %v17259_v53, %v17300_v25 }
 0x699   :  { %4301 = vrot.lane.b32.xlu1 %v4242_v57, %s8112_s22  ;;  %v13322_v34 = vpop.permute.xlu1 %4289  ;;  %v17297_v57 = vld [vmem:[#allocation166_spill] sm:$0xff]  ;;  %v4486_v12 = vadd.f32 %v4448_v17, %v4346_v36  ;;  %v13355_v36 = vpop.permute.xlu0 %4433  ;;  %v17304_v17 = vld [vmem:[#allocation212_spill] sm:$0xff] }
 0x69a   :  { %17293 = vst [vmem:[#allocation178_spill] sm:$0xff] %v13322_v34  ;;  %v4587_v41 = vsel %vm471_vm2, %v17261_v29, %v17297_v57  ;;  %v4588_v9 = vsel %vm471_vm2, %v17297_v57, %v17298_v55  ;;  %v3185_v34 = vadd.f32 %v3147_v49, %v3045_v61  ;;  %v4727_v29 = vsel %vm612_vm3, %v17263_v44, %v17301_v5  ;;  %v17303_v49 = vld [vmem:[#allocation184_spill] sm:$0xff] }
 0x69b   :  { %17302 = vst [vmem:[#allocation187_spill] sm:$0xff] %v13355_v36  ;;  %v4625_v14 = vadd.f32 %v4587_v41, %v4485_v37  ;;  %v3567_v2 = vsel %vm612_vm3, %v17266_v19, %v17303_v49  ;;  %v4867_v53 = vsel %vm753_vm4, %v12902_v13, %v17304_v17  ;;  %v17305_v37 = vld [vmem:[#allocation195_spill] sm:$0xff]  ;;  %v17306_v41 = vld [vmem:[#allocation232_spill] sm:$0xff]  ;;  %v5007_v13 = vsel %vm894_vm5, %v12973_v20, %v13078_v0 }
 0x69c   :  { %v3325_v61 = vadd.f32 %v3287_v56, %v3185_v34  ;;  %v5076_v34 = vmul.f32 %v12510_v51, %v12116_v60  ;;  %v3707_v56 = vsel %vm753_vm4, %v17271_v26, %v17305_v37  ;;  %v4868_v19 = vsel %vm753_vm4, %v17304_v17, %v17306_v41 }
 0x69d   :  { %4577 = vrot.lane.b32.xlu1 %v4520_v4, %s8114_s1  ;;  %v13342_v39 = vpop.permute.xlu1 %4425  ;;  %v4626_v4 = vadd.f32 %v4588_v9, %v4486_v12  ;;  %v5008_v51 = vsel %vm894_vm5, %v13078_v0, %v13239_v6  ;;  %v17310_v0 = vld [vmem:[#allocation213_spill] sm:$0xff] }
 0x69e   :  { %17299 = vst [vmem:[#allocation127_spill] sm:$0xff] %v13342_v39  ;;  %v3465_v57 = vadd.f32 %v3427_v22, %v3325_v61  ;;  %v4765_v39 = vadd.f32 %v4727_v29, %v4625_v14  ;;  %v17308_v61 = vld [vmem:[#allocation125_spill] sm:$0xff] }
 0x69f   :  { %v4766_v44 = vadd.f32 %v4728_v33, %v4626_v4  ;;  %v5214_v33 = vmul.f32 %v13286_v59, %v12213_v52  ;;  %v3847_v20 = vsel %vm894_vm5, %v17273_v21, %v17308_v61  ;;  %v4382_v21 = vmul.f32 %v17288_v15, %v11710_v18 }
 0x6a0   :  { %v3605_v9 = vadd.f32 %v3567_v2, %v3465_v57  ;;  %v4905_v12 = vadd.f32 %v4867_v53, %v4765_v39  ;;  %v17309_v39 = vld [vmem:[#allocation28_spill] sm:$0xff]  ;;  %v3987_v2 = vsel %vm1035_vm6, %v17276_v54, %v17310_v0 }
 0x6a1   :  { %4853 = vrot.lane.b32.xlu1 %v4798_v48, %s8116_s12  ;;  %v13364_v24 = vpop.permute.xlu1 %4701  ;;  %v13377_v48 = vpop.permute.xlu0 %4709  ;;  %v4906_v29 = vadd.f32 %v4868_v19, %v4766_v44  ;;  %v5147_v14 = vsel %vm1035_vm6, %v17274_v1, %v17309_v39  ;;  %v5148_v17 = vsel %vm1035_vm6, %v17309_v39, %v12970_v46 }
 0x6a2   :  { %17307 = vst [vmem:[#allocation120_spill] sm:$0xff] %v13377_v48  ;;  %v3745_v22 = vadd.f32 %v3707_v56, %v3605_v9  ;;  %v5045_v5 = vadd.f32 %v5007_v13, %v4905_v12 }
 0x6a3   :  { %v5046_v4 = vadd.f32 %v5008_v51, %v4906_v29  ;;  %v17314_v51 = vld [vmem:[#allocation29_spill] sm:$0xff]  ;;  %v17317_v29 = vld [vmem:[#allocation67_spill] sm:$0xff] }
 0x6a4   :  { %v3885_v53 = vadd.f32 %v3847_v20, %v3745_v22  ;;  %v5185_v44 = vadd.f32 %v5147_v14, %v5045_v5  ;;  %v4187_v22 = vmul.f32 %v17314_v51, %v13040_v10 }
 0x6a5   :  { %5129 = vrot.lane.b32.xlu1 %v5076_v34, %s8118_s16  ;;  %v13383_v26 = vpop.permute.xlu1 %4977  ;;  %v17311_v34 = vld [vmem:[#allocation225_spill] sm:$0xff]  ;;  %v13405_v56 = vpop.permute.xlu0 %4845  ;;  %v5186_v9 = vadd.f32 %v5148_v17, %v5046_v4 }
 0x6a6   :  { %v4127_v1 = vsel %vm1176_vm7, %v17281_v35, %v17311_v34  ;;  %17312 = vst [vmem:[#allocation236_spill] sm:$0xff] %v13405_v56  ;;  %v4025_v13 = vadd.f32 %v3987_v2, %v3885_v53  ;;  %v17319_v4 = vld [vmem:[#allocation69_spill] sm:$0xff] }
 0x6a7   :  { %v13440_v17 = vld [vmem:[%s15881_s3 + $0x118] sm:$0xff] }
 0x6a8   :  { %v4165_v18 = vadd.f32 %v4127_v1, %v4025_v13  ;;  %17320 = vst [vmem:[#allocation136_spill] sm:$0xff] %v13440_v17  ;;  %v4938_v53 = vmul.f32 %v13440_v17, %v12015_v16  ;;  %v13458_v13 = vld [vmem:[%s15881_s3 + $0x108] sm:$0xff]  ;;  %v17329_v17 = vld [vmem:[#allocation26_spill] sm:$0xff] }
 0x6a9   :  { %5265 = vrot.lane.b32.xlu1 %v5214_v33, %s8119_s17  ;;  %v5254_v57 = vpop.permute.xlu1 %5253  ;;  %v4660_v33 = vmul.f32 %v12819_v62, %v11865_v47  ;;  %v13428_v20 = vpop.permute.xlu0 %5121 }
 0x6aa   :  { %v5287_v54 = vsel %vm1176_vm7, %v13261_v11, %v5254_v57  ;;  %v5288_v19 = vsel %vm1176_vm7, %v5254_v57, %v13115_v27  ;;  %v4207_v39 = vadd.f32 %v4187_v22, %v4165_v18  ;;  %v17321_v57 = vld [vmem:[#allocation165_spill] sm:$0xff]  ;;  %v4729_v18 = vsel %vm612_vm3, %v12966_v58, %v13058_v45 }
 0x6ab   :  { %v13411_v12 = vadd.f32 %v5287_v54, %v5185_v44  ;;  %v13415_v5 = vadd.f32 %v5288_v19, %v5186_v9  ;;  %v4309_v44 = vsel %vm189_vm0, %v17290_v43, %v17321_v57  ;;  %v5216_v43 = vmul.f32 %v13458_v13, %v12213_v52  ;;  %v17324_v9 = vld [vmem:[#allocation210_spill] sm:$0xff]  ;;  %v17328_v58 = vld [vmem:[#allocation101_spill] sm:$0xff] }
 0x6ac   :  { %v4347_v54 = vadd.f32 %v4309_v44, %v4207_v39  ;;  %v4589_v51 = vsel %vm471_vm2, %v17298_v55, %v17324_v9  ;;  %v17326_v55 = vld [vmem:[#allocation230_spill] sm:$0xff] }
 0x6ad   :  { %17313 = vst [vmem:[#allocation194_spill] sm:$0xff] %v13411_v12  ;;  %17315 = vst [vmem:[#allocation203_spill] sm:$0xff] %v13415_v5  ;;  %4441 = vrot.lane.b32.xlu1 %v4382_v21, %s8113_s8  ;;  %v13418_v35 = vpop.permute.xlu1 %3837  ;;  %v13422_v11 = vmul.f32 %v13411_v12, %v17317_v29  ;;  %v13435_v2 = vmul.f32 %v13415_v5, %v17319_v4  ;;  %v17322_v21 = vld [vmem:[#allocation186_spill] sm:$0xff]  ;;  %v13465_v22 = vpop.permute.xlu0 %4119  ;;  %v4661_v4 = vmul.f32 %v17326_v55, %v11865_v47  ;;  %v8023_v47 = vld [vmem:[%s15881_s3 + $0x10] sm:$0xff] }
 0x6ae   :  { %17316 = vst [vmem:[#allocation18_spill] sm:$0xff] %v13418_v35  ;;  %v4449_v1 = vsel %vm330_vm1, %v17295_v3, %v17322_v21  ;;  %17325 = vst [vmem:[#allocation20_spill] sm:$0xff] %v13465_v22  ;;  %v3281_v35 = vsel %vm330_vm1, %v17328_v58, %v12131_v31  ;;  %v4939_v31 = vmul.f32 %v12619_v63, %v12015_v16  ;;  %v17336_v63 = vld [vmem:[#allocation158_spill] sm:$0xff] }
 0x6af   :  { %5389 = vrot.lane.b32.xlu0 %v13422_v11, %s8121_s26  ;;  %v4487_v3 = vadd.f32 %v4449_v1, %v4347_v54  ;;  %v17327_v1 = vld [vmem:[#allocation87_spill] sm:$0xff] }
 0x6b0   :  { %v3141_v54 = vsel %vm189_vm0, %v17327_v1, %v11555_v7  ;;  %v5009_v1 = vsel %vm894_vm5, %v13239_v6, %v13383_v26  ;;  %v13520_v6 = vld [vmem:[%s15881_s3 + $0x110] sm:$0xff] }
 0x6b1   :  { %4717 = vrot.lane.b32.xlu1 %v4660_v33, %s8115_s10  ;;  %v13431_v14 = vpop.permute.xlu1 %4113  ;;  %v8022_v33 = vld [vmem:[%s15881_s3] sm:$0xff]  ;;  %17337 = vst [vmem:[#allocation142_spill] sm:$0xff] %v13520_v6 }
 0x6b2   :  { %17318 = vst [vmem:[#allocation124_spill] sm:$0xff] %v13431_v14  ;;  %v3039_v39 = vmul.f32 %v8022_v33, %v12977_v40  ;;  %v3041_v33 = vmul.f32 %v8023_v47, %v12977_v40  ;;  %v17334_v47 = vld [vmem:[#allocation100_spill] sm:$0xff] }
 0x6b3   :  { %5391 = vrot.lane.b32.xlu0 %v13435_v2, %s8121_s26  ;;  %v17335_v14 = vld [vmem:[#allocation104_spill] sm:$0xff] }
 0x6b4   :  { %v3561_v36 = vsel %vm612_vm3, %v17336_v63, %v17335_v14  ;;  %v17340_v14 = vld [vmem:[#allocation167_spill] sm:$0xff] }
 0x6b5   :  { %4993 = vrot.lane.b32.xlu1 %v4938_v53, %s8117_s14  ;;  %v13453_v19 = vpop.permute.xlu1 %4429  ;;  %v4627_v53 = vadd.f32 %v4589_v51, %v4487_v3  ;;  %v4869_v51 = vsel %vm753_vm4, %v17306_v41, %v17329_v17  ;;  %v13488_v3 = vpop.permute.xlu0 %4435  ;;  %v17343_v63 = vld [vmem:[#allocation95_spill] sm:$0xff] }
 0x6b6   :  { %17323 = vst [vmem:[#allocation31_spill] sm:$0xff] %v13453_v19  ;;  %17330 = vst [vmem:[#allocation25_spill] sm:$0xff] %v13488_v3 }
 0x6b7   :  { %v4767_v29 = vadd.f32 %v4729_v18, %v4627_v53  ;;  %v17331_v18 = vld [vmem:[#allocation89_spill] sm:$0xff]  ;;  %v17332_v53 = vld [vmem:[#allocation152_spill] sm:$0xff] }
 0x6b8   :  { %v3143_v41 = vsel %vm189_vm0, %v17331_v18, %v17220_v28 }
 0x6b9   :  { %5269 = vrot.lane.b32.xlu1 %v5216_v43, %s8119_s17  ;;  %v13475_v44 = vpop.permute.xlu1 %4565  ;;  %v3179_v43 = vadd.f32 %v3141_v54, %v3039_v39  ;;  %v3421_v39 = vsel %vm471_vm2, %v17332_v53, %v11654_v50  ;;  %v4907_v58 = vadd.f32 %v4869_v51, %v4767_v29  ;;  %v3181_v22 = vadd.f32 %v3143_v41, %v3041_v33  ;;  %v17338_v29 = vld [vmem:[#allocation102_spill] sm:$0xff]  ;;  %v17341_v33 = vld [vmem:[#allocation109_spill] sm:$0xff]  ;;  %v13533_v53 = vpop.permute.xlu0 %4711 }
 0x6ba   :  { %v17339_v51 = vld [vmem:[#allocation154_spill] sm:$0xff]  ;;  %v3701_v41 = vsel %vm753_vm4, %v17341_v33, %v17340_v14  ;;  %17342 = vst [vmem:[#allocation34_spill] sm:$0xff] %v13533_v53  ;;  %v17346_v33 = vld [vmem:[#allocation175_spill] sm:$0xff]  ;;  %v17347_v53 = vld [vmem:[#allocation113_spill] sm:$0xff] }
 0x6bb   :  { %v3319_v54 = vadd.f32 %v3281_v35, %v3179_v43  ;;  %v5047_v18 = vadd.f32 %v5009_v1, %v4907_v58  ;;  %v5217_v35 = vmul.f32 %v13520_v6, %v12213_v52  ;;  %v3423_v43 = vsel %vm471_vm2, %v17339_v51, %v17338_v29  ;;  %v17345_v51 = vld [vmem:[#allocation160_spill] sm:$0xff] }
 0x6bc   :  { %v3148_v29 = vsel %vm189_vm0, %v17294_v30, %v17343_v63  ;;  %v17350_v30 = vld [vmem:[#allocation168_spill] sm:$0xff] }
 0x6bd   :  { %4719 = vrot.lane.b32.xlu1 %v4661_v4, %s8115_s10  ;;  %v13495_v7 = vpop.permute.xlu1 %4841  ;;  %v17333_v4 = vld [vmem:[#allocation38_spill] sm:$0xff]  ;;  %v3459_v28 = vadd.f32 %v3421_v39, %v3319_v54 }
 0x6be   :  { %v3283_v3 = vsel %vm330_vm1, %v17334_v47, %v17333_v4  ;;  %v8025_v4 = vld [vmem:[%s15881_s3 + $0x38] sm:$0xff] }
 0x6bf   :  { %v3321_v1 = vadd.f32 %v3283_v3, %v3181_v22  ;;  %v3599_v54 = vadd.f32 %v3561_v36, %v3459_v28  ;;  %v3046_v47 = vmul.f32 %v8025_v4, %v12977_v40 }
 0x6c1   :  { %4995 = vrot.lane.b32.xlu1 %v4939_v31, %s8117_s14  ;;  %v13515_v50 = vpop.permute.xlu1 %5117  ;;  %v5289_v31 = vsel %vm1176_vm7, %v13115_v27, %v13290_v8  ;;  %v17344_v27 = vld [vmem:[#allocation106_spill] sm:$0xff]  ;;  %v3461_v36 = vadd.f32 %v3423_v43, %v3321_v1  ;;  %v3739_v22 = vadd.f32 %v3701_v41, %v3599_v54  ;;  %v17356_v54 = vld [vmem:[#allocation112_spill] sm:$0xff] }
 0x6c2   :  { %v5149_v39 = vsel %vm1035_vm6, %v12970_v46, %v13515_v50  ;;  %v3563_v14 = vsel %vm612_vm3, %v17345_v51, %v17344_v27  ;;  %v3841_v46 = vsel %vm894_vm5, %v17347_v53, %v17346_v33  ;;  %v17352_v27 = vld [vmem:[#allocation117_spill] sm:$0xff]  ;;  %v17354_v41 = vld [vmem:[#allocation70_spill] sm:$0xff]  ;;  %v17358_v33 = vld [vmem:[#allocation188_spill] sm:$0xff] }
 0x6c3   :  { %v5187_v58 = vadd.f32 %v5149_v39, %v5047_v18  ;;  %v4801_v18 = vmul.f32 %v17326_v55, %v11936_v23  ;;  %v17351_v39 = vld [vmem:[#allocation108_spill] sm:$0xff]  ;;  %v17353_v51 = vld [vmem:[#allocation181_spill] sm:$0xff]  ;;  %v3601_v53 = vadd.f32 %v3563_v14, %v3461_v36  ;;  %v3879_v43 = vadd.f32 %v3841_v46, %v3739_v22  ;;  %v17355_v1 = vld [vmem:[#allocation174_spill] sm:$0xff] }
 0x6c4   :  { %v3703_v4 = vsel %vm753_vm4, %v17351_v39, %v17350_v30  ;;  %v3981_v48 = vsel %vm1035_vm6, %v17353_v51, %v17352_v27  ;;  %v17357_v55 = vld [vmem:[#allocation128_spill] sm:$0xff]  ;;  %v13574_v30 = vpop.permute.xlu0 %4983  ;;  %v17362_v46 = vld [vmem:[#allocation115_spill] sm:$0xff]  ;;  %v17365_v51 = vld [vmem:[#allocation42_spill] sm:$0xff] }
 0x6c5   :  { %v13551_v3 = vadd.f32 %v5289_v31, %v5187_v58  ;;  %5271 = vrot.lane.b32.xlu1 %v5217_v35, %s8119_s17  ;;  %v13554_v28 = vpop.permute.xlu1 %3839  ;;  %v3186_v35 = vadd.f32 %v3148_v29, %v3046_v47  ;;  %v3843_v58 = vsel %vm894_vm5, %v17356_v54, %v17355_v1  ;;  %17359 = vst [vmem:[#allocation47_spill] sm:$0xff] %v13574_v30  ;;  %v13584_v47 = vld [vmem:[%s15881_s3 + $0x120] sm:$0xff]  ;;  %v17364_v22 = vld [vmem:[#allocation183_spill] sm:$0xff] }
 0x6c6   :  { %17349 = vst [vmem:[#allocation92_spill] sm:$0xff] %v13554_v28  ;;  %v4121_v28 = vsel %vm1176_vm7, %v17358_v33, %v17357_v55  ;;  %v3741_v39 = vadd.f32 %v3703_v4, %v3601_v53  ;;  %v4019_v6 = vadd.f32 %v3981_v48, %v3879_v43  ;;  %17361 = vst [vmem:[#allocation166_spill] sm:$0xff] %v13584_v47  ;;  %v17363_v48 = vld [vmem:[#allocation119_spill] sm:$0xff]  ;;  %v17366_v43 = vld [vmem:[#allocation126_spill] sm:$0xff] }
 0x6c7   :  { %17348 = vst [vmem:[#allocation237_spill] sm:$0xff] %v13551_v3  ;;  %v13566_v31 = vmul.f32 %v13551_v3, %v17354_v41  ;;  %v5079_v29 = vmul.f32 %v13584_v47, %v12116_v60  ;;  %v3288_v36 = vsel %vm330_vm1, %v17296_v32, %v17362_v46  ;;  %v4181_v53 = vmul.f32 %v17365_v51, %v13040_v10  ;;  %v17367_v54 = vld [vmem:[#allocation118_spill] sm:$0xff]  ;;  %v17368_v55 = vld [vmem:[#allocation191_spill] sm:$0xff] }
 0x6c8   :  { %v3881_v4 = vadd.f32 %v3843_v58, %v3741_v39  ;;  %v4159_v27 = vadd.f32 %v4121_v28, %v4019_v6  ;;  %v3428_v1 = vsel %vm471_vm2, %v17300_v25, %v17366_v43  ;;  %v4123_v33 = vsel %vm1176_vm7, %v17368_v55, %v17367_v54  ;;  %v17370_v28 = vld [vmem:[#allocation121_spill] sm:$0xff]  ;;  %v17371_v39 = vld [vmem:[#allocation130_spill] sm:$0xff] }
 0x6c9   :  { %4859 = vrot.lane.b32.xlu1 %v4801_v18, %s8116_s12  ;;  %v13577_v14 = vpop.permute.xlu1 %4115  ;;  %5393 = vrot.lane.b32.xlu0 %v13566_v31, %s8121_s26  ;;  %v3983_v18 = vsel %vm1035_vm6, %v17364_v22, %v17363_v48  ;;  %v3326_v41 = vadd.f32 %v3288_v36, %v3186_v35  ;;  %v4802_v6 = vmul.f32 %v17288_v15, %v11936_v23  ;;  %v17372_v48 = vld [vmem:[#allocation205_spill] sm:$0xff]  ;;  %v13613_v22 = vpop.permute.xlu0 %4987  ;;  %v17376_v54 = vld [vmem:[#allocation214_spill] sm:$0xff] }
 0x6ca   :  { %17360 = vst [vmem:[#allocation111_spill] sm:$0xff] %v13577_v14  ;;  %v4021_v47 = vadd.f32 %v3983_v18, %v3881_v4  ;;  %v3568_v58 = vsel %vm612_vm3, %v17303_v49, %v17370_v28  ;;  %v4303_v25 = vsel %vm189_vm0, %v17372_v48, %v17371_v39  ;;  %17373 = vst [vmem:[#allocation177_spill] sm:$0xff] %v13613_v22  ;;  %v17375_v4 = vld [vmem:[#allocation201_spill] sm:$0xff] }
 0x6cb   :  { %v3466_v51 = vadd.f32 %v3428_v1, %v3326_v41  ;;  %v4201_v36 = vadd.f32 %v4181_v53, %v4159_v27  ;;  %v3708_v23 = vsel %vm753_vm4, %v17305_v37, %v17375_v4  ;;  %v17377_v55 = vld [vmem:[#allocation137_spill] sm:$0xff]  ;;  %v5080_v41 = vmul.f32 %v12819_v62, %v12116_v60  ;;  %v17379_v27 = vld [vmem:[#allocation204_spill] sm:$0xff]  ;;  %v17380_v1 = vld [vmem:[#allocation226_spill] sm:$0xff] }
 0x6cc   :  { %v4161_v35 = vadd.f32 %v4123_v33, %v4021_v47  ;;  %v4443_v49 = vsel %vm330_vm1, %v17377_v55, %v17376_v54  ;;  %v17378_v47 = vld [vmem:[#allocation133_spill] sm:$0xff]  ;;  %v17386_v55 = vld [vmem:[#allocation238_spill] sm:$0xff] }
 0x6cd   :  { %5135 = vrot.lane.b32.xlu1 %v5079_v29, %s8118_s16  ;;  %v13603_v32 = vpop.permute.xlu1 %4431  ;;  %v17374_v29 = vld [vmem:[#allocation44_spill] sm:$0xff]  ;;  %v3606_v14 = vadd.f32 %v3568_v58, %v3466_v51  ;;  %v4305_v53 = vsel %vm189_vm0, %v17379_v27, %v17378_v47  ;;  %v17381_v33 = vld [vmem:[#allocation145_spill] sm:$0xff]  ;;  %v17382_v58 = vld [vmem:[#allocation134_spill] sm:$0xff]  ;;  %v13643_v47 = vpop.permute.xlu0 %4299 }
 0x6ce   :  { %17369 = vst [vmem:[#allocation40_spill] sm:$0xff] %v13603_v32  ;;  %v4183_v18 = vmul.f32 %v17374_v29, %v13040_v10  ;;  %v4341_v32 = vadd.f32 %v4303_v25, %v4201_v36  ;;  %v4583_v37 = vsel %vm471_vm2, %v17381_v33, %v17380_v1  ;;  %v17383_v25 = vld [vmem:[#allocation217_spill] sm:$0xff]  ;;  %v17384_v51 = vld [vmem:[#allocation139_spill] sm:$0xff]  ;;  %17387 = vst [vmem:[#allocation189_spill] sm:$0xff] %v13643_v47 }
 0x6cf   :  { %v3746_v48 = vadd.f32 %v3708_v23, %v3606_v14  ;;  %v4445_v36 = vsel %vm330_vm1, %v17384_v51, %v17383_v25  ;;  %v17385_v60 = vld [vmem:[#allocation153_spill] sm:$0xff] }
 0x6d0   :  { %v4203_v29 = vadd.f32 %v4183_v18, %v4161_v35  ;;  %v4481_v54 = vadd.f32 %v4443_v49, %v4341_v32  ;;  %v4723_v19 = vsel %vm612_vm3, %v17386_v55, %v17385_v60  ;;  %v4942_v32 = vmul.f32 %v17288_v15, %v12015_v16  ;;  %v17388_v18 = vld [vmem:[#allocation143_spill] sm:$0xff]  ;;  %v17389_v49 = vld [vmem:[#allocation229_spill] sm:$0xff]  ;;  %v8028_v16 = vld [vmem:[%s15881_s3 + $0x40] sm:$0xff] }
 0x6d1   :  { %4861 = vrot.lane.b32.xlu1 %v4802_v6, %s8116_s12  ;;  %v13624_v39 = vpop.permute.xlu1 %4703  ;;  %v3848_v6 = vsel %vm894_vm5, %v17308_v61, %v17382_v58  ;;  %v8027_v61 = vld [vmem:[%s15881_s3 + $0x48] sm:$0xff]  ;;  %v3988_v23 = vsel %vm1035_vm6, %v17310_v0, %v17388_v18  ;;  %v17392_v33 = vld [vmem:[#allocation169_spill] sm:$0xff]  ;;  %v3047_v15 = vmul.f32 %v8028_v16, %v12977_v40  ;;  %v17394_v60 = vld [vmem:[#allocation234_spill] sm:$0xff] }
 0x6d2   :  { %v4343_v27 = vadd.f32 %v4305_v53, %v4203_v29  ;;  %v4621_v22 = vadd.f32 %v4583_v37, %v4481_v54  ;;  %v3048_v35 = vmul.f32 %v8027_v61, %v12977_v40  ;;  %v17390_v53 = vld [vmem:[#allocation144_spill] sm:$0xff]  ;;  %v3886_v29 = vadd.f32 %v3848_v6, %v3746_v48  ;;  %v17393_v51 = vld [vmem:[#allocation149_spill] sm:$0xff]  ;;  %v17395_v61 = vld [vmem:[#allocation155_spill] sm:$0xff] }
 0x6d3   :  { %v4585_v1 = vsel %vm471_vm2, %v17390_v53, %v17389_v49  ;;  %v3149_v0 = vsel %vm189_vm0, %v17343_v63, %v17393_v51  ;;  %v4128_v55 = vsel %vm1176_vm7, %v17311_v34, %v17394_v60  ;;  %v17396_v49 = vld [vmem:[#allocation19_spill] sm:$0xff]  ;;  %v5220_v63 = vmul.f32 %v12819_v62, %v12213_v52 }
 0x6d4   :  { %v4483_v54 = vadd.f32 %v4445_v36, %v4343_v27  ;;  %v4761_v25 = vadd.f32 %v4723_v19, %v4621_v22  ;;  %v4725_v53 = vsel %vm612_vm3, %v17396_v49, %v17395_v61  ;;  %v4026_v16 = vadd.f32 %v3988_v23, %v3886_v29  ;;  %v17399_v22 = vld [vmem:[#allocation27_spill] sm:$0xff]  ;;  %v17400_v36 = vld [vmem:[#allocation170_spill] sm:$0xff]  ;;  %v17403_v23 = vld [vmem:[#allocation216_spill] sm:$0xff] }
 0x6d5   :  { %5137 = vrot.lane.b32.xlu1 %v5080_v41, %s8118_s16  ;;  %v13646_v14 = vpop.permute.xlu1 %4707  ;;  %v17391_v41 = vld [vmem:[#allocation48_spill] sm:$0xff]  ;;  %v3188_v34 = vadd.f32 %v17393_v51, %v3048_v35  ;;  %v4865_v27 = vsel %vm753_vm4, %v17400_v36, %v17399_v22  ;;  %v17401_v61 = vld [vmem:[#allocation51_spill] sm:$0xff]  ;;  %v17406_v51 = vld [vmem:[#allocation41_spill] sm:$0xff] }
 0x6d6   :  { %v4863_v37 = vsel %vm753_vm4, %v17392_v33, %v17391_v41  ;;  %v17397_v41 = vld [vmem:[#allocation52_spill] sm:$0xff]  ;;  %v17398_v33 = vld [vmem:[#allocation190_spill] sm:$0xff]  ;;  %v4623_v48 = vadd.f32 %v4585_v1, %v4483_v54  ;;  %v4188_v49 = vmul.f32 %v17401_v61, %v13040_v10  ;;  %v4166_v62 = vadd.f32 %v4128_v55, %v4026_v16  ;;  %v17408_v36 = vld [vmem:[#allocation239_spill] sm:$0xff] }
 0x6d7   :  { %v5003_v47 = vsel %vm894_vm5, %v17398_v33, %v17397_v41  ;;  %v4901_v6 = vadd.f32 %v4863_v37, %v4761_v25  ;;  %v17402_v41 = vld [vmem:[#allocation244_spill] sm:$0xff]  ;;  %v13693_v37 = vpop.permute.xlu0 %4575  ;;  %v3187_v25 = vadd.f32 %v3149_v0, %v3047_v15  ;;  %v17412_v0 = vld [vmem:[#allocation193_spill] sm:$0xff] }
 0x6d8   :  { %v5143_v1 = vsel %vm1035_vm6, %v17403_v23, %v17402_v41  ;;  %17404 = vst [vmem:[#allocation184_spill] sm:$0xff] %v13693_v37  ;;  %v4763_v54 = vadd.f32 %v4725_v53, %v4623_v48  ;;  %v17407_v33 = vld [vmem:[#allocation192_spill] sm:$0xff]  ;;  %v3429_v55 = vsel %vm471_vm2, %v17366_v43, %v17412_v0  ;;  %v17413_v53 = vld [vmem:[#allocation37_spill] sm:$0xff]  ;;  %v17414_v48 = vld [vmem:[#allocation219_spill] sm:$0xff] }
 0x6d9   :  { %5001 = vrot.lane.b32.xlu1 %v4942_v32, %s8117_s14  ;;  %v13680_v19 = vpop.permute.xlu1 %5119  ;;  %v17405_v32 = vld [vmem:[#allocation185_spill] sm:$0xff]  ;;  %v5041_v35 = vadd.f32 %v5003_v47, %v4901_v6  ;;  %v5005_v22 = vsel %vm894_vm5, %v17407_v33, %v17406_v51  ;;  %v17409_v61 = vld [vmem:[#allocation88_spill] sm:$0xff]  ;;  %v4310_v16 = vsel %vm189_vm0, %v17321_v57, %v17413_v53  ;;  %v5145_v6 = vsel %vm1035_vm6, %v17414_v48, %v12997_v42  ;;  %v17417_v43 = vld [vmem:[#allocation103_spill] sm:$0xff] }
 0x6da   :  { %v3289_v29 = vsel %vm330_vm1, %v17362_v46, %v17405_v32  ;;  %v5283_v30 = vsel %vm1176_vm7, %v17409_v61, %v17408_v36  ;;  %v3328_v41 = vadd.f32 %v17405_v32, %v3188_v34  ;;  %v4903_v23 = vadd.f32 %v4865_v27, %v4763_v54  ;;  %v13711_v46 = vld [vmem:[%s15881_s3 + $0x130] sm:$0xff]  ;;  %v17423_v33 = vld [vmem:[#allocation211_spill] sm:$0xff] }
 0x6db   :  { %v5181_v37 = vadd.f32 %v5143_v1, %v5041_v35  ;;  %17411 = vst [vmem:[#allocation195_spill] sm:$0xff] %v13711_v46  ;;  %v5221_v47 = vmul.f32 %v13711_v46, %v12213_v52  ;;  %v3327_v15 = vadd.f32 %v3289_v29, %v3187_v25  ;;  %v4208_v34 = vadd.f32 %v4188_v49, %v4166_v62  ;;  %v17416_v52 = vld [vmem:[#allocation242_spill] sm:$0xff]  ;;  %v13733_v54 = vpop.permute.xlu0 %4851  ;;  %v17424_v36 = vld [vmem:[#allocation231_spill] sm:$0xff] }
 0x6dc   :  { %v5043_v27 = vadd.f32 %v5005_v22, %v4903_v23  ;;  %v4450_v32 = vsel %vm330_vm1, %v17322_v21, %v17416_v52  ;;  %v5285_v29 = vsel %vm1176_vm7, %v17417_v43, %v17278_v38  ;;  %17418 = vst [vmem:[#allocation125_spill] sm:$0xff] %v13733_v54  ;;  %v17420_v49 = vld [vmem:[#allocation122_spill] sm:$0xff]  ;;  %v3709_v22 = vsel %vm753_vm4, %v17375_v4, %v17423_v33 }
 0x6dd   :  { %5277 = vrot.lane.b32.xlu1 %v5220_v63, %s8119_s17  ;;  %v13706_v56 = vpop.permute.xlu1 %3979  ;;  %v3468_v63 = vadd.f32 %v17412_v0, %v3328_v41  ;;  %v13725_v1 = vadd.f32 %v5283_v30, %v5181_v37  ;;  %v3467_v57 = vadd.f32 %v3429_v55, %v3327_v15  ;;  %v4348_v35 = vadd.f32 %v4310_v16, %v4208_v34  ;;  %v17421_v62 = vld [vmem:[#allocation58_spill] sm:$0xff]  ;;  %v17427_v0 = vld [vmem:[#allocation157_spill] sm:$0xff] }
 0x6de   :  { %17410 = vst [vmem:[#allocation212_spill] sm:$0xff] %v13706_v56  ;;  %v5183_v25 = vadd.f32 %v5145_v6, %v5043_v27  ;;  %v3569_v30 = vsel %vm612_vm3, %v17370_v28, %v17420_v49  ;;  %v4590_v61 = vsel %vm471_vm2, %v17324_v9, %v17424_v36  ;;  %v4730_v55 = vsel %vm612_vm3, %v13058_v45, %v17427_v0  ;;  %v17428_v6 = vld [vmem:[#allocation62_spill] sm:$0xff]  ;;  %v17430_v45 = vld [vmem:[#allocation243_spill] sm:$0xff]  ;;  %v17494_v56 = vld [vmem:[#allocation240_spill] sm:$0xff] }
 0x6df   :  { %17415 = vst [vmem:[#allocation232_spill] sm:$0xff] %v13725_v1  ;;  %v3608_v37 = vadd.f32 %v17420_v49, %v3468_v63  ;;  %v4488_v21 = vadd.f32 %v4450_v32, %v4348_v35  ;;  %v5341_v51 = vmul.f32 %v13725_v1, %v17421_v62  ;;  %v3607_v41 = vadd.f32 %v3569_v30, %v3467_v57  ;;  %v13762_v4 = vpop.permute.xlu0 %5123 }
 0x6e0   :  { %v13744_v38 = vadd.f32 %v5285_v29, %v5183_v25  ;;  %v4870_v29 = vsel %vm753_vm4, %v17329_v17, %v17430_v45  ;;  %v17431_v25 = vld [vmem:[#allocation45_spill] sm:$0xff] }
 0x6e1   :  { %5279 = vrot.lane.b32.xlu1 %v5221_v47, %s8119_s17  ;;  %v13736_v42 = vpop.permute.xlu1 %4295  ;;  %v3748_v23 = vadd.f32 %v17423_v33, %v3608_v37  ;;  %v17426_v47 = vld [vmem:[#allocation223_spill] sm:$0xff]  ;;  %v3747_v16 = vadd.f32 %v3709_v22, %v3607_v41  ;;  %v4628_v48 = vadd.f32 %v4590_v61, %v4488_v21  ;;  %v5484_v35 = vmul.f32 %v5341_v51, %v13725_v1 }
 0x6e2   :  { %17419 = vst [vmem:[#allocation28_spill] sm:$0xff] %v13736_v42  ;;  %17422 = vst [vmem:[#allocation213_spill] sm:$0xff] %v13744_v38  ;;  %v3849_v15 = vsel %vm894_vm5, %v17382_v58, %v17426_v47  ;;  %v5343_v63 = vmul.f32 %v13744_v38, %v17428_v6  ;;  %v17429_v58 = vld [vmem:[#allocation35_spill] sm:$0xff]  ;;  %v4129_v49 = vsel %vm1176_vm7, %v17394_v60, %v17431_v25 }
 0x6e3   :  { %v3888_v9 = vadd.f32 %v17426_v47, %v3748_v23  ;;  %v3887_v34 = vadd.f32 %v3849_v15, %v3747_v16  ;;  %v4768_v27 = vadd.f32 %v4730_v55, %v4628_v48  ;;  %v3989_v43 = vsel %vm1035_vm6, %v17388_v18, %v17429_v58  ;;  %v13781_v30 = vpop.permute.xlu0 %5127  ;;  %v17432_v37 = vld [vmem:[#allocation91_spill] sm:$0xff]  ;;  %v17434_v48 = vld [vmem:[#allocation209_spill] sm:$0xff] }
 0x6e4   :  { %v5010_v21 = vsel %vm894_vm5, %v13383_v26, %v17432_v37  ;;  %v17433_v18 = vld [vmem:[#allocation215_spill] sm:$0xff]  ;;  %v5150_v60 = vsel %vm1035_vm6, %v13515_v50, %v13680_v19  ;;  %v8030_v26 = vld [vmem:[%s15881_s3 + $0xe0] sm:$0xff]  ;;  %v5486_v15 = vmul.f32 %v5343_v63, %v13744_v38  ;;  %v17471_v38 = vld [vmem:[#allocation141_spill] sm:$0xff] }
 0x6e5   :  { %v13753_v28 = vpop.permute.xlu1 %4571  ;;  %5381 = vrot.lane.b32.xlu1 %v5341_v51, %s8121_s26  ;;  %v4028_v57 = vadd.f32 %v17429_v58, %v3888_v9  ;;  %v4190_v33 = vmul.f32 %v17433_v18, %v13040_v10  ;;  %v4027_v22 = vadd.f32 %v3989_v43, %v3887_v34  ;;  %v4908_v61 = vadd.f32 %v4870_v29, %v4768_v27  ;;  %v17437_v29 = vld [vmem:[#allocation107_spill] sm:$0xff] }
 0x6e6   :  { %17425 = vst [vmem:[#allocation225_spill] sm:$0xff] %v13753_v28  ;;  %v4189_v23 = vmul.f32 %v8030_v26, %v13040_v10  ;;  %v4311_v34 = vsel %vm189_vm0, %v17413_v53, %v17434_v48  ;;  %v17441_v53 = vld [vmem:[#allocation73_spill] sm:$0xff]  ;;  %v4731_v26 = vsel %vm612_vm3, %v17427_v0, %v13364_v24  ;;  %v17517_v28 = vld [vmem:[#allocation23_spill] sm:$0xff] }
 0x6e7   :  { %v4168_v17 = vadd.f32 %v17431_v25, %v4028_v57  ;;  %v4167_v51 = vadd.f32 %v4129_v49, %v4027_v22  ;;  %v5048_v47 = vadd.f32 %v5010_v21, %v4908_v61  ;;  %v13804_v50 = vpop.permute.xlu0 %4439  ;;  %v17438_v57 = vld [vmem:[#allocation24_spill] sm:$0xff]  ;;  %v17442_v61 = vld [vmem:[#allocation46_spill] sm:$0xff] }
 0x6e8   :  { %17435 = vst [vmem:[#allocation29_spill] sm:$0xff] %v13804_v50  ;;  %v17487_v50 = vld [vmem:[#allocation218_spill] sm:$0xff] }
 0x6e9   :  { %v13767_v32 = vpop.permute.xlu1 %4843  ;;  %5385 = vrot.lane.b32.xlu1 %v5343_v63, %s8121_s26  ;;  %v4210_v55 = vadd.f32 %v4190_v33, %v4168_v17  ;;  %v5188_v16 = vadd.f32 %v5150_v60, %v5048_v47  ;;  %v4209_v58 = vadd.f32 %v4189_v23, %v4167_v51  ;;  %v5487_v63 = vmul.f32 %v17438_v57, %v17437_v29 }
 0x6ea   :  { %v5488_v17 = vmul.f32 %v13422_v11, %v13411_v12  ;;  %v5489_v11 = vmul.f32 %v13435_v2, %v13415_v5  ;;  %v17447_v2 = vld [vmem:[#allocation171_spill] sm:$0xff]  ;;  %v17468_v12 = vld [vmem:[#allocation140_spill] sm:$0xff]  ;;  %v17470_v5 = vld [vmem:[#allocation221_spill] sm:$0xff] }
 0x6eb   :  { %v4349_v49 = vadd.f32 %v4311_v34, %v4209_v58  ;;  %v4350_v21 = vadd.f32 %v17434_v48, %v4210_v55  ;;  %v13828_v60 = vpop.permute.xlu0 %4715  ;;  %v5011_v58 = vsel %vm894_vm5, %v17432_v37, %v17447_v2  ;;  %v5151_v37 = vsel %vm1035_vm6, %v13680_v19, %v13428_v20 }
 0x6ec   :  { %17443 = vst [vmem:[#allocation210_spill] sm:$0xff] %v13828_v60  ;;  %v3570_v1 = vsel %vm612_vm3, %v17471_v38, %v17470_v5 }
 0x6ed   :  { %v13789_v41 = vpop.permute.xlu1 %4847  ;;  %5524 = vrot.lane.b32.xlu1 %v5484_v35, %s8121_s26  ;;  %v17439_v35 = vld [vmem:[#allocation252_spill] sm:$0xff] }
 0x6ee   :  { %v4451_v25 = vsel %vm330_vm1, %v17416_v52, %v17439_v35  ;;  %v4490_v22 = vadd.f32 %v17439_v35, %v4350_v21  ;;  %v4591_v52 = vsel %vm471_vm2, %v17424_v36, %v17442_v61  ;;  %v4871_v36 = vsel %vm753_vm4, %v17430_v45, %v13495_v7  ;;  %v17449_v35 = vld [vmem:[#allocation94_spill] sm:$0xff] }
 0x6ef   :  { %v4489_v33 = vadd.f32 %v4451_v25, %v4349_v49  ;;  %v13846_v48 = vpop.permute.xlu0 %4991 }
 0x6f0   :  { %v4630_v47 = vadd.f32 %v17442_v61, %v4490_v22  ;;  %17446 = vst [vmem:[#allocation101_spill] sm:$0xff] %v13846_v48  ;;  %v17450_v22 = vld [vmem:[#allocation97_spill] sm:$0xff]  ;;  %v8033_v61 = vld [vmem:[%s15881_s3 + $0x60] sm:$0xff] }
 0x6f1   :  { %v5260_v9 = vpop.permute.xlu1 %5259  ;;  %5528 = vrot.lane.b32.xlu1 %v5486_v15, %s8121_s26  ;;  %v4629_v23 = vadd.f32 %v4591_v52, %v4489_v33  ;;  %v3051_v52 = vmul.f32 %v8033_v61, %v12977_v40 }
 0x6f2   :  { %v5290_v27 = vsel %vm1176_vm7, %v13290_v8, %v5260_v9  ;;  %v4770_v55 = vadd.f32 %v13364_v24, %v4630_v47  ;;  %v8031_v24 = vld [vmem:[%s15881_s3 + $0x50] sm:$0xff] }
 0x6f3   :  { %v13808_v43 = vadd.f32 %v5290_v27, %v5188_v16  ;;  %v4769_v15 = vadd.f32 %v4731_v26, %v4629_v23  ;;  %v5490_v27 = vmul.f32 %v13566_v31, %v13551_v3  ;;  %v3049_v57 = vmul.f32 %v8031_v24, %v12977_v40  ;;  %v13880_v19 = vpop.permute.xlu0 %5263  ;;  %v17451_v26 = vld [vmem:[#allocation99_spill] sm:$0xff]  ;;  %v17469_v3 = vld [vmem:[#allocation156_spill] sm:$0xff] }
 0x6f4   :  { %v4910_v34 = vadd.f32 %v13495_v7, %v4770_v55  ;;  %v8032_v7 = vld [vmem:[%s15881_s3 + $0x58] sm:$0xff]  ;;  %v3152_v23 = vsel %vm189_vm0, %v17450_v22, %v17451_v26 }
 0x6f5   :  { %17436 = vst [vmem:[#allocation165_spill] sm:$0xff] %v13808_v43  ;;  %v13816_v18 = vpop.permute.xlu1 %4297  ;;  %5530 = vrot.lane.b32.xlu1 %v5487_v63, %s8121_s26  ;;  %v5348_v8 = vmul.f32 %v13808_v43, %v17441_v53  ;;  %v4909_v0 = vadd.f32 %v4871_v36, %v4769_v15  ;;  %v3050_v31 = vmul.f32 %v8032_v7, %v12977_v40  ;;  %v17448_v63 = vld [vmem:[#allocation96_spill] sm:$0xff]  ;;  %v17477_v53 = vld [vmem:[#allocation235_spill] sm:$0xff] }
 0x6f6   :  { %17440 = vst [vmem:[#allocation186_spill] sm:$0xff] %v13816_v18  ;;  %v3150_v25 = vsel %vm189_vm0, %v17449_v35, %v17448_v63  ;;  %v5050_v49 = vadd.f32 %v17447_v2, %v4910_v34  ;;  %v8034_v36 = vld [vmem:[%s15881_s3 + $0x70] sm:$0xff]  ;;  %v17452_v34 = vld [vmem:[#allocation98_spill] sm:$0xff]  ;;  %v3191_v7 = vadd.f32 %v3152_v23, %v3051_v52  ;;  %v17456_v35 = vld [vmem:[#allocation197_spill] sm:$0xff] }
 0x6f7   :  { %5395 = vrot.lane.b32.xlu0 %v5348_v8, %s8121_s26  ;;  %v5049_v21 = vadd.f32 %v5011_v58, %v4909_v0  ;;  %v5491_v33 = vmul.f32 %v5348_v8, %v13808_v43  ;;  %v3189_v8 = vadd.f32 %v3150_v25, %v3049_v57  ;;  %v3053_v15 = vmul.f32 %v8034_v36, %v12977_v40  ;;  %v8035_v57 = vld [vmem:[%s15881_s3 + $0x68] sm:$0xff]  ;;  %v17462_v52 = vld [vmem:[#allocation76_spill] sm:$0xff]  ;;  %v17463_v36 = vld [vmem:[#allocation150_spill] sm:$0xff] }
 0x6f8   :  { %v5190_v58 = vadd.f32 %v13428_v20, %v5050_v49  ;;  %v8036_v49 = vld [vmem:[%s15881_s3 + $0x78] sm:$0xff]  ;;  %v17466_v43 = vld [vmem:[#allocation135_spill] sm:$0xff]  ;;  %v17490_v18 = vld [vmem:[#allocation182_spill] sm:$0xff] }
 0x6f9   :  { %v13830_v51 = vpop.permute.xlu1 %4573  ;;  %5532 = vrot.lane.b32.xlu1 %v5488_v17, %s8121_s26  ;;  %v3151_v17 = vsel %vm189_vm0, %v17448_v63, %v17450_v22  ;;  %v5189_v47 = vadd.f32 %v5151_v37, %v5049_v21  ;;  %v3052_v37 = vmul.f32 %v8035_v57, %v12977_v40  ;;  %v17455_v63 = vld [vmem:[#allocation123_spill] sm:$0xff]  ;;  %v17458_v21 = vld [vmem:[#allocation146_spill] sm:$0xff]  ;;  %v3054_v22 = vmul.f32 %v8036_v49, %v12977_v40  ;;  %v17464_v57 = vld [vmem:[#allocation208_spill] sm:$0xff] }
 0x6fa   :  { %17444 = vst [vmem:[#allocation230_spill] sm:$0xff] %v13830_v51  ;;  %v3190_v0 = vadd.f32 %v3151_v17, %v3050_v31  ;;  %v17457_v31 = vld [vmem:[#allocation198_spill] sm:$0xff]  ;;  %v3431_v49 = vsel %vm471_vm2, %v17464_v57, %v17466_v43 }
 0x6fb   :  { %v3291_v25 = vsel %vm330_vm1, %v17455_v63, %v17457_v31 }
 0x6fd   :  { %v13843_v16 = vpop.permute.xlu1 %4849  ;;  %5534 = vrot.lane.b32.xlu1 %v5489_v11, %s8121_s26 }
 0x6fe   :  { %17445 = vst [vmem:[#allocation87_spill] sm:$0xff] %v13843_v16 }
 0x701   :  { %v13854_v45 = vpop.permute.xlu1 %4985  ;;  %5536 = vrot.lane.b32.xlu1 %v5490_v27, %s8121_s26  ;;  %v17453_v27 = vld [vmem:[#allocation151_spill] sm:$0xff] }
 0x702   :  { %v3154_v2 = vsel %vm189_vm0, %v17453_v27, %v17452_v34 }
 0x705   :  { %v5262_v11 = vpop.permute.xlu1 %5261  ;;  %5538 = vrot.lane.b32.xlu1 %v5491_v33, %s8121_s26  ;;  %v17459_v33 = vld [vmem:[#allocation138_spill] sm:$0xff] }
 0x706   :  { %v5291_v55 = vsel %vm1176_vm7, %v5260_v9, %v5262_v11  ;;  %v3290_v9 = vsel %vm330_vm1, %v17456_v35, %v17455_v63  ;;  %v3294_v20 = vsel %vm330_vm1, %v17459_v33, %v17458_v21  ;;  %v13914_v17 = vadd.f32 %v5262_v11, %v5190_v58  ;;  %v17465_v63 = vld [vmem:[#allocation132_spill] sm:$0xff]  ;;  %v13929_v11 = vpop.permute.xlu0 %5267 }
 0x707   :  { %v13895_v24 = vadd.f32 %v5291_v55, %v5189_v47  ;;  %v3193_v47 = vadd.f32 %v3154_v2, %v3053_v15  ;;  %v3155_v55 = vsel %vm189_vm0, %v17452_v34, %v17463_v36  ;;  %v3430_v35 = vsel %vm471_vm2, %v17465_v63, %v17464_v57  ;;  %v17467_v2 = vld [vmem:[#allocation147_spill] sm:$0xff] }
 0x708   :  { %17460 = vst [vmem:[#allocation89_spill] sm:$0xff] %v13914_v17  ;;  %v3153_v58 = vsel %vm189_vm0, %v17451_v26, %v17453_v27  ;;  %v3329_v29 = vadd.f32 %v3290_v9, %v3189_v8  ;;  %v3330_v15 = vadd.f32 %v3291_v25, %v3190_v0  ;;  %v13939_v63 = vsel %vm612_vm3, %v17468_v12, %v17467_v2  ;;  %v17473_v25 = vld [vmem:[#allocation74_spill] sm:$0xff] }
 0x709   :  { %17454 = vst [vmem:[#allocation26_spill] sm:$0xff] %v13895_v24  ;;  %v13916_v61 = vpop.permute.xlu1 %4437  ;;  %v5349_v23 = vmul.f32 %v13895_v24, %v17462_v52  ;;  %v3295_v57 = vsel %vm330_vm1, %v17458_v21, %v17469_v3  ;;  %v3571_v26 = vsel %vm612_vm3, %v17470_v5, %v17468_v12  ;;  %v3194_v8 = vadd.f32 %v3155_v55, %v3054_v22  ;;  %v17476_v52 = vld [vmem:[#allocation233_spill] sm:$0xff] }
 0x70a   :  { %17461 = vst [vmem:[#allocation152_spill] sm:$0xff] %v13916_v61  ;;  %v3469_v0 = vadd.f32 %v3430_v35, %v3329_v29  ;;  %v3470_v27 = vadd.f32 %v3431_v49, %v3330_v15  ;;  %v3192_v21 = vadd.f32 %v3153_v58, %v3052_v37  ;;  %v13963_v5 = vadd.f32 %v3294_v20, %v3193_v47  ;;  %v8037_v22 = vld [vmem:[%s15881_s3 + $0x98] sm:$0xff]  ;;  %v17479_v47 = vld [vmem:[#allocation22_spill] sm:$0xff]  ;;  %v17489_v61 = vld [vmem:[#allocation180_spill] sm:$0xff] }
 0x70b   :  { %5397 = vrot.lane.b32.xlu0 %v5349_v23, %s8121_s26  ;;  %v5492_v34 = vmul.f32 %v5349_v23, %v13895_v24  ;;  %v13955_v23 = vmul.f32 %v13914_v17, %v17473_v25  ;;  %v17475_v24 = vld [vmem:[#allocation148_spill] sm:$0xff]  ;;  %v13965_v29 = vadd.f32 %v3295_v57, %v3194_v8  ;;  %v3058_v55 = vmul.f32 %v8037_v22, %v12977_v40  ;;  %v17480_v58 = vld [vmem:[#allocation161_spill] sm:$0xff]  ;;  %v13986_v57 = vpop.permute.xlu0 %4579 }
 0x70c   :  { %v3710_v38 = vsel %vm753_vm4, %v17476_v52, %v17475_v24  ;;  %v3711_v12 = vsel %vm753_vm4, %v17475_v24, %v17477_v53  ;;  %v3609_v35 = vadd.f32 %v3570_v1, %v3469_v0  ;;  %v3610_v37 = vadd.f32 %v3571_v26, %v3470_v27  ;;  %v17478_v52 = vld [vmem:[#allocation207_spill] sm:$0xff]  ;;  %v8038_v24 = vld [vmem:[%s15881_s3 + $0x90] sm:$0xff]  ;;  %17482 = vst [vmem:[#allocation104_spill] sm:$0xff] %v13986_v57  ;;  %v17488_v57 = vld [vmem:[#allocation33_spill] sm:$0xff] }
 0x70d   :  { %v13950_v9 = vpop.permute.xlu1 %4713  ;;  %5540 = vrot.lane.b32.xlu1 %v5492_v34, %s8121_s26  ;;  %17474 = vst [vmem:[#allocation100_spill] sm:$0xff] %v13955_v23  ;;  %v3292_v49 = vsel %vm330_vm1, %v17457_v31, %v17478_v52  ;;  %v3057_v20 = vmul.f32 %v8038_v24, %v12977_v40  ;;  %v3850_v15 = vsel %vm894_vm5, %v17480_v58, %v17479_v47  ;;  %v17481_v34 = vld [vmem:[#allocation163_spill] sm:$0xff]  ;;  %v17484_v8 = vld [vmem:[#allocation196_spill] sm:$0xff] }
 0x70e   :  { %17472 = vst [vmem:[#allocation38_spill] sm:$0xff] %v13950_v9  ;;  %v3851_v1 = vsel %vm894_vm5, %v17479_v47, %v17481_v34  ;;  %v17483_v26 = vld [vmem:[#allocation159_spill] sm:$0xff]  ;;  %v17485_v0 = vld [vmem:[#allocation172_spill] sm:$0xff]  ;;  %v3749_v22 = vadd.f32 %v3710_v38, %v3609_v35  ;;  %v3750_v24 = vadd.f32 %v3711_v12, %v3610_v37  ;;  %v3293_v58 = vsel %vm330_vm1, %v17478_v52, %v17459_v33  ;;  %v17515_v9 = vld [vmem:[#allocation17_spill] sm:$0xff] }
 0x70f   :  { %5399 = vrot.lane.b32.xlu0 %v13955_v23, %s8121_s26  ;;  %v3573_v31 = vsel %vm612_vm3, %v17467_v2, %v17483_v26  ;;  %v3158_v27 = vsel %vm189_vm0, %v17485_v0, %v17484_v8  ;;  %v3432_v47 = vsel %vm471_vm2, %v17466_v43, %v17487_v50  ;;  %v3990_v2 = vsel %vm1035_vm6, %v17489_v61, %v17488_v57  ;;  %v17492_v33 = vld [vmem:[#allocation228_spill] sm:$0xff]  ;;  %v17493_v43 = vld [vmem:[#allocation206_spill] sm:$0xff]  ;;  %v17495_v61 = vld [vmem:[#allocation241_spill] sm:$0xff] }
 0x710   :  { %v3991_v46 = vsel %vm1035_vm6, %v17488_v57, %v17490_v18  ;;  %v3331_v38 = vadd.f32 %v3292_v49, %v3191_v7  ;;  %v3198_v12 = vadd.f32 %v17484_v8, %v3058_v55  ;;  %v3889_v35 = vadd.f32 %v3850_v15, %v3749_v22  ;;  %v17522_v17 = vld [vmem:[#allocation32_spill] sm:$0xff] }
 0x711   :  { %v13994_v25 = vpop.permute.xlu1 %4989  ;;  %v3890_v37 = vadd.f32 %v3851_v1, %v3750_v24  ;;  %v14009_v60 = vadd.f32 %v3158_v27, %v3057_v20  ;;  %v3433_v52 = vsel %vm471_vm2, %v17487_v50, %v17492_v33  ;;  %v4130_v48 = vsel %vm1176_vm7, %v17494_v56, %v17493_v43  ;;  %v17496_v20 = vld [vmem:[#allocation199_spill] sm:$0xff]  ;;  %v17497_v1 = vld [vmem:[#allocation176_spill] sm:$0xff]  ;;  %v8039_v50 = vld [vmem:[%s15881_s3 + $0x80] sm:$0xff]  ;;  %v14039_v24 = vpop.permute.xlu0 %4855 }
 0x712   :  { %17486 = vst [vmem:[#allocation158_spill] sm:$0xff] %v13994_v25  ;;  %v4131_v42 = vsel %vm1176_vm7, %v17493_v43, %v17495_v61  ;;  %v3332_v57 = vadd.f32 %v3293_v58, %v3192_v21  ;;  %v3471_v7 = vadd.f32 %v3432_v47, %v3331_v38  ;;  %v4029_v49 = vadd.f32 %v3990_v2, %v3889_v35  ;;  %v8040_v21 = vld [vmem:[%s15881_s3 + $0x88] sm:$0xff]  ;;  %v17499_v35 = vld [vmem:[#allocation200_spill] sm:$0xff] }
 0x713   :  { %17491 = vst [vmem:[#allocation102_spill] sm:$0xff] %v14009_v60  ;;  %v4030_v55 = vadd.f32 %v3991_v46, %v3890_v37  ;;  %v14025_v8 = vsel %vm471_vm2, %v17497_v1, %v17496_v20  ;;  %v3055_v56 = vmul.f32 %v8039_v50, %v12977_v40  ;;  %v3056_v27 = vmul.f32 %v8040_v21, %v12977_v40  ;;  %v8041_v46 = vld [vmem:[%s15881_s3 + $0xf0] sm:$0xff]  ;;  %v17500_v37 = vld [vmem:[#allocation179_spill] sm:$0xff]  ;;  %v17501_v40 = vld [vmem:[#allocation202_spill] sm:$0xff] }
 0x714   :  { %v4191_v22 = vmul.f32 %v8041_v46, %v13040_v10  ;;  %17498 = vst [vmem:[#allocation154_spill] sm:$0xff] %v14039_v24  ;;  %v3472_v58 = vadd.f32 %v3433_v52, %v3332_v57  ;;  %v4169_v47 = vadd.f32 %v4130_v48, %v4029_v49  ;;  %v4192_v38 = vmul.f32 %v13286_v59, %v13040_v10  ;;  %v17502_v21 = vld [vmem:[#allocation220_spill] sm:$0xff]  ;;  %v17504_v46 = vld [vmem:[#allocation13_spill] sm:$0xff]  ;;  %v17505_v24 = vld [vmem:[#allocation222_spill] sm:$0xff] }
 0x715   :  { %v14020_v15 = vpop.permute.xlu1 %5125  ;;  %v4170_v2 = vadd.f32 %v4131_v42, %v4030_v55  ;;  %v14046_v43 = vsel %vm753_vm4, %v17500_v37, %v17499_v35  ;;  %v3992_v50 = vsel %vm1035_vm6, %v17490_v18, %v17501_v40  ;;  %v14052_v6 = vadd.f32 %v17502_v21, %v3198_v12  ;;  %v17507_v59 = vld [vmem:[#allocation21_spill] sm:$0xff]  ;;  %v17508_v52 = vld [vmem:[#allocation224_spill] sm:$0xff]  ;;  %v17510_v49 = vld [vmem:[#allocation15_spill] sm:$0xff] }
 0x716   :  { %v14057_v48 = vsel %vm612_vm3, %v17505_v24, %v17504_v46  ;;  %v3611_v42 = vadd.f32 %v13939_v63, %v3471_v7  ;;  %v14063_v57 = vsel %vm894_vm5, %v17508_v52, %v17507_v59  ;;  %v17511_v55 = vld [vmem:[#allocation227_spill] sm:$0xff]  ;;  %v8042_v18 = vld [vmem:[%s15881_s3 + $0x100] sm:$0xff]  ;;  %v14084_v51 = vsel %vm612_vm3, %v17504_v46, %v17515_v9  ;;  %v17520_v60 = vld [vmem:[#allocation16_spill] sm:$0xff] }
 0x717   :  { %17503 = vst [vmem:[#allocation167_spill] sm:$0xff] %v14052_v6  ;;  %17506 = vst [vmem:[#allocation109_spill] sm:$0xff] %v14057_v48  ;;  %v14068_v54 = vsel %vm1176_vm7, %v17511_v55, %v17510_v49  ;;  %v14074_v12 = vmul.f32 %v8042_v18, %v13040_v10  ;;  %v17514_v63 = vld [vmem:[#allocation14_spill] sm:$0xff]  ;;  %v3612_v16 = vadd.f32 %v3573_v31, %v3472_v58  ;;  %v17524_v9 = vld [vmem:[#allocation127_spill] sm:$0xff] }
 0x718   :  { %17509 = vst [vmem:[#allocation95_spill] sm:$0xff] %v14063_v57  ;;  %17512 = vst [vmem:[#allocation106_spill] sm:$0xff] %v14068_v54  ;;  %v3712_v7 = vsel %vm753_vm4, %v17477_v53, %v17514_v63  ;;  %v17518_v6 = vld [vmem:[#allocation254_spill] sm:$0xff]  ;;  %v17519_v57 = vld [vmem:[#allocation93_spill] sm:$0xff]  ;;  %v4211_v53 = vadd.f32 %v4191_v22, %v4169_v47  ;;  %v4212_v23 = vadd.f32 %v4192_v38, %v4170_v2 }
 0x719   :  { %v14076_v48 = vpop.permute.xlu1 %4301  ;;  %17516 = vst [vmem:[#allocation175_spill] sm:$0xff] %v14084_v51  ;;  %v4312_v25 = vsel %vm189_vm0, %v17518_v6, %v17517_v28  ;;  %v4313_v18 = vsel %vm189_vm0, %v17517_v28, %v17519_v57  ;;  %v3852_v46 = vsel %vm894_vm5, %v17481_v34, %v17522_v17  ;;  %v17523_v51 = vld [vmem:[#allocation36_spill] sm:$0xff]  ;;  %v17525_v54 = vld [vmem:[#allocation55_spill] sm:$0xff]  ;;  %v17526_v31 = vld [vmem:[#allocation53_spill] sm:$0xff]  ;;  %v3751_v34 = vadd.f32 %v3712_v7, %v3611_v42 }
 0x71a   :  { %17513 = vst [vmem:[#allocation160_spill] sm:$0xff] %v14076_v48  ;;  %v14095_v48 = vsel %vm894_vm5, %v17507_v59, %v17520_v60  ;;  %v14103_v6 = vsel %vm1176_vm7, %v17510_v49, %v17523_v51  ;;  %v4452_v28 = vsel %vm330_vm1, %v17525_v54, %v17524_v9  ;;  %v4453_v58 = vsel %vm330_vm1, %v17524_v9, %v17526_v31  ;;  %v14111_v59 = vpop.permute.xlu0 %5131  ;;  %v17528_v22 = vld [vmem:[#allocation43_spill] sm:$0xff]  ;;  %v17530_v49 = vld [vmem:[#allocation12_spill] sm:$0xff]  ;;  %v17532_v51 = vld [vmem:[#allocation253_spill] sm:$0xff] }
 0x71b   :  { %17521 = vst [vmem:[#allocation113_spill] sm:$0xff] %v14095_v48  ;;  %17527 = vst [vmem:[#allocation168_spill] sm:$0xff] %v14111_v59  ;;  %v3434_v47 = vsel %vm471_vm2, %v17492_v33, %v17528_v22  ;;  %v4351_v2 = vadd.f32 %v4312_v25, %v4211_v53  ;;  %v4352_v38 = vadd.f32 %v4313_v18, %v4212_v23  ;;  %v17531_v9 = vld [vmem:[#allocation251_spill] sm:$0xff]  ;;  %v17533_v25 = vld [vmem:[#allocation30_spill] sm:$0xff] }
 0x71c   :  { %v3156_v48 = vsel %vm189_vm0, %v17463_v36, %v17530_v49  ;;  %v14123_v54 = vmul.f32 %v13458_v13, %v13040_v10  ;;  %v4592_v59 = vsel %vm471_vm2, %v17531_v9, %v13475_v44  ;;  %v4593_v33 = vsel %vm471_vm2, %v13475_v44, %v17532_v51  ;;  %v17534_v53 = vld [vmem:[#allocation162_spill] sm:$0xff] }
 0x71d   :  { %v14116_v60 = vpop.permute.xlu1 %4577  ;;  %v3574_v23 = vsel %vm612_vm3, %v17483_v26, %v17533_v25  ;;  %v3891_v42 = vadd.f32 %v3852_v46, %v3751_v34  ;;  %v4491_v7 = vadd.f32 %v4452_v28, %v4351_v2  ;;  %v4492_v18 = vadd.f32 %v4453_v58, %v4352_v38 }
 0x71e   :  { %17529 = vst [vmem:[#allocation108_spill] sm:$0xff] %v14116_v60  ;;  %v3157_v13 = vsel %vm189_vm0, %v17530_v49, %v17485_v0  ;;  %v3473_v36 = vadd.f32 %v3434_v47, %v13963_v5  ;;  %v4732_v9 = vsel %vm612_vm3, %v13624_v39, %v17534_v53  ;;  %v4733_v44 = vsel %vm612_vm3, %v17534_v53, %v13646_v14  ;;  %v14152_v47 = vpop.permute.xlu0 %4581  ;;  %v17535_v39 = vld [vmem:[#allocation236_spill] sm:$0xff]  ;;  %v17537_v49 = vld [vmem:[#allocation177_spill] sm:$0xff]  ;;  %v17540_v53 = vld [vmem:[#allocation50_spill] sm:$0xff] }
 0x71f   :  { %v3195_v60 = vadd.f32 %v3156_v48, %v3055_v56  ;;  %v3435_v26 = vsel %vm471_vm2, %v17528_v22, %v17497_v1  ;;  %v4631_v46 = vadd.f32 %v4592_v59, %v4491_v7  ;;  %v4632_v28 = vadd.f32 %v4593_v33, %v4492_v18  ;;  %v17538_v33 = vld [vmem:[#allocation56_spill] sm:$0xff]  ;;  %v17539_v18 = vld [vmem:[#allocation49_spill] sm:$0xff] }
 0x720   :  { %v3613_v0 = vadd.f32 %v3574_v23, %v3473_v36  ;;  %v4132_v5 = vsel %vm1176_vm7, %v17495_v61, %v17511_v55  ;;  %v4872_v34 = vsel %vm753_vm4, %v13767_v32, %v17535_v39  ;;  %v4873_v56 = vsel %vm753_vm4, %v17535_v39, %v13789_v41  ;;  %v17536_v55 = vld [vmem:[#allocation47_spill] sm:$0xff] }
 0x721   :  { %v14147_v58 = vpop.permute.xlu1 %4853  ;;  %v3713_v1 = vsel %vm753_vm4, %v17514_v63, %v17500_v37  ;;  %v4031_v48 = vadd.f32 %v3992_v50, %v3891_v42  ;;  %v4771_v59 = vadd.f32 %v4732_v9, %v4631_v46  ;;  %v4772_v22 = vadd.f32 %v4733_v44, %v4632_v28  ;;  %v17542_v44 = vld [vmem:[#allocation250_spill] sm:$0xff] }
 0x722   :  { %v3196_v2 = vadd.f32 %v3157_v13, %v3056_v27  ;;  %v3474_v61 = vadd.f32 %v3435_v26, %v13965_v29  ;;  %v5012_v38 = vsel %vm894_vm5, %v17536_v55, %v13854_v45  ;;  %v5013_v32 = vsel %vm894_vm5, %v13854_v45, %v17537_v49  ;;  %v17545_v55 = vld [vmem:[#allocation173_spill] sm:$0xff] }
 0x723   :  { %v3854_v23 = vsel %vm894_vm5, %v17538_v33, %v17508_v52  ;;  %v4171_v7 = vadd.f32 %v4132_v5, %v4031_v48  ;;  %v4911_v37 = vadd.f32 %v4872_v34, %v4771_v59  ;;  %v4912_v50 = vadd.f32 %v4873_v56, %v4772_v22  ;;  %v17544_v34 = vld [vmem:[#allocation31_spill] sm:$0xff] }
 0x724   :  { %v3752_v27 = vadd.f32 %v3713_v1, %v3612_v16  ;;  %v3753_v29 = vadd.f32 %v14046_v43, %v3613_v0  ;;  %v5152_v42 = vsel %vm1035_vm6, %v13762_v4, %v14020_v15  ;;  %v5153_v45 = vsel %vm1035_vm6, %v14020_v15, %v13781_v30  ;;  %v17541_v4 = vld [vmem:[#allocation129_spill] sm:$0xff]  ;;  %v17543_v15 = vld [vmem:[#allocation178_spill] sm:$0xff] }
 0x725   :  { %v14173_v63 = vpop.permute.xlu1 %5129  ;;  %v3296_v52 = vsel %vm330_vm1, %v17469_v3, %v17539_v18  ;;  %v3853_v13 = vsel %vm894_vm5, %v17522_v17, %v17538_v33  ;;  %v5051_v36 = vadd.f32 %v5012_v38, %v4911_v37  ;;  %v5052_v16 = vadd.f32 %v5013_v32, %v4912_v50  ;;  %v14197_v3 = vpop.permute.xlu0 %4857  ;;  %v17546_v38 = vld [vmem:[#allocation246_spill] sm:$0xff]  ;;  %v17547_v33 = vld [vmem:[#allocation248_spill] sm:$0xff]  ;;  %v17548_v50 = vld [vmem:[#allocation61_spill] sm:$0xff] }
 0x726   :  { %v3575_v43 = vsel %vm612_vm3, %v17533_v25, %v17540_v53  ;;  %v3893_v9 = vadd.f32 %v3854_v23, %v3753_v29  ;;  %v3994_v26 = vsel %vm1035_vm6, %v17542_v44, %v17541_v4  ;;  %v4314_v46 = vsel %vm189_vm0, %v17519_v57, %v17543_v15  ;;  %v17549_v29 = vld [vmem:[#allocation54_spill] sm:$0xff] }
 0x727   :  { %v3993_v17 = vsel %vm1035_vm6, %v17501_v40, %v17542_v44  ;;  %v4213_v28 = vadd.f32 %v14074_v12, %v4171_v7  ;;  %v5191_v0 = vadd.f32 %v5152_v42, %v5051_v36  ;;  %v5192_v5 = vadd.f32 %v5153_v45, %v5052_v16  ;;  %v17550_v45 = vld [vmem:[#allocation90_spill] sm:$0xff] }
 0x728   :  { %v3892_v39 = vadd.f32 %v3853_v13, %v3752_v27  ;;  %v4454_v56 = vsel %vm330_vm1, %v17526_v31, %v17544_v34  ;;  %v4033_v48 = vadd.f32 %v3994_v26, %v3893_v9  ;;  %v3335_v12 = vadd.f32 %v3296_v52, %v3195_v60  ;;  %v17553_v9 = vld [vmem:[#allocation106_spill] sm:$0xff]  ;;  %v17554_v26 = vld [vmem:[#allocation120_spill] sm:$0xff] }
 0x729   :  { %v5266_v25 = vpop.permute.xlu1 %5265  ;;  %v4353_v59 = vadd.f32 %v4314_v46, %v4213_v28  ;;  %v14217_v32 = vsel %vm1035_vm6, %v17546_v38, %v17545_v55  ;;  %v3715_v31 = vsel %vm753_vm4, %v17499_v35, %v17547_v33  ;;  %v3614_v23 = vadd.f32 %v3575_v43, %v3474_v61  ;;  %v14239_v52 = vpop.permute.xlu0 %5133  ;;  %v17555_v46 = vld [vmem:[#allocation131_spill] sm:$0xff] }
 0x72a   :  { %v5292_v1 = vsel %vm1176_vm7, %v13880_v19, %v5266_v25  ;;  %v5293_v57 = vsel %vm1176_vm7, %v5266_v25, %v13929_v11  ;;  %v4032_v19 = vadd.f32 %v3993_v17, %v3892_v39  ;;  %v3297_v42 = vsel %vm330_vm1, %v17539_v18, %v17549_v29  ;;  %v17559_v39 = vld [vmem:[#allocation102_spill] sm:$0xff] }
 0x72b   :  { %v14210_v22 = vadd.f32 %v5292_v1, %v5191_v0  ;;  %v14212_v40 = vadd.f32 %v5293_v57, %v5192_v5  ;;  %v4493_v7 = vadd.f32 %v4454_v56, %v4353_v59  ;;  %v3298_v35 = vsel %vm330_vm1, %v17549_v29, %v17502_v21  ;;  %v17557_v5 = vld [vmem:[#allocation89_spill] sm:$0xff]  ;;  %v17560_v1 = vld [vmem:[#allocation20_spill] sm:$0xff]  ;;  %v17561_v57 = vld [vmem:[#allocation110_spill] sm:$0xff] }
 0x72c   :  { %v4594_v61 = vsel %vm471_vm2, %v17532_v51, %v17550_v45  ;;  %v3576_v36 = vsel %vm612_vm3, %v17540_v53, %v17505_v24  ;;  %v3754_v16 = vadd.f32 %v3715_v31, %v3614_v23  ;;  %v4173_v18 = vadd.f32 %v14103_v6, %v4033_v48  ;;  %v17552_v51 = vld [vmem:[#allocation247_spill] sm:$0xff]  ;;  %v17556_v6 = vld [vmem:[#allocation249_spill] sm:$0xff] }
 0x72d   :  { %v5351_v37 = vmul.f32 %v14210_v22, %v17421_v62  ;;  %v14226_v27 = vmul.f32 %v14212_v40, %v17548_v50  ;;  %v14228_v60 = vpop.permute.xlu1 %4441  ;;  %v17551_v62 = vld [vmem:[#allocation142_spill] sm:$0xff]  ;;  %v3475_v21 = vadd.f32 %v14025_v8, %v3335_v12  ;;  %v3437_v43 = vsel %vm471_vm2, %v17496_v20, %v17552_v51  ;;  %v17558_v8 = vld [vmem:[#allocation100_spill] sm:$0xff]  ;;  %v17563_v12 = vld [vmem:[#allocation95_spill] sm:$0xff] }
 0x72e   :  { %v4195_v13 = vmul.f32 %v17551_v62, %v13040_v10  ;;  %v4172_v44 = vadd.f32 %v17553_v9, %v4032_v19  ;;  %v4734_v24 = vsel %vm612_vm3, %v13646_v14, %v17554_v26  ;;  %v3336_v53 = vadd.f32 %v3297_v42, %v3196_v2  ;;  %v17562_v14 = vld [vmem:[#allocation87_spill] sm:$0xff] }
 0x72f   :  { %5401 = vrot.lane.b32.xlu0 %v5351_v37, %s8121_s26  ;;  %5403 = vrot.lane.b32.xlu1 %v14226_v27, %s8121_s26  ;;  %v4316_v17 = vsel %vm189_vm0, %v17556_v6, %v17555_v46  ;;  %v4633_v28 = vadd.f32 %v4594_v61, %v4493_v7  ;;  %v5493_v25 = vmul.f32 %v17558_v8, %v17557_v5  ;;  %v17564_v7 = vld [vmem:[#allocation164_spill] sm:$0xff]  ;;  %v17566_v62 = vld [vmem:[#allocation167_spill] sm:$0xff] }
 0x730   :  { %v3337_v56 = vadd.f32 %v3298_v35, %v17559_v39  ;;  %v3615_v20 = vadd.f32 %v3576_v36, %v3475_v21  ;;  %v14269_v48 = vsel %vm1176_vm7, %v17561_v57, %v17560_v1  ;;  %v4874_v2 = vsel %vm753_vm4, %v13789_v41, %v17562_v14  ;;  %v14283_v35 = vpop.permute.xlu0 %4721  ;;  %v17565_v41 = vld [vmem:[#allocation158_spill] sm:$0xff]  ;;  %v17567_v36 = vld [vmem:[#allocation116_spill] sm:$0xff]  ;;  %v17570_v9 = vld [vmem:[#allocation187_spill] sm:$0xff] }
 0x731   :  { %v14261_v0 = vpop.permute.xlu1 %4717  ;;  %v3476_v59 = vadd.f32 %v3437_v43, %v3336_v53  ;;  %v3894_v31 = vadd.f32 %v17563_v12, %v3754_v16  ;;  %v4215_v19 = vadd.f32 %v4195_v13, %v4173_v18  ;;  %v4773_v23 = vadd.f32 %v4734_v24, %v4633_v28  ;;  %v17569_v43 = vld [vmem:[#allocation40_spill] sm:$0xff] }
 0x732   :  { %v3438_v50 = vsel %vm471_vm2, %v17552_v51, %v17564_v7  ;;  %v4214_v29 = vadd.f32 %v14123_v54, %v4172_v44  ;;  %v4315_v42 = vsel %vm189_vm0, %v17543_v15, %v17556_v6  ;;  %v5014_v61 = vsel %vm894_vm5, %v17537_v49, %v17565_v41  ;;  %v17568_v51 = vld [vmem:[#allocation114_spill] sm:$0xff]  ;;  %v17572_v8 = vld [vmem:[#allocation36_spill] sm:$0xff] }
 0x733   :  { %5542 = vrot.lane.b32.xlu0 %v5493_v25, %s8121_s26  ;;  %v3478_v13 = vadd.f32 %v17564_v7, %v17566_v62  ;;  %v3716_v16 = vsel %vm753_vm4, %v17547_v33, %v17567_v36  ;;  %v4913_v18 = vadd.f32 %v4874_v2, %v4773_v23  ;;  %v5494_v54 = vmul.f32 %v5351_v37, %v14210_v22  ;;  %v17574_v2 = vld [vmem:[#allocation230_spill] sm:$0xff]  ;;  %v17575_v7 = vld [vmem:[#allocation25_spill] sm:$0xff] }
 0x734   :  { %v3995_v15 = vsel %vm1035_vm6, %v17541_v4, %v17568_v51  ;;  %v4455_v49 = vsel %vm330_vm1, %v17544_v34, %v17569_v43  ;;  %v4456_v44 = vsel %vm330_vm1, %v17569_v43, %v17570_v9  ;;  %v5154_v33 = vsel %vm1035_vm6, %v13781_v30, %v14173_v63  ;;  %v17571_v4 = vld [vmem:[#allocation124_spill] sm:$0xff]  ;;  %v17573_v34 = vld [vmem:[#allocation225_spill] sm:$0xff] }
 0x735   :  { %v14294_v21 = vpop.permute.xlu1 %4993  ;;  %v3477_v24 = vadd.f32 %v3438_v50, %v3337_v56  ;;  %v4354_v37 = vadd.f32 %v4315_v42, %v4214_v29  ;;  %v4355_v53 = vadd.f32 %v4316_v17, %v4215_v19  ;;  %v5053_v6 = vadd.f32 %v5014_v61, %v4913_v18  ;;  %v14321_v50 = vpop.permute.xlu0 %4997  ;;  %v17576_v29 = vld [vmem:[#allocation136_spill] sm:$0xff]  ;;  %v17577_v61 = vld [vmem:[#allocation38_spill] sm:$0xff]  ;;  %v17579_v43 = vld [vmem:[#allocation17_spill] sm:$0xff] }
 0x736   :  { %v3755_v28 = vadd.f32 %v3716_v16, %v3615_v20  ;;  %v4135_v25 = vsel %vm1176_vm7, %v17572_v8, %v17571_v4  ;;  %v4595_v39 = vsel %vm471_vm2, %v17550_v45, %v17573_v34  ;;  %v4596_v12 = vsel %vm471_vm2, %v17573_v34, %v17574_v2  ;;  %v17578_v45 = vld [vmem:[#allocation34_spill] sm:$0xff] }
 0x737   :  { %5544 = vrot.lane.b32.xlu0 %v5494_v54, %s8121_s26  ;;  %v4034_v30 = vadd.f32 %v3995_v15, %v3894_v31  ;;  %v4494_v56 = vadd.f32 %v4455_v49, %v4354_v37  ;;  %v4495_v23 = vadd.f32 %v4456_v44, %v4355_v53  ;;  %v5193_v17 = vadd.f32 %v5154_v33, %v5053_v6  ;;  %v17580_v44 = vld [vmem:[#allocation109_spill] sm:$0xff]  ;;  %v17582_v6 = vld [vmem:[#allocation175_spill] sm:$0xff] }
 0x738   :  { %v4457_v20 = vsel %vm330_vm1, %v17570_v9, %v17575_v7  ;;  %v4196_v42 = vmul.f32 %v17576_v29, %v13040_v10  ;;  %v4736_v62 = vsel %vm612_vm3, %v17578_v45, %v17577_v61  ;;  %v3618_v49 = vadd.f32 %v17579_v43, %v3478_v13  ;;  %v17581_v37 = vld [vmem:[#allocation125_spill] sm:$0xff]  ;;  %v17585_v13 = vld [vmem:[#allocation39_spill] sm:$0xff]  ;;  %v17591_v43 = vld [vmem:[#allocation92_spill] sm:$0xff] }
 0x739   :  { %v5270_v19 = vpop.permute.xlu1 %5269  ;;  %v4174_v16 = vadd.f32 %v4135_v25, %v4034_v30  ;;  %v4634_v18 = vadd.f32 %v4595_v39, %v4494_v56  ;;  %v4635_v54 = vadd.f32 %v4596_v12, %v4495_v23  ;;  %v4735_v9 = vsel %vm612_vm3, %v17554_v26, %v17578_v45  ;;  %v17584_v39 = vld [vmem:[#allocation62_spill] sm:$0xff]  ;;  %v17586_v56 = vld [vmem:[#allocation28_spill] sm:$0xff] }
 0x73a   :  { %v5294_v31 = vsel %vm1176_vm7, %v13929_v11, %v5270_v19  ;;  %v3616_v33 = vadd.f32 %v17580_v44, %v3476_v59  ;;  %v4876_v53 = vsel %vm753_vm4, %v17581_v37, %v14147_v58  ;;  %v3617_v8 = vadd.f32 %v17582_v6, %v3477_v24  ;;  %v17583_v11 = vld [vmem:[#allocation113_spill] sm:$0xff] }
 0x73b   :  { %v14330_v15 = vadd.f32 %v5294_v31, %v5193_v17  ;;  %v3895_v25 = vadd.f32 %v17583_v11, %v3755_v28  ;;  %v4775_v34 = vadd.f32 %v4736_v62, %v4635_v54  ;;  %v3717_v26 = vsel %vm753_vm4, %v17567_v36, %v17585_v13  ;;  %v17587_v28 = vld [vmem:[#allocation101_spill] sm:$0xff]  ;;  %v17589_v36 = vld [vmem:[#allocation18_spill] sm:$0xff]  ;;  %v17590_v54 = vld [vmem:[#allocation16_spill] sm:$0xff] }
 0x73c   :  { %v4317_v59 = vsel %vm189_vm0, %v17555_v46, %v17586_v56  ;;  %v4875_v24 = vsel %vm753_vm4, %v17562_v14, %v17581_v37  ;;  %v5016_v23 = vsel %vm894_vm5, %v17587_v28, %v14294_v21  ;;  %v17588_v17 = vld [vmem:[#allocation245_spill] sm:$0xff]  ;;  %v4216_v45 = vadd.f32 %v4196_v42, %v4174_v16  ;;  %v5274_v37 = vpop.permute.xlu0 %5273  ;;  %v17592_v11 = vld [vmem:[#allocation168_spill] sm:$0xff] }
 0x73d   :  { %v5353_v12 = vmul.f32 %v14330_v15, %v17584_v39  ;;  %v14344_v30 = vpop.permute.xlu1 %4719  ;;  %v3718_v29 = vsel %vm753_vm4, %v17585_v13, %v17588_v17  ;;  %v4774_v62 = vadd.f32 %v4735_v9, %v4634_v18  ;;  %v4915_v31 = vadd.f32 %v4876_v53, %v4775_v34 }
 0x73e   :  { %v3996_v46 = vsel %vm1035_vm6, %v17568_v51, %v17546_v38  ;;  %v3857_v14 = vsel %vm894_vm5, %v17590_v54, %v17589_v36  ;;  %v3858_v44 = vsel %vm894_vm5, %v17589_v36, %v17591_v43  ;;  %v5015_v42 = vsel %vm894_vm5, %v17565_v41, %v17587_v28 }
 0x73f   :  { %5405 = vrot.lane.b32.xlu1 %v5353_v12, %s8121_s26  ;;  %v4356_v16 = vadd.f32 %v4317_v59, %v4216_v45  ;;  %v4914_v18 = vadd.f32 %v4875_v24, %v4774_v62  ;;  %v5495_v9 = vmul.f32 %v14226_v27, %v14212_v40  ;;  %v5055_v53 = vadd.f32 %v5016_v23, %v4915_v31  ;;  %v17593_v59 = vld [vmem:[#allocation212_spill] sm:$0xff]  ;;  %v17596_v31 = vld [vmem:[#allocation210_spill] sm:$0xff] }
 0x740   :  { %v3756_v51 = vadd.f32 %v3717_v26, %v3616_v33  ;;  %v3757_v6 = vadd.f32 %v3718_v29, %v3617_v8  ;;  %v5156_v34 = vsel %vm1035_vm6, %v17592_v11, %v14239_v52  ;;  %v5155_v39 = vsel %vm1035_vm6, %v14173_v63, %v17592_v11  ;;  %v17594_v26 = vld [vmem:[#allocation111_spill] sm:$0xff]  ;;  %v17595_v23 = vld [vmem:[#allocation184_spill] sm:$0xff] }
 0x741   :  { %v14376_v38 = vpop.permute.xlu1 %4995  ;;  %v4035_v13 = vadd.f32 %v3996_v46, %v3895_v25  ;;  %v3758_v41 = vadd.f32 %v17588_v17, %v3618_v49  ;;  %v3998_v27 = vsel %vm1035_vm6, %v17545_v55, %v17593_v59  ;;  %v5054_v24 = vadd.f32 %v5015_v42, %v4914_v18  ;;  %v14396_v55 = vpop.permute.xlu0 %4999  ;;  %v17598_v42 = vld [vmem:[#allocation154_spill] sm:$0xff]  ;;  %v17600_v11 = vld [vmem:[#allocation195_spill] sm:$0xff] }
 0x742   :  { %v3896_v33 = vadd.f32 %v3857_v14, %v3756_v51  ;;  %v3897_v8 = vadd.f32 %v3858_v44, %v3757_v6  ;;  %v4136_v28 = vsel %vm1176_vm7, %v17571_v4, %v17594_v26  ;;  %v4597_v63 = vsel %vm471_vm2, %v17574_v2, %v17595_v23  ;;  %v17597_v44 = vld [vmem:[#allocation166_spill] sm:$0xff] }
 0x743   :  { %5546 = vrot.lane.b32.xlu1 %v5495_v9, %s8121_s26  ;;  %v4496_v25 = vadd.f32 %v4457_v20, %v4356_v16  ;;  %v5194_v29 = vadd.f32 %v5155_v39, %v5054_v24  ;;  %v5496_v49 = vmul.f32 %v5353_v12, %v14330_v15  ;;  %v5195_v45 = vadd.f32 %v5156_v34, %v5055_v53  ;;  %v17599_v9 = vld [vmem:[#allocation65_spill] sm:$0xff] }
 0x744   :  { %v4037_v62 = vadd.f32 %v3998_v27, %v3897_v8  ;;  %v4737_v46 = vsel %vm612_vm3, %v17577_v61, %v17596_v31  ;;  %v3898_v54 = vadd.f32 %v17591_v43, %v3758_v41  ;;  %v4137_v12 = vsel %vm1176_vm7, %v17594_v26, %v17561_v57  ;;  %v8044_v8 = vld [vmem:[%s15881_s3 + $0x138] sm:$0xff] }
 0x745   :  { %v5272_v17 = vpop.permute.xlu1 %5271  ;;  %v4636_v2 = vadd.f32 %v4597_v63, %v4496_v25  ;;  %v4197_v61 = vmul.f32 %v17597_v44, %v13040_v10  ;;  %v4175_v16 = vadd.f32 %v4136_v28, %v4035_v13  ;;  %v4036_v6 = vadd.f32 %v14217_v32, %v3896_v33  ;;  %v17601_v13 = vld [vmem:[#allocation67_spill] sm:$0xff]  ;;  %v14433_v24 = vpop.permute.xlu0 %5275  ;;  %v17602_v33 = vld [vmem:[#allocation186_spill] sm:$0xff]  ;;  %v17607_v44 = vld [vmem:[#allocation29_spill] sm:$0xff] }
 0x746   :  { %v5295_v36 = vsel %vm1176_vm7, %v5270_v19, %v5272_v17  ;;  %v5296_v4 = vsel %vm1176_vm7, %v5272_v17, %v5274_v37  ;;  %v4877_v19 = vsel %vm753_vm4, %v14147_v58, %v17598_v42  ;;  %v4038_v43 = vadd.f32 %v17593_v59, %v3898_v54  ;;  %v8043_v32 = vld [vmem:[%s15881_s3 + $0x128] sm:$0xff]  ;;  %v17603_v17 = vld [vmem:[#allocation152_spill] sm:$0xff]  ;;  %s14586_s3 = spop %7806 }
 0x747   :  { %v14404_v20 = vadd.f32 %v5295_v36, %v5194_v29  ;;  %v14406_v14 = vadd.f32 %v5296_v4, %v5195_v45  ;;  %5548 = vrot.lane.b32.xlu1 %v5496_v49, %s8121_s26  ;;  %v4776_v18 = vadd.f32 %v4737_v46, %v4636_v2  ;;  %v4177_v57 = vadd.f32 %v14269_v48, %v4037_v62  ;;  %v17604_v62 = vld [vmem:[#allocation160_spill] sm:$0xff]  ;;  %v17605_v46 = vld [vmem:[#allocation189_spill] sm:$0xff]  ;;  %s2787_s17 = smul.f32 %s14586_s3, %s2782_s19 }
 0x748   :  { %v4199_v34 = vmul.f32 %v17600_v11, %v13040_v10  ;;  %v5017_v58 = vsel %vm894_vm5, %v14294_v21, %v14376_v38  ;;  %v4176_v27 = vadd.f32 %v4137_v12, %v4036_v6  ;;  %v4198_v48 = vmul.f32 %v8043_v32, %v13040_v10 }
 0x749   :  { %v5354_v53 = vmul.f32 %v14404_v20, %v17599_v9  ;;  %v14420_v51 = vpop.permute.xlu1 %4859  ;;  %v4916_v39 = vadd.f32 %v4877_v19, %v4776_v18  ;;  %v5355_v41 = vmul.f32 %v14406_v14, %v17601_v13  ;;  %v4318_v21 = vsel %vm189_vm0, %v17586_v56, %v17602_v33  ;;  %s2789_s21 = smul.f32 %s2787_s17, %s12247_s13 }
 0x74a   :  { %v4200_v26 = vmul.f32 %v8044_v8, %v13040_v10  ;;  %v5297_v28 = vsel %vm1176_vm7, %v5274_v37, %v14433_v24  ;;  %v4178_v63 = vadd.f32 %v17560_v1, %v4038_v43  ;;  %v4217_v25 = vadd.f32 %v4197_v61, %v4175_v16 }
 0x74b   :  { %v5497_v59 = vmul.f32 %v5354_v53, %v14404_v20  ;;  %5407 = vrot.lane.b32.xlu0 %v5354_v53, %s8121_s26  ;;  %v5056_v29 = vadd.f32 %v5017_v58, %v4916_v39  ;;  %v4458_v56 = vsel %vm330_vm1, %v17575_v7, %v17603_v17  ;;  %v4219_v45 = vadd.f32 %v4199_v34, %v4177_v57  ;;  %v17606_v7 = vld [vmem:[#allocation108_spill] sm:$0xff]  ;;  %v17608_v34 = vld [vmem:[#allocation69_spill] sm:$0xff] }
 0x74c   :  { %v4320_v36 = vsel %vm189_vm0, %v17605_v46, %v17604_v62  ;;  %v4319_v1 = vsel %vm189_vm0, %v17602_v33, %v17605_v46  ;;  %v4357_v37 = vadd.f32 %v4318_v21, %v4217_v25  ;;  %v5498_v4 = vmul.f32 %v5355_v41, %v14406_v14  ;;  %v17609_v39 = vld [vmem:[#allocation104_spill] sm:$0xff] }
 0x74d   :  { %v5136_v49 = vpop.permute.xlu1 %5135  ;;  %5550 = vrot.lane.b32.xlu1 %v5497_v59, %s8121_s26  ;;  %v4218_v2 = vadd.f32 %v4198_v48, %v4176_v27  ;;  %v4598_v12 = vsel %vm471_vm2, %v17595_v23, %v17606_v7  ;;  %v4460_v61 = vsel %vm330_vm1, %v17607_v44, %v14228_v60  ;;  %v4220_v19 = vadd.f32 %v4200_v26, %v4178_v63  ;;  %v5140_v59 = vpop.permute.xlu0 %5139 }
 0x74e   :  { %v5157_v10 = vsel %vm1035_vm6, %v14239_v52, %v5136_v49  ;;  %v4497_v52 = vadd.f32 %v4458_v56, %v4357_v37  ;;  %v4359_v16 = vadd.f32 %v4320_v36, %v4219_v45  ;;  %v4459_v53 = vsel %vm330_vm1, %v17603_v17, %v17607_v44 }
 0x74f   :  { %v5196_v54 = vadd.f32 %v5157_v10, %v5056_v29  ;;  %5409 = vrot.lane.b32.xlu0 %v5355_v41, %s8121_s26  ;;  %v4358_v9 = vadd.f32 %v4319_v1, %v4218_v2  ;;  %v4738_v23 = vsel %vm612_vm3, %v17596_v31, %v14261_v0  ;;  %v4360_v6 = vadd.f32 %v17604_v62, %v4220_v19 }
 0x750   :  { %v4637_v57 = vadd.f32 %v4598_v12, %v4497_v52  ;;  %v4499_v11 = vadd.f32 %v4460_v61, %v4359_v16  ;;  %v4600_v13 = vsel %vm471_vm2, %v17609_v39, %v14152_v47  ;;  %v4599_v41 = vsel %vm471_vm2, %v17606_v7, %v17609_v39 }
 0x751   :  { %v14469_v43 = vadd.f32 %v5297_v28, %v5196_v54  ;;  %v4862_v18 = vpop.permute.xlu1 %4861  ;;  %5552 = vrot.lane.b32.xlu1 %v5498_v4, %s8121_s26  ;;  %v4498_v27 = vadd.f32 %v4459_v53, %v4358_v9  ;;  %v4500_v32 = vadd.f32 %v14228_v60, %v4360_v6  ;;  %v4878_v21 = vsel %vm753_vm4, %v17598_v42, %v14197_v3  ;;  %v5142_v46 = vpop.permute.xlu0 %5141  ;;  %v17611_v6 = vld [vmem:[#allocation73_spill] sm:$0xff] }
 0x752   :  { %v4777_v31 = vadd.f32 %v4738_v23, %v4637_v57  ;;  %v4739_v8 = vsel %vm612_vm3, %v14261_v0, %v14344_v30  ;;  %v4740_v26 = vsel %vm612_vm3, %v14344_v30, %v14283_v35  ;;  %v4639_v60 = vadd.f32 %v4600_v13, %v4499_v11  ;;  %v17612_v11 = vld [vmem:[#allocation76_spill] sm:$0xff] }
 0x753   :  { %v5356_v58 = vmul.f32 %v14469_v43, %v17608_v34  ;;  %v4638_v28 = vadd.f32 %v4599_v41, %v4498_v27  ;;  %v5018_v63 = vsel %vm894_vm5, %v14376_v38, %v14321_v50  ;;  %v4879_v42 = vsel %vm753_vm4, %v14197_v3, %v14420_v51  ;;  %v17613_v41 = vld [vmem:[#allocation74_spill] sm:$0xff] }
 0x754   :  { %v4880_v25 = vsel %vm753_vm4, %v14420_v51, %v4862_v18  ;;  %v4640_v0 = vadd.f32 %v14152_v47, %v4500_v32  ;;  %v4779_v17 = vadd.f32 %v4740_v26, %v4639_v60  ;;  %v4917_v30 = vadd.f32 %v4878_v21, %v4777_v31 }
 0x755   :  { %v5138_v48 = vpop.permute.xlu1 %5137  ;;  %5411 = vrot.lane.b32.xlu0 %v5356_v58, %s8121_s26  ;;  %v5499_v33 = vmul.f32 %v5356_v58, %v14469_v43  ;;  %v4778_v29 = vadd.f32 %v4739_v8, %v4638_v28  ;;  %v5019_v3 = vsel %vm894_vm5, %v14321_v50, %v14396_v55  ;;  %v5160_v4 = vsel %vm1035_vm6, %v5140_v59, %v5142_v46  ;;  %v5282_v44 = vpop.permute.xlu0 %5281  ;;  %v17610_v50 = vld [vmem:[#allocation70_spill] sm:$0xff] }
 0x756   :  { %v5158_v45 = vsel %vm1035_vm6, %v5136_v49, %v5138_v48  ;;  %v5057_v38 = vadd.f32 %v5018_v63, %v4917_v30  ;;  %v4919_v10 = vadd.f32 %v4880_v25, %v4779_v17  ;;  %v4780_v51 = vadd.f32 %v14283_v35, %v4640_v0 }
 0x757   :  { %5554 = vrot.lane.b32.xlu1 %v5499_v33, %s8121_s26  ;;  %v4918_v36 = vadd.f32 %v4879_v42, %v4778_v29  ;;  %v5159_v49 = vsel %vm1035_vm6, %v5138_v48, %v5140_v59 }
 0x758   :  { %v5197_v47 = vadd.f32 %v5158_v45, %v5057_v38  ;;  %v4920_v2 = vadd.f32 %v4862_v18, %v4780_v51 }
 0x759   :  { %v5002_v56 = vpop.permute.xlu1 %5001  ;;  %v5058_v7 = vadd.f32 %v5019_v3, %v4918_v36  ;;  %v5384_v33 = vpop.permute.xlu0 %5383 }
 0x75a   :  { %v5020_v62 = vsel %vm894_vm5, %v14396_v55, %v5002_v56  ;;  %v5060_v52 = vadd.f32 %v5002_v56, %v4920_v2 }
 0x75b   :  { %v5059_v1 = vadd.f32 %v5020_v62, %v4919_v10  ;;  %v5198_v61 = vadd.f32 %v5159_v49, %v5058_v7 }
 0x75c   :  { %v5200_v18 = vadd.f32 %v5142_v46, %v5060_v52 }
 0x75d   :  { %v5278_v37 = vpop.permute.xlu1 %5277  ;;  %v5199_v19 = vadd.f32 %v5160_v4, %v5059_v1  ;;  %v5388_v8 = vpop.permute.xlu0 %5387 }
 0x75e   :  { %v5298_v54 = vsel %vm1176_vm7, %v14433_v24, %v5278_v37  ;;  %v14539_v39 = vadd.f32 %v5282_v44, %v5200_v18 }
 0x75f   :  { %v14520_v12 = vadd.f32 %v5298_v54, %v5197_v47 }
 0x760   :  { %v5360_v59 = vmul.f32 %v14539_v39, %v17613_v41 }
 0x761   :  { %v5357_v35 = vmul.f32 %v14520_v12, %v17610_v50  ;;  %v5280_v55 = vpop.permute.xlu1 %5279  ;;  %v5527_v28 = vpop.permute.xlu0 %5526 }
 0x762   :  { %v5299_v16 = vsel %vm1176_vm7, %v5278_v37, %v5280_v55  ;;  %v5300_v9 = vsel %vm1176_vm7, %v5280_v55, %v5282_v44  ;;  %v5503_v27 = vmul.f32 %v5360_v59, %v14539_v39 }
 0x763   :  { %v5500_v53 = vmul.f32 %v5357_v35, %v14520_v12  ;;  %v14527_v23 = vadd.f32 %v5299_v16, %v5198_v61  ;;  %v14529_v24 = vadd.f32 %v5300_v9, %v5199_v19  ;;  %5413 = vrot.lane.b32.xlu0 %v5357_v35, %s8121_s26 }
 0x765   :  { %v5358_v57 = vmul.f32 %v14527_v23, %v17611_v6  ;;  %5556 = vrot.lane.b32.xlu1 %v5500_v53, %s8121_s26  ;;  %v5359_v34 = vmul.f32 %v14529_v24, %v17612_v11  ;;  %v5382_v32 = vpop.permute.xlu1 %5381  ;;  %v5390_v63 = vpop.permute.xlu0 %5389 }
 0x766   :  { %v5421_v10 = vsel %vm2573_vm9, %v5382_v32, %v5384_v33  ;;  %v5424_v49 = vsel %vm2573_vm9, %v5388_v8, %v5390_v63 }
 0x767   :  { %v5501_v58 = vmul.f32 %v5358_v57, %v14527_v23  ;;  %5415 = vrot.lane.b32.xlu0 %v5358_v57, %s8121_s26  ;;  %v5502_v13 = vmul.f32 %v5359_v34, %v14529_v24 }
 0x769   :  { %5558 = vrot.lane.b32.xlu1 %v5501_v58, %s8121_s26  ;;  %v5386_v31 = vpop.permute.xlu1 %5385  ;;  %v5392_v25 = vpop.permute.xlu0 %5391 }
 0x76a   :  { %v5422_v38 = vsel %vm2573_vm9, %v5384_v33, %v5386_v31  ;;  %v5423_v47 = vsel %vm2573_vm9, %v5386_v31, %v5388_v8  ;;  %v5425_v7 = vsel %vm2573_vm9, %v5390_v63, %v5392_v25 }
 0x76b   :  { %5417 = vrot.lane.b32.xlu0 %v5359_v34, %s8121_s26  ;;  %v5457_v3 = vadd.f32 %v5422_v38, %v5421_v10 }
 0x76d   :  { %5560 = vrot.lane.b32.xlu1 %v5502_v13, %s8121_s26  ;;  %v5525_v48 = vpop.permute.xlu1 %5524  ;;  %v5394_v0 = vpop.permute.xlu0 %5393  ;;  %v5458_v1 = vadd.f32 %v5457_v3, %v5423_v47 }
 0x76e   :  { %v5564_v50 = vsel %vm2573_vm9, %v5525_v48, %v5527_v28  ;;  %v5426_v16 = vsel %vm2573_vm9, %v5392_v25, %v5394_v0 }
 0x76f   :  { %5419 = vrot.lane.b32.xlu0 %v5360_v59, %s8121_s26  ;;  %v5459_v54 = vadd.f32 %v5458_v1, %v5424_v49 }
 0x771   :  { %v5529_v21 = vpop.permute.xlu1 %5528  ;;  %v5396_v17 = vpop.permute.xlu0 %5395  ;;  %v5460_v61 = vadd.f32 %v5459_v54, %v5425_v7 }
 0x772   :  { %v5565_v44 = vsel %vm2573_vm9, %v5527_v28, %v5529_v21  ;;  %v5427_v34 = vsel %vm2573_vm9, %v5394_v0, %v5396_v17 }
 0x773   :  { %5562 = vrot.lane.b32.xlu0 %v5503_v27, %s8121_s26  ;;  %v5600_v55 = vadd.f32 %v5565_v44, %v5564_v50  ;;  %v5461_v53 = vadd.f32 %v5460_v61, %v5426_v16 }
 0x775   :  { %v5531_v26 = vpop.permute.xlu1 %5530  ;;  %v5462_v41 = vadd.f32 %v5461_v53, %v5427_v34 }
 0x776   :  { %v5566_v35 = vsel %vm2573_vm9, %v5529_v21, %v5531_v26 }
 0x777   :  { %v5601_v18 = vadd.f32 %v5600_v55, %v5566_v35 }
 0x779   :  { %v5533_v60 = vpop.permute.xlu1 %5532 }
 0x77a   :  { %v5567_v9 = vsel %vm2573_vm9, %v5531_v26, %v5533_v60 }
 0x77b   :  { %v5602_v11 = vadd.f32 %v5601_v18, %v5567_v9 }
 0x77d   :  { %v5535_v42 = vpop.permute.xlu1 %5534  ;;  %v5398_v56 = vpop.permute.xlu0 %5397 }
 0x77e   :  { %v5568_v57 = vsel %vm2573_vm9, %v5533_v60, %v5535_v42  ;;  %v5428_v58 = vsel %vm2573_vm9, %v5396_v17, %v5398_v56 }
 0x77f   :  { %v5603_v59 = vadd.f32 %v5602_v11, %v5568_v57  ;;  %v5463_v48 = vadd.f32 %v5462_v41, %v5428_v58 }
 0x781   :  { %v5537_v29 = vpop.permute.xlu1 %5536  ;;  %v5400_v62 = vpop.permute.xlu0 %5399 }
 0x782   :  { %v5569_v13 = vsel %vm2573_vm9, %v5535_v42, %v5537_v29  ;;  %v5429_v32 = vsel %vm2573_vm9, %v5398_v56, %v5400_v62 }
 0x783   :  { %v5604_v33 = vadd.f32 %v5603_v59, %v5569_v13  ;;  %v5464_v28 = vadd.f32 %v5463_v48, %v5429_v32 }
 0x785   :  { %v5539_v30 = vpop.permute.xlu1 %5538 }
 0x786   :  { %v5570_v31 = vsel %vm2573_vm9, %v5537_v29, %v5539_v30 }
 0x787   :  { %v5605_v60 = vadd.f32 %v5604_v33, %v5570_v31 }
 0x789   :  { %v5541_v45 = vpop.permute.xlu1 %5540 }
 0x78a   :  { %v5571_v8 = vsel %vm2573_vm9, %v5539_v30, %v5541_v45 }
 0x78b   :  { %v5606_v0 = vadd.f32 %v5605_v60, %v5571_v8 }
 0x7a1   :  { %v5404_v46 = vpop.permute.xlu1 %5403  ;;  %v5402_v36 = vpop.permute.xlu0 %5401 }
 0x7a2   :  { %v5430_v26 = vsel %vm2573_vm9, %v5402_v36, %v5404_v46 }
 0x7a3   :  { %v5465_v17 = vadd.f32 %v5464_v28, %v5430_v26 }
 0x7a5   :  { %v5543_v37 = vpop.permute.xlu0 %5542 }
 0x7a6   :  { %v5572_v25 = vsel %vm2573_vm9, %v5541_v45, %v5543_v37 }
 0x7a7   :  { %v5607_v62 = vadd.f32 %v5606_v0, %v5572_v25 }
 0x7a9   :  { %v5545_v2 = vpop.permute.xlu0 %5544 }
 0x7b1   :  { %v5406_v51 = vpop.permute.xlu1 %5405 }
 0x7b2   :  { %v5431_v42 = vsel %vm2573_vm9, %v5404_v46, %v5406_v51 }
 0x7b3   :  { %v5466_v10 = vadd.f32 %v5465_v17, %v5431_v42 }
 0x7b5   :  { %v5547_v4 = vpop.permute.xlu1 %5546 }
 0x7b6   :  { %v5573_v56 = vsel %vm2573_vm9, %v5545_v2, %v5547_v4 }
 0x7b7   :  { %v5608_v47 = vadd.f32 %v5607_v62, %v5573_v56 }
 0x7b9   :  { %v5549_v52 = vpop.permute.xlu1 %5548 }
 0x7ba   :  { %v5574_v30 = vsel %vm2573_vm9, %v5547_v4, %v5549_v52 }
 0x7bb   :  { %v5609_v37 = vadd.f32 %v5608_v47, %v5574_v30  ;;  %v6915_v30 = vld [vmem:[%s15883_s5 + $0x480] sm:$0xff]  ;;  %v6916_v47 = vld [vmem:[%s15883_s5 + $0x488] sm:$0xff] }
 0x7bd   :  { %v5408_v19 = vpop.permute.xlu0 %5407 }
 0x7be   :  { %v5432_v29 = vsel %vm2573_vm9, %v5406_v51, %v5408_v19 }
 0x7bf   :  { %v5551_v6 = vpop.permute.xlu1 %5550  ;;  %v5467_v1 = vadd.f32 %v5466_v10, %v5432_v29  ;;  %v6931_v10 = vld [vmem:[%s15883_s5 + $0x500] sm:$0xff] }
 0x7c0   :  { %v5575_v45 = vsel %vm2573_vm9, %v5549_v52, %v5551_v6 }
 0x7c1   :  { %v5410_v27 = vpop.permute.xlu0 %5409  ;;  %v5610_v44 = vadd.f32 %v5609_v37, %v5575_v45  ;;  %v7472_v45 = vpack.c.bf16 %v6916_v47, %v6915_v30  ;;  %v6979_v37 = vld [vmem:[%s15883_s5 + $0x680] sm:$0xff]  ;;  %v6924_v30 = vld [vmem:[%s15883_s5 + $0x4c8] sm:$0xff] }
 0x7c2   :  { %v5433_v36 = vsel %vm2573_vm9, %v5408_v19, %v5410_v27 }
 0x7c3   :  { %v5553_v21 = vpop.permute.xlu1 %5552  ;;  %v5468_v54 = vadd.f32 %v5467_v1, %v5433_v36  ;;  %v6995_v1 = vld [vmem:[%s15883_s5 + $0x700] sm:$0xff] }
 0x7c4   :  { %v5576_v2 = vsel %vm2573_vm9, %v5551_v6, %v5553_v21 }
 0x7c5   :  { %v5611_v55 = vadd.f32 %v5610_v44, %v5576_v2  ;;  %v6917_v44 = vld [vmem:[%s15883_s5 + $0x490] sm:$0xff] }
 0x7c7   :  { %v5412_v63 = vpop.permute.xlu0 %5411 }
 0x7c8   :  { %v5434_v46 = vsel %vm2573_vm9, %v5410_v27, %v5412_v63 }
 0x7c9   :  { %v5555_v38 = vpop.permute.xlu1 %5554  ;;  %v5469_v61 = vadd.f32 %v5468_v54, %v5434_v46  ;;  %v6980_v54 = vld [vmem:[%s15883_s5 + $0x688] sm:$0xff] }
 0x7ca   :  { %v5577_v4 = vsel %vm2573_vm9, %v5553_v21, %v5555_v38  ;;  %v7536_v2 = vpack.c.bf16 %v6980_v54, %v6979_v37  ;;  %v7006_v37 = vld [vmem:[%s15883_s5 + $0x758] sm:$0xff] }
 0x7cb   :  { %v5612_v53 = vadd.f32 %v5611_v55, %v5577_v4  ;;  %v6998_v55 = vld [vmem:[%s15883_s5 + $0x718] sm:$0xff] }
 0x7d5   :  { %v5414_v3 = vpop.permute.xlu0 %5413 }
 0x7d6   :  { %v5435_v51 = vsel %vm2573_vm9, %v5412_v63, %v5414_v3 }
 0x7d7   :  { %v5557_v49 = vpop.permute.xlu1 %5556  ;;  %v5470_v19 = vadd.f32 %v5469_v61, %v5435_v51  ;;  %v6934_v51 = vld [vmem:[%s15883_s5 + $0x518] sm:$0xff] }
 0x7d8   :  { %v5578_v52 = vsel %vm2573_vm9, %v5555_v38, %v5557_v49  ;;  %v6918_v61 = vld [vmem:[%s15883_s5 + $0x498] sm:$0xff] }
 0x7d9   :  { %v5416_v7 = vpop.permute.xlu0 %5415  ;;  %v5613_v11 = vadd.f32 %v5612_v53, %v5578_v52  ;;  %v7476_v4 = vpack.c.bf16 %v6918_v61, %v6917_v44  ;;  %v6982_v52 = vld [vmem:[%s15883_s5 + $0x698] sm:$0xff]  ;;  %v6936_v53 = vld [vmem:[%s15883_s5 + $0x528] sm:$0xff]  ;;  %v6989_v61 = vld [vmem:[%s15883_s5 + $0x6d0] sm:$0xff] }
 0x7da   :  { %v5436_v35 = vsel %vm2573_vm9, %v5414_v3, %v5416_v7  ;;  %v6932_v3 = vld [vmem:[%s15883_s5 + $0x508] sm:$0xff]  ;;  %v6926_v44 = vld [vmem:[%s15883_s5 + $0x4d8] sm:$0xff] }
 0x7db   :  { %v5559_v50 = vpop.permute.xlu1 %5558  ;;  %v5471_v18 = vadd.f32 %v5470_v19, %v5436_v35  ;;  %v7470_v36 = vpack.c.bf16 %v6932_v3, %v6931_v10  ;;  %v6997_v35 = vld [vmem:[%s15883_s5 + $0x710] sm:$0xff]  ;;  %v6923_v3 = vld [vmem:[%s15883_s5 + $0x4c0] sm:$0xff] }
 0x7dc   :  { %v5579_v6 = vsel %vm2573_vm9, %v5557_v49, %v5559_v50  ;;  %v6996_v49 = vld [vmem:[%s15883_s5 + $0x708] sm:$0xff]  ;;  %v6981_v19 = vld [vmem:[%s15883_s5 + $0x690] sm:$0xff]  ;;  %v7488_v54 = vpack.c.bf16 %v6924_v30, %v6923_v3  ;;  %v17620_v30 = vld [vmem:[#allocation78_spill] sm:$0xff] }
 0x7dd   :  { %v5418_v16 = vpop.permute.xlu0 %5417  ;;  %v5614_v59 = vadd.f32 %v5613_v11, %v5579_v6  ;;  %v7534_v46 = vpack.c.bf16 %v6996_v49, %v6995_v1  ;;  %7471 = vmatprep.subr.bf16.mxu1 %v7470_v36  ;;  %v6919_v6 = vld [vmem:[%s15883_s5 + $0x4a0] sm:$0xff]  ;;  %v6920_v11 = vld [vmem:[%s15883_s5 + $0x4a8] sm:$0xff]  ;;  %v6941_v49 = vld [vmem:[%s15883_s5 + $0x550] sm:$0xff] }
 0x7de   :  { %v5437_v9 = vsel %vm2573_vm9, %v5416_v7, %v5418_v16  ;;  %v6933_v7 = vld [vmem:[%s15883_s5 + $0x510] sm:$0xff]  ;;  %7473 = vmatpush3.bf16.msra.mxu1 %v7472_v45  ;;  %v6987_v36 = vld [vmem:[%s15883_s5 + $0x6c0] sm:$0xff]  ;;  %v6988_v1 = vld [vmem:[%s15883_s5 + $0x6c8] sm:$0xff] }
 0x7df   :  { %v5561_v57 = vpop.permute.xlu1 %5560  ;;  %v5472_v34 = vadd.f32 %v5471_v18, %v5437_v9  ;;  %7535 = vmatprep.subr.bf16.mxu0 %v7534_v46  ;;  %v6935_v9 = vld [vmem:[%s15883_s5 + $0x520] sm:$0xff]  ;;  %v7540_v18 = vpack.c.bf16 %v6982_v52, %v6981_v19  ;;  %v6942_v45 = vld [vmem:[%s15883_s5 + $0x558] sm:$0xff]  ;;  %v7005_v46 = vld [vmem:[%s15883_s5 + $0x750] sm:$0xff] }
 0x7e0   :  { %v5580_v13 = vsel %vm2573_vm9, %v5559_v50, %v5561_v57  ;;  %v7474_v50 = vpack.c.bf16 %v6934_v51, %v6933_v7  ;;  %7537 = vmatpush3.bf16.msra.mxu0 %v7536_v2  ;;  %v7552_v7 = vpack.c.bf16 %v6988_v1, %v6987_v36  ;;  %v7490_v2 = vpack.c.bf16 %v6942_v45, %v6941_v49  ;;  %v6925_v51 = vld [vmem:[%s15883_s5 + $0x4d0] sm:$0xff]  ;;  %v6944_v19 = vld [vmem:[%s15883_s5 + $0x568] sm:$0xff] }
 0x7e1   :  { %v5420_v58 = vpop.permute.xlu0 %5419  ;;  %v5615_v32 = vadd.f32 %v5614_v59, %v5580_v13  ;;  %v7000_v13 = vld [vmem:[%s15883_s5 + $0x728] sm:$0xff] }
 0x7e2   :  { %v5438_v41 = vsel %vm2573_vm9, %v5418_v16, %v5420_v58  ;;  %v7538_v16 = vpack.c.bf16 %v6998_v55, %v6997_v35  ;;  %7475 = vmatprep.subr.bf16.mxu1 %v7474_v50  ;;  %v6984_v59 = vld [vmem:[%s15883_s5 + $0x6a8] sm:$0xff]  ;;  %v6990_v35 = vld [vmem:[%s15883_s5 + $0x6d8] sm:$0xff]  ;;  %v6943_v55 = vld [vmem:[%s15883_s5 + $0x560] sm:$0xff] }
 0x7e3   :  { %v5473_v27 = vadd.f32 %v5472_v34, %v5438_v41  ;;  %v6999_v34 = vld [vmem:[%s15883_s5 + $0x720] sm:$0xff]  ;;  %7477 = vmatpush3.bf16.msra.mxu1 %v7476_v4  ;;  %v7554_v4 = vpack.c.bf16 %v7006_v37, %v7005_v46  ;;  %v7008_v52 = vld [vmem:[%s15883_s5 + $0x768] sm:$0xff] }
 0x7e4   :  { %7539 = vmatprep.subr.bf16.mxu0 %v7538_v16  ;;  %v6983_v41 = vld [vmem:[%s15883_s5 + $0x6a0] sm:$0xff] }
 0x7e5   :  { %5474 = vadd.xlane.f32.xlu1 %v5473_v27  ;;  %v5563_v31 = vpop.permute.xlu0 %5562  ;;  %v7480_v27 = vpack.c.bf16 %v6920_v11, %v6919_v6  ;;  %7541 = vmatpush3.bf16.msra.mxu0 %v7540_v18  ;;  %v7007_v16 = vld [vmem:[%s15883_s5 + $0x760] sm:$0xff]  ;;  %v7494_v18 = vpack.c.bf16 %v6944_v19, %v6943_v55  ;;  %v6928_v6 = vld [vmem:[%s15883_s5 + $0x4e8] sm:$0xff]  ;;  %v17625_v19 = vld [vmem:[#allocation213_spill] sm:$0xff] }
 0x7e6   :  { %v5581_v48 = vsel %vm2573_vm9, %v5561_v57, %v5563_v31  ;;  %v7478_v57 = vpack.c.bf16 %v6936_v53, %v6935_v9  ;;  %v6937_v31 = vld [vmem:[%s15883_s5 + $0x530] sm:$0xff]  ;;  %v7492_v9 = vpack.c.bf16 %v6926_v44, %v6925_v51  ;;  %v7556_v53 = vpack.c.bf16 %v6990_v35, %v6989_v61  ;;  %v17624_v35 = vld [vmem:[#allocation105_spill] sm:$0xff] }
 0x7e7   :  { %v5616_v33 = vadd.f32 %v5615_v32, %v5581_v48  ;;  %v7542_v32 = vpack.c.bf16 %v7000_v13, %v6999_v34  ;;  %v6938_v48 = vld [vmem:[%s15883_s5 + $0x538] sm:$0xff]  ;;  %v7558_v11 = vpack.c.bf16 %v7008_v52, %v7007_v16  ;;  %v17626_v52 = vld [vmem:[#allocation203_spill] sm:$0xff] }
 0x7e8   :  { %7479 = vmatprep.subr.bf16.mxu1 %v7478_v57  ;;  %v6927_v57 = vld [vmem:[%s15883_s5 + $0x4e0] sm:$0xff] }
 0x7e9   :  { %5617 = vadd.xlane.f32.xlu0 %v5616_v33  ;;  %v6921_v33 = vld [vmem:[%s15883_s5 + $0x4b0] sm:$0xff]  ;;  %7543 = vmatprep.subr.bf16.mxu0 %v7542_v32  ;;  %v7496_v34 = vpack.c.bf16 %v6928_v6, %v6927_v57  ;;  %v17628_v57 = vld [vmem:[#allocation194_spill] sm:$0xff] }
 0x7ea   :  { %7481 = vmatpush3.bf16.msra.mxu1 %v7480_v27  ;;  %v17615_v27 = vld [vmem:[#allocation64_spill] sm:$0xff] }
 0x872   :  { %v5475_v21 = vpop.xlane.xlu1 %5474 }
 0x873   :  { %v5476_v8 = vrot.slane %v5475_v21, 4 }
 0x875   :  { %v5477_v26 = vadd.f32 %v5476_v8, %v5475_v21  ;;  %v7544_v21 = vpack.c.bf16 %v6984_v59, %v6983_v41  ;;  %v7482_v8 = vpack.c.bf16 %v6938_v48, %v6937_v31  ;;  %v17614_v41 = vld [vmem:[#allocation63_spill] sm:$0xff] }
 0x876   :  { %v5618_v28 = vpop.xlane.xlu0 %5617 }
 0x877   :  { %v5478_v60 = vrot.slane %v5477_v26, 2  ;;  %v5619_v63 = vrot.slane %v5618_v28, 4  ;;  %7545 = vmatpush3.bf16.msra.mxu0 %v7544_v21  ;;  %7483 = vmatprep.subr.bf16.mxu1 %v7482_v8  ;;  %v17617_v8 = vld [vmem:[#allocation57_spill] sm:$0xff] }
 0x879   :  { %v5620_v25 = vadd.f32 %v5619_v63, %v5618_v28  ;;  %v5479_v42 = vadd.f32 %v5478_v60, %v5477_v26  ;;  %v6922_v26 = vld [vmem:[%s15883_s5 + $0x4b8] sm:$0xff]  ;;  %v7001_v28 = vld [vmem:[%s15883_s5 + $0x730] sm:$0xff] }
 0x87a   :  { %v7002_v60 = vld [vmem:[%s15883_s5 + $0x738] sm:$0xff] }
 0x87b   :  { %v5621_v0 = vrot.slane %v5620_v25, 2  ;;  %v5480_v17 = vrot.slane %v5479_v42, 1  ;;  %v7546_v63 = vpack.c.bf16 %v7002_v60, %v7001_v28 }
 0x87d   :  { %v5481_v38 = vadd.f32 %v5480_v17, %v5479_v42  ;;  %v5622_v56 = vadd.f32 %v5621_v0, %v5620_v25  ;;  %v6985_v25 = vld [vmem:[%s15883_s5 + $0x6b0] sm:$0xff]  ;;  %v6986_v42 = vld [vmem:[%s15883_s5 + $0x6b8] sm:$0xff]  ;;  %v6939_v0 = vld [vmem:[%s15883_s5 + $0x540] sm:$0xff]  ;;  %7547 = vmatprep.subr.bf16.mxu0 %v7546_v63 }
 0x87e   :  { %v6940_v17 = vld [vmem:[%s15883_s5 + $0x548] sm:$0xff] }
 0x87f   :  { %7808 = vpush %v5481_v38  ;;  %v5623_v29 = vrot.slane %v5622_v56, 1  ;;  %v7484_v38 = vpack.c.bf16 %v6922_v26, %v6921_v33  ;;  %v7486_v10 = vpack.c.bf16 %v6940_v17, %v6939_v0  ;;  %v17616_v33 = vld [vmem:[#allocation60_spill] sm:$0xff]  ;;  %v6992_v0 = vld [vmem:[%s15883_s5 + $0x6e8] sm:$0xff] }
 0x880   :  { %v6945_v17 = vld [vmem:[%s15883_s5 + $0x570] sm:$0xff] }
 0x881   :  { %v5624_v62 = vadd.f32 %v5623_v29, %v5622_v56  ;;  %v7003_v56 = vld [vmem:[%s15883_s5 + $0x740] sm:$0xff]  ;;  %v7004_v29 = vld [vmem:[%s15883_s5 + $0x748] sm:$0xff]  ;;  %7485 = vmatpush3.bf16.msra.mxu1 %v7484_v38 }
 0x882   :  { %v7550_v47 = vpack.c.bf16 %v7004_v29, %v7003_v56  ;;  %7487 = vmatprep.subr.bf16.mxu1 %v7486_v10  ;;  %v17618_v38 = vld [vmem:[#allocation59_spill] sm:$0xff]  ;;  %v17619_v10 = vld [vmem:[#allocation81_spill] sm:$0xff] }
 0x883   :  { %7810 = vpush %v5624_v62  ;;  %v7548_v62 = vpack.c.bf16 %v6986_v42, %v6985_v25  ;;  %v6991_v42 = vld [vmem:[%s15883_s5 + $0x6e0] sm:$0xff] }
 0x884   :  { %v7560_v29 = vpack.c.bf16 %v6992_v0, %v6991_v42 }
 0x885   :  { %7549 = vmatpush3.bf16.msra.mxu0 %v7548_v62  ;;  %7489 = vmatpush3.bf16.msra.mxu1 %v7488_v54  ;;  %v6946_v62 = vld [vmem:[%s15883_s5 + $0x578] sm:$0xff]  ;;  %v17622_v54 = vld [vmem:[#allocation71_spill] sm:$0xff] }
 0x886   :  { %7551 = vmatprep.subr.bf16.mxu0 %v7550_v47  ;;  %7491 = vmatprep.subr.bf16.mxu1 %v7490_v2  ;;  %v17621_v47 = vld [vmem:[#allocation80_spill] sm:$0xff]  ;;  %v7498_v49 = vpack.c.bf16 %v6946_v62, %v6945_v17 }
 0x889   :  { %7553 = vmatpush3.bf16.msra.mxu0 %v7552_v7  ;;  %7493 = vmatpush3.bf16.msra.mxu1 %v7492_v9 }
 0x88a   :  { %7555 = vmatprep.subr.bf16.mxu0 %v7554_v4  ;;  %7495 = vmatprep.subr.bf16.mxu1 %v7494_v18 }
 0x88d   :  { %7557 = vmatpush3.bf16.msra.mxu0 %v7556_v53  ;;  %7497 = vmatpush3.bf16.msra.mxu1 %v7496_v34  ;;  %v17627_v53 = vld [vmem:[#allocation237_spill] sm:$0xff] }
 0x88e   :  { %7559 = vmatprep.subr.bf16.mxu0 %v7558_v11  ;;  %7499 = vmatprep.subr.bf16.mxu1 %v7498_v49 }
 0x891   :  { %7561 = vmatpush3.bf16.msra.mxu0 %v7560_v29 }
 0x8b0   :  { %s7809_s22 = spop %7808 }
 0x8b1   :  { %s14588_s8 = smul.f32 6.1035156e-05, %s7809_s22  ;;  %s14766_s22 = sld [smem:[#allocation7 + $0x1]] }
 0x8b3   :  { %s5627_s1 = smul.f32 %s14588_s8, %s14588_s8 }
 0x8b4   :  { %s7811_s25 = spop %7810 }
 0x8b5   :  { %s5626_s0 = smul.f32 6.1035156e-05, %s7811_s25 }
 0x8b7   :  { %s5628_s23 = ssub.f32 %s5626_s0, %s5627_s1 }
 0x8b9   :  { %s5630_s15 = sadd.f32 1e-05, %s5628_s23 }
 0x8ba   :  { %s2790_s23 = ssub.f32 %s2788_s20, %s2789_s21 }
 0x8bb   :  { %v5631_v58 = vstv %s5630_s15 }
 0x8bc   :  { %7912 = vrsqrt.f32 %v5631_v58  ;;  %v14756_v58 = vstv %s2787_s17  ;;  %v14758_v13 = vstv %s2790_s23 }
 0x8bd   :  { %v2795_v59 = vmul.f32 %v14756_v58, %v17614_v41  ;;  %v2796_v32 = vmul.f32 %v14756_v58, %v17615_v27  ;;  %v2794_v21 = vmul.f32 %v14756_v58, %v17616_v33  ;;  %v2792_v26 = vmul.f32 %v14756_v58, %v17617_v8  ;;  %v17629_v41 = vld [vmem:[#allocation107_spill] sm:$0xff]  ;;  %v17630_v33 = vld [vmem:[#allocation26_spill] sm:$0xff] }
 0x8be   :  { %v2793_v56 = vmul.f32 %v14756_v58, %v17618_v38  ;;  %v2805_v3 = vmul.f32 %v14756_v58, %v17619_v10  ;;  %v14796_v36 = vmul.f32 %v14756_v58, %v17620_v30  ;;  %v14800_v1 = vmul.f32 %v14756_v58, %v17621_v47 }
 0x8bf   :  { %v2816_v31 = vadd.f32 %v14758_v13, %v2795_v59  ;;  %v2817_v48 = vadd.f32 %v14758_v13, %v2796_v32  ;;  %v14773_v63 = vadd.f32 %v14758_v13, %v2794_v21  ;;  %v14776_v25 = vadd.f32 %v14758_v13, %v2792_v26 }
 0x8c0   :  { %v14809_v37 = vadd.f32 %v14758_v13, %v2793_v56  ;;  %v14813_v7 = vmul.f32 %v14756_v58, %v17622_v54  ;;  %v14822_v44 = vadd.f32 %v14758_v13, %v2805_v3 }
 0x8c1   :  { %v2856_v28 = vmul.f32 0.3, %v2816_v31  ;;  %v2857_v60 = vmul.f32 0.3, %v2817_v48  ;;  %vm2836_vm10 = vcmp.gt.f32.partialorder %v2816_v31, 0.0  ;;  %vm2837_vm11 = vcmp.gt.f32.partialorder %v2817_v48, 0.0 }
 0x8c2   :  { %v14819_v51 = vmul.f32 0.3, %v14773_v63  ;;  %v14825_v61 = vmul.f32 0.3, %v14776_v25 }
 0x8c3   :  { %v14803_v45 = vsel %vm2836_vm10, %v2816_v31, %v2856_v28  ;;  %v14806_v46 = vsel %vm2837_vm11, %v2817_v48, %v2857_v60  ;;  %vm2833_vm11 = vcmp.gt.f32.partialorder %v14776_v25, 0.0 }
 0x8c6   :  { %v7913_v50 = vpop.eup %7912 }
 0x8c7   :  { %7812 = vpush %v7913_v50  ;;  %v17623_v50 = vld [vmem:[#allocation232_spill] sm:$0xff] }
 0x8f8   :  { %s7813_s30 = spop %7812 }
 0x8f9   :  { %s5634_s9 = smul.f32 %s7813_s30, %s6913_s24  ;;  %s8122_s24 = smov [#allocation8]  }
 0x8fb   :  { %s5636_s0 = smul.f32 %s5634_s9, %s14588_s8  ;;  %v14816_v2 = vstv %s5634_s9 }
 0x8fc   :  { %v5639_v4 = vmul.f32 %v14816_v2, %v17623_v50  ;;  %v5640_v55 = vmul.f32 %v14816_v2, %v17624_v35  ;;  %v5641_v16 = vmul.f32 %v14816_v2, %v17625_v19  ;;  %v5644_v9 = vmul.f32 %v14816_v2, %v17626_v52 }
 0x8fd   :  { %s5637_s8 = ssub.f32 %s14766_s22, %s5636_s0  ;;  %v5645_v18 = vmul.f32 %v14816_v2, %v17627_v53  ;;  %v5643_v6 = vmul.f32 %v14816_v2, %v17628_v57  ;;  %v5650_v11 = vmul.f32 %v14816_v2, %v14212_v40  ;;  %v5651_v34 = vmul.f32 %v14816_v2, %v14330_v15  ;;  %s6844_s22 = sshll.u32 %s8122_s24, 4  ;;  %s6845_s22 = int_to_ptr.vmem [resolvable:$true] %s6844_s22 }
 0x8fe   :  { %v5642_v59 = vmul.f32 %v14816_v2, %v17629_v41  ;;  %v5649_v27 = vmul.f32 %v14816_v2, %v14210_v22  ;;  %v5654_v32 = vmul.f32 %v14816_v2, %v14469_v43  ;;  %v5655_v31 = vmul.f32 %v14816_v2, %v14520_v12  ;;  %s8081_s13 = scalar_lea.vmem %s6845_s22, 256  ;;  %p8086_p2 = scmp.lt.s32.totalorder %s6845_s22, %s6845_s22 }
 0x8ff   :  { %v14852_v48 = vstv %s5637_s8  ;;  %v5647_v40 = vmul.f32 %v14816_v2, %v17630_v33  ;;  %v5653_v15 = vmul.f32 %v14816_v2, %v14406_v14  ;;  %v14860_v21 = vmul.f32 %v14816_v2, %v17557_v5  ;;  %p8082_p1 = scmp.ne.s32.totalorder %s6845_s22, %s8081_s13  ;;  %p8087_p3 = scmp.lt.s32.totalorder %s8081_s13, %s8081_s13 }
 0x900   :  { %v5660_v22 = vadd.f32 %v14852_v48, %v5639_v4  ;;  %v5661_v8 = vadd.f32 %v14852_v48, %v5640_v55  ;;  %v5662_v43 = vadd.f32 %v14852_v48, %v5641_v16  ;;  %v5665_v12 = vadd.f32 %v14852_v48, %v5644_v9 }
 0x901   :  { %v5666_v26 = vadd.f32 %v14852_v48, %v5645_v18  ;;  %v5664_v28 = vadd.f32 %v14852_v48, %v5643_v6  ;;  %v5671_v60 = vadd.f32 %v14852_v48, %v5650_v11  ;;  %v5672_v14 = vadd.f32 %v14852_v48, %v5651_v34  ;;  %p8088_p4 = por %p8087_p3, %p8086_p2 }
 0x902   :  { %vm5680_vm12 = vcmp.gt.f32.partialorder %v5660_v22, 0.0  ;;  %v5700_v42 = vmul.f32 0.3, %v5660_v22  ;;  %vm5681_vm13 = vcmp.gt.f32.partialorder %v5661_v8, 0.0  ;;  %vm5682_vm14 = vcmp.gt.f32.partialorder %v5662_v43, 0.0 }
 0x903   :  { %v5701_v5 = vmul.f32 0.3, %v5661_v8  ;;  %v5702_v0 = vmul.f32 0.3, %v5662_v43  ;;  %vm5685_vm15 = vcmp.gt.f32.partialorder %v5665_v12, 0.0  ;;  %vm5686_vm0 = vcmp.gt.f32.partialorder %v5666_v26, 0.0  ;;  %p8089_p5 = pnand %p8088_p4, %p8082_p1 }
 0x904   :  { %v5720_v17 = vsel %vm5680_vm12, %v5660_v22, %v5700_v42  ;;  %v5705_v38 = vmul.f32 0.3, %v5665_v12  ;;  %v5706_v56 = vmul.f32 0.3, %v5666_v26  ;;  %vm5684_vm1 = vcmp.gt.f32.partialorder %v5664_v28, 0.0  ;;  %v17631_v42 = vld [vmem:[#allocation75_spill] sm:$0xff] }
 0x905   :  { %5905 = vrot.lane.b32.xlu1 %v5720_v17, %s8121_s26  ;;  %v5721_v29 = vsel %vm5681_vm13, %v5661_v8, %v5701_v5  ;;  %v5722_v62 = vsel %vm5682_vm14, %v5662_v43, %v5702_v0  ;;  %v5704_v10 = vmul.f32 0.3, %v5664_v28  ;;  %vm5691_vm2 = vcmp.gt.f32.partialorder %v5671_v60, 0.0 }
 0x906   :  { %v7830_v3 = vpack.i.bf16 %v5722_v62, %v5721_v29  ;;  %v5725_v30 = vsel %vm5685_vm15, %v5665_v12, %v5705_v38  ;;  %v5726_v47 = vsel %vm5686_vm0, %v5666_v26, %v5706_v56  ;;  %vm5692_vm3 = vcmp.gt.f32.partialorder %v5672_v14, 0.0  ;;  %v17632_v38 = vld [vmem:[#allocation165_spill] sm:$0xff]  ;;  %v7009_v29 = vld [vmem:[%s15883_s5 + $0x770] sm:$0xff] }
 0x907   :  { %v7835_v49 = vpack.i.bf16 %v5726_v47, %v5725_v30  ;;  %v5724_v54 = vsel %vm5684_vm1, %v5664_v28, %v5704_v10  ;;  %v5711_v50 = vmul.f32 0.3, %v5671_v60  ;;  %v5712_v4 = vmul.f32 0.3, %v5672_v14  ;;  %v7010_v62 = vld [vmem:[%s15883_s5 + $0x778] sm:$0xff] }
 0x908   :  { %7831 = vrot.lane.b32.xlu0 %v7830_v3, %s8121_s26  ;;  %v5663_v35 = vadd.f32 %v14852_v48, %v5642_v59  ;;  %v5670_v55 = vadd.f32 %v14852_v48, %v5649_v27  ;;  %v5675_v19 = vadd.f32 %v14852_v48, %v5654_v32  ;;  %v5676_v16 = vadd.f32 %v14852_v48, %v5655_v31 }
 0x909   :  { %7836 = vrot.lane.b32.xlu1 %v7835_v49, %s8121_s26  ;;  %v5731_v52 = vsel %vm5691_vm2, %v5671_v60, %v5711_v50  ;;  %v5732_v9 = vsel %vm5692_vm3, %v5672_v14, %v5712_v4  ;;  %v5668_v53 = vadd.f32 %v14852_v48, %v5647_v40  ;;  %v5674_v18 = vadd.f32 %v14852_v48, %v5653_v15  ;;  %v6929_v60 = vld [vmem:[%s15883_s5 + $0x4f0] sm:$0xff] }
 0x90a   :  { %v7840_v57 = vpack.i.bf16 %v5732_v9, %v5731_v52  ;;  %vm5683_vm4 = vcmp.gt.f32.partialorder %v5663_v35, 0.0  ;;  %vm5690_vm5 = vcmp.gt.f32.partialorder %v5670_v55, 0.0  ;;  %v5703_v6 = vmul.f32 0.3, %v5663_v35  ;;  %v6964_v52 = vld [vmem:[%s15883_s5 + $0x608] sm:$0xff] }
 0x90b   :  { %v5710_v11 = vmul.f32 0.3, %v5670_v55  ;;  %vm5695_vm6 = vcmp.gt.f32.partialorder %v5675_v19, 0.0  ;;  %vm5696_vm7 = vcmp.gt.f32.partialorder %v5676_v16, 0.0  ;;  %v5715_v34 = vmul.f32 0.3, %v5675_v19 }
 0x90c   :  { %5913 = vrot.lane.b32.xlu0 %v5724_v54, %s8121_s26  ;;  %v5723_v41 = vsel %vm5683_vm4, %v5663_v35, %v5703_v6  ;;  %v5716_v59 = vmul.f32 0.3, %v5676_v16  ;;  %vm5688_vm8 = vcmp.gt.f32.partialorder %v5668_v53, 0.0  ;;  %vm5694_vm10 = vcmp.gt.f32.partialorder %v5674_v18, 0.0  ;;  %v6993_v54 = vld [vmem:[%s15883_s5 + $0x6f0] sm:$0xff] }
 0x90d   :  { %7841 = vrot.lane.b32.xlu1 %v7840_v57, %s8121_s26  ;;  %v5730_v27 = vsel %vm5690_vm5, %v5670_v55, %v5710_v11  ;;  %v5735_v32 = vsel %vm5695_vm6, %v5675_v19, %v5715_v34  ;;  %v5708_v31 = vmul.f32 0.3, %v5668_v53  ;;  %v5714_v33 = vmul.f32 0.3, %v5674_v18  ;;  %v6994_v19 = vld [vmem:[%s15883_s5 + $0x6f8] sm:$0xff]  ;;  %v7044_v57 = vld [vmem:[%s15883_s5 + $0x888] sm:$0xff] }
 0x90e   :  { %v7845_v40 = vpack.i.bf16 %v5723_v41, %v5730_v27  ;;  %v5736_v15 = vsel %vm5696_vm7, %v5676_v16, %v5716_v59  ;;  %v5657_v22 = vmul.f32 %v14816_v2, %v14529_v24  ;;  %v5669_v8 = vadd.f32 %v14852_v48, %v14860_v21  ;;  %v6930_v24 = vld [vmem:[%s15883_s5 + $0x4f8] sm:$0xff]  ;;  %v6963_v16 = vld [vmem:[%s15883_s5 + $0x600] sm:$0xff] }
 0x90f   :  { %vm2846_vm12 = vcmp.gt.f32.partialorder %v14822_v44, 0.0  ;;  %v7850_v43 = vpack.i.bf16 %v5736_v15, %v5735_v32  ;;  %v5728_v12 = vsel %vm5688_vm8, %v5668_v53, %v5708_v31  ;;  %v5734_v26 = vsel %vm5694_vm10, %v5674_v18, %v5714_v33  ;;  %v7043_v18 = vld [vmem:[%s15883_s5 + $0x880] sm:$0xff] }
 0x910   :  { %v5658_v28 = vmul.f32 %v14816_v2, %v14539_v39  ;;  %7846 = vrot.lane.b32.xlu0 %v7845_v40, %s8121_s26  ;;  %v5678_v21 = vadd.f32 %v14852_v48, %v5657_v22  ;;  %vm5689_vm13 = vcmp.gt.f32.partialorder %v5669_v8, 0.0  ;;  %v5709_v14 = vmul.f32 0.3, %v5669_v8 }
 0x911   :  { %v2800_v5 = vmul.f32 %v14756_v58, %v17631_v42  ;;  %7851 = vrot.lane.b32.xlu1 %v7850_v43, %s8121_s26  ;;  %v7855_v39 = vpack.i.bf16 %v5728_v12, %v5734_v26  ;;  %v5652_v17 = vmul.f32 %v14816_v2, %v14404_v20  ;;  %v5646_v56 = vmul.f32 %v14816_v2, %v17632_v38  ;;  %v17634_v12 = vld [vmem:[#allocation79_spill] sm:$0xff] }
 0x912   :  { %v5679_v0 = vadd.f32 %v14852_v48, %v5658_v28  ;;  %vm5698_vm14 = vcmp.gt.f32.partialorder %v5678_v21, 0.0  ;;  %v5718_v10 = vmul.f32 0.3, %v5678_v21  ;;  %v5729_v3 = vsel %vm5689_vm13, %v5669_v8, %v5709_v14 }
 0x913   :  { %vm2835_vm15 = vcmp.gt.f32.partialorder %v14773_v63, 0.0  ;;  %v7500_v30 = vpack.c.bf16 %v6930_v24, %v6929_v60  ;;  %v5673_v20 = vadd.f32 %v14852_v48, %v5652_v17  ;;  %v5667_v49 = vadd.f32 %v14852_v48, %v5646_v56  ;;  %v17637_v56 = vld [vmem:[#allocation83_spill] sm:$0xff] }
 0x914   :  { %vm5699_vm0 = vcmp.gt.f32.partialorder %v5679_v0, 0.0  ;;  %v5719_v47 = vmul.f32 0.3, %v5679_v0  ;;  %7856 = vrot.lane.b32.xlu0 %v7855_v39, %s8121_s26  ;;  %v5738_v50 = vsel %vm5698_vm14, %v5678_v21, %v5718_v10  ;;  %v5656_v4 = vmul.f32 %v14816_v2, %v14527_v23 }
 0x915   :  { %v2866_v35 = vmul.f32 0.3, %v14822_v44  ;;  %7501 = vmatpush3.bf16.msra.mxu1 %v7500_v30  ;;  %v7562_v55 = vpack.c.bf16 %v7010_v62, %v7009_v29  ;;  %v7860_v9 = vpack.i.bf16 %v5738_v50, %v5729_v3  ;;  %v2825_v23 = vadd.f32 %v14758_v13, %v14796_v36  ;;  %v17638_v29 = vld [vmem:[#allocation82_spill] sm:$0xff] }
 0x916   :  { %v2827_v2 = vadd.f32 %v14758_v13, %v14800_v1  ;;  %v2820_v53 = vadd.f32 %v14758_v13, %v14813_v7  ;;  %v5739_v6 = vsel %vm5699_vm0, %v5679_v0, %v5719_v47  ;;  %v5713_v11 = vmul.f32 0.3, %v5673_v20  ;;  %v17639_v47 = vld [vmem:[#allocation85_spill] sm:$0xff] }
 0x917   :  { %v5677_v34 = vadd.f32 %v14852_v48, %v5656_v4  ;;  %v2821_v36 = vadd.f32 %v14758_v13, %v2800_v5  ;;  %7563 = vmatprep.subr.bf16.mxu0 %v7562_v55  ;;  %7861 = vrot.lane.b32.xlu1 %v7860_v9, %s8121_s26  ;;  %vm5693_vm1 = vcmp.gt.f32.partialorder %v5673_v20, 0.0  ;;  %v5707_v1 = vmul.f32 0.3, %v5667_v49  ;;  %v17635_v5 = vld [vmem:[#allocation68_spill] sm:$0xff] }
 0x918   :  { %v7564_v7 = vpack.c.bf16 %v6994_v19, %v6993_v54  ;;  %v7502_v41 = vpack.c.bf16 %v6964_v52, %v6963_v16  ;;  %5943 = vrot.lane.b32.xlu0 %v5739_v6, %s8121_s26  ;;  %vm5687_vm2 = vcmp.gt.f32.partialorder %v5667_v49, 0.0  ;;  %vm2834_vm3 = vcmp.gt.f32.partialorder %v14809_v37, 0.0  ;;  %v17640_v9 = vld [vmem:[#allocation72_spill] sm:$0xff] }
 0x919   :  { %v2854_v59 = vmul.f32 0.3, %v14809_v37  ;;  %v14949_v27 = vpack.c.bf16 %v7044_v57, %v7043_v18  ;;  %v2873_v48 = vsel %vm2833_vm11, %v14776_v25, %v14825_v61  ;;  %v2886_v32 = vsel %vm2846_vm12, %v14822_v44, %v2866_v35  ;;  %v17633_v25 = vld [vmem:[#allocation77_spill] sm:$0xff] }
 0x91a   :  { %v2865_v31 = vmul.f32 0.3, %v2825_v23  ;;  %v2867_v33 = vmul.f32 0.3, %v2827_v2  ;;  %7565 = vmatpush3.bf16.msra.mxu0 %v7564_v7  ;;  %7503 = vmatprep.subr.bf16.mxu1 %v7502_v41  ;;  %v5733_v40 = vsel %vm5693_vm1, %v5673_v20, %v5713_v11  ;;  %v5717_v15 = vmul.f32 0.3, %v5677_v34 }
 0x91b   :  { %v2860_v22 = vmul.f32 0.3, %v2820_v53  ;;  %v2861_v8 = vmul.f32 0.3, %v2821_v36  ;;  %7599 = vmatprep.subr.bf16.mxu0 %v14949_v27  ;;  %5931 = vrot.lane.b32.xlu1 %v5733_v40, %s8121_s26  ;;  %v5727_v43 = vsel %vm5687_vm2, %v5667_v49, %v5707_v1  ;;  %vm5697_vm4 = vcmp.gt.f32.partialorder %v5677_v34, 0.0  ;;  %v17642_v1 = vld [vmem:[#allocation86_spill] sm:$0xff] }
 0x91c   :  { %v2802_v61 = vmul.f32 %v14756_v58, %v17633_v25  ;;  %v2803_v44 = vmul.f32 %v14756_v58, %v17634_v12  ;;  %5919 = vrot.lane.b32.xlu0 %v5727_v43, %s8121_s26  ;;  %vm2845_vm5 = vcmp.gt.f32.partialorder %v2825_v23, 0.0  ;;  %vm2847_vm6 = vcmp.gt.f32.partialorder %v2827_v2, 0.0 }
 0x91d   :  { %vm2840_vm7 = vcmp.gt.f32.partialorder %v2820_v53, 0.0  ;;  %vm2841_vm8 = vcmp.gt.f32.partialorder %v2821_v36, 0.0  ;;  %v7865_v26 = vpack.i.bf16 %v14806_v46, %v14803_v45  ;;  %v2875_v28 = vsel %vm2835_vm15, %v14773_v63, %v14819_v51  ;;  %v17636_v51 = vld [vmem:[#allocation66_spill] sm:$0xff] }
 0x91e   :  { %v2823_v60 = vadd.f32 %v14758_v13, %v2802_v61  ;;  %v2824_v24 = vadd.f32 %v14758_v13, %v2803_v44  ;;  %v2874_v21 = vsel %vm2834_vm3, %v14809_v37, %v2854_v59  ;;  %v5737_v14 = vsel %vm5697_vm4, %v5677_v34, %v5717_v15 }
 0x91f   :  { %v7875_v42 = vpack.i.bf16 %v2886_v32, %v2873_v48  ;;  %v2798_v39 = vmul.f32 %v14756_v58, %v17635_v5  ;;  %7866 = vrot.lane.b32.xlu1 %v7865_v26, %s8121_s26  ;;  %v2885_v45 = vsel %vm2845_vm5, %v2825_v23, %v2865_v31  ;;  %v2887_v46 = vsel %vm2847_vm6, %v2827_v2, %v2867_v33  ;;  %v17641_v2 = vld [vmem:[#allocation84_spill] sm:$0xff]  ;;  %v6947_v26 = vld [vmem:[%s15883_s5 + $0x580] sm:$0xff] }
 0x920   :  { %v2880_v0 = vsel %vm2840_vm7, %v2820_v53, %v2860_v22  ;;  %v2881_v17 = vsel %vm2841_vm8, %v2821_v36, %v2861_v8  ;;  %6380 = vrot.lane.b32.xlu0 %v2875_v28, %s8121_s26  ;;  %v2797_v38 = vmul.f32 %v14756_v58, %v17636_v51  ;;  %v2807_v37 = vmul.f32 %v14756_v58, %v17637_v56  ;;  %v6948_v28 = vld [vmem:[%s15883_s5 + $0x588] sm:$0xff]  ;;  %v6949_v56 = vld [vmem:[%s15883_s5 + $0x590] sm:$0xff] }
 0x921   :  { %v2819_v63 = vadd.f32 %v14758_v13, %v2798_v39  ;;  %v2808_v62 = vmul.f32 %v14756_v58, %v17638_v29  ;;  %v7870_v10 = vpack.i.bf16 %v2874_v21, %v5737_v14  ;;  %v2863_v3 = vmul.f32 0.3, %v2823_v60  ;;  %v6966_v21 = vld [vmem:[%s15883_s5 + $0x618] sm:$0xff]  ;;  %v7045_v39 = vld [vmem:[%s15883_s5 + $0x890] sm:$0xff] }
 0x922   :  { %v2864_v30 = vmul.f32 0.3, %v2824_v24  ;;  %v2809_v20 = vmul.f32 %v14756_v58, %v17639_v47  ;;  %vm2843_vm10 = vcmp.gt.f32.partialorder %v2823_v60, 0.0  ;;  %vm2844_vm11 = vcmp.gt.f32.partialorder %v2824_v24, 0.0 }
 0x923   :  { %v2818_v49 = vadd.f32 %v14758_v13, %v2797_v38  ;;  %v2828_v54 = vadd.f32 %v14758_v13, %v2807_v37  ;;  %7871 = vrot.lane.b32.xlu1 %v7870_v10, %s8121_s26  ;;  %v2829_v50 = vadd.f32 %v14758_v13, %v2808_v62  ;;  %v7880_v35 = vpack.i.bf16 %v2885_v45, %v2887_v46  ;;  %v7046_v45 = vld [vmem:[%s15883_s5 + $0x898] sm:$0xff] }
 0x924   :  { %v2830_v4 = vadd.f32 %v14758_v13, %v2809_v20  ;;  %7876 = vrot.lane.b32.xlu0 %v7875_v42, %s8121_s26  ;;  %v7885_v55 = vpack.i.bf16 %v2881_v17, %v2880_v0  ;;  %vm2839_vm12 = vcmp.gt.f32.partialorder %v2819_v63, 0.0  ;;  %v2859_v19 = vmul.f32 0.3, %v2819_v63  ;;  %v6950_v37 = vld [vmem:[%s15883_s5 + $0x598] sm:$0xff] }
 0x925   :  { %v2883_v16 = vsel %vm2843_vm10, %v2823_v60, %v2863_v3  ;;  %v2884_v52 = vsel %vm2844_vm11, %v2824_v24, %v2864_v30  ;;  %v2801_v23 = vmul.f32 %v14756_v58, %v17640_v9  ;;  %v2811_v53 = vmul.f32 %v14756_v58, %v17641_v2  ;;  %v6965_v24 = vld [vmem:[%s15883_s5 + $0x610] sm:$0xff]  ;;  %v6967_v3 = vld [vmem:[%s15883_s5 + $0x620] sm:$0xff]  ;;  %v6968_v30 = vld [vmem:[%s15883_s5 + $0x628] sm:$0xff] }
 0x926   :  { %vm2838_vm13 = vcmp.gt.f32.partialorder %v2818_v49, 0.0  ;;  %vm2848_vm14 = vcmp.gt.f32.partialorder %v2828_v54, 0.0  ;;  %v2858_v18 = vmul.f32 0.3, %v2818_v49  ;;  %v2868_v57 = vmul.f32 0.3, %v2828_v54 }
 0x927   :  { %7881 = vrot.lane.b32.xlu1 %v7880_v35, %s8121_s26  ;;  %v2869_v6 = vmul.f32 0.3, %v2829_v50  ;;  %v2870_v11 = vmul.f32 0.3, %v2830_v4  ;;  %v2822_v34 = vadd.f32 %v14758_v13, %v2801_v23  ;;  %v2832_v36 = vadd.f32 %v14758_v13, %v2811_v53  ;;  %v6970_v2 = vld [vmem:[%s15883_s5 + $0x638] sm:$0xff] }
 0x928   :  { %7886 = vrot.lane.b32.xlu0 %v7885_v55, %s8121_s26  ;;  %vm2849_vm15 = vcmp.gt.f32.partialorder %v2829_v50, 0.0  ;;  %vm2850_vm0 = vcmp.gt.f32.partialorder %v2830_v4, 0.0  ;;  %v2810_v7 = vmul.f32 %v14756_v58, %v17642_v1  ;;  %v2879_v41 = vsel %vm2839_vm12, %v2819_v63, %v2859_v19  ;;  %v6951_v19 = vld [vmem:[%s15883_s5 + $0x5a0] sm:$0xff] }
 0x929   :  { %v7890_v59 = vpack.i.bf16 %v2883_v16, %v2884_v52  ;;  %v2878_v48 = vsel %vm2838_vm13, %v2818_v49, %v2858_v18  ;;  %v2888_v32 = vsel %vm2848_vm14, %v2828_v54, %v2868_v57  ;;  %v2889_v33 = vsel %vm2849_vm15, %v2829_v50, %v2869_v6  ;;  %v7047_v49 = vld [vmem:[%s15883_s5 + $0x8a0] sm:$0xff]  ;;  %v7048_v54 = vld [vmem:[%s15883_s5 + $0x8a8] sm:$0xff]  ;;  %v7049_v6 = vld [vmem:[%s15883_s5 + $0x8b0] sm:$0xff] }
 0x92a   :  { %v2831_v31 = vadd.f32 %v14758_v13, %v2810_v7  ;;  %v2890_v40 = vsel %vm2850_vm0, %v2830_v4, %v2870_v11  ;;  %v2862_v15 = vmul.f32 0.3, %v2822_v34  ;;  %v2872_v22 = vmul.f32 0.3, %v2832_v36  ;;  %v6952_v16 = vld [vmem:[%s15883_s5 + $0x5a8] sm:$0xff]  ;;  %v7050_v11 = vld [vmem:[%s15883_s5 + $0x8b8] sm:$0xff] }
 0x92b   :  { %6388 = vrot.lane.b32.xlu1 %v2879_v41, %s8121_s26  ;;  %vm2842_vm1 = vcmp.gt.f32.partialorder %v2822_v34, 0.0  ;;  %vm2852_vm2 = vcmp.gt.f32.partialorder %v2832_v36, 0.0  ;;  %v7895_v8 = vpack.i.bf16 %v2888_v32, %v2878_v48  ;;  %v7900_v43 = vpack.i.bf16 %v2890_v40, %v2889_v33  ;;  %v6953_v48 = vld [vmem:[%s15883_s5 + $0x5b0] sm:$0xff]  ;;  %v6954_v32 = vld [vmem:[%s15883_s5 + $0x5b8] sm:$0xff] }
 0x92c   :  { %7891 = vrot.lane.b32.xlu0 %v7890_v59, %s8121_s26  ;;  %v2871_v58 = vmul.f32 0.3, %v2831_v31  ;;  %vm2851_vm3 = vcmp.gt.f32.partialorder %v2831_v31, 0.0  ;;  %v2882_v25 = vsel %vm2842_vm1, %v2822_v34, %v2862_v15  ;;  %v2892_v61 = vsel %vm2852_vm2, %v2832_v36, %v2872_v22  ;;  %v6971_v15 = vld [vmem:[%s15883_s5 + $0x640] sm:$0xff] }
 0x92d   :  { %v7905_v12 = vpack.i.bf16 %v2892_v61, %v2882_v25  ;;  %v7504_v17 = vpack.c.bf16 %v6948_v28, %v6947_v26  ;;  %v7506_v38 = vpack.c.bf16 %v6966_v21, %v6965_v24  ;;  %v7602_v10 = vpack.c.bf16 %v7046_v45, %v7045_v39  ;;  %v6974_v39 = vld [vmem:[%s15883_s5 + $0x658] sm:$0xff]  ;;  %v7053_v45 = vld [vmem:[%s15883_s5 + $0x8d0] sm:$0xff] }
 0x92e   :  { %v2891_v13 = vsel %vm2851_vm3, %v2831_v31, %v2871_v58  ;;  %v7508_v35 = vpack.c.bf16 %v6950_v37, %v6949_v56  ;;  %v7510_v55 = vpack.c.bf16 %v6968_v30, %v6967_v3  ;;  %v7606_v23 = vpack.c.bf16 %v7048_v54, %v7047_v49  ;;  %v7052_v58 = vld [vmem:[%s15883_s5 + $0x8c8] sm:$0xff]  ;;  %v6958_v56 = vld [vmem:[%s15883_s5 + $0x5d8] sm:$0xff]  ;;  %v6959_v49 = vld [vmem:[%s15883_s5 + $0x5e0] sm:$0xff] }
 0x92f   :  { %7896 = vrot.lane.b32.xlu1 %v7895_v8, %s8121_s26  ;;  %v7512_v1 = vpack.c.bf16 %v6952_v16, %v6951_v19  ;;  %v7610_v40 = vpack.c.bf16 %v7050_v11, %v7049_v6  ;;  %v6972_v8 = vld [vmem:[%s15883_s5 + $0x648] sm:$0xff]  ;;  %v7516_v25 = vpack.c.bf16 %v6954_v32, %v6953_v48  ;;  %v7057_v19 = vld [vmem:[%s15883_s5 + $0x8f0] sm:$0xff]  ;;  %v7058_v16 = vld [vmem:[%s15883_s5 + $0x8f8] sm:$0xff] }
 0x930   :  { %7901 = vrot.lane.b32.xlu0 %v7900_v43, %s8121_s26  ;;  %v7051_v43 = vld [vmem:[%s15883_s5 + $0x8c0] sm:$0xff]  ;;  %v7518_v24 = vpack.c.bf16 %v6972_v8, %v6971_v15  ;;  %v7056_v3 = vld [vmem:[%s15883_s5 + $0x8e8] sm:$0xff]  ;;  %v7626_v6 = vpack.c.bf16 %v7058_v16, %v7057_v19  ;;  %v7029_v8 = vld [vmem:[%s15883_s5 + $0x810] sm:$0xff] }
 0x931   :  { %v7614_v21 = vpack.c.bf16 %v7052_v58, %v7051_v43  ;;  %v6960_v54 = vld [vmem:[%s15883_s5 + $0x5e8] sm:$0xff]  ;;  %v7027_v11 = vld [vmem:[%s15883_s5 + $0x800] sm:$0xff]  ;;  %v7030_v43 = vld [vmem:[%s15883_s5 + $0x818] sm:$0xff] }
 0x932   :  { %v7011_v48 = vld [vmem:[%s15883_s5 + $0x780] sm:$0xff]  ;;  %v7012_v32 = vld [vmem:[%s15883_s5 + $0x788] sm:$0xff] }
 0x933   :  { %6412 = vrot.lane.b32.xlu1 %v2891_v13, %s8121_s26  ;;  %v2925_v58 = vld [vmem:[%s15883_s5 + $0x100] sm:$0xff] }
 0x934   :  { %7906 = vrot.lane.b32.xlu0 %v7905_v12, %s8121_s26  ;;  %v6955_v12 = vld [vmem:[%s15883_s5 + $0x5c0] sm:$0xff] }
 0x977   :  { %v5906_v44 = vpop.permute.xlu1 %5905 }
 0x97a   :  { %v15020_v60 = vpop.permute.xlu0 %7831 }
 0x97b   :  { %v7834_v14 = vunpack.i.h.bf16 %v15020_v60  ;;  %v7833_v42 = vunpack.i.l.bf16 %v15020_v60  ;;  %v15030_v5 = vpop.permute.xlu1 %7836  ;;  %v2927_v60 = vld [vmem:[%s15883_s5 + $0x110] sm:$0xff] }
 0x97c   :  { %v7839_v46 = vunpack.i.h.bf16 %v15030_v5  ;;  %v7838_v0 = vunpack.i.l.bf16 %v15030_v5 }
 0x97d   :  { %v5946_v63 = vsel %vm2573_vm9, %v7833_v42, %v7834_v14  ;;  %v5945_v51 = vsel %vm2573_vm9, %v5906_v44, %v7833_v42  ;;  %v6956_v44 = vld [vmem:[%s15883_s5 + $0x5c8] sm:$0xff]  ;;  %v6973_v42 = vld [vmem:[%s15883_s5 + $0x650] sm:$0xff] }
 0x97e   :  { %v5914_v29 = vpop.permute.xlu0 %5913  ;;  %6045 = vmatprep.mubr.f32.mxu1 %v5946_v63  ;;  %v5950_v62 = vsel %vm2573_vm9, %v7838_v0, %v7839_v46  ;;  %v7520_v63 = vpack.c.bf16 %v6956_v44, %v6955_v12  ;;  %v7568_v12 = vpack.c.bf16 %v7012_v32, %v7011_v48  ;;  %v2943_v44 = vld [vmem:[%s15883_s5 + $0x190] sm:$0xff]  ;;  %v7019_v48 = vld [vmem:[%s15883_s5 + $0x7c0] sm:$0xff]  ;;  %v7020_v32 = vld [vmem:[%s15883_s5 + $0x7c8] sm:$0xff] }
 0x97f   :  { %6046 = vmatmul.mubr.f32.vlgmr.msra.gmra.mrb[0].mxu1 %v5945_v51  ;;  %v15059_v47 = vpop.permute.xlu1 %7841  ;;  %6195 = vmatprep.mubr.f32.mxu0 %v5950_v62  ;;  %v5949_v20 = vsel %vm2573_vm9, %v5914_v29, %v7838_v0  ;;  %v7054_v0 = vld [vmem:[%s15883_s5 + $0x8d8] sm:$0xff]  ;;  %v7522_v51 = vpack.c.bf16 %v6974_v39, %v6973_v42  ;;  %v6976_v62 = vld [vmem:[%s15883_s5 + $0x668] sm:$0xff]  ;;  %v7570_v42 = vpack.c.bf16 %v7030_v43, %v7029_v8  ;;  %v7013_v39 = vld [vmem:[%s15883_s5 + $0x790] sm:$0xff] }
 0x980   :  { %7505 = vmatpush3.bf16.msra.mxu1 %v7504_v17  ;;  %v7844_v50 = vunpack.i.h.bf16 %v15059_v47  ;;  %v7843_v4 = vunpack.i.l.bf16 %v15059_v47  ;;  %6196 = vmatmul.mubr.f32.vlgmr.msra.gmra.mrb[0].mxu0 %v5949_v20  ;;  %v7618_v37 = vpack.c.bf16 %v7054_v0, %v7053_v45  ;;  %v7014_v45 = vld [vmem:[%s15883_s5 + $0x798] sm:$0xff]  ;;  %v2929_v47 = vld [vmem:[%s15883_s5 + $0x120] sm:$0xff] }
 0x981   :  { %7601 = vmatpush3.bf16.msra.mxu0 %v14949_v27  ;;  %7507 = vmatprep.subr.bf16.mxu1 %v7506_v38  ;;  %v6969_v27 = vld [vmem:[%s15883_s5 + $0x630] sm:$0xff]  ;;  %v7038_v8 = vld [vmem:[%s15883_s5 + $0x858] sm:$0xff] }
 0x982   :  { %v15077_v52 = vpop.permute.xlu0 %7846  ;;  %v5955_v9 = vsel %vm2573_vm9, %v7843_v4, %v7844_v50  ;;  %7603 = vmatprep.subr.bf16.mxu0 %v7602_v10  ;;  %v7514_v59 = vpack.c.bf16 %v6970_v2, %v6969_v27  ;;  %v6957_v38 = vld [vmem:[%s15883_s5 + $0x5d0] sm:$0xff] }
 0x983   :  { %v7849_v53 = vunpack.i.h.bf16 %v15077_v52  ;;  %v7848_v18 = vunpack.i.l.bf16 %v15077_v52  ;;  %v15090_v57 = vpop.permute.xlu1 %7851  ;;  %6050 = vmatprep.mubr.f32.mxu1 %v5955_v9  ;;  %v7524_v30 = vpack.c.bf16 %v6958_v56, %v6957_v38  ;;  %v6961_v2 = vld [vmem:[%s15883_s5 + $0x5f0] sm:$0xff] }
 0x984   :  { %7509 = vmatpush3.bf16.msra.mxu1 %v7508_v35  ;;  %v7854_v34 = vunpack.i.h.bf16 %v15090_v57  ;;  %v7853_v36 = vunpack.i.l.bf16 %v15090_v57  ;;  %v6977_v35 = vld [vmem:[%s15883_s5 + $0x670] sm:$0xff]  ;;  %v2993_v57 = vld [vmem:[%s15883_s5 + $0x320] sm:$0xff] }
 0x985   :  { %7605 = vmatpush3.bf16.msra.mxu0 %v7602_v10  ;;  %v5954_v7 = vsel %vm2573_vm9, %v7848_v18, %v7843_v4  ;;  %7511 = vmatprep.subr.bf16.mxu1 %v7510_v55  ;;  %v5948_v41 = vsel %vm2573_vm9, %v7849_v53, %v5914_v29  ;;  %v6975_v29 = vld [vmem:[%s15883_s5 + $0x660] sm:$0xff]  ;;  %v6978_v55 = vld [vmem:[%s15883_s5 + $0x678] sm:$0xff]  ;;  %v5947_v0 = vsel %vm2573_vm9, %v7834_v14, %v7849_v53 }
 0x986   :  { %v15110_v31 = vpop.permute.xlu0 %7856  ;;  %6051 = vmatmul.mubr.f32.gmra.mrb[2].mxu1 %v5954_v7  ;;  %v5959_v33 = vsel %vm2573_vm9, %v7853_v36, %v7854_v34  ;;  %7607 = vmatprep.subr.bf16.mxu0 %v7606_v23  ;;  %v7055_v10 = vld [vmem:[%s15883_s5 + $0x8e0] sm:$0xff]  ;;  %v7526_v20 = vpack.c.bf16 %v6976_v62, %v6975_v29  ;;  %v7530_v27 = vpack.c.bf16 %v6978_v55, %v6977_v35  ;;  %v6962_v18 = vld [vmem:[%s15883_s5 + $0x5f8] sm:$0xff]  ;;  %v2942_v7 = vld [vmem:[%s15883_s5 + $0x188] sm:$0xff] }
 0x987   :  { %v7858_v22 = vunpack.i.l.bf16 %v15110_v31  ;;  %6120 = vmatprep.mubr.f32.mxu1 %v5948_v41  ;;  %6200 = vmatprep.mubr.f32.mxu0 %v5959_v33  ;;  %v7859_v26 = vunpack.i.h.bf16 %v15110_v31  ;;  %v7622_v4 = vpack.c.bf16 %v7056_v3, %v7055_v10  ;;  %v7532_v41 = vpack.c.bf16 %v6962_v18, %v6961_v2  ;;  %v2928_v14 = vld [vmem:[%s15883_s5 + $0x118] sm:$0xff]  ;;  %v2946_v29 = vld [vmem:[%s15883_s5 + $0x1a8] sm:$0xff]  ;;  %v7015_v3 = vld [vmem:[%s15883_s5 + $0x7a0] sm:$0xff] }
 0x988   :  { %7513 = vmatpush3.bf16.msra.mxu1 %v7512_v1  ;;  %v2941_v1 = vld [vmem:[%s15883_s5 + $0x180] sm:$0xff]  ;;  %v2947_v31 = vld [vmem:[%s15883_s5 + $0x1b0] sm:$0xff]  ;;  %v7036_v18 = vld [vmem:[%s15883_s5 + $0x848] sm:$0xff] }
 0x989   :  { %v15128_v61 = vpop.permute.xlu1 %7861  ;;  %7609 = vmatpush3.bf16.msra.mxu0 %v7606_v23  ;;  %7515 = vmatprep.subr.bf16.mxu1 %v7514_v59  ;;  %v5958_v13 = vsel %vm2573_vm9, %v7858_v22, %v7853_v36  ;;  %v7528_v23 = vpack.c.bf16 %v6960_v54, %v6959_v49  ;;  %v7028_v36 = vld [vmem:[%s15883_s5 + $0x808] sm:$0xff]  ;;  %v7662_v15 = vpack.c.bf16 %v2942_v7, %v2941_v1  ;;  %v7033_v54 = vld [vmem:[%s15883_s5 + $0x830] sm:$0xff]  ;;  %v7035_v2 = vld [vmem:[%s15883_s5 + $0x840] sm:$0xff] }
 0x98a   :  { %v7863_v28 = vunpack.i.l.bf16 %v15128_v61  ;;  %6201 = vmatmul.mubr.f32.gmra.mrb[2].mxu0 %v5958_v13  ;;  %7611 = vmatprep.subr.bf16.mxu0 %v7610_v40  ;;  %v7566_v59 = vpack.c.bf16 %v7028_v36, %v7027_v11  ;;  %v5944_v33 = vpop.permute.xlu0 %5943  ;;  %v7864_v13 = vunpack.i.h.bf16 %v15128_v61  ;;  %v7668_v49 = vpack.c.bf16 %v2928_v14, %v2927_v60  ;;  %v2931_v11 = vld [vmem:[%s15883_s5 + $0x130] sm:$0xff]  ;;  %v2932_v36 = vld [vmem:[%s15883_s5 + $0x138] sm:$0xff]  ;;  %v2949_v7 = vld [vmem:[%s15883_s5 + $0x1c0] sm:$0xff] }
 0x98b   :  { %v2953_v14 = vld [vmem:[%s15883_s5 + $0x1e0] sm:$0xff] }
 0x98c   :  { %7517 = vmatpush3.bf16.msra.mxu1 %v7516_v25  ;;  %v5953_v17 = vsel %vm2573_vm9, %v7859_v26, %v7863_v28  ;;  %v2926_v25 = vld [vmem:[%s15883_s5 + $0x108] sm:$0xff]  ;;  %v2944_v28 = vld [vmem:[%s15883_s5 + $0x198] sm:$0xff]  ;;  %v5962_v53 = vsel %vm2573_vm9, %v7864_v13, %v5944_v33  ;;  %v7676_v33 = vpack.c.bf16 %v2932_v36, %v2931_v11  ;;  %v3005_v11 = vld [vmem:[%s15883_s5 + $0x380] sm:$0xff] }
 0x98d   :  { %7432 = vmatprep.mubr.f32.mxu0 %v5953_v17  ;;  %7613 = vmatpush3.bf16.msra.mxu0 %v7610_v40  ;;  %v15192_v9 = vpop.permute.xlu1 %5931  ;;  %v7664_v17 = vpack.c.bf16 %v2926_v25, %v2925_v58  ;;  %v7666_v38 = vpack.c.bf16 %v2944_v28, %v2943_v44  ;;  %v2933_v58 = vld [vmem:[%s15883_s5 + $0x140] sm:$0xff]  ;;  %v2934_v25 = vld [vmem:[%s15883_s5 + $0x148] sm:$0xff]  ;;  %v2951_v44 = vld [vmem:[%s15883_s5 + $0x1d0] sm:$0xff] }
 0x98e   :  { %7519 = vmatprep.subr.bf16.mxu1 %v7518_v24  ;;  %7615 = vmatprep.subr.bf16.mxu0 %v7614_v21  ;;  %v5957_v52 = vsel %vm2573_vm9, %v15192_v9, %v7858_v22  ;;  %v15271_v56 = vpop.permute.xlu0 %5919  ;;  %v2945_v22 = vld [vmem:[%s15883_s5 + $0x1a0] sm:$0xff]  ;;  %v2952_v28 = vld [vmem:[%s15883_s5 + $0x1d8] sm:$0xff]  ;;  %v3006_v36 = vld [vmem:[%s15883_s5 + $0x388] sm:$0xff] }
 0x98f   :  { %v5952_v35 = vsel %vm2573_vm9, %v15271_v56, %v7859_v26  ;;  %v7670_v55 = vpack.c.bf16 %v2946_v29, %v2945_v22  ;;  %v2948_v26 = vld [vmem:[%s15883_s5 + $0x1b8] sm:$0xff]  ;;  %v7023_v22 = vld [vmem:[%s15883_s5 + $0x7e0] sm:$0xff]  ;;  %v7024_v29 = vld [vmem:[%s15883_s5 + $0x7e8] sm:$0xff] }
 0x990   :  { %7521 = vmatpush3.bf16.msra.mxu1 %v7520_v63  ;;  %v7031_v63 = vld [vmem:[%s15883_s5 + $0x820] sm:$0xff] }
 0x991   :  { %7617 = vmatpush3.bf16.msra.mxu0 %v7614_v21  ;;  %7523 = vmatprep.subr.bf16.mxu1 %v7522_v51  ;;  %v15218_v40 = vpop.permute.xlu1 %7866  ;;  %v7032_v51 = vld [vmem:[%s15883_s5 + $0x828] sm:$0xff] }
 0x992   :  { %7619 = vmatprep.subr.bf16.mxu0 %v7618_v37  ;;  %v7869_v24 = vunpack.i.h.bf16 %v15218_v40  ;;  %v7868_v21 = vunpack.i.l.bf16 %v15218_v40  ;;  %v7574_v10 = vpack.c.bf16 %v7032_v51, %v7031_v63  ;;  %v7040_v63 = vld [vmem:[%s15883_s5 + $0x868] sm:$0xff]  ;;  %v7682_v51 = vpack.c.bf16 %v2952_v28, %v2951_v44  ;;  %v3008_v44 = vld [vmem:[%s15883_s5 + $0x398] sm:$0xff] }
 0x994   :  { %7525 = vmatpush3.bf16.msra.mxu1 %v7524_v30  ;;  %v6419_v62 = vsel %vm2573_vm9, %v7868_v21, %v7869_v24  ;;  %v7016_v30 = vld [vmem:[%s15883_s5 + $0x7a8] sm:$0xff] }
 0x995   :  { %7621 = vmatpush3.bf16.msra.mxu0 %v7618_v37  ;;  %7527 = vmatprep.subr.bf16.mxu1 %v7526_v20  ;;  %v7572_v37 = vpack.c.bf16 %v7014_v45, %v7013_v39  ;;  %v5956_v20 = vsel %vm2573_vm9, %v7844_v50, %v15192_v9  ;;  %v2930_v50 = vld [vmem:[%s15883_s5 + $0x128] sm:$0xff]  ;;  %v7576_v19 = vpack.c.bf16 %v7016_v30, %v7015_v3  ;;  %v7017_v9 = vld [vmem:[%s15883_s5 + $0x7b0] sm:$0xff]  ;;  %v7022_v45 = vld [vmem:[%s15883_s5 + $0x7d8] sm:$0xff] }
 0x996   :  { %7623 = vmatprep.subr.bf16.mxu0 %v7622_v4  ;;  %v7021_v39 = vld [vmem:[%s15883_s5 + $0x7d0] sm:$0xff]  ;;  %v7042_v30 = vld [vmem:[%s15883_s5 + $0x878] sm:$0xff] }
 0x997   :  { %v7588_v60 = vpack.c.bf16 %v7022_v45, %v7021_v39  ;;  %v7041_v3 = vld [vmem:[%s15883_s5 + $0x870] sm:$0xff]  ;;  %v2896_v45 = vld [vmem:[%s15883_s5 + $0x18] sm:$0xff] }
 0x998   :  { %7529 = vmatpush3.bf16.msra.mxu1 %v7528_v23  ;;  %v7018_v23 = vld [vmem:[%s15883_s5 + $0x7b8] sm:$0xff]  ;;  %v2895_v39 = vld [vmem:[%s15883_s5 + $0x10] sm:$0xff] }
 0x999   :  { %7625 = vmatpush3.bf16.msra.mxu0 %v7622_v4  ;;  %7531 = vmatprep.subr.bf16.mxu1 %v7530_v27  ;;  %v7034_v4 = vld [vmem:[%s15883_s5 + $0x838] sm:$0xff]  ;;  %v7672_v27 = vpack.c.bf16 %v2930_v50, %v2929_v47  ;;  %v7580_v1 = vpack.c.bf16 %v7018_v23, %v7017_v9  ;;  %v7594_v50 = vpack.c.bf16 %v7042_v30, %v7041_v3  ;;  %v2910_v9 = vld [vmem:[%s15883_s5 + $0x88] sm:$0xff]  ;;  %v2897_v30 = vld [vmem:[%s15883_s5 + $0x20] sm:$0xff] }
 0x99a   :  { %7627 = vmatprep.subr.bf16.mxu0 %v7626_v6  ;;  %v7578_v16 = vpack.c.bf16 %v7034_v4, %v7033_v54  ;;  %v2938_v54 = vld [vmem:[%s15883_s5 + $0x168] sm:$0xff]  ;;  %v15408_v4 = vpop.permute.xlu1 %7871  ;;  %v2956_v47 = vld [vmem:[%s15883_s5 + $0x1f8] sm:$0xff]  ;;  %v7636_v61 = vpack.c.bf16 %v2896_v45, %v2895_v39  ;;  %v3015_v45 = vld [vmem:[%s15883_s5 + $0x3d0] sm:$0xff] }
 0x99c   :  { %7533 = vmatpush3.bf16.msra.mxu1 %v7532_v41  ;;  %v2950_v41 = vld [vmem:[%s15883_s5 + $0x1c8] sm:$0xff] }
 0x99d   :  { %7629 = vmatpush3.bf16.msra.mxu0 %v7626_v6  ;;  %7567 = vmatprep.subr.bf16.mxu1 %v7566_v59  ;;  %v7674_v6 = vpack.c.bf16 %v2948_v26, %v2947_v31  ;;  %v7582_v59 = vpack.c.bf16 %v7036_v18, %v7035_v2  ;;  %v7678_v43 = vpack.c.bf16 %v2950_v41, %v2949_v7  ;;  %v7026_v31 = vld [vmem:[%s15883_s5 + $0x7f8] sm:$0xff]  ;;  %v2893_v7 = vld [vmem:[%s15883_s5] sm:$0xff]  ;;  %v2894_v41 = vld [vmem:[%s15883_s5 + $0x8] sm:$0xff] }
 0x99e   :  { %7663 = vmatprep.subr.bf16.mxu0 %v7662_v15  ;;  %v7037_v15 = vld [vmem:[%s15883_s5 + $0x850] sm:$0xff]  ;;  %v2940_v2 = vld [vmem:[%s15883_s5 + $0x178] sm:$0xff] }
 0x99f   :  { %6121 = vmatmul.mubr.f32.vlgmr.msra.gmra.mrb[4].mxu1 %v5947_v0  ;;  %v7680_v0 = vpack.c.bf16 %v2934_v25, %v2933_v58  ;;  %v2990_v58 = vld [vmem:[%s15883_s5 + $0x308] sm:$0xff]  ;;  %v7632_v25 = vpack.c.bf16 %v2894_v41, %v2893_v7  ;;  %v2996_v7 = vld [vmem:[%s15883_s5 + $0x338] sm:$0xff] }
 0x9a0   :  { %6125 = vmatprep.mubr.f32.mxu1 %v5957_v52  ;;  %7569 = vmatpush3.bf16.msra.mxu1 %v7568_v12  ;;  %v7584_v12 = vpack.c.bf16 %v7020_v32, %v7019_v48  ;;  %v2935_v52 = vld [vmem:[%s15883_s5 + $0x150] sm:$0xff] }
 0x9a1   :  { %7433 = vmatmul.mubr.f32.vlgmr.msra.gmra.mrb[4].mxu0 %v5962_v53  ;;  %7571 = vmatprep.subr.bf16.mxu1 %v7570_v42  ;;  %v7586_v42 = vpack.c.bf16 %v7038_v8, %v7037_v15  ;;  %v2954_v53 = vld [vmem:[%s15883_s5 + $0x1e8] sm:$0xff]  ;;  %v2911_v32 = vld [vmem:[%s15883_s5 + $0x90] sm:$0xff]  ;;  %v7873_v15 = vunpack.i.l.bf16 %v15408_v4  ;;  %v7726_v8 = vpack.c.bf16 %v3006_v36, %v3005_v11 }
 0x9a2   :  { %7665 = vmatpush3.bf16.msra.mxu0 %v7664_v17  ;;  %6591 = vmatprep.mubr.f32.mxu0 %v6419_v62  ;;  %v7039_v17 = vld [vmem:[%s15883_s5 + $0x860] sm:$0xff]  ;;  %v15394_v62 = vpop.permute.xlu0 %6380  ;;  %v2918_v11 = vld [vmem:[%s15883_s5 + $0xc8] sm:$0xff] }
 0x9a3   :  { %6126 = vmatmul.mubr.f32.gmra.mrb[6].mxu1 %v5956_v20  ;;  %7667 = vmatprep.subr.bf16.mxu0 %v7666_v38  ;;  %v2936_v38 = vld [vmem:[%s15883_s5 + $0x158] sm:$0xff]  ;;  %v7686_v20 = vpack.c.bf16 %v2954_v53, %v2953_v14  ;;  %v5961_v5 = vsel %vm2573_vm9, %v7873_v15, %v7864_v13  ;;  %v6418_v53 = vsel %vm2573_vm9, %v15394_v62, %v7868_v21  ;;  %v3009_v13 = vld [vmem:[%s15883_s5 + $0x3a0] sm:$0xff] }
 0x9a4   :  { %7573 = vmatpush3.bf16.msra.mxu1 %v7572_v37  ;;  %6270 = vmatprep.mubr.f32.mxu1 %v5952_v35  ;;  %v7590_v37 = vpack.c.bf16 %v7040_v63, %v7039_v17  ;;  %v7592_v35 = vpack.c.bf16 %v7024_v29, %v7023_v22  ;;  %v2992_v14 = vld [vmem:[%s15883_s5 + $0x318] sm:$0xff]  ;;  %v3010_v22 = vld [vmem:[%s15883_s5 + $0x3a8] sm:$0xff] }
 0x9a5   :  { %7575 = vmatprep.subr.bf16.mxu1 %v7574_v10  ;;  %v7684_v10 = vpack.c.bf16 %v2936_v38, %v2935_v52  ;;  %v2914_v52 = vld [vmem:[%s15883_s5 + $0xa8] sm:$0xff]  ;;  %v7874_v38 = vunpack.i.h.bf16 %v15408_v4 }
 0x9a6   :  { %7669 = vmatpush3.bf16.msra.mxu0 %v7668_v49  ;;  %v2937_v49 = vld [vmem:[%s15883_s5 + $0x160] sm:$0xff]  ;;  %v15434_v18 = vpop.permute.xlu0 %7876 }
 0x9a7   :  { %7671 = vmatprep.subr.bf16.mxu0 %v7670_v55  ;;  %v2955_v55 = vld [vmem:[%s15883_s5 + $0x1f0] sm:$0xff]  ;;  %v7688_v26 = vpack.c.bf16 %v2938_v54, %v2937_v49  ;;  %v5960_v49 = vsel %vm2573_vm9, %v7854_v34, %v7873_v15  ;;  %v2994_v34 = vld [vmem:[%s15883_s5 + $0x328] sm:$0xff]  ;;  %v2901_v15 = vld [vmem:[%s15883_s5 + $0x40] sm:$0xff] }
 0x9a8   :  { %7577 = vmatpush3.bf16.msra.mxu1 %v7576_v19  ;;  %v7025_v19 = vld [vmem:[%s15883_s5 + $0x7f0] sm:$0xff]  ;;  %v7690_v23 = vpack.c.bf16 %v2956_v47, %v2955_v55  ;;  %v2916_v55 = vld [vmem:[%s15883_s5 + $0xb8] sm:$0xff]  ;;  %v6417_v47 = vsel %vm2573_vm9, %v7874_v38, %v15394_v62 }
 0x9a9   :  { %7579 = vmatprep.subr.bf16.mxu1 %v7578_v16  ;;  %v2909_v16 = vld [vmem:[%s15883_s5 + $0x80] sm:$0xff]  ;;  %v3011_v62 = vld [vmem:[%s15883_s5 + $0x3b0] sm:$0xff] }
 0x9aa   :  { %7673 = vmatpush3.bf16.msra.mxu0 %v7672_v27  ;;  %v2939_v27 = vld [vmem:[%s15883_s5 + $0x170] sm:$0xff]  ;;  %v15480_v17 = vpop.permute.xlu0 %7886 }
 0x9ab   :  { %7675 = vmatprep.subr.bf16.mxu0 %v7674_v6  ;;  %v7596_v6 = vpack.c.bf16 %v7026_v31, %v7025_v19  ;;  %v7692_v48 = vpack.c.bf16 %v2940_v2, %v2939_v27  ;;  %v7889_v29 = vunpack.i.h.bf16 %v15480_v17  ;;  %v2900_v27 = vld [vmem:[%s15883_s5 + $0x38] sm:$0xff]  ;;  %v7736_v2 = vpack.c.bf16 %v2994_v34, %v2993_v57  ;;  %v3002_v57 = vld [vmem:[%s15883_s5 + $0x368] sm:$0xff] }
 0x9ac   :  { %7581 = vmatpush3.bf16.msra.mxu1 %v7580_v1  ;;  %v7630_v1 = vpack.c.bf16 %v2910_v9, %v2909_v16 }
 0x9ad   :  { %7583 = vmatprep.subr.bf16.mxu1 %v7582_v59  ;;  %v15448_v59 = vpop.permute.xlu1 %7881 }
 0x9ae   :  { %7677 = vmatpush3.bf16.msra.mxu0 %v7676_v33  ;;  %v2912_v33 = vld [vmem:[%s15883_s5 + $0x98] sm:$0xff]  ;;  %v7883_v28 = vunpack.i.l.bf16 %v15448_v59 }
 0x9af   :  { %7679 = vmatprep.subr.bf16.mxu0 %v7678_v43  ;;  %v2989_v43 = vld [vmem:[%s15883_s5 + $0x300] sm:$0xff] }
 0x9b0   :  { %7585 = vmatpush3.bf16.msra.mxu1 %v7584_v12  ;;  %v3007_v12 = vld [vmem:[%s15883_s5 + $0x390] sm:$0xff]  ;;  %v7728_v63 = vpack.c.bf16 %v2990_v58, %v2989_v43 }
 0x9b1   :  { %7587 = vmatprep.subr.bf16.mxu1 %v7586_v42  ;;  %v7634_v42 = vpack.c.bf16 %v2912_v33, %v2911_v32  ;;  %v3014_v32 = vld [vmem:[%s15883_s5 + $0x3c8] sm:$0xff]  ;;  %v2919_v58 = vld [vmem:[%s15883_s5 + $0xd0] sm:$0xff] }
 0x9b2   :  { %7681 = vmatpush3.bf16.msra.mxu0 %v7680_v0  ;;  %v5951_v0 = vsel %vm2573_vm9, %v7839_v46, %v15271_v56  ;;  %v7730_v46 = vpack.c.bf16 %v3008_v44, %v3007_v12  ;;  %v2991_v56 = vld [vmem:[%s15883_s5 + $0x310] sm:$0xff]  ;;  %v2997_v44 = vld [vmem:[%s15883_s5 + $0x340] sm:$0xff] }
 0x9b3   :  { %7683 = vmatprep.subr.bf16.mxu0 %v7682_v51  ;;  %v2913_v51 = vld [vmem:[%s15883_s5 + $0xa0] sm:$0xff]  ;;  %v7732_v54 = vpack.c.bf16 %v2992_v14, %v2991_v56  ;;  %v2999_v14 = vld [vmem:[%s15883_s5 + $0x350] sm:$0xff] }
 0x9b4   :  { %7589 = vmatpush3.bf16.msra.mxu1 %v7588_v60  ;;  %v7879_v60 = vunpack.i.h.bf16 %v15434_v18  ;;  %v7638_v3 = vpack.c.bf16 %v2914_v52, %v2913_v51  ;;  %v2903_v51 = vld [vmem:[%s15883_s5 + $0x50] sm:$0xff]  ;;  %v2904_v52 = vld [vmem:[%s15883_s5 + $0x58] sm:$0xff] }
 0x9b5   :  { %7591 = vmatprep.subr.bf16.mxu1 %v7590_v37  ;;  %v7884_v37 = vunpack.i.h.bf16 %v15448_v59 }
 0x9b6   :  { %7685 = vmatpush3.bf16.msra.mxu0 %v7684_v10  ;;  %v7888_v10 = vunpack.i.l.bf16 %v15480_v17  ;;  %v6428_v21 = vsel %vm2573_vm9, %v7879_v60, %v7883_v28  ;;  %v2982_v17 = vld [vmem:[%s15883_s5 + $0x2c8] sm:$0xff] }
 0x9b7   :  { %7687 = vmatprep.subr.bf16.mxu0 %v7686_v20  ;;  %v2898_v20 = vld [vmem:[%s15883_s5 + $0x28] sm:$0xff]  ;;  %v6427_v19 = vsel %vm2573_vm9, %v7884_v37, %v7879_v60 }
 0x9b8   :  { %7593 = vmatpush3.bf16.msra.mxu1 %v7592_v35  ;;  %v2915_v35 = vld [vmem:[%s15883_s5 + $0xb0] sm:$0xff]  ;;  %v7640_v31 = vpack.c.bf16 %v2898_v20, %v2897_v30  ;;  %v6423_v16 = vsel %vm2573_vm9, %v7888_v10, %v7889_v29  ;;  %v2906_v30 = vld [vmem:[%s15883_s5 + $0x68] sm:$0xff]  ;;  %v15632_v20 = vpop.permute.xlu1 %6388 }
 0x9b9   :  { %7595 = vmatprep.subr.bf16.mxu1 %v7594_v50  ;;  %v7734_v50 = vpack.c.bf16 %v3010_v22, %v3009_v13  ;;  %v7642_v9 = vpack.c.bf16 %v2916_v55, %v2915_v35  ;;  %v3017_v13 = vld [vmem:[%s15883_s5 + $0x3e0] sm:$0xff]  ;;  %v3018_v22 = vld [vmem:[%s15883_s5 + $0x3e8] sm:$0xff]  ;;  %v2923_v35 = vld [vmem:[%s15883_s5 + $0xf0] sm:$0xff]  ;;  %v6422_v4 = vsel %vm2573_vm9, %v15632_v20, %v7888_v10 }
 0x9ba   :  { %7689 = vmatpush3.bf16.msra.mxu0 %v7688_v26  ;;  %v3012_v26 = vld [vmem:[%s15883_s5 + $0x3b8] sm:$0xff] }
 0x9bb   :  { %7691 = vmatprep.subr.bf16.mxu0 %v7690_v23  ;;  %v2899_v23 = vld [vmem:[%s15883_s5 + $0x30] sm:$0xff]  ;;  %v7738_v36 = vpack.c.bf16 %v3012_v26, %v3011_v62  ;;  %v2924_v55 = vld [vmem:[%s15883_s5 + $0xf8] sm:$0xff] }
 0x9bc   :  { %7597 = vmatpush3.bf16.msra.mxu1 %v7596_v6  ;;  %v2917_v6 = vld [vmem:[%s15883_s5 + $0xc0] sm:$0xff]  ;;  %v7644_v41 = vpack.c.bf16 %v2900_v27, %v2899_v23  ;;  %v7658_v62 = vpack.c.bf16 %v2924_v55, %v2923_v35  ;;  %v2907_v26 = vld [vmem:[%s15883_s5 + $0x70] sm:$0xff]  ;;  %v2974_v27 = vld [vmem:[%s15883_s5 + $0x288] sm:$0xff] }
 0x9bd   :  { %7631 = vmatprep.subr.bf16.mxu1 %v7630_v1  ;;  %v2995_v1 = vld [vmem:[%s15883_s5 + $0x330] sm:$0xff]  ;;  %v7646_v33 = vpack.c.bf16 %v2918_v11, %v2917_v6  ;;  %v2973_v23 = vld [vmem:[%s15883_s5 + $0x280] sm:$0xff]  ;;  %v3004_v11 = vld [vmem:[%s15883_s5 + $0x378] sm:$0xff] }
 0x9be   :  { %7693 = vmatpush3.bf16.msra.mxu0 %v7692_v48  ;;  %v3013_v48 = vld [vmem:[%s15883_s5 + $0x3c0] sm:$0xff]  ;;  %v7740_v43 = vpack.c.bf16 %v2996_v7, %v2995_v1  ;;  %v3003_v6 = vld [vmem:[%s15883_s5 + $0x370] sm:$0xff] }
 0x9bf   :  { %6271 = vmatmul.mubr.f32.vlgmr.msra.gmra.mrb[8].mxu1 %v5951_v0  ;;  %7727 = vmatprep.subr.bf16.mxu0 %v7726_v8  ;;  %v2902_v8 = vld [vmem:[%s15883_s5 + $0x48] sm:$0xff]  ;;  %v7742_v12 = vpack.c.bf16 %v3014_v32, %v3013_v48  ;;  %v3016_v0 = vld [vmem:[%s15883_s5 + $0x3d8] sm:$0xff]  ;;  %v7694_v32 = vpack.c.bf16 %v2974_v27, %v2973_v23  ;;  %v2979_v55 = vld [vmem:[%s15883_s5 + $0x2b0] sm:$0xff] }
 0x9c0   :  { %6275 = vmatprep.mubr.f32.mxu1 %v5961_v5  ;;  %7633 = vmatpush3.bf16.msra.mxu1 %v7632_v25  ;;  %v2920_v25 = vld [vmem:[%s15883_s5 + $0xd8] sm:$0xff]  ;;  %v7648_v39 = vpack.c.bf16 %v2902_v8, %v2901_v15  ;;  %v2921_v5 = vld [vmem:[%s15883_s5 + $0xe0] sm:$0xff]  ;;  %v7746_v56 = vpack.c.bf16 %v3016_v0, %v3015_v45  ;;  %v3022_v48 = vld [vmem:[%s15883_s5 + $0x408] sm:$0xff]  ;;  %v7878_v8 = vunpack.i.l.bf16 %v15434_v18 }
 0x9c1   :  { %6592 = vmatmul.mubr.f32.vlgmr.msra.gmra.mrb[6].mxu0 %v6418_v53  ;;  %7635 = vmatprep.subr.bf16.mxu1 %v7634_v42  ;;  %v2998_v42 = vld [vmem:[%s15883_s5 + $0x348] sm:$0xff]  ;;  %v3000_v53 = vld [vmem:[%s15883_s5 + $0x358] sm:$0xff]  ;;  %v3023_v18 = vld [vmem:[%s15883_s5 + $0x410] sm:$0xff] }
 0x9c2   :  { %6596 = vmatprep.mubr.f32.mxu0 %v6428_v21  ;;  %7729 = vmatpush3.bf16.msra.mxu0 %v7728_v63  ;;  %v7650_v63 = vpack.c.bf16 %v2920_v25, %v2919_v58  ;;  %v7744_v60 = vpack.c.bf16 %v2998_v42, %v2997_v44  ;;  %v2958_v15 = vld [vmem:[%s15883_s5 + $0x208] sm:$0xff]  ;;  %v2975_v58 = vld [vmem:[%s15883_s5 + $0x290] sm:$0xff]  ;;  %v2976_v25 = vld [vmem:[%s15883_s5 + $0x298] sm:$0xff] }
 0x9c3   :  { %6276 = vmatmul.mubr.f32.gmra.mrb[10].mxu1 %v5960_v49  ;;  %7731 = vmatprep.subr.bf16.mxu0 %v7730_v46  ;;  %v2922_v46 = vld [vmem:[%s15883_s5 + $0xe8] sm:$0xff]  ;;  %v15634_v49 = vpop.permute.xlu0 %7891  ;;  %v7698_v0 = vpack.c.bf16 %v2976_v25, %v2975_v58  ;;  %v2981_v23 = vld [vmem:[%s15883_s5 + $0x2c0] sm:$0xff]  ;;  %v2967_v25 = vld [vmem:[%s15883_s5 + $0x250] sm:$0xff] }
 0x9c4   :  { %7637 = vmatpush3.bf16.msra.mxu1 %v7636_v61  ;;  %6516 = vmatprep.mubr.f32.mxu1 %v6417_v47  ;;  %v7652_v61 = vpack.c.bf16 %v2904_v52, %v2903_v51  ;;  %v7654_v21 = vpack.c.bf16 %v2922_v46, %v2921_v5  ;;  %v7750_v47 = vpack.c.bf16 %v3018_v22, %v3017_v13  ;;  %v2960_v51 = vld [vmem:[%s15883_s5 + $0x218] sm:$0xff]  ;;  %v7894_v52 = vunpack.i.h.bf16 %v15634_v49 }
 0x9c5   :  { %6597 = vmatmul.mubr.f32.gmra.mrb[8].mxu0 %v6427_v19  ;;  %7639 = vmatprep.subr.bf16.mxu1 %v7638_v3  ;;  %v2905_v3 = vld [vmem:[%s15883_s5 + $0x60] sm:$0xff]  ;;  %v3019_v19 = vld [vmem:[%s15883_s5 + $0x3f0] sm:$0xff]  ;;  %v6416_v46 = vsel %vm2573_vm9, %v7878_v8, %v7874_v38 }
 0x9c6   :  { %7733 = vmatpush3.bf16.msra.mxu0 %v7732_v54  ;;  %6741 = vmatprep.mubr.f32.mxu0 %v6423_v16  ;;  %v7748_v54 = vpack.c.bf16 %v3000_v53, %v2999_v14  ;;  %v7656_v34 = vpack.c.bf16 %v2906_v30, %v2905_v3  ;;  %v2908_v16 = vld [vmem:[%s15883_s5 + $0x78] sm:$0xff]  ;;  %v2978_v14 = vld [vmem:[%s15883_s5 + $0x2a8] sm:$0xff]  ;;  %v3031_v8 = vld [vmem:[%s15883_s5 + $0x450] sm:$0xff] }
 0x9c7   :  { %7735 = vmatprep.subr.bf16.mxu0 %v7734_v50  ;;  %v3001_v50 = vld [vmem:[%s15883_s5 + $0x360] sm:$0xff]  ;;  %v15674_v1 = vpop.permute.xlu0 %7901  ;;  %v7660_v7 = vpack.c.bf16 %v2908_v16, %v2907_v26  ;;  %v2963_v16 = vld [vmem:[%s15883_s5 + $0x230] sm:$0xff] }
 0x9c8   :  { %7641 = vmatpush3.bf16.msra.mxu1 %v7640_v31  ;;  %v3020_v31 = vld [vmem:[%s15883_s5 + $0x3f8] sm:$0xff]  ;;  %v7904_v45 = vunpack.i.h.bf16 %v15674_v1  ;;  %v7903_v38 = vunpack.i.l.bf16 %v15674_v1 }
 0x9c9   :  { %7643 = vmatprep.subr.bf16.mxu1 %v7642_v9  ;;  %v7752_v9 = vpack.c.bf16 %v3002_v57, %v3001_v50 }
 0x9ca   :  { %7737 = vmatpush3.bf16.msra.mxu0 %v7736_v2  ;;  %v7754_v2 = vpack.c.bf16 %v3020_v31, %v3019_v19  ;;  %v3027_v31 = vld [vmem:[%s15883_s5 + $0x430] sm:$0xff] }
 0x9cb   :  { %7739 = vmatprep.subr.bf16.mxu0 %v7738_v36  ;;  %v15672_v36 = vpop.permute.xlu1 %7896  ;;  %v15712_v5 = vpop.permute.xlu0 %7906 }
 0x9cc   :  { %7645 = vmatpush3.bf16.msra.mxu1 %v7644_v41  ;;  %v3021_v41 = vld [vmem:[%s15883_s5 + $0x400] sm:$0xff]  ;;  %v7898_v53 = vunpack.i.l.bf16 %v15672_v36  ;;  %v7908_v3 = vunpack.i.l.bf16 %v15712_v5 }
 0x9cd   :  { %7647 = vmatprep.subr.bf16.mxu1 %v7646_v33  ;;  %v2957_v33 = vld [vmem:[%s15883_s5 + $0x200] sm:$0xff]  ;;  %v7758_v44 = vpack.c.bf16 %v3022_v48, %v3021_v41  ;;  %v2966_v41 = vld [vmem:[%s15883_s5 + $0x248] sm:$0xff]  ;;  %v2983_v48 = vld [vmem:[%s15883_s5 + $0x2d0] sm:$0xff] }
 0x9ce   :  { %7741 = vmatpush3.bf16.msra.mxu0 %v7740_v43  ;;  %v7756_v43 = vpack.c.bf16 %v3004_v11, %v3003_v6  ;;  %v7696_v42 = vpack.c.bf16 %v2958_v15, %v2957_v33  ;;  %v6421_v50 = vsel %vm2573_vm9, %v7898_v53, %v15632_v20  ;;  %v6424_v20 = vsel %vm2573_vm9, %v7889_v29, %v7908_v3  ;;  %v3030_v6 = vld [vmem:[%s15883_s5 + $0x448] sm:$0xff] }
 0x9cf   :  { %7743 = vmatprep.subr.bf16.mxu0 %v7742_v12  ;;  %v7893_v12 = vunpack.i.l.bf16 %v15634_v49  ;;  %v2961_v49 = vld [vmem:[%s15883_s5 + $0x220] sm:$0xff]  ;;  %v7710_v11 = vpack.c.bf16 %v2982_v17, %v2981_v23 }
 0x9d0   :  { %7649 = vmatpush3.bf16.msra.mxu1 %v7648_v39  ;;  %v3024_v39 = vld [vmem:[%s15883_s5 + $0x418] sm:$0xff] }
 0x9d1   :  { %7651 = vmatprep.subr.bf16.mxu1 %v7650_v63  ;;  %v2959_v63 = vld [vmem:[%s15883_s5 + $0x210] sm:$0xff]  ;;  %v7762_v13 = vpack.c.bf16 %v3024_v39, %v3023_v18  ;;  %v6425_v35 = vsel %vm2573_vm9, %v7894_v52, %v7893_v12  ;;  %v2970_v52 = vld [vmem:[%s15883_s5 + $0x268] sm:$0xff] }
 0x9d2   :  { %7745 = vmatpush3.bf16.msra.mxu0 %v7744_v60  ;;  %v15710_v60 = vpop.permute.xlu1 %6412  ;;  %v7700_v22 = vpack.c.bf16 %v2960_v51, %v2959_v63  ;;  %v2969_v51 = vld [vmem:[%s15883_s5 + $0x260] sm:$0xff] }
 0x9d3   :  { %7747 = vmatprep.subr.bf16.mxu0 %v7746_v56  ;;  %v2977_v56 = vld [vmem:[%s15883_s5 + $0x2a0] sm:$0xff]  ;;  %v6432_v30 = vsel %vm2573_vm9, %v7904_v45, %v15710_v60 }
 0x9d4   :  { %7653 = vmatpush3.bf16.msra.mxu1 %v7652_v61  ;;  %v6426_v61 = vsel %vm2573_vm9, %v7893_v12, %v7884_v37  ;;  %v3026_v37 = vld [vmem:[%s15883_s5 + $0x428] sm:$0xff]  ;;  %v7702_v10 = vpack.c.bf16 %v2978_v14, %v2977_v56  ;;  %v2968_v12 = vld [vmem:[%s15883_s5 + $0x258] sm:$0xff] }
 0x9d5   :  { %7655 = vmatprep.subr.bf16.mxu1 %v7654_v21  ;;  %v3025_v21 = vld [vmem:[%s15883_s5 + $0x420] sm:$0xff]  ;;  %v7716_v39 = vpack.c.bf16 %v2968_v12, %v2967_v25  ;;  %v2988_v56 = vld [vmem:[%s15883_s5 + $0x2f8] sm:$0xff] }
 0x9d6   :  { %7749 = vmatpush3.bf16.msra.mxu0 %v7748_v54  ;;  %v2962_v54 = vld [vmem:[%s15883_s5 + $0x228] sm:$0xff]  ;;  %v7766_v57 = vpack.c.bf16 %v3026_v37, %v3025_v21  ;;  %v2971_v21 = vld [vmem:[%s15883_s5 + $0x270] sm:$0xff]  ;;  %v2972_v37 = vld [vmem:[%s15883_s5 + $0x278] sm:$0xff] }
 0x9d7   :  { %7751 = vmatprep.subr.bf16.mxu0 %v7750_v47  ;;  %v2980_v47 = vld [vmem:[%s15883_s5 + $0x2b8] sm:$0xff]  ;;  %v7704_v19 = vpack.c.bf16 %v2962_v54, %v2961_v49  ;;  %v7899_v49 = vunpack.i.h.bf16 %v15672_v36  ;;  %v6420_v54 = vsel %vm2573_vm9, %v7869_v24, %v7898_v53 }
 0x9d8   :  { %7657 = vmatpush3.bf16.msra.mxu1 %v7656_v34  ;;  %v6431_v34 = vsel %vm2573_vm9, %v7903_v38, %v7904_v45  ;;  %v7706_v26 = vpack.c.bf16 %v2980_v47, %v2979_v55  ;;  %v3033_v45 = vld [vmem:[%s15883_s5 + $0x460] sm:$0xff] }
 0x9d9   :  { %7659 = vmatprep.subr.bf16.mxu1 %v7658_v62  ;;  %v3028_v62 = vld [vmem:[%s15883_s5 + $0x438] sm:$0xff] }
 0x9da   :  { %7753 = vmatpush3.bf16.msra.mxu0 %v7752_v9  ;;  %v2964_v9 = vld [vmem:[%s15883_s5 + $0x238] sm:$0xff]  ;;  %v7770_v29 = vpack.c.bf16 %v3028_v62, %v3027_v31 }
 0x9db   :  { %7755 = vmatprep.subr.bf16.mxu0 %v7754_v2  ;;  %v7708_v27 = vpack.c.bf16 %v2964_v9, %v2963_v16  ;;  %v3029_v2 = vld [vmem:[%s15883_s5 + $0x440] sm:$0xff] }
 0x9dc   :  { %7661 = vmatpush3.bf16.msra.mxu1 %v7660_v7  ;;  %v2965_v7 = vld [vmem:[%s15883_s5 + $0x240] sm:$0xff]  ;;  %v7774_v33 = vpack.c.bf16 %v3030_v6, %v3029_v2 }
 0x9dd   :  { %7695 = vmatprep.subr.bf16.mxu1 %v7694_v32  ;;  %v2984_v32 = vld [vmem:[%s15883_s5 + $0x2d8] sm:$0xff]  ;;  %v7712_v15 = vpack.c.bf16 %v2966_v41, %v2965_v7 }
 0x9de   :  { %7757 = vmatpush3.bf16.msra.mxu0 %v7756_v43  ;;  %v3032_v43 = vld [vmem:[%s15883_s5 + $0x458] sm:$0xff]  ;;  %v7714_v58 = vpack.c.bf16 %v2984_v32, %v2983_v48 }
 0x9df   :  { %6517 = vmatmul.mubr.f32.vlgmr.msra.gmra.mrb[12].mxu1 %v6416_v46  ;;  %7759 = vmatprep.subr.bf16.mxu0 %v7758_v44  ;;  %v7778_v18 = vpack.c.bf16 %v3032_v43, %v3031_v8  ;;  %v2987_v46 = vld [vmem:[%s15883_s5 + $0x2f0] sm:$0xff] }
 0x9e0   :  { %6521 = vmatprep.mubr.f32.mxu1 %v6426_v61  ;;  %7697 = vmatpush3.bf16.msra.mxu1 %v7696_v42  ;;  %v2986_v42 = vld [vmem:[%s15883_s5 + $0x2e8] sm:$0xff]  ;;  %v7720_v61 = vpack.c.bf16 %v2970_v52, %v2969_v51 }
 0x9e1   :  { %6742 = vmatmul.mubr.f32.vlgmr.msra.gmra.mrb[10].mxu0 %v6422_v4  ;;  %7699 = vmatprep.subr.bf16.mxu1 %v7698_v0  ;;  %v3034_v0 = vld [vmem:[%s15883_s5 + $0x468] sm:$0xff]  ;;  %v3036_v4 = vld [vmem:[%s15883_s5 + $0x478] sm:$0xff] }
 0x9e2   :  { %6746 = vmatprep.mubr.f32.mxu0 %v6432_v30  ;;  %7761 = vmatpush3.bf16.msra.mxu0 %v7758_v44  ;;  %v2985_v44 = vld [vmem:[%s15883_s5 + $0x2e0] sm:$0xff]  ;;  %v7782_v14 = vpack.c.bf16 %v3034_v0, %v3033_v45  ;;  %v7724_v30 = vpack.c.bf16 %v2972_v37, %v2971_v21 }
 0x9e3   :  { %6522 = vmatmul.mubr.f32.gmra.mrb[14].mxu1 %v6425_v35  ;;  %7763 = vmatprep.subr.bf16.mxu0 %v7762_v13  ;;  %v7718_v63 = vpack.c.bf16 %v2986_v42, %v2985_v44  ;;  %v6430_v35 = vsel %vm2573_vm9, %v7899_v49, %v7903_v38 }
 0x9e4   :  { %7701 = vmatpush3.bf16.msra.mxu1 %v7700_v22  ;;  %6666 = vmatprep.mubr.f32.mxu1 %v6421_v50  ;;  %v7722_v22 = vpack.c.bf16 %v2988_v56, %v2987_v46 }
 0x9e5   :  { %6747 = vmatmul.mubr.f32.gmra.mrb[12].mxu0 %v6431_v34  ;;  %7703 = vmatprep.subr.bf16.mxu1 %v7702_v10  ;;  %v7909_v10 = vunpack.i.h.bf16 %v15712_v5  ;;  %v6429_v5 = vsel %vm2573_vm9, %v7883_v28, %v7899_v49 }
 0x9e6   :  { %7765 = vmatpush3.bf16.msra.mxu0 %v7762_v13  ;;  %7467 = vmatprep.mubr.f32.mxu0 %v6424_v20  ;;  %v3035_v13 = vld [vmem:[%s15883_s5 + $0x470] sm:$0xff] }
 0x9e7   :  { %7767 = vmatprep.subr.bf16.mxu0 %v7766_v57  ;;  %v7786_v3 = vpack.c.bf16 %v3036_v4, %v3035_v13  ;;  %v6433_v55 = vsel %vm2573_vm9, %v15710_v60, %v7909_v10  ;;  %vm6836_vm9 = vcmask 261120  }
 0x9e8   :  { %7705 = vmatpush3.bf16.msra.mxu1 %v7704_v19 }
 0x9e9   :  { %7707 = vmatprep.subr.bf16.mxu1 %v7706_v26 }
 0x9ea   :  { %7769 = vmatpush3.bf16.msra.mxu0 %v7766_v57 }
 0x9eb   :  { %7771 = vmatprep.subr.bf16.mxu0 %v7770_v29 }
 0x9ec   :  { %7709 = vmatpush3.bf16.msra.mxu1 %v7708_v27 }
 0x9ed   :  { %7711 = vmatprep.subr.bf16.mxu1 %v7710_v11 }
 0x9ee   :  { %7773 = vmatpush3.bf16.msra.mxu0 %v7770_v29 }
 0x9ef   :  { %7775 = vmatprep.subr.bf16.mxu0 %v7774_v33 }
 0x9f0   :  { %7713 = vmatpush3.bf16.msra.mxu1 %v7712_v15 }
 0x9f1   :  { %7715 = vmatprep.subr.bf16.mxu1 %v7714_v58 }
 0x9f2   :  { %7777 = vmatpush3.bf16.msra.mxu0 %v7774_v33 }
 0x9f3   :  { %7779 = vmatprep.subr.bf16.mxu0 %v7778_v18 }
 0x9f4   :  { %7717 = vmatpush3.bf16.msra.mxu1 %v7716_v39 }
 0x9f5   :  { %7719 = vmatprep.subr.bf16.mxu1 %v7718_v63 }
 0x9f6   :  { %7781 = vmatpush3.bf16.msra.mxu0 %v7778_v18 }
 0x9f7   :  { %7783 = vmatprep.subr.bf16.mxu0 %v7782_v14 }
 0x9f8   :  { %7721 = vmatpush3.bf16.msra.mxu1 %v7720_v61 }
 0x9f9   :  { %7723 = vmatprep.subr.bf16.mxu1 %v7722_v22 }
 0x9fa   :  { %7785 = vmatpush3.bf16.msra.mxu0 %v7782_v14 }
 0x9fb   :  { %7787 = vmatprep.subr.bf16.mxu0 %v7786_v3 }
 0x9fc   :  { %7725 = vmatpush3.bf16.msra.mxu1 %v7724_v30 }
 0x9fe   :  { %7789 = vmatpush3.bf16.msra.mxu0 %v7786_v3 }
 0x9ff   :  { %6667 = vmatmul.mubr.f32.vlgmr.msra.gmra.mrb[16].mxu1 %v6420_v54 }
 0xa00   :  { %6671 = vmatprep.mubr.f32.mxu1 %v6430_v35 }
 0xa01   :  { %7468 = vmatmul.mubr.f32.vlgmr.msra.gmra.mrb[4].mxu0 %v6433_v55  ;;  %v7059_v55 = vld [vmem:[%s15884_s6] ss:$0 sm:$0xff] }
 0xa03   :  { %6672 = vmatmul.mubr.f32.gmra.mrb[18].mxu1 %v6429_v5 }
 0xa52   :  { %v7092_v36 = vpop.f32.mrb[0].mxu1 }
 0xa53   :  { %v7093_v47 = vpop.f32.mrb[1].mxu1  ;;  %v7168_v40 = vpop.f32.mrb[0].mxu0 }
 0xa54   :  { %v7094_v50 = vadd.f32 %v7093_v47, %v7092_v36  ;;  %v7169_v24 = vpop.f32.mrb[1].mxu0 }
 0xa55   :  { %v7170_v53 = vadd.f32 %v7169_v24, %v7168_v40 }
 0xa59   :  { %v7095_v57 = vpop.f32.mrb[2].mxu1 }
 0xa5a   :  { %v7096_v1 = vpop.f32.mrb[3].mxu1 }
 0xa5b   :  { %v7097_v34 = vadd.f32 %v7096_v1, %v7095_v57 }
 0xa5d   :  { %v7171_v38 = vpop.f32.mrb[2].mxu0 }
 0xa5e   :  { %v7172_v19 = vpop.f32.mrb[3].mxu0 }
 0xa5f   :  { %v7173_v31 = vadd.f32 %v7172_v19, %v7171_v38 }
 0xa72   :  { %v7130_v60 = vpop.f32.mrb[4].mxu1 }
 0xa73   :  { %v7131_v62 = vpop.f32.mrb[5].mxu1 }
 0xa74   :  { %v7132_v20 = vadd.f32 %v7131_v62, %v7130_v60 }
 0xa76   :  { %v6123_v26 = vadd.f32 %v7132_v20, %v7094_v50  ;;  %v7133_v59 = vpop.f32.mrb[6].mxu1 }
 0xa77   :  { %v7134_v16 = vpop.f32.mrb[7].mxu1 }
 0xa78   :  { %v7135_v28 = vadd.f32 %v7134_v16, %v7133_v59  ;;  %v6198_v9 = vadd.f32 %v7170_v53, %v6123_v26 }
 0xa7a   :  { %v6128_v23 = vadd.f32 %v7135_v28, %v7097_v34 }
 0xa7c   :  { %v6203_v17 = vadd.f32 %v7173_v31, %v6128_v23 }
 0xa92   :  { %v7206_v29 = vpop.f32.mrb[8].mxu1 }
 0xa93   :  { %v7207_v27 = vpop.f32.mrb[9].mxu1 }
 0xa94   :  { %v7208_v2 = vadd.f32 %v7207_v27, %v7206_v29  ;;  %v7300_v6 = vpop.f32.mrb[6].mxu0 }
 0xa95   :  { %v7301_v11 = vpop.f32.mrb[7].mxu0 }
 0xa96   :  { %v6273_v7 = vadd.f32 %v7208_v2, %v6198_v9  ;;  %v7302_v41 = vadd.f32 %v7301_v11, %v7300_v6  ;;  %v7209_v48 = vpop.f32.mrb[10].mxu1 }
 0xa97   :  { %v7210_v32 = vpop.f32.mrb[11].mxu1 }
 0xa98   :  { %v7211_v33 = vadd.f32 %v7210_v32, %v7209_v48  ;;  %v7303_v15 = vpop.f32.mrb[8].mxu0 }
 0xa99   :  { %v7304_v8 = vpop.f32.mrb[9].mxu0 }
 0xa9a   :  { %v6278_v43 = vadd.f32 %v7211_v33, %v6203_v17  ;;  %v7305_v58 = vadd.f32 %v7304_v8, %v7303_v15 }
 0xab2   :  { %v7262_v25 = vpop.f32.mrb[12].mxu1 }
 0xab3   :  { %v7263_v12 = vpop.f32.mrb[13].mxu1 }
 0xab4   :  { %v7264_v44 = vadd.f32 %v7263_v12, %v7262_v25  ;;  %v7376_v42 = vpop.f32.mrb[10].mxu0 }
 0xab5   :  { %v7377_v18 = vpop.f32.mrb[11].mxu0 }
 0xab6   :  { %v7795_v39 = vadd.f32 %v7264_v44, %v6273_v7  ;;  %v7378_v45 = vadd.f32 %v7377_v18, %v7376_v42  ;;  %v7265_v0 = vpop.f32.mrb[14].mxu1 }
 0xab7   :  { %v7266_v63 = vpop.f32.mrb[15].mxu1 }
 0xab8   :  { %v7267_v51 = vadd.f32 %v7266_v63, %v7265_v0  ;;  %v7379_v52 = vpop.f32.mrb[12].mxu0  ;;  %v7796_v46 = vadd.f32 %v7795_v39, %v7302_v41 }
 0xab9   :  { %v7380_v56 = vpop.f32.mrb[13].mxu0 }
 0xaba   :  { %v7790_v14 = vadd.f32 %v7267_v51, %v6278_v43  ;;  %v7381_v61 = vadd.f32 %v7380_v56, %v7379_v52 }
 0xabc   :  { %v7791_v13 = vadd.f32 %v7790_v14, %v7305_v58 }
 0xad2   :  { %v7338_v4 = vpop.f32.mrb[16].mxu1 }
 0xad3   :  { %v7339_v22 = vpop.f32.mrb[17].mxu1 }
 0xad4   :  { %v7340_v21 = vadd.f32 %v7339_v22, %v7338_v4  ;;  %v7469_v37 = vpop.f32.mrb[4].mxu0 }
 0xad5   :  { %v6818_v3 = vpop.f32.mrb[5].mxu0 }
 0xad6   :  { %v7797_v30 = vadd.f32 %v7796_v46, %v7340_v21  ;;  %v7341_v10 = vpop.f32.mrb[18].mxu1 }
 0xad7   :  { %v7342_v49 = vpop.f32.mrb[19].mxu1 }
 0xad8   :  { %v7798_v54 = vadd.f32 %v7797_v30, %v7378_v45  ;;  %v7343_v35 = vadd.f32 %v7342_v49, %v7341_v10 }
 0xada   :  { %v7799_v5 = vadd.f32 %v7798_v54, %v6818_v3  ;;  %v7792_v36 = vadd.f32 %v7791_v13, %v7343_v35 }
 0xadc   :  { %v6834_v47 = vadd.f32 %v7799_v5, %v7059_v55  ;;  %v7793_v40 = vadd.f32 %v7792_v36, %v7381_v61 }
 0xade   :  { %6837 = vst.msk [vmem:[#allocation8] sm:$0xff] %vm6836_vm9, %v6834_v47  ;;  %v7794_v50 = vadd.f32 %v7793_v40, %v7469_v37 }
 0xae0   :  { %v6835_v24 = vadd.f32 %v7794_v50, %v7059_v55 }
 0xae2   :  { %6838 = vst.msk [vmem:[#allocation8 + $0x8] sm:$0xff] %vm6836_vm9, %v6835_v24 }
 0xae3   :  { %8092 = shalt.err (!%p8089_p5)
}
 0xae4   :  { %s8093_s25 = scalar_lea.hbm %s15885_s7, 256 }
 0xae5   :  { %p8094_p6 = scmp.ne.s32.totalorder %s15885_s7, %s8093_s25  ;;  %p8097_p7 = scmp.lt.u32.totalorder %s8093_s25, %s15885_s7 }
 0xae7   :  { %p8099_p8 = pnand %p8097_p7, %p8094_p6 }
 0xae9   :  { %8102 = shalt.err (!%p8099_p8)
}
 0xaea   :  { %s8123_s1 = smov 128   ;;  %s8124_s10 = smov 8  }
 0xaeb   :  { %6850 = dma.vmem_to_hbm [thread:$0]  %s6845_s22, 256, %s15885_s7, [#allocation3], %s8123_s1, %s8123_s1, %s8124_s10  }
 0xaec   :  { %8107 = dma.done.wait [#allocation3], 256  }
 0xaed   :  { %8108 = vsyncadd [#allocation3], 4294967040 }
 0xaee   :  { %6854 = vsyncpa [#allocation3], 1 }
 0xaef   :  { %6855 = vsyncpa [#allocation4], 1 }
 0xaf0   :  { %6856 = vsyncpa [#allocation6], 1 }

</bundles_post_ra>
